<compile_context>
chip_gen: v5e
topology: v5e:2x2
jax: 0.10.0
libtpu: 0.0.40
codegen_flags: <defaults>
</compile_context>

<pallas_src>
import functools

import jax
import jax.numpy as jnp
from jax import lax
from jax.experimental import pallas as pl
from jax.experimental.pallas import tpu as pltpu

NEG_SLOPE = 0.2            # args.activ assumed to be LeakyReLU(0.2)
BN_EPS = 1e-5
VMEM_LIMIT = 32 * 1024 * 1024   # explicit scoped-VMEM limit (v5e default is only 16 MiB)


def _leaky(y):
    return jnp.where(y > 0, y, NEG_SLOPE * y)


def _choose_tile(n, cap):
    """Largest tile <= cap that evenly divides n (n itself if n <= cap)."""
    if n <= cap:
        return n
    for t in range(cap, 7, -1):
        if n % t == 0:
            return t
    return n


# ---------------------------------------------------------------------------
# Kernel A: pairwise negative squared distance + packed per-point projection
#   d[i,j] = -||x_i - x_j||^2 = 2 x_i.x_j - ||x_i||^2 - ||x_j||^2   (f32 output)
#   yp     = x @ [W_top | W_bot - W_top]      (one lane-dense (TM, 2*Cout) bf16 store)
# Tiled over N rows; the full-x j-side block stays resident across the row tiles.
# ---------------------------------------------------------------------------
def _dist_proj_kernel(xi_ref, xall_ref, wp_ref, d_ref, yp_ref):
    xi = xi_ref[0]                                          # (TM, C) f32
    xa = xall_ref[0]                                        # (N,  C) f32
    xx_i = jnp.sum(xi * xi, axis=-1, keepdims=True)         # (TM, 1)
    sq_a = xa * xa
    ones_row = jnp.ones((1, xa.shape[1]), jnp.float32)
    # ||x_j||^2 as a (1, N) row via a matmul (avoids an in-kernel transpose).
    xx_j = lax.dot_general(ones_row, sq_a, (((1,), (1,)), ((), ())),
                           preferred_element_type=jnp.float32)          # (1, N)

    xi_b = xi.astype(jnp.bfloat16)
    xa_b = xa.astype(jnp.bfloat16)
    inner = lax.dot_general(xi_b, xa_b, (((1,), (1,)), ((), ())),
                            preferred_element_type=jnp.float32)         # (TM, N)
    d_ref[0] = 2.0 * inner - xx_i - xx_j

    yp_ref[0] = jnp.dot(xi_b, wp_ref[...],
                        preferred_element_type=jnp.float32).astype(jnp.bfloat16)


def dist_and_project(x_bnc, w_pack):
    B, N, C = x_bnc.shape
    two_cout = w_pack.shape[1]
    TM = _choose_tile(N, 256)
    return pl.pallas_call(
        _dist_proj_kernel,
        out_shape=(
            jax.ShapeDtypeStruct((B, N, N), jnp.float32),
            jax.ShapeDtypeStruct((B, N, two_cout), jnp.bfloat16),
        ),
        grid=(B, N // TM),
        in_specs=[
            pl.BlockSpec((1, TM, C), lambda b, m: (b, m, 0)),
            pl.BlockSpec((1, N, C), lambda b, m: (b, 0, 0)),     # resident j-side block
            pl.BlockSpec((C, two_cout), lambda b, m: (0, 0)),
        ],
        out_specs=[
            pl.BlockSpec((1, TM, N), lambda b, m: (b, m, 0)),
            pl.BlockSpec((1, TM, two_cout), lambda b, m: (b, m, 0)),
        ],
        compiler_params=pltpu.CompilerParams(
            dimension_semantics=("parallel", "parallel"),
            vmem_limit_bytes=VMEM_LIMIT),
    )(x_bnc, x_bnc, w_pack)


# ---------------------------------------------------------------------------
# Kernel B: EdgeConv combine.  Reduce over k FIRST (bf16 max/min), pick per-channel
# by the sign of the folded BN scale, then apply (+y_ctr)*scale+shift and LeakyReLU
# once.  Exact, because a per-channel monotone affine + LeakyReLU commute with max.
# ---------------------------------------------------------------------------
def _edge_combine_kernel(g_ref, yp_ref, sc_ref, sh_ref, o_ref, *, cout):
    g = g_ref[0]                                            # (K, TN, Cout) bf16
    m_pos = jnp.max(g, axis=0)                              # (TN, Cout) bf16
    m_neg = jnp.min(g, axis=0)
    sc = sc_ref[...]                                        # (1, Cout) f32
    sh = sh_ref[...]
    sel = jnp.where(sc >= 0.0, m_pos, m_neg).astype(jnp.float32)
    yc = yp_ref[0][:, cout:].astype(jnp.float32)            # center contribution
    o_ref[0] = _leaky((sel + yc) * sc + sh)


def edge_combine(g, yp, scale, shift):
    B, K, N, Cout = g.shape
    TN = _choose_tile(N, 512)
    kern = functools.partial(_edge_combine_kernel, cout=Cout)
    return pl.pallas_call(
        kern,
        out_shape=jax.ShapeDtypeStruct((B, N, Cout), jnp.float32),
        grid=(B, N // TN),
        in_specs=[
            pl.BlockSpec((1, K, TN, Cout), lambda b, n: (b, 0, n, 0)),
            pl.BlockSpec((1, TN, 2 * Cout), lambda b, n: (b, n, 0)),
            pl.BlockSpec((1, Cout), lambda b, n: (0, 0)),
            pl.BlockSpec((1, Cout), lambda b, n: (0, 0)),
        ],
        out_specs=pl.BlockSpec((1, TN, Cout), lambda b, n: (b, n, 0)),
        compiler_params=pltpu.CompilerParams(
            dimension_semantics=("parallel", "parallel"),
            vmem_limit_bytes=VMEM_LIMIT),
    )(g, yp, scale, shift)


def edge_conv_layer(x, w_pack, scale, shift, k):
    # TODO(synk): kNN top-k selection and the data-dependent neighbor gather stay in
    # XLA (lax.top_k / vmap fancy indexing); only projected rows are gathered thanks to
    # the 1x1-conv linearity split, so the (B,N,K,2C) edge tensor never exists.
    cout = w_pack.shape[1] // 2
    d, yp = dist_and_project(x, w_pack)          # (B,N,N) f32, (B,N,2*Cout) bf16
    _, idx = lax.top_k(d, k)                     # (B, N, k)
    y_nbr = yp[..., :cout]                       # (B, N, Cout) bf16
    idx_t = jnp.swapaxes(idx, 1, 2)              # (B, k, N)
    g = jax.vmap(lambda rows, ii: rows[ii])(y_nbr, idx_t)   # (B, k, N, Cout)
    return edge_combine(g, yp, scale, shift)     # (B, N, Cout) f32


# ---------------------------------------------------------------------------
# Kernel C: conv5 (1x1 Conv1d, w_c5 row-split over x1..x4 so the concat buffer never
# exists) + BN + activ + global max/avg pooling over points (N-tiled reduction with
# VMEM accumulators, init/finalize via pl.when).  Output: packed pooled (B, 2, 1024).
# ---------------------------------------------------------------------------
def _conv5_pool_kernel(x1_ref, x2_ref, x3_ref, x4_ref,
                       w5a_ref, w5b_ref, w5c_ref, w5d_ref,
                       s5_ref, h5_ref, o_ref, mx_ref, sm_ref, *, inv_n):
    n = pl.program_id(1)

    @pl.when(n == 0)
    def _init():
        mx_ref[...] = jnp.full(mx_ref.shape, -jnp.inf, jnp.float32)
        sm_ref[...] = jnp.zeros(sm_ref.shape, jnp.float32)

    y = (jnp.dot(x1_ref[0].astype(jnp.bfloat16), w5a_ref[...],
                 preferred_element_type=jnp.float32)
         + jnp.dot(x2_ref[0].astype(jnp.bfloat16), w5b_ref[...],
                   preferred_element_type=jnp.float32)
         + jnp.dot(x3_ref[0].astype(jnp.bfloat16), w5c_ref[...],
                   preferred_element_type=jnp.float32)
         + jnp.dot(x4_ref[0].astype(jnp.bfloat16), w5d_ref[...],
                   preferred_element_type=jnp.float32))               # (TN, 1024)
    y = _leaky(y * s5_ref[...] + h5_ref[...])
    mx_ref[...] = jnp.maximum(mx_ref[...], jnp.max(y, axis=0, keepdims=True))
    sm_ref[...] = sm_ref[...] + jnp.sum(y, axis=0, keepdims=True)

    @pl.when(n == pl.num_programs(1) - 1)
    def _finalize():
        o_ref[0] = jnp.concatenate([mx_ref[...], sm_ref[...] * inv_n], axis=0)


def conv5_pool(x1, x2, x3, x4, p):
    B, N, _ = x1.shape
    C5 = p["w5a"].shape[1]
    TN = _choose_tile(N, 512)
    kern = functools.partial(_conv5_pool_kernel, inv_n=1.0 / N)
    return pl.pallas_call(
        kern,
        out_shape=jax.ShapeDtypeStruct((B, 2, C5), jnp.float32),
        grid=(B, N // TN),
        in_specs=[
            pl.BlockSpec((1, TN, x1.shape[2]), lambda b, n: (b, n, 0)),
            pl.BlockSpec((1, TN, x2.shape[2]), lambda b, n: (b, n, 0)),
            pl.BlockSpec((1, TN, x3.shape[2]), lambda b, n: (b, n, 0)),
            pl.BlockSpec((1, TN, x4.shape[2]), lambda b, n: (b, n, 0)),
            pl.BlockSpec(p["w5a"].shape, lambda b, n: (0, 0)),
            pl.BlockSpec(p["w5b"].shape, lambda b, n: (0, 0)),
            pl.BlockSpec(p["w5c"].shape, lambda b, n: (0, 0)),
            pl.BlockSpec(p["w5d"].shape, lambda b, n: (0, 0)),
            pl.BlockSpec(p["s5"].shape, lambda b, n: (0, 0)),
            pl.BlockSpec(p["h5"].shape, lambda b, n: (0, 0)),
        ],
        out_specs=pl.BlockSpec((1, 2, C5), lambda b, n: (b, 0, 0)),
        scratch_shapes=[
            pltpu.VMEM((1, C5), jnp.float32),   # running max
            pltpu.VMEM((1, C5), jnp.float32),   # running sum
        ],
        compiler_params=pltpu.CompilerParams(
            dimension_semantics=("parallel", "arbitrary"),
            vmem_limit_bytes=VMEM_LIMIT),
    )(x1, x2, x3, x4, p["w5a"], p["w5b"], p["w5c"], p["w5d"], p["s5"], p["h5"])


# ---------------------------------------------------------------------------
# Kernel D: fused MLP head (linear1+bn6+activ, linear2+bn7+activ, linear3) consuming
# the pooled features for ALL batches at once (M = B matmuls).  Dropout = identity.
# ---------------------------------------------------------------------------
def _head_kernel(p_ref, w1a_ref, w1b_ref, s6_ref, h6_ref,
                 w2_ref, b2_ref, s7_ref, h7_ref, w3_ref, b3_ref, o_ref):
    pooled = p_ref[...]                                     # (B, 2, 1024) f32
    mx = pooled[:, 0, :].astype(jnp.bfloat16)               # max-pool
    av = pooled[:, 1, :].astype(jnp.bfloat16)               # avg-pool
    # [max, avg] @ W_l1 == max @ W_l1[:1024] + avg @ W_l1[1024:]   (no concat)
    h = (jnp.dot(mx, w1a_ref[...], preferred_element_type=jnp.float32)
         + jnp.dot(av, w1b_ref[...], preferred_element_type=jnp.float32))
    h = _leaky(h * s6_ref[...] + h6_ref[...])               # bn6 + activ; dp1 = id
    h = jnp.dot(h.astype(jnp.bfloat16), w2_ref[...],
                preferred_element_type=jnp.float32) + b2_ref[...]
    h = _leaky(h * s7_ref[...] + h7_ref[...])               # bn7 + activ; dp2 = id
    o_ref[...] = jnp.dot(h.astype(jnp.bfloat16), w3_ref[...],
                         preferred_element_type=jnp.float32) + b3_ref[...]


def mlp_head(pooled, p):
    B = pooled.shape[0]
    num_class = p["w_l3"].shape[1]
    return pl.pallas_call(
        _head_kernel,
        out_shape=jax.ShapeDtypeStruct((B, num_class), jnp.float32),
    )(pooled, p["w1a"], p["w1b"], p["s6"], p["h6"],
      p["w_l2"], p["b_l2"], p["s7"], p["h7"], p["w_l3"], p["b_l3"])


# ---------------------------------------------------------------------------
# Full forward
# ---------------------------------------------------------------------------
def dgcnn_forward(x_bcn, params, k):
    p = params
    # x_bcn: (B, 3, N) -- PyTorch layout; convert to channels-last for kernels.
    x = jnp.transpose(x_bcn, (0, 2, 1)).astype(jnp.float32)            # (B, N, 3)

    x1 = edge_conv_layer(x,  p["wp1"], p["s1"], p["h1"], k)            # (B, N, 64)
    x2 = edge_conv_layer(x1, p["wp2"], p["s2"], p["h2"], k)            # (B, N, 64)
    x3 = edge_conv_layer(x2, p["wp3"], p["s3"], p["h3"], k)            # (B, N, 128)
    x4 = edge_conv_layer(x3, p["wp4"], p["s4"], p["h4"], k)            # (B, N, 256)

    pooled = conv5_pool(x1, x2, x3, x4, p)                             # (B, 2, 1024)
    logits = mlp_head(pooled, p)                                       # (B, num_class)
    trans_feat = None
    return logits, trans_feat


# ---------------------------------------------------------------------------
# Deterministic parameter initialization (shapes from the module __init__).
# BatchNorm folded to per-channel (scale, shift); EdgeConv weights packed as
# [W_top | W_bot - W_top]; w_c5 row-split over x1..x4; w_l1 split for max/avg.
# ---------------------------------------------------------------------------
def init_params(key, num_class=40):
    keys = list(jax.random.split(key, 24))
    it = iter(keys)

    def dense_w(cin, cout):
        return (jax.random.normal(next(it), (cin, cout), jnp.float32)
                / jnp.sqrt(jnp.float32(cin)))

    def bn_fold(c):
        k1, k2, k3, k4 = jax.random.split(next(it), 4)
        gamma = 1.0 + 0.1 * jax.random.normal(k1, (c,), jnp.float32)
        beta = 0.1 * jax.random.normal(k2, (c,), jnp.float32)
        mean = 0.1 * jax.random.normal(k3, (c,), jnp.float32)
        var = 1.0 + 0.1 * jnp.abs(jax.random.normal(k4, (c,), jnp.float32))
        scale = gamma / jnp.sqrt(var + BN_EPS)
        shift = beta - mean * scale
        return scale.reshape(1, c), shift.reshape(1, c)

    def edge_w(cin, cout):
        w = dense_w(2 * cin, cout)                   # (2C, Cout) as in Conv2d 1x1
        w_top = w[:cin]                              # multiplies (nbr - ctr)
        w_dlt = w[cin:] - w[:cin]                    # ctr coefficient after expansion
        return jnp.concatenate([w_top, w_dlt], axis=1).astype(jnp.bfloat16)  # (C, 2Cout)

    p = {}
    p["wp1"] = edge_w(3, 64);      p["s1"], p["h1"] = bn_fold(64)
    p["wp2"] = edge_w(64, 64);     p["s2"], p["h2"] = bn_fold(64)
    p["wp3"] = edge_w(64, 128);    p["s3"], p["h3"] = bn_fold(128)
    p["wp4"] = edge_w(128, 256);   p["s4"], p["h4"] = bn_fold(256)

    w5 = dense_w(512, 1024).astype(jnp.bfloat16)     # conv5 weight, row-split over x1..x4
    p["w5a"], p["w5b"] = w5[:64], w5[64:128]
    p["w5c"], p["w5d"] = w5[128:256], w5[256:512]
    p["s5"], p["h5"] = bn_fold(1024)

    wl1 = dense_w(2048, 512).astype(jnp.bfloat16)    # linear1, split for max / avg pool
    p["w1a"], p["w1b"] = wl1[:1024], wl1[1024:]
    p["s6"], p["h6"] = bn_fold(512)
    p["w_l2"] = dense_w(512, 256).astype(jnp.bfloat16)
    p["b_l2"] = 0.1 * jax.random.normal(next(it), (1, 256), jnp.float32)
    p["s7"], p["h7"] = bn_fold(256)
    p["w_l3"] = dense_w(256, num_class).astype(jnp.bfloat16)
    p["b_l3"] = 0.1 * jax.random.normal(next(it), (1, num_class), jnp.float32)
    return p


if __name__ == "__main__":
    B, N, K = 2, 16, 4          # small test: batch=2, 16 points, n_knn=4
    NUM_CLASS = 40

    key = jax.random.PRNGKey(0)
    kx, kp = jax.random.split(key)
    x = jax.random.normal(kx, (B, 3, N), jnp.float32)   # PyTorch layout (B, C=3, N)
    params = init_params(kp, NUM_CLASS)

    fwd = jax.jit(functools.partial(dgcnn_forward, k=K))
    logits, trans_feat = fwd(x, params)
    jax.block_until_ready(logits)

    assert logits.shape == (B, NUM_CLASS), logits.shape
    assert trans_feat is None
    print("KERNEL_OK")
</pallas_src>

<mosaic_0001>
module attributes {stable_mosaic.version = 11 : i64} {
  func.func @_dist_proj_kernel(%arg0: i32, %arg1: i32, %arg2: memref<1x16x3xf32, #tpu.memory_space<vmem>>, %arg3: memref<1x16x3xf32, #tpu.memory_space<vmem>>, %arg4: memref<3x128xbf16, #tpu.memory_space<vmem>>, %arg5: memref<1x16x16xf32, #tpu.memory_space<vmem>>, %arg6: memref<1x16x128xbf16, #tpu.memory_space<vmem>>) attributes {dimension_semantics = [#tpu.dimension_semantics<parallel>, #tpu.dimension_semantics<parallel>], iteration_bounds = array<i64: 2, 1>, scalar_prefetch = 0 : i64, scratch_operands = 0 : i64, tpu.core_type = #tpu.core_type<tc>, window_params = [{transform_indices = @transform_0, window_bounds = array<i64: 1, 16, 3>}, {transform_indices = @transform_1, window_bounds = array<i64: 1, 16, 3>}, {pipeline_mode = #tpu.pipeline_mode<synchronous>, transform_indices = @transform_2, window_bounds = array<i64: 3, 128>}, {transform_indices = @transform_3, window_bounds = array<i64: 1, 16, 16>}, {transform_indices = @transform_4, window_bounds = array<i64: 1, 16, 128>}]} {
    %c0 = arith.constant 0 : index
    %c0_0 = arith.constant 0 : index
    %c0_1 = arith.constant 0 : index
    %0 = vector.load %arg2[%c0, %c0_0, %c0_1] : memref<1x16x3xf32, #tpu.memory_space<vmem>>, vector<1x16x3xf32>
    %1 = vector.shape_cast %0 : vector<1x16x3xf32> to vector<16x3xf32>
    %c0_2 = arith.constant 0 : index
    %c0_3 = arith.constant 0 : index
    %c0_4 = arith.constant 0 : index
    %2 = vector.load %arg3[%c0_2, %c0_3, %c0_4] : memref<1x16x3xf32, #tpu.memory_space<vmem>>, vector<1x16x3xf32>
    %3 = vector.shape_cast %2 : vector<1x16x3xf32> to vector<16x3xf32>
    %4 = arith.mulf %1, %1 : vector<16x3xf32>
    %cst = arith.constant dense<0.000000e+00> : vector<16xf32>
    %5 = vector.multi_reduction <add>, %4, %cst [1] : vector<16x3xf32> to vector<16xf32>
    %6 = vector.shape_cast %5 : vector<16xf32> to vector<16x1xf32>
    %7 = arith.mulf %3, %3 : vector<16x3xf32>
    %cst_5 = arith.constant 1.000000e+00 : f32
    %8 = vector.broadcast %cst_5 : f32 to vector<1x3xf32>
    %cst_6 = arith.constant dense<0.000000e+00> : vector<1x16xf32>
    %9 = tpu.matmul %8, %7, %cst_6 {dimension_numbers = #tpu.dot_dimension_numbers<[1], [1], [0], [0], [0, 0, 1, 0], [], []>} : vector<1x3xf32>, vector<16x3xf32>, vector<1x16xf32> -> vector<1x16xf32>
    %10 = arith.truncf %1 : vector<16x3xf32> to vector<16x3xbf16>
    %11 = arith.truncf %3 : vector<16x3xf32> to vector<16x3xbf16>
    %cst_7 = arith.constant dense<0.000000e+00> : vector<16x16xf32>
    %12 = tpu.matmul %10, %11, %cst_7 {dimension_numbers = #tpu.dot_dimension_numbers<[1], [1], [0], [0], [0, 0, 1, 0], [], []>} : vector<16x3xbf16>, vector<16x3xbf16>, vector<16x16xf32> -> vector<16x16xf32>
    %cst_8 = arith.constant 2.000000e+00 : f32
    %13 = vector.broadcast %cst_8 : f32 to vector<16x16xf32>
    %14 = arith.mulf %13, %12 : vector<16x16xf32>
    %15 = vector.broadcast %6 : vector<16x1xf32> to vector<16x16xf32>
    %16 = arith.subf %14, %15 : vector<16x16xf32>
    %17 = vector.broadcast %9 : vector<1x16xf32> to vector<16x16xf32>
    %18 = arith.subf %16, %17 : vector<16x16xf32>
    %c0_9 = arith.constant 0 : index
    %c0_10 = arith.constant 0 : index
    %c0_11 = arith.constant 0 : index
    %19 = vector.load %arg5[%c0_9, %c0_10, %c0_11] : memref<1x16x16xf32, #tpu.memory_space<vmem>>, vector<1x16x16xf32>
    %20 = vector.shape_cast %19 : vector<1x16x16xf32> to vector<16x16xf32>
    %21 = vector.shape_cast %18 : vector<16x16xf32> to vector<1x16x16xf32>
    tpu.vector_store %arg5[%c0_9, %c0_10, %c0_11], %21 {strides = array<i32>} : memref<1x16x16xf32, #tpu.memory_space<vmem>>, vector<1x16x16xf32>,
    %c0_12 = arith.constant 0 : index
    %c0_13 = arith.constant 0 : index
    %22 = vector.load %arg4[%c0_12, %c0_13] : memref<3x128xbf16, #tpu.memory_space<vmem>>, vector<3x128xbf16>
    %cst_14 = arith.constant dense<0.000000e+00> : vector<16x128xf32>
    %23 = tpu.matmul %10, %22, %cst_14 {dimension_numbers = #tpu.dot_dimension_numbers<[1], [0], [0], [1], [0, 0, 1, 1], [], []>} : vector<16x3xbf16>, vector<3x128xbf16>, vector<16x128xf32> -> vector<16x128xf32>
    %24 = arith.truncf %23 : vector<16x128xf32> to vector<16x128xbf16>
    %c0_15 = arith.constant 0 : index
    %c0_16 = arith.constant 0 : index
    %c0_17 = arith.constant 0 : index
    %25 = vector.load %arg6[%c0_15, %c0_16, %c0_17] : memref<1x16x128xbf16, #tpu.memory_space<vmem>>, vector<1x16x128xbf16>
    %26 = vector.shape_cast %25 : vector<1x16x128xbf16> to vector<16x128xbf16>
    %27 = vector.shape_cast %24 : vector<16x128xbf16> to vector<1x16x128xbf16>
    tpu.vector_store %arg6[%c0_15, %c0_16, %c0_17], %27 {strides = array<i32>} : memref<1x16x128xbf16, #tpu.memory_space<vmem>>, vector<1x16x128xbf16>,
    return
  }
  func.func @transform_0(%arg0: i32, %arg1: i32) -> (i32, i32, i32) {
    %c0_i32 = arith.constant 0 : i32
    %c0_i32_0 = arith.constant 0 : i32
    return %arg0, %arg1, %c0_i32 : i32, i32, i32
  }
  func.func @transform_1(%arg0: i32, %arg1: i32) -> (i32, i32, i32) {
    %c0_i32 = arith.constant 0 : i32
    %c0_i32_0 = arith.constant 0 : i32
    %c0_i32_1 = arith.constant 0 : i32
    return %arg0, %c0_i32, %c0_i32_0 : i32, i32, i32
  }
  func.func @transform_2(%arg0: i32, %arg1: i32) -> (i32, i32) {
    %c0_i32 = arith.constant 0 : i32
    %c0_i32_0 = arith.constant 0 : i32
    %c0_i32_1 = arith.constant 0 : i32
    return %c0_i32, %c0_i32_0 : i32, i32
  }
  func.func @transform_3(%arg0: i32, %arg1: i32) -> (i32, i32, i32) {
    %c0_i32 = arith.constant 0 : i32
    %c0_i32_0 = arith.constant 0 : i32
    return %arg0, %arg1, %c0_i32 : i32, i32, i32
  }
  func.func @transform_4(%arg0: i32, %arg1: i32) -> (i32, i32, i32) {
    %c0_i32 = arith.constant 0 : i32
    %c0_i32_0 = arith.constant 0 : i32
    return %arg0, %arg1, %c0_i32 : i32, i32, i32
  }
}

module attributes {stable_mosaic.version = 11 : i64} {
  func.func @_dist_proj_kernel(%arg0: i32, %arg1: i32, %arg2: memref<1x16x64xf32, #tpu.memory_space<vmem>>, %arg3: memref<1x16x64xf32, #tpu.memory_space<vmem>>, %arg4: memref<64x128xbf16, #tpu.memory_space<vmem>>, %arg5: memref<1x16x16xf32, #tpu.memory_space<vmem>>, %arg6: memref<1x16x128xbf16, #tpu.memory_space<vmem>>) attributes {dimension_semantics = [#tpu.dimension_semantics<parallel>, #tpu.dimension_semantics<parallel>], iteration_bounds = array<i64: 2, 1>, scalar_prefetch = 0 : i64, scratch_operands = 0 : i64, tpu.core_type = #tpu.core_type<tc>, window_params = [{transform_indices = @transform_0, window_bounds = array<i64: 1, 16, 64>}, {transform_indices = @transform_1, window_bounds = array<i64: 1, 16, 64>}, {pipeline_mode = #tpu.pipeline_mode<synchronous>, transform_indices = @transform_2, window_bounds = array<i64: 64, 128>}, {transform_indices = @transform_3, window_bounds = array<i64: 1, 16, 16>}, {transform_indices = @transform_4, window_bounds = array<i64: 1, 16, 128>}]} {
    %c0 = arith.constant 0 : index
    %c0_0 = arith.constant 0 : index
    %c0_1 = arith.constant 0 : index
    %0 = vector.load %arg2[%c0, %c0_0, %c0_1] : memref<1x16x64xf32, #tpu.memory_space<vmem>>, vector<1x16x64xf32>
    %1 = vector.shape_cast %0 : vector<1x16x64xf32> to vector<16x64xf32>
    %c0_2 = arith.constant 0 : index
    %c0_3 = arith.constant 0 : index
    %c0_4 = arith.constant 0 : index
    %2 = vector.load %arg3[%c0_2, %c0_3, %c0_4] : memref<1x16x64xf32, #tpu.memory_space<vmem>>, vector<1x16x64xf32>
    %3 = vector.shape_cast %2 : vector<1x16x64xf32> to vector<16x64xf32>
    %4 = arith.mulf %1, %1 : vector<16x64xf32>
    %cst = arith.constant dense<0.000000e+00> : vector<16xf32>
    %5 = vector.multi_reduction <add>, %4, %cst [1] : vector<16x64xf32> to vector<16xf32>
    %6 = vector.shape_cast %5 : vector<16xf32> to vector<16x1xf32>
    %7 = arith.mulf %3, %3 : vector<16x64xf32>
    %cst_5 = arith.constant 1.000000e+00 : f32
    %8 = vector.broadcast %cst_5 : f32 to vector<1x64xf32>
    %cst_6 = arith.constant dense<0.000000e+00> : vector<1x16xf32>
    %9 = tpu.matmul %8, %7, %cst_6 {dimension_numbers = #tpu.dot_dimension_numbers<[1], [1], [0], [0], [0, 0, 1, 0], [], []>} : vector<1x64xf32>, vector<16x64xf32>, vector<1x16xf32> -> vector<1x16xf32>
    %10 = arith.truncf %1 : vector<16x64xf32> to vector<16x64xbf16>
    %11 = arith.truncf %3 : vector<16x64xf32> to vector<16x64xbf16>
    %cst_7 = arith.constant dense<0.000000e+00> : vector<16x16xf32>
    %12 = tpu.matmul %10, %11, %cst_7 {dimension_numbers = #tpu.dot_dimension_numbers<[1], [1], [0], [0], [0, 0, 1, 0], [], []>} : vector<16x64xbf16>, vector<16x64xbf16>, vector<16x16xf32> -> vector<16x16xf32>
    %cst_8 = arith.constant 2.000000e+00 : f32
    %13 = vector.broadcast %cst_8 : f32 to vector<16x16xf32>
    %14 = arith.mulf %13, %12 : vector<16x16xf32>
    %15 = vector.broadcast %6 : vector<16x1xf32> to vector<16x16xf32>
    %16 = arith.subf %14, %15 : vector<16x16xf32>
    %17 = vector.broadcast %9 : vector<1x16xf32> to vector<16x16xf32>
    %18 = arith.subf %16, %17 : vector<16x16xf32>
    %c0_9 = arith.constant 0 : index
    %c0_10 = arith.constant 0 : index
    %c0_11 = arith.constant 0 : index
    %19 = vector.load %arg5[%c0_9, %c0_10, %c0_11] : memref<1x16x16xf32, #tpu.memory_space<vmem>>, vector<1x16x16xf32>
    %20 = vector.shape_cast %19 : vector<1x16x16xf32> to vector<16x16xf32>
    %21 = vector.shape_cast %18 : vector<16x16xf32> to vector<1x16x16xf32>
    tpu.vector_store %arg5[%c0_9, %c0_10, %c0_11], %21 {strides = array<i32>} : memref<1x16x16xf32, #tpu.memory_space<vmem>>, vector<1x16x16xf32>,
    %c0_12 = arith.constant 0 : index
    %c0_13 = arith.constant 0 : index
    %22 = vector.load %arg4[%c0_12, %c0_13] : memref<64x128xbf16, #tpu.memory_space<vmem>>, vector<64x128xbf16>
    %cst_14 = arith.constant dense<0.000000e+00> : vector<16x128xf32>
    %23 = tpu.matmul %10, %22, %cst_14 {dimension_numbers = #tpu.dot_dimension_numbers<[1], [0], [0], [1], [0, 0, 1, 1], [], []>} : vector<16x64xbf16>, vector<64x128xbf16>, vector<16x128xf32> -> vector<16x128xf32>
    %24 = arith.truncf %23 : vector<16x128xf32> to vector<16x128xbf16>
    %c0_15 = arith.constant 0 : index
    %c0_16 = arith.constant 0 : index
    %c0_17 = arith.constant 0 : index
    %25 = vector.load %arg6[%c0_15, %c0_16, %c0_17] : memref<1x16x128xbf16, #tpu.memory_space<vmem>>, vector<1x16x128xbf16>
    %26 = vector.shape_cast %25 : vector<1x16x128xbf16> to vector<16x128xbf16>
    %27 = vector.shape_cast %24 : vector<16x128xbf16> to vector<1x16x128xbf16>
    tpu.vector_store %arg6[%c0_15, %c0_16, %c0_17], %27 {strides = array<i32>} : memref<1x16x128xbf16, #tpu.memory_space<vmem>>, vector<1x16x128xbf16>,
    return
  }
  func.func @transform_0(%arg0: i32, %arg1: i32) -> (i32, i32, i32) {
    %c0_i32 = arith.constant 0 : i32
    %c0_i32_0 = arith.constant 0 : i32
    return %arg0, %arg1, %c0_i32 : i32, i32, i32
  }
  func.func @transform_1(%arg0: i32, %arg1: i32) -> (i32, i32, i32) {
    %c0_i32 = arith.constant 0 : i32
    %c0_i32_0 = arith.constant 0 : i32
    %c0_i32_1 = arith.constant 0 : i32
    return %arg0, %c0_i32, %c0_i32_0 : i32, i32, i32
  }
  func.func @transform_2(%arg0: i32, %arg1: i32) -> (i32, i32) {
    %c0_i32 = arith.constant 0 : i32
    %c0_i32_0 = arith.constant 0 : i32
    %c0_i32_1 = arith.constant 0 : i32
    return %c0_i32, %c0_i32_0 : i32, i32
  }
  func.func @transform_3(%arg0: i32, %arg1: i32) -> (i32, i32, i32) {
    %c0_i32 = arith.constant 0 : i32
    %c0_i32_0 = arith.constant 0 : i32
    return %arg0, %arg1, %c0_i32 : i32, i32, i32
  }
  func.func @transform_4(%arg0: i32, %arg1: i32) -> (i32, i32, i32) {
    %c0_i32 = arith.constant 0 : i32
    %c0_i32_0 = arith.constant 0 : i32
    return %arg0, %arg1, %c0_i32 : i32, i32, i32
  }
}

module attributes {stable_mosaic.version = 11 : i64} {
  func.func @_edge_combine_kernel(%arg0: i32, %arg1: i32, %arg2: memref<1x4x16x64xbf16, #tpu.memory_space<vmem>>, %arg3: memref<1x16x128xbf16, #tpu.memory_space<vmem>>, %arg4: memref<1x64xf32, #tpu.memory_space<vmem>>, %arg5: memref<1x64xf32, #tpu.memory_space<vmem>>, %arg6: memref<1x16x64xf32, #tpu.memory_space<vmem>>) attributes {dimension_semantics = [#tpu.dimension_semantics<parallel>, #tpu.dimension_semantics<parallel>], iteration_bounds = array<i64: 2, 1>, scalar_prefetch = 0 : i64, scratch_operands = 0 : i64, tpu.core_type = #tpu.core_type<tc>, window_params = [{transform_indices = @transform_0, window_bounds = array<i64: 1, 4, 16, 64>}, {transform_indices = @transform_1, window_bounds = array<i64: 1, 16, 128>}, {pipeline_mode = #tpu.pipeline_mode<synchronous>, transform_indices = @transform_2, window_bounds = array<i64: 1, 64>}, {pipeline_mode = #tpu.pipeline_mode<synchronous>, transform_indices = @transform_3, window_bounds = array<i64: 1, 64>}, {transform_indices = @transform_4, window_bounds = array<i64: 1, 16, 64>}]} {
    %c0 = arith.constant 0 : index
    %c0_0 = arith.constant 0 : index
    %c0_1 = arith.constant 0 : index
    %c0_2 = arith.constant 0 : index
    %0 = vector.load %arg2[%c0, %c0_0, %c0_1, %c0_2] : memref<1x4x16x64xbf16, #tpu.memory_space<vmem>>, vector<1x4x16x64xbf16>
    %1 = vector.shape_cast %0 : vector<1x4x16x64xbf16> to vector<4x16x64xbf16>
    %cst = arith.constant dense<0xFF80> : vector<16x64xbf16>
    %2 = vector.multi_reduction <maximumf>, %1, %cst [0] : vector<4x16x64xbf16> to vector<16x64xbf16>
    %cst_3 = arith.constant dense<0x7F80> : vector<16x64xbf16>
    %3 = vector.multi_reduction <minimumf>, %1, %cst_3 [0] : vector<4x16x64xbf16> to vector<16x64xbf16>
    %c0_4 = arith.constant 0 : index
    %c0_5 = arith.constant 0 : index
    %4 = vector.load %arg4[%c0_4, %c0_5] : memref<1x64xf32, #tpu.memory_space<vmem>>, vector<1x64xf32>
    %c0_6 = arith.constant 0 : index
    %c0_7 = arith.constant 0 : index
    %5 = vector.load %arg5[%c0_6, %c0_7] : memref<1x64xf32, #tpu.memory_space<vmem>>, vector<1x64xf32>
    %cst_8 = arith.constant 0.000000e+00 : f32
    %6 = vector.broadcast %cst_8 : f32 to vector<1x64xf32>
    %7 = arith.cmpf oge, %4, %6 : vector<1x64xf32>
    %8 = vector.shape_cast %7 : vector<1x64xi1> to vector<1x64xi1>
    %9 = vector.broadcast %8 : vector<1x64xi1> to vector<16x64xi1>
    %10 = arith.select %9, %2, %3 : vector<16x64xi1>, vector<16x64xbf16>
    %11 = arith.extf %10 : vector<16x64xbf16> to vector<16x64xf32>
    %c0_9 = arith.constant 0 : index
    %c0_10 = arith.constant 0 : index
    %c0_11 = arith.constant 0 : index
    %12 = vector.load %arg3[%c0_9, %c0_10, %c0_11] : memref<1x16x128xbf16, #tpu.memory_space<vmem>>, vector<1x16x128xbf16>
    %13 = vector.shape_cast %12 : vector<1x16x128xbf16> to vector<16x128xbf16>
    %14 = vector.extract_strided_slice %13 {offsets = [0, 64], sizes = [16, 64], strides = [1, 1]} : vector<16x128xbf16> to vector<16x64xbf16>
    %15 = arith.extf %14 : vector<16x64xbf16> to vector<16x64xf32>
    %16 = arith.addf %11, %15 : vector<16x64xf32>
    %17 = vector.broadcast %4 : vector<1x64xf32> to vector<16x64xf32>
    %18 = arith.mulf %16, %17 : vector<16x64xf32>
    %19 = vector.broadcast %5 : vector<1x64xf32> to vector<16x64xf32>
    %20 = arith.addf %18, %19 : vector<16x64xf32>
    %cst_12 = arith.constant 0.000000e+00 : f32
    %21 = vector.broadcast %cst_12 : f32 to vector<16x64xf32>
    %22 = arith.cmpf ogt, %20, %21 : vector<16x64xf32>
    %cst_13 = arith.constant 2.000000e-01 : f32
    %23 = vector.broadcast %cst_13 : f32 to vector<16x64xf32>
    %24 = arith.mulf %23, %20 : vector<16x64xf32>
    %25 = arith.select %22, %20, %24 : vector<16x64xi1>, vector<16x64xf32>
    %c0_14 = arith.constant 0 : index
    %c0_15 = arith.constant 0 : index
    %c0_16 = arith.constant 0 : index
    %26 = vector.load %arg6[%c0_14, %c0_15, %c0_16] : memref<1x16x64xf32, #tpu.memory_space<vmem>>, vector<1x16x64xf32>
    %27 = vector.shape_cast %26 : vector<1x16x64xf32> to vector<16x64xf32>
    %28 = vector.shape_cast %25 : vector<16x64xf32> to vector<1x16x64xf32>
    tpu.vector_store %arg6[%c0_14, %c0_15, %c0_16], %28 {strides = array<i32>} : memref<1x16x64xf32, #tpu.memory_space<vmem>>, vector<1x16x64xf32>,
    return
  }
  func.func @transform_0(%arg0: i32, %arg1: i32) -> (i32, i32, i32, i32) {
    %c0_i32 = arith.constant 0 : i32
    %c0_i32_0 = arith.constant 0 : i32
    %c0_i32_1 = arith.constant 0 : i32
    return %arg0, %c0_i32, %arg1, %c0_i32_0 : i32, i32, i32, i32
  }
  func.func @transform_1(%arg0: i32, %arg1: i32) -> (i32, i32, i32) {
    %c0_i32 = arith.constant 0 : i32
    %c0_i32_0 = arith.constant 0 : i32
    return %arg0, %arg1, %c0_i32 : i32, i32, i32
  }
  func.func @transform_2(%arg0: i32, %arg1: i32) -> (i32, i32) {
    %c0_i32 = arith.constant 0 : i32
    %c0_i32_0 = arith.constant 0 : i32
    %c0_i32_1 = arith.constant 0 : i32
    return %c0_i32, %c0_i32_0 : i32, i32
  }
  func.func @transform_3(%arg0: i32, %arg1: i32) -> (i32, i32) {
    %c0_i32 = arith.constant 0 : i32
    %c0_i32_0 = arith.constant 0 : i32
    %c0_i32_1 = arith.constant 0 : i32
    return %c0_i32, %c0_i32_0 : i32, i32
  }
  func.func @transform_4(%arg0: i32, %arg1: i32) -> (i32, i32, i32) {
    %c0_i32 = arith.constant 0 : i32
    %c0_i32_0 = arith.constant 0 : i32
    return %arg0, %arg1, %c0_i32 : i32, i32, i32
  }
}

module attributes {stable_mosaic.version = 11 : i64} {
  func.func @_dist_proj_kernel(%arg0: i32, %arg1: i32, %arg2: memref<1x16x64xf32, #tpu.memory_space<vmem>>, %arg3: memref<1x16x64xf32, #tpu.memory_space<vmem>>, %arg4: memref<64x256xbf16, #tpu.memory_space<vmem>>, %arg5: memref<1x16x16xf32, #tpu.memory_space<vmem>>, %arg6: memref<1x16x256xbf16, #tpu.memory_space<vmem>>) attributes {dimension_semantics = [#tpu.dimension_semantics<parallel>, #tpu.dimension_semantics<parallel>], iteration_bounds = array<i64: 2, 1>, scalar_prefetch = 0 : i64, scratch_operands = 0 : i64, tpu.core_type = #tpu.core_type<tc>, window_params = [{transform_indices = @transform_0, window_bounds = array<i64: 1, 16, 64>}, {transform_indices = @transform_1, window_bounds = array<i64: 1, 16, 64>}, {pipeline_mode = #tpu.pipeline_mode<synchronous>, transform_indices = @transform_2, window_bounds = array<i64: 64, 256>}, {transform_indices = @transform_3, window_bounds = array<i64: 1, 16, 16>}, {transform_indices = @transform_4, window_bounds = array<i64: 1, 16, 256>}]} {
    %c0 = arith.constant 0 : index
    %c0_0 = arith.constant 0 : index
    %c0_1 = arith.constant 0 : index
    %0 = vector.load %arg2[%c0, %c0_0, %c0_1] : memref<1x16x64xf32, #tpu.memory_space<vmem>>, vector<1x16x64xf32>
    %1 = vector.shape_cast %0 : vector<1x16x64xf32> to vector<16x64xf32>
    %c0_2 = arith.constant 0 : index
    %c0_3 = arith.constant 0 : index
    %c0_4 = arith.constant 0 : index
    %2 = vector.load %arg3[%c0_2, %c0_3, %c0_4] : memref<1x16x64xf32, #tpu.memory_space<vmem>>, vector<1x16x64xf32>
    %3 = vector.shape_cast %2 : vector<1x16x64xf32> to vector<16x64xf32>
    %4 = arith.mulf %1, %1 : vector<16x64xf32>
    %cst = arith.constant dense<0.000000e+00> : vector<16xf32>
    %5 = vector.multi_reduction <add>, %4, %cst [1] : vector<16x64xf32> to vector<16xf32>
    %6 = vector.shape_cast %5 : vector<16xf32> to vector<16x1xf32>
    %7 = arith.mulf %3, %3 : vector<16x64xf32>
    %cst_5 = arith.constant 1.000000e+00 : f32
    %8 = vector.broadcast %cst_5 : f32 to vector<1x64xf32>
    %cst_6 = arith.constant dense<0.000000e+00> : vector<1x16xf32>
    %9 = tpu.matmul %8, %7, %cst_6 {dimension_numbers = #tpu.dot_dimension_numbers<[1], [1], [0], [0], [0, 0, 1, 0], [], []>} : vector<1x64xf32>, vector<16x64xf32>, vector<1x16xf32> -> vector<1x16xf32>
    %10 = arith.truncf %1 : vector<16x64xf32> to vector<16x64xbf16>
    %11 = arith.truncf %3 : vector<16x64xf32> to vector<16x64xbf16>
    %cst_7 = arith.constant dense<0.000000e+00> : vector<16x16xf32>
    %12 = tpu.matmul %10, %11, %cst_7 {dimension_numbers = #tpu.dot_dimension_numbers<[1], [1], [0], [0], [0, 0, 1, 0], [], []>} : vector<16x64xbf16>, vector<16x64xbf16>, vector<16x16xf32> -> vector<16x16xf32>
    %cst_8 = arith.constant 2.000000e+00 : f32
    %13 = vector.broadcast %cst_8 : f32 to vector<16x16xf32>
    %14 = arith.mulf %13, %12 : vector<16x16xf32>
    %15 = vector.broadcast %6 : vector<16x1xf32> to vector<16x16xf32>
    %16 = arith.subf %14, %15 : vector<16x16xf32>
    %17 = vector.broadcast %9 : vector<1x16xf32> to vector<16x16xf32>
    %18 = arith.subf %16, %17 : vector<16x16xf32>
    %c0_9 = arith.constant 0 : index
    %c0_10 = arith.constant 0 : index
    %c0_11 = arith.constant 0 : index
    %19 = vector.load %arg5[%c0_9, %c0_10, %c0_11] : memref<1x16x16xf32, #tpu.memory_space<vmem>>, vector<1x16x16xf32>
    %20 = vector.shape_cast %19 : vector<1x16x16xf32> to vector<16x16xf32>
    %21 = vector.shape_cast %18 : vector<16x16xf32> to vector<1x16x16xf32>
    tpu.vector_store %arg5[%c0_9, %c0_10, %c0_11], %21 {strides = array<i32>} : memref<1x16x16xf32, #tpu.memory_space<vmem>>, vector<1x16x16xf32>,
    %c0_12 = arith.constant 0 : index
    %c0_13 = arith.constant 0 : index
    %22 = vector.load %arg4[%c0_12, %c0_13] : memref<64x256xbf16, #tpu.memory_space<vmem>>, vector<64x256xbf16>
    %cst_14 = arith.constant dense<0.000000e+00> : vector<16x256xf32>
    %23 = tpu.matmul %10, %22, %cst_14 {dimension_numbers = #tpu.dot_dimension_numbers<[1], [0], [0], [1], [0, 0, 1, 1], [], []>} : vector<16x64xbf16>, vector<64x256xbf16>, vector<16x256xf32> -> vector<16x256xf32>
    %24 = arith.truncf %23 : vector<16x256xf32> to vector<16x256xbf16>
    %c0_15 = arith.constant 0 : index
    %c0_16 = arith.constant 0 : index
    %c0_17 = arith.constant 0 : index
    %25 = vector.load %arg6[%c0_15, %c0_16, %c0_17] : memref<1x16x256xbf16, #tpu.memory_space<vmem>>, vector<1x16x256xbf16>
    %26 = vector.shape_cast %25 : vector<1x16x256xbf16> to vector<16x256xbf16>
    %27 = vector.shape_cast %24 : vector<16x256xbf16> to vector<1x16x256xbf16>
    tpu.vector_store %arg6[%c0_15, %c0_16, %c0_17], %27 {strides = array<i32>} : memref<1x16x256xbf16, #tpu.memory_space<vmem>>, vector<1x16x256xbf16>,
    return
  }
  func.func @transform_0(%arg0: i32, %arg1: i32) -> (i32, i32, i32) {
    %c0_i32 = arith.constant 0 : i32
    %c0_i32_0 = arith.constant 0 : i32
    return %arg0, %arg1, %c0_i32 : i32, i32, i32
  }
  func.func @transform_1(%arg0: i32, %arg1: i32) -> (i32, i32, i32) {
    %c0_i32 = arith.constant 0 : i32
    %c0_i32_0 = arith.constant 0 : i32
    %c0_i32_1 = arith.constant 0 : i32
    return %arg0, %c0_i32, %c0_i32_0 : i32, i32, i32
  }
  func.func @transform_2(%arg0: i32, %arg1: i32) -> (i32, i32) {
    %c0_i32 = arith.constant 0 : i32
    %c0_i32_0 = arith.constant 0 : i32
    %c0_i32_1 = arith.constant 0 : i32
    return %c0_i32, %c0_i32_0 : i32, i32
  }
  func.func @transform_3(%arg0: i32, %arg1: i32) -> (i32, i32, i32) {
    %c0_i32 = arith.constant 0 : i32
    %c0_i32_0 = arith.constant 0 : i32
    return %arg0, %arg1, %c0_i32 : i32, i32, i32
  }
  func.func @transform_4(%arg0: i32, %arg1: i32) -> (i32, i32, i32) {
    %c0_i32 = arith.constant 0 : i32
    %c0_i32_0 = arith.constant 0 : i32
    return %arg0, %arg1, %c0_i32 : i32, i32, i32
  }
}

module attributes {stable_mosaic.version = 11 : i64} {
  func.func @_edge_combine_kernel(%arg0: i32, %arg1: i32, %arg2: memref<1x4x16x128xbf16, #tpu.memory_space<vmem>>, %arg3: memref<1x16x256xbf16, #tpu.memory_space<vmem>>, %arg4: memref<1x128xf32, #tpu.memory_space<vmem>>, %arg5: memref<1x128xf32, #tpu.memory_space<vmem>>, %arg6: memref<1x16x128xf32, #tpu.memory_space<vmem>>) attributes {dimension_semantics = [#tpu.dimension_semantics<parallel>, #tpu.dimension_semantics<parallel>], iteration_bounds = array<i64: 2, 1>, scalar_prefetch = 0 : i64, scratch_operands = 0 : i64, tpu.core_type = #tpu.core_type<tc>, window_params = [{transform_indices = @transform_0, window_bounds = array<i64: 1, 4, 16, 128>}, {transform_indices = @transform_1, window_bounds = array<i64: 1, 16, 256>}, {pipeline_mode = #tpu.pipeline_mode<synchronous>, transform_indices = @transform_2, window_bounds = array<i64: 1, 128>}, {pipeline_mode = #tpu.pipeline_mode<synchronous>, transform_indices = @transform_3, window_bounds = array<i64: 1, 128>}, {transform_indices = @transform_4, window_bounds = array<i64: 1, 16, 128>}]} {
    %c0 = arith.constant 0 : index
    %c0_0 = arith.constant 0 : index
    %c0_1 = arith.constant 0 : index
    %c0_2 = arith.constant 0 : index
    %0 = vector.load %arg2[%c0, %c0_0, %c0_1, %c0_2] : memref<1x4x16x128xbf16, #tpu.memory_space<vmem>>, vector<1x4x16x128xbf16>
    %1 = vector.shape_cast %0 : vector<1x4x16x128xbf16> to vector<4x16x128xbf16>
    %cst = arith.constant dense<0xFF80> : vector<16x128xbf16>
    %2 = vector.multi_reduction <maximumf>, %1, %cst [0] : vector<4x16x128xbf16> to vector<16x128xbf16>
    %cst_3 = arith.constant dense<0x7F80> : vector<16x128xbf16>
    %3 = vector.multi_reduction <minimumf>, %1, %cst_3 [0] : vector<4x16x128xbf16> to vector<16x128xbf16>
    %c0_4 = arith.constant 0 : index
    %c0_5 = arith.constant 0 : index
    %4 = vector.load %arg4[%c0_4, %c0_5] : memref<1x128xf32, #tpu.memory_space<vmem>>, vector<1x128xf32>
    %c0_6 = arith.constant 0 : index
    %c0_7 = arith.constant 0 : index
    %5 = vector.load %arg5[%c0_6, %c0_7] : memref<1x128xf32, #tpu.memory_space<vmem>>, vector<1x128xf32>
    %cst_8 = arith.constant 0.000000e+00 : f32
    %6 = vector.broadcast %cst_8 : f32 to vector<1x128xf32>
    %7 = arith.cmpf oge, %4, %6 : vector<1x128xf32>
    %8 = vector.shape_cast %7 : vector<1x128xi1> to vector<1x128xi1>
    %9 = vector.broadcast %8 : vector<1x128xi1> to vector<16x128xi1>
    %10 = arith.select %9, %2, %3 : vector<16x128xi1>, vector<16x128xbf16>
    %11 = arith.extf %10 : vector<16x128xbf16> to vector<16x128xf32>
    %c0_9 = arith.constant 0 : index
    %c0_10 = arith.constant 0 : index
    %c0_11 = arith.constant 0 : index
    %12 = vector.load %arg3[%c0_9, %c0_10, %c0_11] : memref<1x16x256xbf16, #tpu.memory_space<vmem>>, vector<1x16x256xbf16>
    %13 = vector.shape_cast %12 : vector<1x16x256xbf16> to vector<16x256xbf16>
    %14 = vector.extract_strided_slice %13 {offsets = [0, 128], sizes = [16, 128], strides = [1, 1]} : vector<16x256xbf16> to vector<16x128xbf16>
    %15 = arith.extf %14 : vector<16x128xbf16> to vector<16x128xf32>
    %16 = arith.addf %11, %15 : vector<16x128xf32>
    %17 = vector.broadcast %4 : vector<1x128xf32> to vector<16x128xf32>
    %18 = arith.mulf %16, %17 : vector<16x128xf32>
    %19 = vector.broadcast %5 : vector<1x128xf32> to vector<16x128xf32>
    %20 = arith.addf %18, %19 : vector<16x128xf32>
    %cst_12 = arith.constant 0.000000e+00 : f32
    %21 = vector.broadcast %cst_12 : f32 to vector<16x128xf32>
    %22 = arith.cmpf ogt, %20, %21 : vector<16x128xf32>
    %cst_13 = arith.constant 2.000000e-01 : f32
    %23 = vector.broadcast %cst_13 : f32 to vector<16x128xf32>
    %24 = arith.mulf %23, %20 : vector<16x128xf32>
    %25 = arith.select %22, %20, %24 : vector<16x128xi1>, vector<16x128xf32>
    %c0_14 = arith.constant 0 : index
    %c0_15 = arith.constant 0 : index
    %c0_16 = arith.constant 0 : index
    %26 = vector.load %arg6[%c0_14, %c0_15, %c0_16] : memref<1x16x128xf32, #tpu.memory_space<vmem>>, vector<1x16x128xf32>
    %27 = vector.shape_cast %26 : vector<1x16x128xf32> to vector<16x128xf32>
    %28 = vector.shape_cast %25 : vector<16x128xf32> to vector<1x16x128xf32>
    tpu.vector_store %arg6[%c0_14, %c0_15, %c0_16], %28 {strides = array<i32>} : memref<1x16x128xf32, #tpu.memory_space<vmem>>, vector<1x16x128xf32>,
    return
  }
  func.func @transform_0(%arg0: i32, %arg1: i32) -> (i32, i32, i32, i32) {
    %c0_i32 = arith.constant 0 : i32
    %c0_i32_0 = arith.constant 0 : i32
    %c0_i32_1 = arith.constant 0 : i32
    return %arg0, %c0_i32, %arg1, %c0_i32_0 : i32, i32, i32, i32
  }
  func.func @transform_1(%arg0: i32, %arg1: i32) -> (i32, i32, i32) {
    %c0_i32 = arith.constant 0 : i32
    %c0_i32_0 = arith.constant 0 : i32
    return %arg0, %arg1, %c0_i32 : i32, i32, i32
  }
  func.func @transform_2(%arg0: i32, %arg1: i32) -> (i32, i32) {
    %c0_i32 = arith.constant 0 : i32
    %c0_i32_0 = arith.constant 0 : i32
    %c0_i32_1 = arith.constant 0 : i32
    return %c0_i32, %c0_i32_0 : i32, i32
  }
  func.func @transform_3(%arg0: i32, %arg1: i32) -> (i32, i32) {
    %c0_i32 = arith.constant 0 : i32
    %c0_i32_0 = arith.constant 0 : i32
    %c0_i32_1 = arith.constant 0 : i32
    return %c0_i32, %c0_i32_0 : i32, i32
  }
  func.func @transform_4(%arg0: i32, %arg1: i32) -> (i32, i32, i32) {
    %c0_i32 = arith.constant 0 : i32
    %c0_i32_0 = arith.constant 0 : i32
    return %arg0, %arg1, %c0_i32 : i32, i32, i32
  }
}

module attributes {stable_mosaic.version = 11 : i64} {
  func.func @_dist_proj_kernel(%arg0: i32, %arg1: i32, %arg2: memref<1x16x128xf32, #tpu.memory_space<vmem>>, %arg3: memref<1x16x128xf32, #tpu.memory_space<vmem>>, %arg4: memref<128x512xbf16, #tpu.memory_space<vmem>>, %arg5: memref<1x16x16xf32, #tpu.memory_space<vmem>>, %arg6: memref<1x16x512xbf16, #tpu.memory_space<vmem>>) attributes {dimension_semantics = [#tpu.dimension_semantics<parallel>, #tpu.dimension_semantics<parallel>], iteration_bounds = array<i64: 2, 1>, scalar_prefetch = 0 : i64, scratch_operands = 0 : i64, tpu.core_type = #tpu.core_type<tc>, window_params = [{transform_indices = @transform_0, window_bounds = array<i64: 1, 16, 128>}, {transform_indices = @transform_1, window_bounds = array<i64: 1, 16, 128>}, {pipeline_mode = #tpu.pipeline_mode<synchronous>, transform_indices = @transform_2, window_bounds = array<i64: 128, 512>}, {transform_indices = @transform_3, window_bounds = array<i64: 1, 16, 16>}, {transform_indices = @transform_4, window_bounds = array<i64: 1, 16, 512>}]} {
    %c0 = arith.constant 0 : index
    %c0_0 = arith.constant 0 : index
    %c0_1 = arith.constant 0 : index
    %0 = vector.load %arg2[%c0, %c0_0, %c0_1] : memref<1x16x128xf32, #tpu.memory_space<vmem>>, vector<1x16x128xf32>
    %1 = vector.shape_cast %0 : vector<1x16x128xf32> to vector<16x128xf32>
    %c0_2 = arith.constant 0 : index
    %c0_3 = arith.constant 0 : index
    %c0_4 = arith.constant 0 : index
    %2 = vector.load %arg3[%c0_2, %c0_3, %c0_4] : memref<1x16x128xf32, #tpu.memory_space<vmem>>, vector<1x16x128xf32>
    %3 = vector.shape_cast %2 : vector<1x16x128xf32> to vector<16x128xf32>
    %4 = arith.mulf %1, %1 : vector<16x128xf32>
    %cst = arith.constant dense<0.000000e+00> : vector<16xf32>
    %5 = vector.multi_reduction <add>, %4, %cst [1] : vector<16x128xf32> to vector<16xf32>
    %6 = vector.shape_cast %5 : vector<16xf32> to vector<16x1xf32>
    %7 = arith.mulf %3, %3 : vector<16x128xf32>
    %cst_5 = arith.constant 1.000000e+00 : f32
    %8 = vector.broadcast %cst_5 : f32 to vector<1x128xf32>
    %cst_6 = arith.constant dense<0.000000e+00> : vector<1x16xf32>
    %9 = tpu.matmul %8, %7, %cst_6 {dimension_numbers = #tpu.dot_dimension_numbers<[1], [1], [0], [0], [0, 0, 1, 0], [], []>} : vector<1x128xf32>, vector<16x128xf32>, vector<1x16xf32> -> vector<1x16xf32>
    %10 = arith.truncf %1 : vector<16x128xf32> to vector<16x128xbf16>
    %11 = arith.truncf %3 : vector<16x128xf32> to vector<16x128xbf16>
    %cst_7 = arith.constant dense<0.000000e+00> : vector<16x16xf32>
    %12 = tpu.matmul %10, %11, %cst_7 {dimension_numbers = #tpu.dot_dimension_numbers<[1], [1], [0], [0], [0, 0, 1, 0], [], []>} : vector<16x128xbf16>, vector<16x128xbf16>, vector<16x16xf32> -> vector<16x16xf32>
    %cst_8 = arith.constant 2.000000e+00 : f32
    %13 = vector.broadcast %cst_8 : f32 to vector<16x16xf32>
    %14 = arith.mulf %13, %12 : vector<16x16xf32>
    %15 = vector.broadcast %6 : vector<16x1xf32> to vector<16x16xf32>
    %16 = arith.subf %14, %15 : vector<16x16xf32>
    %17 = vector.broadcast %9 : vector<1x16xf32> to vector<16x16xf32>
    %18 = arith.subf %16, %17 : vector<16x16xf32>
    %c0_9 = arith.constant 0 : index
    %c0_10 = arith.constant 0 : index
    %c0_11 = arith.constant 0 : index
    %19 = vector.load %arg5[%c0_9, %c0_10, %c0_11] : memref<1x16x16xf32, #tpu.memory_space<vmem>>, vector<1x16x16xf32>
    %20 = vector.shape_cast %19 : vector<1x16x16xf32> to vector<16x16xf32>
    %21 = vector.shape_cast %18 : vector<16x16xf32> to vector<1x16x16xf32>
    tpu.vector_store %arg5[%c0_9, %c0_10, %c0_11], %21 {strides = array<i32>} : memref<1x16x16xf32, #tpu.memory_space<vmem>>, vector<1x16x16xf32>,
    %c0_12 = arith.constant 0 : index
    %c0_13 = arith.constant 0 : index
    %22 = vector.load %arg4[%c0_12, %c0_13] : memref<128x512xbf16, #tpu.memory_space<vmem>>, vector<128x512xbf16>
    %cst_14 = arith.constant dense<0.000000e+00> : vector<16x512xf32>
    %23 = tpu.matmul %10, %22, %cst_14 {dimension_numbers = #tpu.dot_dimension_numbers<[1], [0], [0], [1], [0, 0, 1, 1], [], []>} : vector<16x128xbf16>, vector<128x512xbf16>, vector<16x512xf32> -> vector<16x512xf32>
    %24 = arith.truncf %23 : vector<16x512xf32> to vector<16x512xbf16>
    %c0_15 = arith.constant 0 : index
    %c0_16 = arith.constant 0 : index
    %c0_17 = arith.constant 0 : index
    %25 = vector.load %arg6[%c0_15, %c0_16, %c0_17] : memref<1x16x512xbf16, #tpu.memory_space<vmem>>, vector<1x16x512xbf16>
    %26 = vector.shape_cast %25 : vector<1x16x512xbf16> to vector<16x512xbf16>
    %27 = vector.shape_cast %24 : vector<16x512xbf16> to vector<1x16x512xbf16>
    tpu.vector_store %arg6[%c0_15, %c0_16, %c0_17], %27 {strides = array<i32>} : memref<1x16x512xbf16, #tpu.memory_space<vmem>>, vector<1x16x512xbf16>,
    return
  }
  func.func @transform_0(%arg0: i32, %arg1: i32) -> (i32, i32, i32) {
    %c0_i32 = arith.constant 0 : i32
    %c0_i32_0 = arith.constant 0 : i32
    return %arg0, %arg1, %c0_i32 : i32, i32, i32
  }
  func.func @transform_1(%arg0: i32, %arg1: i32) -> (i32, i32, i32) {
    %c0_i32 = arith.constant 0 : i32
    %c0_i32_0 = arith.constant 0 : i32
    %c0_i32_1 = arith.constant 0 : i32
    return %arg0, %c0_i32, %c0_i32_0 : i32, i32, i32
  }
  func.func @transform_2(%arg0: i32, %arg1: i32) -> (i32, i32) {
    %c0_i32 = arith.constant 0 : i32
    %c0_i32_0 = arith.constant 0 : i32
    %c0_i32_1 = arith.constant 0 : i32
    return %c0_i32, %c0_i32_0 : i32, i32
  }
  func.func @transform_3(%arg0: i32, %arg1: i32) -> (i32, i32, i32) {
    %c0_i32 = arith.constant 0 : i32
    %c0_i32_0 = arith.constant 0 : i32
    return %arg0, %arg1, %c0_i32 : i32, i32, i32
  }
  func.func @transform_4(%arg0: i32, %arg1: i32) -> (i32, i32, i32) {
    %c0_i32 = arith.constant 0 : i32
    %c0_i32_0 = arith.constant 0 : i32
    return %arg0, %arg1, %c0_i32 : i32, i32, i32
  }
}

module attributes {stable_mosaic.version = 11 : i64} {
  func.func @_edge_combine_kernel(%arg0: i32, %arg1: i32, %arg2: memref<1x4x16x256xbf16, #tpu.memory_space<vmem>>, %arg3: memref<1x16x512xbf16, #tpu.memory_space<vmem>>, %arg4: memref<1x256xf32, #tpu.memory_space<vmem>>, %arg5: memref<1x256xf32, #tpu.memory_space<vmem>>, %arg6: memref<1x16x256xf32, #tpu.memory_space<vmem>>) attributes {dimension_semantics = [#tpu.dimension_semantics<parallel>, #tpu.dimension_semantics<parallel>], iteration_bounds = array<i64: 2, 1>, scalar_prefetch = 0 : i64, scratch_operands = 0 : i64, tpu.core_type = #tpu.core_type<tc>, window_params = [{transform_indices = @transform_0, window_bounds = array<i64: 1, 4, 16, 256>}, {transform_indices = @transform_1, window_bounds = array<i64: 1, 16, 512>}, {pipeline_mode = #tpu.pipeline_mode<synchronous>, transform_indices = @transform_2, window_bounds = array<i64: 1, 256>}, {pipeline_mode = #tpu.pipeline_mode<synchronous>, transform_indices = @transform_3, window_bounds = array<i64: 1, 256>}, {transform_indices = @transform_4, window_bounds = array<i64: 1, 16, 256>}]} {
    %c0 = arith.constant 0 : index
    %c0_0 = arith.constant 0 : index
    %c0_1 = arith.constant 0 : index
    %c0_2 = arith.constant 0 : index
    %0 = vector.load %arg2[%c0, %c0_0, %c0_1, %c0_2] : memref<1x4x16x256xbf16, #tpu.memory_space<vmem>>, vector<1x4x16x256xbf16>
    %1 = vector.shape_cast %0 : vector<1x4x16x256xbf16> to vector<4x16x256xbf16>
    %cst = arith.constant dense<0xFF80> : vector<16x256xbf16>
    %2 = vector.multi_reduction <maximumf>, %1, %cst [0] : vector<4x16x256xbf16> to vector<16x256xbf16>
    %cst_3 = arith.constant dense<0x7F80> : vector<16x256xbf16>
    %3 = vector.multi_reduction <minimumf>, %1, %cst_3 [0] : vector<4x16x256xbf16> to vector<16x256xbf16>
    %c0_4 = arith.constant 0 : index
    %c0_5 = arith.constant 0 : index
    %4 = vector.load %arg4[%c0_4, %c0_5] : memref<1x256xf32, #tpu.memory_space<vmem>>, vector<1x256xf32>
    %c0_6 = arith.constant 0 : index
    %c0_7 = arith.constant 0 : index
    %5 = vector.load %arg5[%c0_6, %c0_7] : memref<1x256xf32, #tpu.memory_space<vmem>>, vector<1x256xf32>
    %cst_8 = arith.constant 0.000000e+00 : f32
    %6 = vector.broadcast %cst_8 : f32 to vector<1x256xf32>
    %7 = arith.cmpf oge, %4, %6 : vector<1x256xf32>
    %8 = vector.shape_cast %7 : vector<1x256xi1> to vector<1x256xi1>
    %9 = vector.broadcast %8 : vector<1x256xi1> to vector<16x256xi1>
    %10 = arith.select %9, %2, %3 : vector<16x256xi1>, vector<16x256xbf16>
    %11 = arith.extf %10 : vector<16x256xbf16> to vector<16x256xf32>
    %c0_9 = arith.constant 0 : index
    %c0_10 = arith.constant 0 : index
    %c0_11 = arith.constant 0 : index
    %12 = vector.load %arg3[%c0_9, %c0_10, %c0_11] : memref<1x16x512xbf16, #tpu.memory_space<vmem>>, vector<1x16x512xbf16>
    %13 = vector.shape_cast %12 : vector<1x16x512xbf16> to vector<16x512xbf16>
    %14 = vector.extract_strided_slice %13 {offsets = [0, 256], sizes = [16, 256], strides = [1, 1]} : vector<16x512xbf16> to vector<16x256xbf16>
    %15 = arith.extf %14 : vector<16x256xbf16> to vector<16x256xf32>
    %16 = arith.addf %11, %15 : vector<16x256xf32>
    %17 = vector.broadcast %4 : vector<1x256xf32> to vector<16x256xf32>
    %18 = arith.mulf %16, %17 : vector<16x256xf32>
    %19 = vector.broadcast %5 : vector<1x256xf32> to vector<16x256xf32>
    %20 = arith.addf %18, %19 : vector<16x256xf32>
    %cst_12 = arith.constant 0.000000e+00 : f32
    %21 = vector.broadcast %cst_12 : f32 to vector<16x256xf32>
    %22 = arith.cmpf ogt, %20, %21 : vector<16x256xf32>
    %cst_13 = arith.constant 2.000000e-01 : f32
    %23 = vector.broadcast %cst_13 : f32 to vector<16x256xf32>
    %24 = arith.mulf %23, %20 : vector<16x256xf32>
    %25 = arith.select %22, %20, %24 : vector<16x256xi1>, vector<16x256xf32>
    %c0_14 = arith.constant 0 : index
    %c0_15 = arith.constant 0 : index
    %c0_16 = arith.constant 0 : index
    %26 = vector.load %arg6[%c0_14, %c0_15, %c0_16] : memref<1x16x256xf32, #tpu.memory_space<vmem>>, vector<1x16x256xf32>
    %27 = vector.shape_cast %26 : vector<1x16x256xf32> to vector<16x256xf32>
    %28 = vector.shape_cast %25 : vector<16x256xf32> to vector<1x16x256xf32>
    tpu.vector_store %arg6[%c0_14, %c0_15, %c0_16], %28 {strides = array<i32>} : memref<1x16x256xf32, #tpu.memory_space<vmem>>, vector<1x16x256xf32>,
    return
  }
  func.func @transform_0(%arg0: i32, %arg1: i32) -> (i32, i32, i32, i32) {
    %c0_i32 = arith.constant 0 : i32
    %c0_i32_0 = arith.constant 0 : i32
    %c0_i32_1 = arith.constant 0 : i32
    return %arg0, %c0_i32, %arg1, %c0_i32_0 : i32, i32, i32, i32
  }
  func.func @transform_1(%arg0: i32, %arg1: i32) -> (i32, i32, i32) {
    %c0_i32 = arith.constant 0 : i32
    %c0_i32_0 = arith.constant 0 : i32
    return %arg0, %arg1, %c0_i32 : i32, i32, i32
  }
  func.func @transform_2(%arg0: i32, %arg1: i32) -> (i32, i32) {
    %c0_i32 = arith.constant 0 : i32
    %c0_i32_0 = arith.constant 0 : i32
    %c0_i32_1 = arith.constant 0 : i32
    return %c0_i32, %c0_i32_0 : i32, i32
  }
  func.func @transform_3(%arg0: i32, %arg1: i32) -> (i32, i32) {
    %c0_i32 = arith.constant 0 : i32
    %c0_i32_0 = arith.constant 0 : i32
    %c0_i32_1 = arith.constant 0 : i32
    return %c0_i32, %c0_i32_0 : i32, i32
  }
  func.func @transform_4(%arg0: i32, %arg1: i32) -> (i32, i32, i32) {
    %c0_i32 = arith.constant 0 : i32
    %c0_i32_0 = arith.constant 0 : i32
    return %arg0, %arg1, %c0_i32 : i32, i32, i32
  }
}

module attributes {stable_mosaic.version = 11 : i64} {
  func.func @_conv5_pool_kernel(%arg0: i32, %arg1: i32, %arg2: memref<1x16x64xf32, #tpu.memory_space<vmem>>, %arg3: memref<1x16x64xf32, #tpu.memory_space<vmem>>, %arg4: memref<1x16x128xf32, #tpu.memory_space<vmem>>, %arg5: memref<1x16x256xf32, #tpu.memory_space<vmem>>, %arg6: memref<64x1024xbf16, #tpu.memory_space<vmem>>, %arg7: memref<64x1024xbf16, #tpu.memory_space<vmem>>, %arg8: memref<128x1024xbf16, #tpu.memory_space<vmem>>, %arg9: memref<256x1024xbf16, #tpu.memory_space<vmem>>, %arg10: memref<1x1024xf32, #tpu.memory_space<vmem>>, %arg11: memref<1x1024xf32, #tpu.memory_space<vmem>>, %arg12: memref<1x2x1024xf32, #tpu.memory_space<vmem>>, %arg13: memref<1x1024xf32, #tpu.memory_space<vmem>>, %arg14: memref<1x1024xf32, #tpu.memory_space<vmem>>) attributes {dimension_semantics = [#tpu.dimension_semantics<parallel>, #tpu.dimension_semantics<arbitrary>], iteration_bounds = array<i64: 2, 1>, scalar_prefetch = 0 : i64, scratch_operands = 2 : i64, tpu.core_type = #tpu.core_type<tc>, window_params = [{transform_indices = @transform_0, window_bounds = array<i64: 1, 16, 64>}, {transform_indices = @transform_1, window_bounds = array<i64: 1, 16, 64>}, {transform_indices = @transform_2, window_bounds = array<i64: 1, 16, 128>}, {transform_indices = @transform_3, window_bounds = array<i64: 1, 16, 256>}, {pipeline_mode = #tpu.pipeline_mode<synchronous>, transform_indices = @transform_4, window_bounds = array<i64: 64, 1024>}, {pipeline_mode = #tpu.pipeline_mode<synchronous>, transform_indices = @transform_5, window_bounds = array<i64: 64, 1024>}, {pipeline_mode = #tpu.pipeline_mode<synchronous>, transform_indices = @transform_6, window_bounds = array<i64: 128, 1024>}, {pipeline_mode = #tpu.pipeline_mode<synchronous>, transform_indices = @transform_7, window_bounds = array<i64: 256, 1024>}, {pipeline_mode = #tpu.pipeline_mode<synchronous>, transform_indices = @transform_8, window_bounds = array<i64: 1, 1024>}, {pipeline_mode = #tpu.pipeline_mode<synchronous>, transform_indices = @transform_9, window_bounds = array<i64: 1, 1024>}, {transform_indices = @transform_10, window_bounds = array<i64: 1, 2, 1024>}]} {
    %c0_i32 = arith.constant 0 : i32
    %0 = arith.cmpi eq, %arg1, %c0_i32 : i32
    %1 = arith.extui %0 : i1 to i32
    %c0_i32_0 = arith.constant 0 : i32
    %2 = arith.cmpi ne, %1, %c0_i32_0 : i32
    scf.if %2 {
      %cst_41 = arith.constant 0xFF800000 : f32
      %50 = vector.broadcast %cst_41 : f32 to vector<1x1024xf32>
      %c0_42 = arith.constant 0 : index
      %c0_43 = arith.constant 0 : index
      %51 = vector.load %arg13[%c0_42, %c0_43] : memref<1x1024xf32, #tpu.memory_space<vmem>>, vector<1x1024xf32>
      tpu.vector_store %arg13[%c0_42, %c0_43], %50 {strides = array<i32>} : memref<1x1024xf32, #tpu.memory_space<vmem>>, vector<1x1024xf32>,
      %cst_44 = arith.constant 0.000000e+00 : f32
      %52 = vector.broadcast %cst_44 : f32 to vector<1x1024xf32>
      %c0_45 = arith.constant 0 : index
      %c0_46 = arith.constant 0 : index
      %53 = vector.load %arg14[%c0_45, %c0_46] : memref<1x1024xf32, #tpu.memory_space<vmem>>, vector<1x1024xf32>
      tpu.vector_store %arg14[%c0_45, %c0_46], %52 {strides = array<i32>} : memref<1x1024xf32, #tpu.memory_space<vmem>>, vector<1x1024xf32>,
    } else {
    }
    %c0 = arith.constant 0 : index
    %c0_1 = arith.constant 0 : index
    %c0_2 = arith.constant 0 : index
    %3 = vector.load %arg2[%c0, %c0_1, %c0_2] : memref<1x16x64xf32, #tpu.memory_space<vmem>>, vector<1x16x64xf32>
    %4 = vector.shape_cast %3 : vector<1x16x64xf32> to vector<16x64xf32>
    %5 = arith.truncf %4 : vector<16x64xf32> to vector<16x64xbf16>
    %c0_3 = arith.constant 0 : index
    %c0_4 = arith.constant 0 : index
    %6 = vector.load %arg6[%c0_3, %c0_4] : memref<64x1024xbf16, #tpu.memory_space<vmem>>, vector<64x1024xbf16>
    %cst = arith.constant dense<0.000000e+00> : vector<16x1024xf32>
    %7 = tpu.matmul %5, %6, %cst {dimension_numbers = #tpu.dot_dimension_numbers<[1], [0], [0], [1], [0, 0, 1, 1], [], []>} : vector<16x64xbf16>, vector<64x1024xbf16>, vector<16x1024xf32> -> vector<16x1024xf32>
    %c0_5 = arith.constant 0 : index
    %c0_6 = arith.constant 0 : index
    %c0_7 = arith.constant 0 : index
    %8 = vector.load %arg3[%c0_5, %c0_6, %c0_7] : memref<1x16x64xf32, #tpu.memory_space<vmem>>, vector<1x16x64xf32>
    %9 = vector.shape_cast %8 : vector<1x16x64xf32> to vector<16x64xf32>
    %10 = arith.truncf %9 : vector<16x64xf32> to vector<16x64xbf16>
    %c0_8 = arith.constant 0 : index
    %c0_9 = arith.constant 0 : index
    %11 = vector.load %arg7[%c0_8, %c0_9] : memref<64x1024xbf16, #tpu.memory_space<vmem>>, vector<64x1024xbf16>
    %cst_10 = arith.constant dense<0.000000e+00> : vector<16x1024xf32>
    %12 = tpu.matmul %10, %11, %cst_10 {dimension_numbers = #tpu.dot_dimension_numbers<[1], [0], [0], [1], [0, 0, 1, 1], [], []>} : vector<16x64xbf16>, vector<64x1024xbf16>, vector<16x1024xf32> -> vector<16x1024xf32>
    %13 = arith.addf %7, %12 : vector<16x1024xf32>
    %c0_11 = arith.constant 0 : index
    %c0_12 = arith.constant 0 : index
    %c0_13 = arith.constant 0 : index
    %14 = vector.load %arg4[%c0_11, %c0_12, %c0_13] : memref<1x16x128xf32, #tpu.memory_space<vmem>>, vector<1x16x128xf32>
    %15 = vector.shape_cast %14 : vector<1x16x128xf32> to vector<16x128xf32>
    %16 = arith.truncf %15 : vector<16x128xf32> to vector<16x128xbf16>
    %c0_14 = arith.constant 0 : index
    %c0_15 = arith.constant 0 : index
    %17 = vector.load %arg8[%c0_14, %c0_15] : memref<128x1024xbf16, #tpu.memory_space<vmem>>, vector<128x1024xbf16>
    %cst_16 = arith.constant dense<0.000000e+00> : vector<16x1024xf32>
    %18 = tpu.matmul %16, %17, %cst_16 {dimension_numbers = #tpu.dot_dimension_numbers<[1], [0], [0], [1], [0, 0, 1, 1], [], []>} : vector<16x128xbf16>, vector<128x1024xbf16>, vector<16x1024xf32> -> vector<16x1024xf32>
    %19 = arith.addf %13, %18 : vector<16x1024xf32>
    %c0_17 = arith.constant 0 : index
    %c0_18 = arith.constant 0 : index
    %c0_19 = arith.constant 0 : index
    %20 = vector.load %arg5[%c0_17, %c0_18, %c0_19] : memref<1x16x256xf32, #tpu.memory_space<vmem>>, vector<1x16x256xf32>
    %21 = vector.shape_cast %20 : vector<1x16x256xf32> to vector<16x256xf32>
    %22 = arith.truncf %21 : vector<16x256xf32> to vector<16x256xbf16>
    %c0_20 = arith.constant 0 : index
    %c0_21 = arith.constant 0 : index
    %23 = vector.load %arg9[%c0_20, %c0_21] : memref<256x1024xbf16, #tpu.memory_space<vmem>>, vector<256x1024xbf16>
    %cst_22 = arith.constant dense<0.000000e+00> : vector<16x1024xf32>
    %24 = tpu.matmul %22, %23, %cst_22 {dimension_numbers = #tpu.dot_dimension_numbers<[1], [0], [0], [1], [0, 0, 1, 1], [], []>} : vector<16x256xbf16>, vector<256x1024xbf16>, vector<16x1024xf32> -> vector<16x1024xf32>
    %25 = arith.addf %19, %24 : vector<16x1024xf32>
    %c0_23 = arith.constant 0 : index
    %c0_24 = arith.constant 0 : index
    %26 = vector.load %arg10[%c0_23, %c0_24] : memref<1x1024xf32, #tpu.memory_space<vmem>>, vector<1x1024xf32>
    %27 = vector.broadcast %26 : vector<1x1024xf32> to vector<16x1024xf32>
    %28 = arith.mulf %25, %27 : vector<16x1024xf32>
    %c0_25 = arith.constant 0 : index
    %c0_26 = arith.constant 0 : index
    %29 = vector.load %arg11[%c0_25, %c0_26] : memref<1x1024xf32, #tpu.memory_space<vmem>>, vector<1x1024xf32>
    %30 = vector.broadcast %29 : vector<1x1024xf32> to vector<16x1024xf32>
    %31 = arith.addf %28, %30 : vector<16x1024xf32>
    %cst_27 = arith.constant 0.000000e+00 : f32
    %32 = vector.broadcast %cst_27 : f32 to vector<16x1024xf32>
    %33 = arith.cmpf ogt, %31, %32 : vector<16x1024xf32>
    %cst_28 = arith.constant 2.000000e-01 : f32
    %34 = vector.broadcast %cst_28 : f32 to vector<16x1024xf32>
    %35 = arith.mulf %34, %31 : vector<16x1024xf32>
    %36 = arith.select %33, %31, %35 : vector<16x1024xi1>, vector<16x1024xf32>
    %c0_29 = arith.constant 0 : index
    %c0_30 = arith.constant 0 : index
    %37 = vector.load %arg13[%c0_29, %c0_30] : memref<1x1024xf32, #tpu.memory_space<vmem>>, vector<1x1024xf32>
    %cst_31 = arith.constant dense<0xFF800000> : vector<1024xf32>
    %38 = vector.multi_reduction <maximumf>, %36, %cst_31 [0] : vector<16x1024xf32> to vector<1024xf32>
    %39 = vector.shape_cast %38 : vector<1024xf32> to vector<1x1024xf32>
    %40 = arith.maximumf %37, %39 : vector<1x1024xf32>
    %c0_32 = arith.constant 0 : index
    %c0_33 = arith.constant 0 : index
    %41 = vector.load %arg13[%c0_32, %c0_33] : memref<1x1024xf32, #tpu.memory_space<vmem>>, vector<1x1024xf32>
    tpu.vector_store %arg13[%c0_32, %c0_33], %40 {strides = array<i32>} : memref<1x1024xf32, #tpu.memory_space<vmem>>, vector<1x1024xf32>,
    %c0_34 = arith.constant 0 : index
    %c0_35 = arith.constant 0 : index
    %42 = vector.load %arg14[%c0_34, %c0_35] : memref<1x1024xf32, #tpu.memory_space<vmem>>, vector<1x1024xf32>
    %cst_36 = arith.constant dense<0.000000e+00> : vector<1024xf32>
    %43 = vector.multi_reduction <add>, %36, %cst_36 [0] : vector<16x1024xf32> to vector<1024xf32>
    %44 = vector.shape_cast %43 : vector<1024xf32> to vector<1x1024xf32>
    %45 = arith.addf %42, %44 : vector<1x1024xf32>
    %c0_37 = arith.constant 0 : index
    %c0_38 = arith.constant 0 : index
    %46 = vector.load %arg14[%c0_37, %c0_38] : memref<1x1024xf32, #tpu.memory_space<vmem>>, vector<1x1024xf32>
    tpu.vector_store %arg14[%c0_37, %c0_38], %45 {strides = array<i32>} : memref<1x1024xf32, #tpu.memory_space<vmem>>, vector<1x1024xf32>,
    %c0_i32_39 = arith.constant 0 : i32
    %47 = arith.cmpi eq, %arg1, %c0_i32_39 : i32
    %48 = arith.extui %47 : i1 to i32
    %c0_i32_40 = arith.constant 0 : i32
    %49 = arith.cmpi ne, %48, %c0_i32_40 : i32
    scf.if %49 {
      %c0_41 = arith.constant 0 : index
      %c0_42 = arith.constant 0 : index
      %50 = vector.load %arg13[%c0_41, %c0_42] : memref<1x1024xf32, #tpu.memory_space<vmem>>, vector<1x1024xf32>
      %c0_43 = arith.constant 0 : index
      %c0_44 = arith.constant 0 : index
      %51 = vector.load %arg14[%c0_43, %c0_44] : memref<1x1024xf32, #tpu.memory_space<vmem>>, vector<1x1024xf32>
      %cst_45 = arith.constant 6.250000e-02 : f32
      %52 = vector.broadcast %cst_45 : f32 to vector<1x1024xf32>
      %53 = arith.mulf %51, %52 : vector<1x1024xf32>
      %54 = tpu.concatenate %50, %53 in 0 : vector<1x1024xf32>, vector<1x1024xf32> -> vector<2x1024xf32>
      %c0_46 = arith.constant 0 : index
      %c0_47 = arith.constant 0 : index
      %c0_48 = arith.constant 0 : index
      %55 = vector.load %arg12[%c0_46, %c0_47, %c0_48] : memref<1x2x1024xf32, #tpu.memory_space<vmem>>, vector<1x2x1024xf32>
      %56 = vector.shape_cast %55 : vector<1x2x1024xf32> to vector<2x1024xf32>
      %57 = vector.shape_cast %54 : vector<2x1024xf32> to vector<1x2x1024xf32>
      tpu.vector_store %arg12[%c0_46, %c0_47, %c0_48], %57 {strides = array<i32>} : memref<1x2x1024xf32, #tpu.memory_space<vmem>>, vector<1x2x1024xf32>,
    } else {
    }
    return
  }
  func.func @transform_0(%arg0: i32, %arg1: i32) -> (i32, i32, i32) {
    %c0_i32 = arith.constant 0 : i32
    %c0_i32_0 = arith.constant 0 : i32
    return %arg0, %arg1, %c0_i32 : i32, i32, i32
  }
  func.func @transform_1(%arg0: i32, %arg1: i32) -> (i32, i32, i32) {
    %c0_i32 = arith.constant 0 : i32
    %c0_i32_0 = arith.constant 0 : i32
    return %arg0, %arg1, %c0_i32 : i32, i32, i32
  }
  func.func @transform_2(%arg0: i32, %arg1: i32) -> (i32, i32, i32) {
    %c0_i32 = arith.constant 0 : i32
    %c0_i32_0 = arith.constant 0 : i32
    return %arg0, %arg1, %c0_i32 : i32, i32, i32
  }
  func.func @transform_3(%arg0: i32, %arg1: i32) -> (i32, i32, i32) {
    %c0_i32 = arith.constant 0 : i32
    %c0_i32_0 = arith.constant 0 : i32
    return %arg0, %arg1, %c0_i32 : i32, i32, i32
  }
  func.func @transform_4(%arg0: i32, %arg1: i32) -> (i32, i32) {
    %c0_i32 = arith.constant 0 : i32
    %c0_i32_0 = arith.constant 0 : i32
    %c0_i32_1 = arith.constant 0 : i32
    return %c0_i32, %c0_i32_0 : i32, i32
  }
  func.func @transform_5(%arg0: i32, %arg1: i32) -> (i32, i32) {
    %c0_i32 = arith.constant 0 : i32
    %c0_i32_0 = arith.constant 0 : i32
    %c0_i32_1 = arith.constant 0 : i32
    return %c0_i32, %c0_i32_0 : i32, i32
  }
  func.func @transform_6(%arg0: i32, %arg1: i32) -> (i32, i32) {
    %c0_i32 = arith.constant 0 : i32
    %c0_i32_0 = arith.constant 0 : i32
    %c0_i32_1 = arith.constant 0 : i32
    return %c0_i32, %c0_i32_0 : i32, i32
  }
  func.func @transform_7(%arg0: i32, %arg1: i32) -> (i32, i32) {
    %c0_i32 = arith.constant 0 : i32
    %c0_i32_0 = arith.constant 0 : i32
    %c0_i32_1 = arith.constant 0 : i32
    return %c0_i32, %c0_i32_0 : i32, i32
  }
  func.func @transform_8(%arg0: i32, %arg1: i32) -> (i32, i32) {
    %c0_i32 = arith.constant 0 : i32
    %c0_i32_0 = arith.constant 0 : i32
    %c0_i32_1 = arith.constant 0 : i32
    return %c0_i32, %c0_i32_0 : i32, i32
  }
  func.func @transform_9(%arg0: i32, %arg1: i32) -> (i32, i32) {
    %c0_i32 = arith.constant 0 : i32
    %c0_i32_0 = arith.constant 0 : i32
    %c0_i32_1 = arith.constant 0 : i32
    return %c0_i32, %c0_i32_0 : i32, i32
  }
  func.func @transform_10(%arg0: i32, %arg1: i32) -> (i32, i32, i32) {
    %c0_i32 = arith.constant 0 : i32
    %c0_i32_0 = arith.constant 0 : i32
    %c0_i32_1 = arith.constant 0 : i32
    return %arg0, %c0_i32, %c0_i32_0 : i32, i32, i32
  }
}

module attributes {stable_mosaic.version = 11 : i64} {
  func.func @_head_kernel(%arg0: memref<2x2x1024xf32, #tpu.memory_space<vmem>>, %arg1: memref<1024x512xbf16, #tpu.memory_space<vmem>>, %arg2: memref<1024x512xbf16, #tpu.memory_space<vmem>>, %arg3: memref<1x512xf32, #tpu.memory_space<vmem>>, %arg4: memref<1x512xf32, #tpu.memory_space<vmem>>, %arg5: memref<512x256xbf16, #tpu.memory_space<vmem>>, %arg6: memref<1x256xf32, #tpu.memory_space<vmem>>, %arg7: memref<1x256xf32, #tpu.memory_space<vmem>>, %arg8: memref<1x256xf32, #tpu.memory_space<vmem>>, %arg9: memref<256x40xbf16, #tpu.memory_space<vmem>>, %arg10: memref<1x40xf32, #tpu.memory_space<vmem>>, %arg11: memref<2x40xf32, #tpu.memory_space<vmem>>) attributes {dimension_semantics = [], scalar_prefetch = 0 : i64, scratch_operands = 0 : i64, tpu.core_type = #tpu.core_type<tc>} {
    %c0 = arith.constant 0 : index
    %c0_0 = arith.constant 0 : index
    %c0_1 = arith.constant 0 : index
    %0 = vector.load %arg0[%c0, %c0_0, %c0_1] : memref<2x2x1024xf32, #tpu.memory_space<vmem>>, vector<2x2x1024xf32>
    %1 = vector.extract_strided_slice %0 {offsets = [0, 0, 0], sizes = [2, 1, 1024], strides = [1, 1, 1]} : vector<2x2x1024xf32> to vector<2x1x1024xf32>
    %2 = vector.shape_cast %1 : vector<2x1x1024xf32> to vector<2x1024xf32>
    %3 = arith.truncf %2 : vector<2x1024xf32> to vector<2x1024xbf16>
    %4 = vector.extract_strided_slice %0 {offsets = [0, 1, 0], sizes = [2, 1, 1024], strides = [1, 1, 1]} : vector<2x2x1024xf32> to vector<2x1x1024xf32>
    %5 = vector.shape_cast %4 : vector<2x1x1024xf32> to vector<2x1024xf32>
    %6 = arith.truncf %5 : vector<2x1024xf32> to vector<2x1024xbf16>
    %c0_2 = arith.constant 0 : index
    %c0_3 = arith.constant 0 : index
    %7 = vector.load %arg1[%c0_2, %c0_3] : memref<1024x512xbf16, #tpu.memory_space<vmem>>, vector<1024x512xbf16>
    %cst = arith.constant dense<0.000000e+00> : vector<2x512xf32>
    %8 = tpu.matmul %3, %7, %cst {dimension_numbers = #tpu.dot_dimension_numbers<[1], [0], [0], [1], [0, 0, 1, 1], [], []>} : vector<2x1024xbf16>, vector<1024x512xbf16>, vector<2x512xf32> -> vector<2x512xf32>
    %c0_4 = arith.constant 0 : index
    %c0_5 = arith.constant 0 : index
    %9 = vector.load %arg2[%c0_4, %c0_5] : memref<1024x512xbf16, #tpu.memory_space<vmem>>, vector<1024x512xbf16>
    %cst_6 = arith.constant dense<0.000000e+00> : vector<2x512xf32>
    %10 = tpu.matmul %6, %9, %cst_6 {dimension_numbers = #tpu.dot_dimension_numbers<[1], [0], [0], [1], [0, 0, 1, 1], [], []>} : vector<2x1024xbf16>, vector<1024x512xbf16>, vector<2x512xf32> -> vector<2x512xf32>
    %11 = arith.addf %8, %10 : vector<2x512xf32>
    %c0_7 = arith.constant 0 : index
    %c0_8 = arith.constant 0 : index
    %12 = vector.load %arg3[%c0_7, %c0_8] : memref<1x512xf32, #tpu.memory_space<vmem>>, vector<1x512xf32>
    %13 = vector.broadcast %12 : vector<1x512xf32> to vector<2x512xf32>
    %14 = arith.mulf %11, %13 : vector<2x512xf32>
    %c0_9 = arith.constant 0 : index
    %c0_10 = arith.constant 0 : index
    %15 = vector.load %arg4[%c0_9, %c0_10] : memref<1x512xf32, #tpu.memory_space<vmem>>, vector<1x512xf32>
    %16 = vector.broadcast %15 : vector<1x512xf32> to vector<2x512xf32>
    %17 = arith.addf %14, %16 : vector<2x512xf32>
    %cst_11 = arith.constant 0.000000e+00 : f32
    %18 = vector.broadcast %cst_11 : f32 to vector<2x512xf32>
    %19 = arith.cmpf ogt, %17, %18 : vector<2x512xf32>
    %cst_12 = arith.constant 2.000000e-01 : f32
    %20 = vector.broadcast %cst_12 : f32 to vector<2x512xf32>
    %21 = arith.mulf %20, %17 : vector<2x512xf32>
    %22 = arith.select %19, %17, %21 : vector<2x512xi1>, vector<2x512xf32>
    %23 = arith.truncf %22 : vector<2x512xf32> to vector<2x512xbf16>
    %c0_13 = arith.constant 0 : index
    %c0_14 = arith.constant 0 : index
    %24 = vector.load %arg5[%c0_13, %c0_14] : memref<512x256xbf16, #tpu.memory_space<vmem>>, vector<512x256xbf16>
    %cst_15 = arith.constant dense<0.000000e+00> : vector<2x256xf32>
    %25 = tpu.matmul %23, %24, %cst_15 {dimension_numbers = #tpu.dot_dimension_numbers<[1], [0], [0], [1], [0, 0, 1, 1], [], []>} : vector<2x512xbf16>, vector<512x256xbf16>, vector<2x256xf32> -> vector<2x256xf32>
    %c0_16 = arith.constant 0 : index
    %c0_17 = arith.constant 0 : index
    %26 = vector.load %arg6[%c0_16, %c0_17] : memref<1x256xf32, #tpu.memory_space<vmem>>, vector<1x256xf32>
    %27 = vector.broadcast %26 : vector<1x256xf32> to vector<2x256xf32>
    %28 = arith.addf %25, %27 : vector<2x256xf32>
    %c0_18 = arith.constant 0 : index
    %c0_19 = arith.constant 0 : index
    %29 = vector.load %arg7[%c0_18, %c0_19] : memref<1x256xf32, #tpu.memory_space<vmem>>, vector<1x256xf32>
    %30 = vector.broadcast %29 : vector<1x256xf32> to vector<2x256xf32>
    %31 = arith.mulf %28, %30 : vector<2x256xf32>
    %c0_20 = arith.constant 0 : index
    %c0_21 = arith.constant 0 : index
    %32 = vector.load %arg8[%c0_20, %c0_21] : memref<1x256xf32, #tpu.memory_space<vmem>>, vector<1x256xf32>
    %33 = vector.broadcast %32 : vector<1x256xf32> to vector<2x256xf32>
    %34 = arith.addf %31, %33 : vector<2x256xf32>
    %cst_22 = arith.constant 0.000000e+00 : f32
    %35 = vector.broadcast %cst_22 : f32 to vector<2x256xf32>
    %36 = arith.cmpf ogt, %34, %35 : vector<2x256xf32>
    %cst_23 = arith.constant 2.000000e-01 : f32
    %37 = vector.broadcast %cst_23 : f32 to vector<2x256xf32>
    %38 = arith.mulf %37, %34 : vector<2x256xf32>
    %39 = arith.select %36, %34, %38 : vector<2x256xi1>, vector<2x256xf32>
    %40 = arith.truncf %39 : vector<2x256xf32> to vector<2x256xbf16>
    %c0_24 = arith.constant 0 : index
    %c0_25 = arith.constant 0 : index
    %41 = vector.load %arg9[%c0_24, %c0_25] : memref<256x40xbf16, #tpu.memory_space<vmem>>, vector<256x40xbf16>
    %cst_26 = arith.constant dense<0.000000e+00> : vector<2x40xf32>
    %42 = tpu.matmul %40, %41, %cst_26 {dimension_numbers = #tpu.dot_dimension_numbers<[1], [0], [0], [1], [0, 0, 1, 1], [], []>} : vector<2x256xbf16>, vector<256x40xbf16>, vector<2x40xf32> -> vector<2x40xf32>
    %c0_27 = arith.constant 0 : index
    %c0_28 = arith.constant 0 : index
    %43 = vector.load %arg10[%c0_27, %c0_28] : memref<1x40xf32, #tpu.memory_space<vmem>>, vector<1x40xf32>
    %44 = vector.broadcast %43 : vector<1x40xf32> to vector<2x40xf32>
    %45 = arith.addf %42, %44 : vector<2x40xf32>
    %c0_29 = arith.constant 0 : index
    %c0_30 = arith.constant 0 : index
    %46 = vector.load %arg11[%c0_29, %c0_30] : memref<2x40xf32, #tpu.memory_space<vmem>>, vector<2x40xf32>
    tpu.vector_store %arg11[%c0_29, %c0_30], %45 {strides = array<i32>} : memref<2x40xf32, #tpu.memory_space<vmem>>, vector<2x40xf32>,
    return
  }
}

</mosaic_0001>

<bundles_post_ra>
// kernel: dgcnn_forward.12
= control target key start
LH: loop header
LB: loop body
LE: loop exit
PB: predicated region body
PF: predicated region fallthrough
CT: control target
= control target key end

     0   :  { %10 = vsyncpa [#allocation3], 0  ;;  %s762_s15 = smov 0   ;;  %s764_s16 = smov 0   ;;  %s822_s0 = inlined_call_operand.vmem [shape: f32[2,16,64], index: 0, kind: input, shape index: {}, may-alias: {0,1}]   ;;  %s823_s1 = inlined_call_operand.vmem [shape: f32[2,16,64], index: 1, kind: input, shape index: {}, may-alias: {0,1}]   ;;  %s824_s2 = inlined_call_operand.hbm [shape: bf16[64,128], index: 2, kind: input, shape index: {}]   ;;  %s825_s3 = inlined_call_operand.vmem [shape: f32[2,16,16], index: 3, kind: output, shape index: {0}]   ;;  %s826_s4 = inlined_call_operand.vmem [shape: bf16[2,16,128], index: 4, kind: output, shape index: {1}]  }
   0x1   :  { %s766_s17 = smov 0  }
   0x2 LB: > { %s586_s18 = sadd.s32 4294967295, %s731_s17   ;;  %s28_s19 = sadd.s32 1, %s727_s16  ;;  %s731_s17 = sphi %s766_s17, %s16_s17   ;;  %s727_s16 = sphi %s764_s16, %s828_s16   ;;  %s723_s15 = sphi %s762_s15, %s827_s15  }
   0x3   : > { %p30_p0 = scmp.ge.s32.totalorder %s28_s19, 2  ;;  %p588_p1 = scmp.ge.s32.totalorder %s731_s17, 1 }
   0x4   : > { %p164_p2 = scmp.lt.s32.totalorder %s731_s17, 3  ;;  %p645_p4 = scmp.eq.s32.totalorder %s586_s18, 0 }
   0x5   : > { %s830_s19 = smov (%p30_p0, %s28_s19), 0  ;;  %s175_s22 = sshll.u32 %s824_s2, 4  ;;  %s176_s22 = int_to_ptr.hbm [resolvable:$true] %s175_s22 }
   0x6   : > { %p165_p3 = pnand %p588_p1, %p164_p2  ;;  %s733_s23 = smov [#allocation2]  }
   0x7   : > { %s177_s24 = sshll.u32 %s733_s23, 4  ;;  %s734_s25 = smov 64   ;;  %s178_s24 = int_to_ptr.vmem [resolvable:$true] %s177_s24 }
   0x8   : > { %p641_p5 = pneg %p165_p3  ;;  %s735_s26 = smov 4  }
   0x9   : > { %214 = sbr.rel (%p165_p3) target bundleno = 174 (0xae), region = 32 }
   0xa   : > { %p642_p6 = pnand %p645_p4, %p641_p5 }
   0xc   : > { %644 = dma.hbm_to_vmem [thread:$0]  (!%p642_p6), %s176_s22, 512, %s178_s24, [#allocation3], %s734_s25, %s734_s25, %s735_s26  }
   0xe   : > { %718 = dma.done.wait (%p645_p4), [#allocation3], 512  }
   0xf   : > { %720 = vsyncadd (%p645_p4), [#allocation3], 4294966784  ;;  %p264_p7 = scmp.lt.s32.totalorder %s723_s15, 1  ;;  %v631_v0 = vld [vmem:[#allocation2 + $0x18] sm:$0xff]  ;;  %vm305_vm0 = vcmask 523264   ;;  %v630_v6 = vld [vmem:[#allocation2 + $0x10] sm:$0xff] }
  0x10   : > { %411 = vmatpush.bf16.msra.mxu2 %v631_v0  ;;  %v629_v12 = vld [vmem:[#allocation2 + $0x8] sm:$0xff]  ;;  %v628_v15 = vld [vmem:[#allocation2] sm:$0xff]  ;;  %v736_v16 = vmov 1.0   ;;  %vm372_vm1 = vcmask 130048  }
  0x11   : > { %s832_s15 = smov (!%p264_p7, %s723_s15), 1 }
  0x12   : > { %s787_s27 = sshll.u32 %s832_s15, 4  ;;  %s627_s11 = sshll.u32 %s832_s15, 3 }
  0x13   : > { %s277_s30 = scalar_lea.vmem %s823_s1, %s787_s27  ;;  %s271_s7 = scalar_lea.vmem %s822_s0, %s787_s27 }
  0x14   : > { %v301_v1 = vld [vmem:[%s277_s30] sm:$0xff]  ;;  %v302_v2 = vld [vmem:[%s277_s30 + $0x8] sm:$0xff]  ;;  %412 = vmatpush.bf16.msra.mxu2 %v630_v6  ;;  %s286_s10 = scalar_lea.vmem %s825_s3, %s787_s27  ;;  %s296_s14 = scalar_lea.vmem %s826_s4, %s627_s11 }
  0x15   : > { %v344_v3 = vpack.c.bf16 %v302_v2, %v301_v1  ;;  %v299_v4 = vld [vmem:[%s271_s7] sm:$0xff]  ;;  %v313_v5 = vmul.f32 %v302_v2, %v302_v2  ;;  %v312_v8 = vmul.f32 %v301_v1, %v301_v1  ;;  %v300_v10 = vld [vmem:[%s271_s7 + $0x8] sm:$0xff] }
  0x16   : > { %v303_v7 = vmul.f32 %v299_v4, %v299_v4  ;;  %v304_v13 = vmul.f32 %v300_v10, %v300_v10  ;;  %v343_v14 = vpack.c.bf16 %v300_v10, %v299_v4 }
  0x17   : > { %v349_v9 = vsel %vm305_vm0, %v344_v3, 0  ;;  %601 = vmatpush.xpose.msk.msra.mxu0 %vm305_vm0, %v313_v5 }
  0x18   : > { %358 = vmatpush.bf16.xpose.msra.mxu1 %v349_v9  ;;  %v306_v11 = vsel %vm305_vm0, %v303_v7, 0.0  ;;  %413 = vmatpush.bf16.msra.mxu2 %v629_v12  ;;  %v309_v17 = vsel %vm305_vm0, %v304_v13, 0.0 }
  0x19   : > { %307 = vadd.xlane.f32.xlu0 %v306_v11 }
  0x1b   : > { %602 = vmatpush.xpose.msk.msra.mxu0 %vm305_vm0, %v312_v8 }
  0x1c   : > { %414 = vmatpush.bf16.msra.mxu2 %v628_v15 }
  0x1e   : > { %603 = vmatmul.msk.f32.vlgmr.msra.gmra.mxu0 %vm305_vm0, %v736_v16 }
  0x1f   : > { %604 = vmatmul.msk.bf16.vlgmr.msra.gmra.mxu1 %vm305_vm0, %v343_v14  ;;  %621 = vmatmul.msk.bf16.vlgmr.msra.gmra.mxu2 %vm305_vm0, %v343_v14 }
  0x21   : > { %310 = vadd.xlane.f32.xlu0 %v309_v17 }
  0x8c   : > { %v308_v18 = vpop.xlane.xlu0 %307 }
  0x94   : > { %v311_v26 = vpop.xlane.xlu0 %310 }
  0x9b   : > { %v340_v19 = vpop.f32.mrf.mxu0 }
  0x9c   : > { %v360_v20 = vpop.f32.mrf.mxu1  ;;  %v369_v22 = vperm.slane %v340_v19, 0 }
  0x9d   : > { %v365_v21 = vmul.f32 2.0, %v360_v20 }
  0x9f   : > { %v367_v23 = vsub.f32 %v365_v21, %v308_v18 }
  0xa1   : > { %v370_v24 = vsub.f32 %v367_v23, %v369_v22 }
  0xa2   : > { %v416_v29 = vpop.f32.mrf.mxu2 }
  0xa3   : > { %373 = vst.msk [vmem:[%s286_s10] sm:$0xff] %vm372_vm1, %v370_v24 }
  0xa4   : > { %v362_v25 = vpop.f32.mrf.mxu1 }
  0xa5   : > { %v366_v27 = vmul.f32 2.0, %v362_v25 }
  0xa7   : > { %v368_v28 = vsub.f32 %v366_v27, %v311_v26 }
  0xa9   : > { %v371_v30 = vsub.f32 %v368_v28, %v369_v22 }
  0xaa   : > { %v418_v31 = vpop.f32.mrf.mxu2 }
  0xab   : > { %374 = vst.msk [vmem:[%s286_s10 + $0x8] sm:$0xff] %vm372_vm1, %v371_v30  ;;  %v635_v32 = vpack.c.bf16 %v418_v31, %v416_v29 }
  0xad   : > { %636 = vst [vmem:[%s296_s14] sm:$0xff] %v635_v32  }
  0xae PF: > { %s16_s17 = sadd.s32 1, %s731_s17   ;;  %s827_s15 = smov %s727_s16 }
  0xaf   : > { %p13_p8 = scmp.ge.s32.totalorder %s16_s17, 4   ;;  %s828_s16 = smov %s830_s19 }
  0xb1   :  { %15 = sbr.rel (!%p13_p8) target bundleno = 2 (0x2), region = 82 }
  0xb6   :  { %480 = vsyncpa [#allocation3], 1 }
  0xb7   :  { %482 = vsyncpa [#allocation3 + $0x1], 1 }

// kernel: dgcnn_forward.10
= control target key start
LH: loop header
LB: loop body
LE: loop exit
PB: predicated region body
PF: predicated region fallthrough
CT: control target
= control target key end

     0   :  { %s639_s15 = smov 0   ;;  %s641_s16 = smov 0   ;;  %s698_s0 = inlined_call_operand.vmem [shape: f32[2,16,3], index: 0, kind: input, shape index: {}, may-alias: {0,1}]   ;;  %s699_s1 = inlined_call_operand.vmem [shape: f32[2,16,3], index: 1, kind: input, shape index: {}, may-alias: {0,1}]   ;;  %s700_s2 = inlined_call_operand.vmem [shape: bf16[3,128], index: 2, kind: input, shape index: {}]   ;;  %s701_s3 = inlined_call_operand.vmem [shape: f32[2,16,16], index: 3, kind: output, shape index: {0}]   ;;  %s702_s4 = inlined_call_operand.vmem [shape: bf16[2,16,128], index: 4, kind: output, shape index: {1}]  }
   0x1   :  { %s643_s17 = smov 0  }
   0x2 LB: > { %s27_s18 = sadd.s32 1, %s606_s16  ;;  %p537_p0 = scmp.ge.s32.totalorder %s610_s17, 1  ;;  %s610_s17 = sphi %s643_s17, %s15_s17   ;;  %s606_s16 = sphi %s641_s16, %s704_s16   ;;  %s602_s15 = sphi %s639_s15, %s703_s15  }
   0x3   : > { %p29_p1 = scmp.ge.s32.totalorder %s27_s18, 2  ;;  %p198_p2 = scmp.lt.s32.totalorder %s610_s17, 3 }
   0x5   : > { %s706_s18 = smov (%p29_p1, %s27_s18), 0  ;;  %p199_p3 = pnand %p537_p0, %p198_p2 }
   0x6   : > { %p247_p4 = scmp.lt.s32.totalorder (!%p199_p3), %s602_s15, 1 }
   0x7   : > { %202 = sbr.rel (%p199_p3) target bundleno = 168 (0xa8), region = 32 }
   0xc   : > { %v358_v0 = vld [vmem:[%s700_s2] sm:$0x3]  ;;  %vm359_vm0 = vcmask 1040384   ;;  %vm360_vm1 = vcmask 1041408   ;;  %v612_v1 = vmov 65535   ;;  %s708_s15 = smov (!%p247_p4, %s602_s15), 1 }
   0xd   : > { %v361_v2 = vsel %vm359_vm0, 4294967295, %v612_v1  ;;  %s663_s21 = sshll.u32 %s708_s15, 4  ;;  %vm288_vm2 = vcmask 23552   ;;  %v613_v18 = vmov 1.0   ;;  %s556_s28 = sshll.u32 %s708_s15, 3  ;;  %vm355_vm3 = vcmask 130048  }
   0xe   : > { %v362_v3 = vsel %vm360_vm1, %v361_v2, 0  ;;  %s254_s24 = scalar_lea.vmem %s698_s0, %s663_s21  ;;  %s260_s27 = scalar_lea.vmem %s699_s1, %s663_s21 }
   0xf   : > { %v364_v4 = vand.u32 %v362_v3, %v358_v0  ;;  %v282_v5 = vld [vmem:[%s254_s24] sm:$0xff]  ;;  %v283_v6 = vld [vmem:[%s254_s24 + $0x8] sm:$0xff]  ;;  %s269_s5 = scalar_lea.vmem %s701_s3, %s663_s21  ;;  %s279_s8 = scalar_lea.vmem %s702_s4, %s556_s28 }
  0x10   : > { %v284_v7 = vld [vmem:[%s260_s27] sm:$0xff]  ;;  %v326_v8 = vpack.c.bf16 %v283_v6, %v282_v5  ;;  %v285_v9 = vld [vmem:[%s260_s27 + $0x8] sm:$0xff]  ;;  %v286_v10 = vmul.f32 %v282_v5, %v282_v5  ;;  %v287_v16 = vmul.f32 %v283_v6, %v283_v6 }
  0x11   : > { %373 = vmatpush.bf16.msra.mxu2 %v364_v4  ;;  %v327_v11 = vpack.c.bf16 %v285_v9, %v284_v7  ;;  %v296_v12 = vmul.f32 %v285_v9, %v285_v9  ;;  %v295_v14 = vmul.f32 %v284_v7, %v284_v7 }
  0x12   : > { %v289_v13 = vsel %vm288_vm2, %v286_v10, 0.0  ;;  %v292_v17 = vsel %vm288_vm2, %v287_v16, 0.0 }
  0x13   : > { %v332_v15 = vsel %vm288_vm2, %v327_v11, 0  ;;  %546 = vmatpush.xpose.msk.msra.mxu0 %vm288_vm2, %v296_v12  ;;  %290 = vadd.xlane.f32.xlu0 %v289_v13 }
  0x14   : > { %550 = vmatmul.msk.bf16.vlgmr.msra.gmra.mxu2 %vm288_vm2, %v326_v8  ;;  %341 = vmatpush.bf16.xpose.msra.mxu1 %v332_v15 }
  0x17   : > { %547 = vmatpush.xpose.msk.msra.mxu0 %vm288_vm2, %v295_v14 }
  0x1a   : > { %548 = vmatmul.msk.f32.vlgmr.msra.gmra.mxu0 %vm288_vm2, %v613_v18 }
  0x1b   : > { %549 = vmatmul.msk.bf16.vlgmr.msra.gmra.mxu1 %vm288_vm2, %v326_v8  ;;  %293 = vadd.xlane.f32.xlu0 %v292_v17 }
  0x86   : > { %v291_v20 = vpop.xlane.xlu0 %290 }
  0x8e   : > { %v294_v30 = vpop.xlane.xlu0 %293 }
  0x97   : > { %v375_v19 = vpop.f32.mrf.mxu2  ;;  %v323_v21 = vpop.f32.mrf.mxu0 }
  0x98   : > { %v343_v22 = vpop.f32.mrf.mxu1  ;;  %v352_v24 = vperm.slane %v323_v21, 0 }
  0x99   : > { %v348_v23 = vmul.f32 2.0, %v343_v22 }
  0x9b   : > { %v350_v25 = vsub.f32 %v348_v23, %v291_v20 }
  0x9d   : > { %v353_v26 = vsub.f32 %v350_v25, %v352_v24 }
  0x9f   : > { %v377_v27 = vpop.f32.mrf.mxu2  ;;  %356 = vst.msk [vmem:[%s269_s5] sm:$0xff] %vm355_vm3, %v353_v26 }
  0xa0   : > { %v560_v28 = vpack.c.bf16 %v377_v27, %v375_v19  ;;  %v345_v29 = vpop.f32.mrf.mxu1 }
  0xa1   : > { %v349_v31 = vmul.f32 2.0, %v345_v29 }
  0xa2   : > { %561 = vst [vmem:[%s279_s8] sm:$0xff] %v560_v28  }
  0xa3   : > { %v351_v32 = vsub.f32 %v349_v31, %v294_v30 }
  0xa5   : > { %v354_v33 = vsub.f32 %v351_v32, %v352_v24 }
  0xa7   : > { %357 = vst.msk [vmem:[%s269_s5 + $0x8] sm:$0xff] %vm355_vm3, %v354_v33 }
  0xa8 PF: > { %s15_s17 = sadd.s32 1, %s610_s17   ;;  %s703_s15 = smov %s606_s16 }
  0xa9   : > { %p12_p5 = scmp.ge.s32.totalorder %s15_s17, 4   ;;  %s704_s16 = smov %s706_s18 }
  0xab   :  { %14 = sbr.rel (!%p12_p5) target bundleno = 2 (0x2), region = 77 }

// kernel: dgcnn_forward.11
= control target key start
LH: loop header
LB: loop body
LE: loop exit
PB: predicated region body
PF: predicated region fallthrough
CT: control target
= control target key end

     0   :  { %9 = vsyncpa [#allocation3], 0  ;;  %s832_s0 = inlined_call_operand.vmem [shape: bf16[2,4,16,64], index: 0, kind: input, shape index: {}]   ;;  %s833_s1 = inlined_call_operand.vmem [shape: bf16[2,16,128], index: 1, kind: input, shape index: {}]   ;;  %s834_s2 = inlined_call_operand.hbm [shape: f32[1,64], index: 2, kind: input, shape index: {}]   ;;  %s835_s3 = inlined_call_operand.hbm [shape: f32[1,64], index: 3, kind: input, shape index: {}]   ;;  %s836_s4 = inlined_call_operand.vmem [shape: f32[2,16,64], index: 4, kind: output, shape index: {}]  }
   0x1   :  { %10 = vsyncpa [#allocation5], 0  ;;  %s740_s15 = smov 0   ;;  %s742_s16 = smov 0  }
   0x2   :  { %s744_s17 = smov 0  }
   0x3 LB: > { %s522_s18 = sadd.s32 4294967295, %s709_s17   ;;  %s28_s19 = sadd.s32 1, %s705_s16  ;;  %s709_s17 = sphi %s744_s17, %s16_s17   ;;  %s705_s16 = sphi %s742_s16, %s840_s16   ;;  %s701_s15 = sphi %s740_s15, %s839_s15  }
   0x4   : > { %p30_p0 = scmp.ge.s32.totalorder %s28_s19, 2  ;;  %p524_p1 = scmp.ge.s32.totalorder %s709_s17, 1 }
   0x5   : > { %p159_p2 = scmp.lt.s32.totalorder %s709_s17, 3  ;;  %p765_p4 = scmp.eq.s32.totalorder %s522_s18, 0 }
   0x6   : > { %s842_s19 = smov (%p30_p0, %s28_s19), 0  ;;  %s171_s24 = sshll.u32 %s834_s2, 4  ;;  %s172_s24 = int_to_ptr.hbm [resolvable:$true] %s171_s24 }
   0x7   : > { %p761_p3 = pnand %p524_p1, %p159_p2  ;;  %s711_s25 = smov [#allocation2]  }
   0x8   : > { %s173_s26 = sshll.u32 %s711_s25, 4  ;;  %s183_s29 = sshll.u32 %s835_s3, 4  ;;  %s174_s26 = int_to_ptr.vmem [resolvable:$true] %s173_s26  ;;  %s184_s29 = int_to_ptr.hbm [resolvable:$true] %s183_s29 }
   0x9   : > { %p573_p5 = pneg %p761_p3  ;;  %s712_s30 = smov [#allocation4]  }
   0xa   : > { %s185_s5 = sshll.u32 %s712_s30, 4  ;;  %224 = sbr.rel (%p761_p3) target bundleno = 156 (0x9c), region = 36  ;;  %s186_s5 = int_to_ptr.vmem [resolvable:$true] %s185_s5 }
   0xb   : > { %p574_p6 = pnand %p765_p4, %p573_p5 }
   0xd   : > { %576 = dma.hbm_to_vmem [thread:$0]  (!%p574_p6), %s172_s24, 16, %s174_s26, [#allocation3]  }
   0xe   : > { %579 = dma.hbm_to_vmem [thread:$0]  (!%p574_p6), %s184_s29, 16, %s186_s5, [#allocation5]  }
   0xf   : > { %692 = dma.done.wait (%p765_p4), [#allocation3], 16  }
  0x10   : > { %694 = vsyncadd (%p765_p4), [#allocation3], 4294967280 }
  0x11   : > { %696 = dma.done.wait (%p765_p4), [#allocation5], 16  }
  0x12   : > { %698 = vsyncadd (%p765_p4), [#allocation5], 4294967280  ;;  %p274_p7 = scmp.lt.s32.totalorder %s701_s15, 1  ;;  %s713_s10 = smov 64   ;;  %vm319_vm0 = vcmask 523264   ;;  %v714_v37 = vmov 0  }
  0x13   : > { %v352_v17 = vld [vmem:[#allocation2] sm:$0x1]  ;;  %v618_v62 = vld [vmem:[#allocation4] ss:$0 sm:$0xff] }
  0x14   : > { %s844_s15 = smov (!%p274_p7, %s701_s15), 1  ;;  %vm354_vm1 = vcmp.ge.f32.partialorder %v352_v17, 0.0  ;;  %v617_v59 = vld [vmem:[#allocation2] ss:$0 sm:$0xff] }
  0x15   : > { %s540_s6 = sshll.u32 %s844_s15, 3  ;;  %s539_s11 = sshll.u32 %s844_s15, 5  ;;  %v355_v38 = vsel %vm354_vm1, 1, %v714_v37 }
  0x16   : > { %s291_s9 = scalar_lea.vmem %s833_s1, %s540_s6  ;;  %s281_s14 = scalar_lea.vmem %s832_s0, %s539_s11  ;;  %v356_v43 = vperm.slane %v355_v38, 0 }
  0x17   : > { %v559_v0 = vld [vmem:[%s291_s9] sm:$0xff]   ;;  %v562_v5 = vld [vmem:[%s281_s14 + $0x8] sm:$0xff]   ;;  %v563_v6 = vld [vmem:[%s281_s14 + $0x10] sm:$0xff]   ;;  %s541_s18 = sshll.u32 %s844_s15, 4 }
  0x18   : > { %v560_v1 = vunpack.c.l.bf16 %v559_v0  ;;  %v561_v2 = vunpack.c.h.bf16 %v559_v0  ;;  %v543_v4 = vld [vmem:[%s281_s14] sm:$0xff]   ;;  %v564_v7 = vld [vmem:[%s281_s14 + $0x18] sm:$0xff]   ;;  %v548_v10 = vunpack.c.l.bf16 %v562_v5  ;;  %v549_v11 = vunpack.c.h.bf16 %v562_v5  ;;  %s301_s22 = scalar_lea.vmem %s836_s4, %s541_s18 }
  0x19   : > { %v544_v8 = vunpack.c.l.bf16 %v543_v4  ;;  %v545_v9 = vunpack.c.h.bf16 %v543_v4  ;;  %v552_v12 = vunpack.c.l.bf16 %v563_v6  ;;  %v553_v13 = vunpack.c.h.bf16 %v563_v6 }
  0x1a   : > { %v612_v3 = vpack.i.bf16 %v561_v2, %v560_v1  ;;  %v556_v14 = vunpack.c.l.bf16 %v564_v7  ;;  %v557_v15 = vunpack.c.h.bf16 %v564_v7  ;;  %v321_v18 = vsel %vm319_vm0, %v548_v10, -inf }
  0x1b   : > { %v320_v16 = vsel %vm319_vm0, %v544_v8, -inf  ;;  %v322_v19 = vsel %vm319_vm0, %v552_v12, -inf  ;;  %v327_v20 = vsel %vm319_vm0, %v545_v9, -inf  ;;  %v328_v21 = vsel %vm319_vm0, %v549_v11, -inf }
  0x1c   : > { %613 = vrot.lane.b32.xlu0 %v612_v3, %s713_s10  ;;  %v324_v22 = vsel %vm319_vm0, %v556_v14, -inf  ;;  %v329_v23 = vsel %vm319_vm0, %v553_v13, -inf  ;;  %v331_v24 = vsel %vm319_vm0, %v557_v15, -inf  ;;  %v336_v25 = vsel %vm319_vm0, %v544_v8, inf }
  0x1d   : > { %v337_v26 = vsel %vm319_vm0, %v548_v10, inf  ;;  %v338_v27 = vsel %vm319_vm0, %v552_v12, inf  ;;  %v340_v28 = vsel %vm319_vm0, %v556_v14, inf  ;;  %v343_v29 = vsel %vm319_vm0, %v545_v9, inf }
  0x1e   : > { %v344_v30 = vsel %vm319_vm0, %v549_v11, inf  ;;  %v345_v31 = vsel %vm319_vm0, %v553_v13, inf  ;;  %v347_v32 = vsel %vm319_vm0, %v557_v15, inf  ;;  %v323_v33 = vmax.f32 %v320_v16, %v322_v19 }
  0x1f   : > { %v325_v34 = vmax.f32 %v321_v18, %v324_v22  ;;  %v330_v35 = vmax.f32 %v327_v20, %v329_v23  ;;  %v332_v36 = vmax.f32 %v328_v21, %v331_v24  ;;  %v339_v39 = vmin.f32 %v336_v25, %v338_v27 }
  0x20   : > { %v341_v40 = vmin.f32 %v337_v26, %v340_v28  ;;  %v346_v41 = vmin.f32 %v343_v29, %v345_v31  ;;  %v348_v42 = vmin.f32 %v344_v30, %v347_v32  ;;  %vm357_vm2 = vcmp.eq.s32.totalorder %v356_v43, 1 }
  0x21   : > { %v326_v44 = vmax.f32 %v323_v33, %v325_v34  ;;  %v333_v45 = vmax.f32 %v330_v35, %v332_v36  ;;  %vm358_vm3 = vmpackc.low %vm357_vm2, %vm357_vm2 }
  0x22   : > { %v342_v46 = vmin.f32 %v339_v39, %v341_v40  ;;  %v349_v47 = vmin.f32 %v346_v41, %v348_v42 }
  0x23   : > { %v334_v48 = vpack.c.bf16 %v326_v44, %v326_v44  ;;  %v335_v49 = vpack.c.bf16 %v333_v45, %v333_v45 }
  0x24   : > { %v350_v50 = vpack.c.bf16 %v342_v46, %v342_v46  ;;  %v351_v51 = vpack.c.bf16 %v349_v47, %v349_v47 }
  0x26   : > { %v359_v52 = vsel %vm358_vm3, %v334_v48, %v350_v50  ;;  %v360_v53 = vsel %vm358_vm3, %v335_v49, %v351_v51 }
  0x27   : > { %v361_v54 = vunpack.c.l.bf16 %v359_v52  ;;  %v362_v55 = vunpack.c.l.bf16 %v360_v53 }
  0x8e   : > { %v614_v56 = vpop.permute.xlu0 %613 }
  0x8f   : > { %v616_v57 = vunpack.i.h.bf16 %v614_v56  ;;  %v615_v58 = vunpack.i.l.bf16 %v614_v56 }
  0x91   : > { %v375_v60 = vadd.f32 %v615_v58, %v361_v54  ;;  %v376_v61 = vadd.f32 %v616_v57, %v362_v55 }
  0x93   : > { %v380_v63 = vmul.f32 %v617_v59, %v375_v60  ;;  %v381_v0 = vmul.f32 %v617_v59, %v376_v61 }
  0x95   : > { %v385_v1 = vadd.f32 %v618_v62, %v380_v63  ;;  %v386_v2 = vadd.f32 %v618_v62, %v381_v0 }
  0x97   : > { %vm387_vm4 = vcmp.gt.f32.partialorder %v385_v1, 0.0  ;;  %vm388_vm5 = vcmp.gt.f32.partialorder %v386_v2, 0.0  ;;  %v389_v3 = vmul.f32 0.2, %v385_v1  ;;  %v390_v4 = vmul.f32 0.2, %v386_v2 }
  0x99   : > { %v391_v5 = vsel %vm387_vm4, %v385_v1, %v389_v3  ;;  %v392_v6 = vsel %vm388_vm5, %v386_v2, %v390_v4 }
  0x9a   : > { %393 = vst.msk [vmem:[%s301_s22] sm:$0xff] %vm319_vm0, %v391_v5 }
  0x9b   : > { %394 = vst.msk [vmem:[%s301_s22 + $0x8] sm:$0xff] %vm319_vm0, %v392_v6 }
  0x9c PF: > { %s16_s17 = sadd.s32 1, %s709_s17   ;;  %s839_s15 = smov %s705_s16 }
  0x9d   : > { %p13_p8 = scmp.ge.s32.totalorder %s16_s17, 4   ;;  %s840_s16 = smov %s842_s19 }
  0x9f   :  { %15 = sbr.rel (!%p13_p8) target bundleno = 3 (0x3), region = 78 }
  0xa4   :  { %425 = vsyncpa [#allocation3], 1 }
  0xa5   :  { %427 = vsyncpa [#allocation3 + $0x1], 1 }
  0xa6   :  { %428 = vsyncpa [#allocation5], 1 }

// kernel: dgcnn_forward.14
= control target key start
LH: loop header
LB: loop body
LE: loop exit
PB: predicated region body
PF: predicated region fallthrough
CT: control target
= control target key end

     0   :  { %s735_s15 = smov 0   ;;  %s737_s16 = smov 0   ;;  %s837_s0 = inlined_call_operand.vmem [shape: f32[2,16,64], index: 0, kind: input, shape index: {}, may-alias: {0,1}]   ;;  %s838_s1 = inlined_call_operand.vmem [shape: f32[2,16,64], index: 1, kind: input, shape index: {}, may-alias: {0,1}]   ;;  %s839_s2 = inlined_call_operand.vmem [shape: bf16[64,256], index: 2, kind: input, shape index: {}]   ;;  %s840_s3 = inlined_call_operand.vmem [shape: f32[2,16,16], index: 3, kind: output, shape index: {0}]   ;;  %s841_s4 = inlined_call_operand.vmem [shape: bf16[2,16,256], index: 4, kind: output, shape index: {1}]  }
   0x1   :  { %s739_s17 = smov 0  }
   0x2 LB: > { %s27_s18 = sadd.s32 1, %s703_s16  ;;  %p599_p0 = scmp.ge.s32.totalorder %s707_s17, 1  ;;  %s707_s17 = sphi %s739_s17, %s15_s17   ;;  %s703_s16 = sphi %s737_s16, %s843_s16   ;;  %s699_s15 = sphi %s735_s15, %s842_s15  }
   0x3   : > { %p29_p1 = scmp.ge.s32.totalorder %s27_s18, 2  ;;  %p198_p2 = scmp.lt.s32.totalorder %s707_s17, 3 }
   0x5   : > { %s845_s18 = smov (%p29_p1, %s27_s18), 0  ;;  %p199_p3 = pnand %p599_p0, %p198_p2 }
   0x6   : > { %p248_p4 = scmp.lt.s32.totalorder (!%p199_p3), %s699_s15, 1 }
   0x7   : > { %202 = sbr.rel (%p199_p3) target bundleno = 174 (0xae), region = 32 }
   0xc   : > { %v638_v0 = vld [vmem:[%s839_s2 + $0x30] sm:$0xf]  ;;  %v659_v1 = vld [vmem:[%s839_s2 + $0x34] sm:$0xf0]  ;;  %v658_v2 = vld [vmem:[%s839_s2 + $0x34] sm:$0xf] }
   0xd   : > { %v639_v3 = vor.u32 %v659_v1, %v638_v0  ;;  %v640_v4 = vld [vmem:[%s839_s2 + $0x38] sm:$0xf0]  ;;  %v630_v5 = vld [vmem:[%s839_s2 + $0x20] sm:$0xf]  ;;  %v657_v6 = vld [vmem:[%s839_s2 + $0x24] sm:$0xf0] }
   0xe   : > { %v643_v7 = vor.u32 %v658_v2, %v640_v4  ;;  %v656_v8 = vld [vmem:[%s839_s2 + $0x24] sm:$0xf]  ;;  %v632_v9 = vld [vmem:[%s839_s2 + $0x28] sm:$0xf0]  ;;  %v631_v10 = vor.u32 %v657_v6, %v630_v5  ;;  %s847_s15 = smov (!%p248_p4, %s699_s15), 1  ;;  %vm290_vm0 = vcmask 523264  }
   0xf   : > { %412 = vmatpush.bf16.msra.mxu2 %v639_v3  ;;  %v635_v11 = vor.u32 %v656_v8, %v632_v9  ;;  %v622_v12 = vld [vmem:[%s839_s2 + $0x10] sm:$0xf]  ;;  %v655_v13 = vld [vmem:[%s839_s2 + $0x14] sm:$0xf0]  ;;  %v654_v14 = vld [vmem:[%s839_s2 + $0x14] sm:$0xf] }
  0x10   : > { %426 = vmatpush.bf16.msra.mxu3 %v643_v7  ;;  %v624_v15 = vld [vmem:[%s839_s2 + $0x18] sm:$0xf0]  ;;  %s789_s21 = sshll.u32 %s847_s15, 4  ;;  %v623_v16 = vor.u32 %v655_v13, %v622_v12  ;;  %v614_v17 = vld [vmem:[%s839_s2] sm:$0xf]  ;;  %v709_v36 = vmov 1.0  }
  0x11   : > { %s261_s24 = scalar_lea.vmem %s838_s1, %s789_s21  ;;  %v653_v18 = vld [vmem:[%s839_s2 + $0x4] sm:$0xf0]  ;;  %s255_s15 = scalar_lea.vmem %s837_s0, %s789_s21  ;;  %v627_v21 = vor.u32 %v654_v14, %v624_v15  ;;  %v652_v25 = vld [vmem:[%s839_s2 + $0x4] sm:$0xf]  ;;  %v616_v26 = vld [vmem:[%s839_s2 + $0x8] sm:$0xf0] }
  0x12   : > { %v286_v19 = vld [vmem:[%s261_s24] sm:$0xff]  ;;  %v287_v20 = vld [vmem:[%s261_s24 + $0x8] sm:$0xff]  ;;  %v615_v30 = vor.u32 %v653_v18, %v614_v17  ;;  %v619_v33 = vor.u32 %v652_v25, %v616_v26  ;;  %s270_s11 = scalar_lea.vmem %s840_s3, %s789_s21  ;;  %vm357_vm1 = vcmask 130048   ;;  %s281_s14 = scalar_lea.vmem %s841_s4, %s789_s21 }
  0x13   : > { %413 = vmatpush.bf16.msra.mxu2 %v631_v10  ;;  %v284_v22 = vld [vmem:[%s255_s15] sm:$0xff]  ;;  %v329_v23 = vpack.c.bf16 %v287_v20, %v286_v19  ;;  %v298_v24 = vmul.f32 %v287_v20, %v287_v20  ;;  %v297_v28 = vmul.f32 %v286_v19, %v286_v19  ;;  %v285_v31 = vld [vmem:[%s255_s15 + $0x8] sm:$0xff] }
  0x14   : > { %427 = vmatpush.bf16.msra.mxu3 %v635_v11  ;;  %v288_v27 = vmul.f32 %v284_v22, %v284_v22  ;;  %v328_v34 = vpack.c.bf16 %v285_v31, %v284_v22  ;;  %v289_v35 = vmul.f32 %v285_v31, %v285_v31 }
  0x15   : > { %v334_v29 = vsel %vm290_vm0, %v329_v23, 0  ;;  %608 = vmatpush.xpose.msk.msra.mxu0 %vm290_vm0, %v298_v24 }
  0x16   : > { %v291_v32 = vsel %vm290_vm0, %v288_v27, 0.0  ;;  %343 = vmatpush.bf16.xpose.msra.mxu1 %v334_v29  ;;  %v294_v37 = vsel %vm290_vm0, %v289_v35, 0.0 }
  0x17   : > { %414 = vmatpush.bf16.msra.mxu2 %v623_v16  ;;  %292 = vadd.xlane.f32.xlu0 %v291_v32 }
  0x18   : > { %428 = vmatpush.bf16.msra.mxu3 %v627_v21 }
  0x19   : > { %609 = vmatpush.xpose.msk.msra.mxu0 %vm290_vm0, %v297_v28 }
  0x1b   : > { %415 = vmatpush.bf16.msra.mxu2 %v615_v30 }
  0x1c   : > { %429 = vmatpush.bf16.msra.mxu3 %v619_v33  ;;  %610 = vmatmul.msk.f32.vlgmr.msra.gmra.mxu0 %vm290_vm0, %v709_v36 }
  0x1d   : > { %611 = vmatmul.msk.bf16.vlgmr.msra.gmra.mxu1 %vm290_vm0, %v328_v34 }
  0x1e   : > { %644 = vmatmul.msk.bf16.vlgmr.msra.gmra.mxu2 %vm290_vm0, %v328_v34 }
  0x1f   : > { %645 = vmatmul.msk.bf16.vlgmr.msra.gmra.mxu3 %vm290_vm0, %v328_v34  ;;  %295 = vadd.xlane.f32.xlu0 %v294_v37 }
  0x8a   : > { %v293_v38 = vpop.xlane.xlu0 %292 }
  0x92   : > { %v296_v49 = vpop.xlane.xlu0 %295 }
  0x99   : > { %v325_v39 = vpop.f32.mrf.mxu0 }
  0x9a   : > { %v345_v40 = vpop.f32.mrf.mxu1  ;;  %v354_v42 = vperm.slane %v325_v39, 0 }
  0x9b   : > { %v350_v41 = vmul.f32 2.0, %v345_v40 }
  0x9d   : > { %v352_v43 = vsub.f32 %v350_v41, %v293_v38 }
  0x9f   : > { %v355_v44 = vsub.f32 %v352_v43, %v354_v42 }
  0xa1   : > { %v417_v45 = vpop.f32.mrf.mxu2  ;;  %358 = vst.msk [vmem:[%s270_s11] sm:$0xff] %vm357_vm1, %v355_v44 }
  0xa2   : > { %v431_v46 = vpop.f32.mrf.mxu3  ;;  %v347_v48 = vpop.f32.mrf.mxu1 }
  0xa3   : > { %v436_v47 = vpack.c.bf16 %v431_v46, %v417_v45  ;;  %v351_v50 = vmul.f32 2.0, %v347_v48 }
  0xa5   : > { %438 = vst [vmem:[%s281_s14] sm:$0xff] %v436_v47  ;;  %v353_v51 = vsub.f32 %v351_v50, %v296_v49 }
  0xa7   : > { %v356_v52 = vsub.f32 %v353_v51, %v354_v42 }
  0xa9   : > { %v419_v53 = vpop.f32.mrf.mxu2  ;;  %359 = vst.msk [vmem:[%s270_s11 + $0x8] sm:$0xff] %vm357_vm1, %v356_v52 }
  0xaa   : > { %v433_v54 = vpop.f32.mrf.mxu3 }
  0xab   : > { %v437_v55 = vpack.c.bf16 %v433_v54, %v419_v53 }
  0xad   : > { %439 = vst [vmem:[%s281_s14 + $0x8] sm:$0xff] %v437_v55 }
  0xae PF: > { %s15_s17 = sadd.s32 1, %s707_s17   ;;  %s842_s15 = smov %s703_s16 }
  0xaf   : > { %p12_p5 = scmp.ge.s32.totalorder %s15_s17, 4   ;;  %s843_s16 = smov %s845_s18 }
  0xb1   :  { %14 = sbr.rel (!%p12_p5) target bundleno = 2 (0x2), region = 77 }

// kernel: dgcnn_forward.15
= control target key start
LH: loop header
LB: loop body
LE: loop exit
PB: predicated region body
PF: predicated region fallthrough
CT: control target
= control target key end

     0   :  { %9 = vsyncpa [#allocation3], 0  ;;  %s793_s0 = inlined_call_operand.vmem [shape: bf16[2,4,16,128], index: 0, kind: input, shape index: {}]   ;;  %s794_s1 = inlined_call_operand.vmem [shape: bf16[2,16,256], index: 1, kind: input, shape index: {}]   ;;  %s795_s2 = inlined_call_operand.hbm [shape: f32[1,128], index: 2, kind: input, shape index: {}]   ;;  %s796_s3 = inlined_call_operand.hbm [shape: f32[1,128], index: 3, kind: input, shape index: {}]   ;;  %s797_s4 = inlined_call_operand.vmem [shape: f32[2,16,128], index: 4, kind: output, shape index: {}]  }
   0x1   :  { %10 = vsyncpa [#allocation5], 0  ;;  %s716_s15 = smov 0   ;;  %s718_s16 = smov 0  }
   0x2   :  { %s720_s17 = smov 0  }
   0x3 LB: > { %s509_s18 = sadd.s32 4294967295, %s686_s17   ;;  %s28_s19 = sadd.s32 1, %s682_s16  ;;  %s686_s17 = sphi %s720_s17, %s16_s17   ;;  %s682_s16 = sphi %s718_s16, %s801_s16   ;;  %s678_s15 = sphi %s716_s15, %s800_s15  }
   0x4   : > { %p30_p0 = scmp.ge.s32.totalorder %s28_s19, 2  ;;  %p511_p1 = scmp.ge.s32.totalorder %s686_s17, 1 }
   0x5   : > { %p159_p2 = scmp.lt.s32.totalorder %s686_s17, 3  ;;  %p741_p4 = scmp.eq.s32.totalorder %s509_s18, 0 }
   0x6   : > { %s803_s19 = smov (%p30_p0, %s28_s19), 0  ;;  %s171_s24 = sshll.u32 %s795_s2, 4  ;;  %s172_s24 = int_to_ptr.hbm [resolvable:$true] %s171_s24 }
   0x7   : > { %p737_p3 = pnand %p511_p1, %p159_p2  ;;  %s688_s25 = smov [#allocation2]  }
   0x8   : > { %s173_s26 = sshll.u32 %s688_s25, 4  ;;  %s183_s29 = sshll.u32 %s796_s3, 4  ;;  %s174_s26 = int_to_ptr.vmem [resolvable:$true] %s173_s26  ;;  %s184_s29 = int_to_ptr.hbm [resolvable:$true] %s183_s29 }
   0x9   : > { %p556_p5 = pneg %p737_p3  ;;  %s689_s30 = smov [#allocation4]  }
   0xa   : > { %s185_s5 = sshll.u32 %s689_s30, 4  ;;  %225 = sbr.rel (%p737_p3) target bundleno = 48 (0x30), region = 36  ;;  %s186_s5 = int_to_ptr.vmem [resolvable:$true] %s185_s5 }
   0xb   : > { %p557_p6 = pnand %p741_p4, %p556_p5 }
   0xd   : > { %559 = dma.hbm_to_vmem [thread:$0]  (!%p557_p6), %s172_s24, 16, %s174_s26, [#allocation3]  }
   0xe   : > { %562 = dma.hbm_to_vmem [thread:$0]  (!%p557_p6), %s184_s29, 16, %s186_s5, [#allocation5]  }
   0xf   : > { %669 = dma.done.wait (%p741_p4), [#allocation3], 16  }
  0x10   : > { %671 = vsyncadd (%p741_p4), [#allocation3], 4294967280 }
  0x11   : > { %673 = dma.done.wait (%p741_p4), [#allocation5], 16  }
  0x12   : > { %675 = vsyncadd (%p741_p4), [#allocation5], 4294967280  ;;  %p276_p7 = scmp.lt.s32.totalorder %s678_s15, 1  ;;  %v338_v8 = vld [vmem:[#allocation2] sm:$0x1]  ;;  %v690_v26 = vmov 0  }
  0x13   : > { %vm340_vm0 = vcmp.ge.f32.partialorder %v338_v8, 0.0  ;;  %v594_v42 = vld [vmem:[#allocation2] ss:$0 sm:$0xff]  ;;  %v595_v45 = vld [vmem:[#allocation4] ss:$0 sm:$0xff] }
  0x14   : > { %s805_s15 = smov (!%p276_p7, %s678_s15), 1  ;;  %v341_v27 = vsel %vm340_vm0, 1, %v690_v26 }
  0x15   : > { %s526_s6 = sshll.u32 %s805_s15, 5  ;;  %s527_s7 = sshll.u32 %s805_s15, 4  ;;  %v342_v31 = vperm.slane %v341_v27, 0 }
  0x16   : > { %s283_s10 = scalar_lea.vmem %s793_s0, %s526_s6  ;;  %s294_s13 = scalar_lea.vmem %s794_s1, %s527_s7 }
  0x17   : > { %v530_v0 = vld [vmem:[%s283_s10] sm:$0xff]   ;;  %v545_v1 = vld [vmem:[%s283_s10 + $0x8] sm:$0xff]   ;;  %v546_v2 = vld [vmem:[%s283_s10 + $0x10] sm:$0xff]   ;;  %vm343_vm1 = vcmp.eq.s32.totalorder %v342_v31, 1  ;;  %s304_s20 = scalar_lea.vmem %s797_s4, %s527_s7 }
  0x18   : > { %v531_v3 = vunpack.c.l.bf16 %v530_v0  ;;  %v532_v4 = vunpack.c.h.bf16 %v530_v0  ;;  %v535_v5 = vunpack.c.l.bf16 %v545_v1  ;;  %v536_v6 = vunpack.c.h.bf16 %v545_v1  ;;  %v547_v7 = vld [vmem:[%s283_s10 + $0x18] sm:$0xff]   ;;  %v349_v13 = vld [vmem:[%s294_s13] sm:$0xff]  ;;  %v350_v14 = vld [vmem:[%s294_s13 + $0x8] sm:$0xff] }
  0x19   : > { %v539_v9 = vunpack.c.l.bf16 %v546_v2  ;;  %v540_v10 = vunpack.c.h.bf16 %v546_v2  ;;  %v543_v11 = vunpack.c.l.bf16 %v547_v7  ;;  %v544_v12 = vunpack.c.h.bf16 %v547_v7  ;;  %vm344_vm2 = vmpackc.low %vm343_vm1, %vm343_vm1 }
  0x1a   : > { %v353_v15 = vrot.slane %v349_v13, 4  ;;  %v354_v28 = vrot.slane %v350_v14, 4 }
  0x1b   : > { %v322_v16 = vmax.f32 %v531_v3, %v539_v9  ;;  %v323_v17 = vmax.f32 %v535_v5, %v543_v11  ;;  %v325_v18 = vmax.f32 %v532_v4, %v540_v10  ;;  %v326_v19 = vmax.f32 %v536_v6, %v544_v12 }
  0x1c   : > { %v330_v20 = vmin.f32 %v531_v3, %v539_v9  ;;  %v331_v21 = vmin.f32 %v535_v5, %v543_v11  ;;  %v333_v22 = vmin.f32 %v532_v4, %v540_v10  ;;  %v334_v23 = vmin.f32 %v536_v6, %v544_v12 }
  0x1d   : > { %v324_v24 = vmax.f32 %v322_v16, %v323_v17  ;;  %v327_v25 = vmax.f32 %v325_v18, %v326_v19  ;;  %v357_v36 = vunpack.c.l.bf16 %v353_v15  ;;  %v358_v37 = vunpack.c.l.bf16 %v354_v28 }
  0x1e   : > { %v332_v29 = vmin.f32 %v330_v20, %v331_v21  ;;  %v335_v30 = vmin.f32 %v333_v22, %v334_v23 }
  0x1f   : > { %v328_v32 = vpack.c.bf16 %v324_v24, %v324_v24  ;;  %v329_v33 = vpack.c.bf16 %v327_v25, %v327_v25 }
  0x20   : > { %v336_v34 = vpack.c.bf16 %v332_v29, %v332_v29  ;;  %v337_v35 = vpack.c.bf16 %v335_v30, %v335_v30 }
  0x22   : > { %v345_v38 = vsel %vm344_vm2, %v328_v32, %v336_v34  ;;  %v346_v39 = vsel %vm344_vm2, %v329_v33, %v337_v35 }
  0x23   : > { %v347_v40 = vunpack.c.l.bf16 %v345_v38  ;;  %v348_v41 = vunpack.c.l.bf16 %v346_v39 }
  0x25   : > { %v359_v43 = vadd.f32 %v357_v36, %v347_v40  ;;  %v360_v44 = vadd.f32 %v358_v37, %v348_v41 }
  0x27   : > { %v364_v46 = vmul.f32 %v594_v42, %v359_v43  ;;  %v365_v47 = vmul.f32 %v594_v42, %v360_v44 }
  0x29   : > { %v369_v48 = vadd.f32 %v595_v45, %v364_v46  ;;  %v370_v49 = vadd.f32 %v595_v45, %v365_v47 }
  0x2b   : > { %vm371_vm3 = vcmp.gt.f32.partialorder %v369_v48, 0.0  ;;  %v373_v50 = vmul.f32 0.2, %v369_v48  ;;  %vm372_vm4 = vcmp.gt.f32.partialorder %v370_v49, 0.0  ;;  %v374_v51 = vmul.f32 0.2, %v370_v49 }
  0x2d   : > { %v375_v52 = vsel %vm371_vm3, %v369_v48, %v373_v50  ;;  %v376_v53 = vsel %vm372_vm4, %v370_v49, %v374_v51 }
  0x2e   : > { %377 = vst [vmem:[%s304_s20] sm:$0xff] %v375_v52 }
  0x2f   : > { %378 = vst [vmem:[%s304_s20 + $0x8] sm:$0xff] %v376_v53 }
  0x30 PF: > { %s16_s17 = sadd.s32 1, %s686_s17   ;;  %s800_s15 = smov %s682_s16 }
  0x31   : > { %p13_p8 = scmp.ge.s32.totalorder %s16_s17, 4   ;;  %s801_s16 = smov %s803_s19 }
  0x33   :  { %15 = sbr.rel (!%p13_p8) target bundleno = 3 (0x3), region = 78 }
  0x38   :  { %409 = vsyncpa [#allocation3], 1 }
  0x39   :  { %411 = vsyncpa [#allocation3 + $0x1], 1 }
  0x3a   :  { %412 = vsyncpa [#allocation5], 1 }

// kernel: dgcnn_forward.17
= control target key start
LH: loop header
LB: loop body
LE: loop exit
PB: predicated region body
PF: predicated region fallthrough
CT: control target
= control target key end

     0   :  { %9 = vsyncpa [#allocation3], 0  ;;  %s824_s0 = inlined_call_operand.vmem [shape: bf16[2,4,16,256], index: 0, kind: input, shape index: {}]   ;;  %s825_s1 = inlined_call_operand.vmem [shape: bf16[2,16,512], index: 1, kind: input, shape index: {}]   ;;  %s826_s2 = inlined_call_operand.hbm [shape: f32[1,256], index: 2, kind: input, shape index: {}]   ;;  %s827_s3 = inlined_call_operand.hbm [shape: f32[1,256], index: 3, kind: input, shape index: {}]   ;;  %s828_s4 = inlined_call_operand.vmem [shape: f32[2,16,256], index: 4, kind: output, shape index: {}]  }
   0x1   :  { %10 = vsyncpa [#allocation5], 0  ;;  %s747_s15 = smov 0   ;;  %s749_s16 = smov 0  }
   0x2   :  { %s751_s17 = smov 0  }
   0x3 LB: > { %s561_s18 = sadd.s32 4294967295, %s717_s17   ;;  %s28_s19 = sadd.s32 1, %s713_s16  ;;  %s717_s17 = sphi %s751_s17, %s16_s17   ;;  %s713_s16 = sphi %s749_s16, %s832_s16   ;;  %s709_s15 = sphi %s747_s15, %s831_s15  }
   0x4   : > { %p30_p0 = scmp.ge.s32.totalorder %s28_s19, 2  ;;  %p563_p1 = scmp.ge.s32.totalorder %s717_s17, 1 }
   0x5   : > { %p159_p2 = scmp.lt.s32.totalorder %s717_s17, 3  ;;  %p772_p4 = scmp.eq.s32.totalorder %s561_s18, 0 }
   0x6   : > { %s834_s19 = smov (%p30_p0, %s28_s19), 0  ;;  %s171_s24 = sshll.u32 %s826_s2, 4  ;;  %s172_s24 = int_to_ptr.hbm [resolvable:$true] %s171_s24 }
   0x7   : > { %p768_p3 = pnand %p563_p1, %p159_p2  ;;  %s719_s25 = smov [#allocation2]  }
   0x8   : > { %s173_s26 = sshll.u32 %s719_s25, 4  ;;  %s183_s29 = sshll.u32 %s827_s3, 4  ;;  %s174_s26 = int_to_ptr.vmem [resolvable:$true] %s173_s26  ;;  %s184_s29 = int_to_ptr.hbm [resolvable:$true] %s183_s29 }
   0x9   : > { %p589_p5 = pneg %p768_p3  ;;  %s720_s30 = smov [#allocation4]  }
   0xa   : > { %s185_s5 = sshll.u32 %s720_s30, 4  ;;  %226 = sbr.rel (%p768_p3) target bundleno = 53 (0x35), region = 36  ;;  %s186_s5 = int_to_ptr.vmem [resolvable:$true] %s185_s5 }
   0xb   : > { %p590_p6 = pnand %p772_p4, %p589_p5 }
   0xd   : > { %592 = dma.hbm_to_vmem [thread:$0]  (!%p590_p6), %s172_s24, 32, %s174_s26, [#allocation3]  }
   0xe   : > { %595 = dma.hbm_to_vmem [thread:$0]  (!%p590_p6), %s184_s29, 32, %s186_s5, [#allocation5]  }
   0xf   : > { %700 = dma.done.wait (%p772_p4), [#allocation3], 32  }
  0x10   : > { %702 = vsyncadd (%p772_p4), [#allocation3], 4294967264 }
  0x11   : > { %704 = dma.done.wait (%p772_p4), [#allocation5], 32  }
  0x12   : > { %706 = vsyncadd (%p772_p4), [#allocation5], 4294967264  ;;  %p279_p7 = scmp.lt.s32.totalorder %s709_s15, 1  ;;  %v363_v40 = vld [vmem:[#allocation2] sm:$0x3]  ;;  %v721_v51 = vmov 0  }
  0x13   : > { %vm365_vm0 = vcmp.ge.f32.partialorder %v363_v40, 0.0  ;;  %v364_v59 = vld [vmem:[#allocation4] sm:$0x3] }
  0x14   : > { %s836_s15 = smov (!%p279_p7, %s709_s15), 1  ;;  %v366_v52 = vsel %vm365_vm0, 1, %v721_v51 }
  0x15   : > { %s578_s6 = sshll.u32 %s836_s15, 6  ;;  %s579_s10 = sshll.u32 %s836_s15, 5  ;;  %v367_v55 = vperm.slane %v366_v52, 0  ;;  %v368_v56 = vperm.slane %v366_v52, 1 }
  0x16   : > { %s287_s9 = scalar_lea.vmem %s824_s0, %s578_s6  ;;  %s298_s13 = scalar_lea.vmem %s825_s1, %s579_s10 }
  0x17   : > { %v311_v0 = vld [vmem:[%s287_s9] sm:$0xff]  ;;  %v312_v1 = vld [vmem:[%s287_s9 + $0x8] sm:$0xff]  ;;  %v313_v2 = vld [vmem:[%s287_s9 + $0x10] sm:$0xff]  ;;  %vm369_vm1 = vcmp.eq.s32.totalorder %v367_v55, 1  ;;  %vm370_vm2 = vcmp.eq.s32.totalorder %v368_v56, 1  ;;  %s309_s20 = scalar_lea.vmem %s828_s4, %s579_s10 }
  0x18   : > { %v314_v3 = vld [vmem:[%s287_s9 + $0x18] sm:$0xff]  ;;  %v315_v4 = vld [vmem:[%s287_s9 + $0x20] sm:$0xff]  ;;  %v316_v5 = vld [vmem:[%s287_s9 + $0x28] sm:$0xff]  ;;  %v319_v6 = vunpack.c.l.bf16 %v311_v0  ;;  %v320_v7 = vunpack.c.h.bf16 %v311_v0  ;;  %v321_v8 = vunpack.c.l.bf16 %v312_v1  ;;  %v322_v9 = vunpack.c.h.bf16 %v312_v1 }
  0x19   : > { %v317_v10 = vld [vmem:[%s287_s9 + $0x30] sm:$0xff]  ;;  %v318_v11 = vld [vmem:[%s287_s9 + $0x38] sm:$0xff]  ;;  %v323_v12 = vunpack.c.l.bf16 %v313_v2  ;;  %v324_v13 = vunpack.c.h.bf16 %v313_v2  ;;  %v325_v14 = vunpack.c.l.bf16 %v314_v3  ;;  %v326_v15 = vunpack.c.h.bf16 %v314_v3  ;;  %v378_v57 = vld [vmem:[%s298_s13 + $0x8] sm:$0xff] }
  0x1a   : > { %v327_v16 = vunpack.c.l.bf16 %v315_v4  ;;  %v328_v17 = vunpack.c.h.bf16 %v315_v4  ;;  %v329_v18 = vunpack.c.l.bf16 %v316_v5  ;;  %v330_v19 = vunpack.c.h.bf16 %v316_v5  ;;  %v379_v58 = vld [vmem:[%s298_s13 + $0x18] sm:$0xff]  ;;  %vm371_vm3 = vmpackc.low %vm370_vm2, %vm369_vm1 }
  0x1b   : > { %v331_v20 = vunpack.c.l.bf16 %v317_v10  ;;  %v332_v21 = vunpack.c.h.bf16 %v317_v10  ;;  %v333_v22 = vunpack.c.l.bf16 %v318_v11  ;;  %v334_v23 = vunpack.c.h.bf16 %v318_v11 }
  0x1c   : > { %v335_v24 = vmax.f32 %v319_v6, %v323_v12  ;;  %v338_v25 = vmax.f32 %v320_v7, %v324_v13  ;;  %v341_v26 = vmax.f32 %v321_v8, %v325_v14  ;;  %v344_v27 = vmax.f32 %v322_v9, %v326_v15 }
  0x1d   : > { %v349_v28 = vmin.f32 %v319_v6, %v323_v12  ;;  %v352_v29 = vmin.f32 %v320_v7, %v324_v13  ;;  %v355_v30 = vmin.f32 %v321_v8, %v325_v14  ;;  %v358_v31 = vmin.f32 %v322_v9, %v326_v15 }
  0x1e   : > { %v336_v32 = vmax.f32 %v335_v24, %v327_v16  ;;  %v339_v33 = vmax.f32 %v338_v25, %v328_v17  ;;  %v342_v34 = vmax.f32 %v341_v26, %v329_v18  ;;  %v345_v35 = vmax.f32 %v344_v27, %v330_v19 }
  0x1f   : > { %v350_v36 = vmin.f32 %v349_v28, %v327_v16  ;;  %v353_v37 = vmin.f32 %v352_v29, %v328_v17  ;;  %v356_v38 = vmin.f32 %v355_v30, %v329_v18  ;;  %v359_v39 = vmin.f32 %v358_v31, %v330_v19 }
  0x20   : > { %v337_v41 = vmax.f32 %v336_v32, %v331_v20  ;;  %v340_v42 = vmax.f32 %v339_v33, %v332_v21  ;;  %v343_v43 = vmax.f32 %v342_v34, %v333_v22  ;;  %v346_v44 = vmax.f32 %v345_v35, %v334_v23 }
  0x21   : > { %v351_v45 = vmin.f32 %v350_v36, %v331_v20  ;;  %v354_v46 = vmin.f32 %v353_v37, %v332_v21  ;;  %v357_v47 = vmin.f32 %v356_v38, %v333_v22  ;;  %v360_v48 = vmin.f32 %v359_v39, %v334_v23 }
  0x22   : > { %v347_v49 = vpack.c.bf16 %v340_v42, %v337_v41  ;;  %v348_v50 = vpack.c.bf16 %v346_v44, %v343_v43  ;;  %v380_v60 = vunpack.c.l.bf16 %v378_v57  ;;  %v381_v61 = vunpack.c.h.bf16 %v378_v57 }
  0x23   : > { %v361_v53 = vpack.c.bf16 %v354_v46, %v351_v45  ;;  %v362_v54 = vpack.c.bf16 %v360_v48, %v357_v47  ;;  %v382_v62 = vunpack.c.l.bf16 %v379_v58  ;;  %v383_v63 = vunpack.c.h.bf16 %v379_v58 }
  0x24   : > { %v389_v2 = vperm.slane %v363_v40, 0  ;;  %v390_v3 = vperm.slane %v363_v40, 1  ;;  %v398_v8 = vperm.slane %v364_v59, 0  ;;  %v399_v9 = vperm.slane %v364_v59, 1 }
  0x25   : > { %v372_v0 = vsel %vm371_vm3, %v347_v49, %v361_v53  ;;  %v373_v1 = vsel %vm371_vm3, %v348_v50, %v362_v54 }
  0x26   : > { %v374_v4 = vunpack.c.l.bf16 %v372_v0  ;;  %v375_v5 = vunpack.c.h.bf16 %v372_v0  ;;  %v376_v6 = vunpack.c.l.bf16 %v373_v1  ;;  %v377_v7 = vunpack.c.h.bf16 %v373_v1 }
  0x28   : > { %v384_v10 = vadd.f32 %v380_v60, %v374_v4  ;;  %v385_v11 = vadd.f32 %v381_v61, %v375_v5  ;;  %v386_v12 = vadd.f32 %v382_v62, %v376_v6  ;;  %v387_v13 = vadd.f32 %v383_v63, %v377_v7 }
  0x2a   : > { %v393_v14 = vmul.f32 %v389_v2, %v384_v10  ;;  %v394_v15 = vmul.f32 %v390_v3, %v385_v11  ;;  %v395_v16 = vmul.f32 %v389_v2, %v386_v12  ;;  %v396_v17 = vmul.f32 %v390_v3, %v387_v13 }
  0x2c   : > { %v402_v18 = vadd.f32 %v398_v8, %v393_v14  ;;  %v403_v19 = vadd.f32 %v399_v9, %v394_v15  ;;  %v404_v20 = vadd.f32 %v398_v8, %v395_v16  ;;  %v405_v21 = vadd.f32 %v399_v9, %v396_v17 }
  0x2e   : > { %vm406_vm4 = vcmp.gt.f32.partialorder %v402_v18, 0.0  ;;  %v410_v22 = vmul.f32 0.2, %v402_v18  ;;  %vm407_vm5 = vcmp.gt.f32.partialorder %v403_v19, 0.0  ;;  %v411_v23 = vmul.f32 0.2, %v403_v19 }
  0x2f   : > { %vm408_vm6 = vcmp.gt.f32.partialorder %v404_v20, 0.0  ;;  %v412_v24 = vmul.f32 0.2, %v404_v20  ;;  %vm409_vm7 = vcmp.gt.f32.partialorder %v405_v21, 0.0  ;;  %v413_v25 = vmul.f32 0.2, %v405_v21 }
  0x30   : > { %v414_v26 = vsel %vm406_vm4, %v402_v18, %v410_v22  ;;  %v415_v27 = vsel %vm407_vm5, %v403_v19, %v411_v23 }
  0x31   : > { %418 = vst [vmem:[%s309_s20] sm:$0xff] %v414_v26  ;;  %v416_v28 = vsel %vm408_vm6, %v404_v20, %v412_v24  ;;  %v417_v29 = vsel %vm409_vm7, %v405_v21, %v413_v25 }
  0x32   : > { %419 = vst [vmem:[%s309_s20 + $0x8] sm:$0xff] %v415_v27 }
  0x33   : > { %420 = vst [vmem:[%s309_s20 + $0x10] sm:$0xff] %v416_v28 }
  0x34   : > { %421 = vst [vmem:[%s309_s20 + $0x18] sm:$0xff] %v417_v29 }
  0x35 PF: > { %s16_s17 = sadd.s32 1, %s717_s17   ;;  %s831_s15 = smov %s713_s16 }
  0x36   : > { %p13_p8 = scmp.ge.s32.totalorder %s16_s17, 4   ;;  %s832_s16 = smov %s834_s19 }
  0x38   :  { %15 = sbr.rel (!%p13_p8) target bundleno = 3 (0x3), region = 78 }
  0x3d   :  { %454 = vsyncpa [#allocation3], 1 }
  0x3e   :  { %456 = vsyncpa [#allocation3 + $0x1], 1 }
  0x3f   :  { %457 = vsyncpa [#allocation5], 1 }

// kernel: dgcnn_forward.16
= control target key start
LH: loop header
LB: loop body
LE: loop exit
PB: predicated region body
PF: predicated region fallthrough
CT: control target
= control target key end

     0   :  { %10 = vsyncpa [#allocation3], 0  ;;  %s1088_s15 = smov 0   ;;  %s1090_s16 = smov 0   ;;  %s1147_s0 = inlined_call_operand.vmem [shape: f32[2,16,128], index: 0, kind: input, shape index: {}, may-alias: {0,1}]   ;;  %s1148_s1 = inlined_call_operand.vmem [shape: f32[2,16,128], index: 1, kind: input, shape index: {}, may-alias: {0,1}]   ;;  %s1149_s2 = inlined_call_operand.hbm [shape: bf16[128,512], index: 2, kind: input, shape index: {}]   ;;  %s1150_s3 = inlined_call_operand.vmem [shape: f32[2,16,16], index: 3, kind: output, shape index: {0}]   ;;  %s1151_s4 = inlined_call_operand.vmem [shape: bf16[2,16,512], index: 4, kind: output, shape index: {1}]  }
   0x1   :  { %s1092_s17 = smov 0  }
   0x2 LB: > { %s782_s18 = sadd.s32 4294967295, %s1057_s17   ;;  %s28_s19 = sadd.s32 1, %s1053_s16  ;;  %s1057_s17 = sphi %s1092_s17, %s16_s17   ;;  %s1053_s16 = sphi %s1090_s16, %s1153_s16   ;;  %s1049_s15 = sphi %s1088_s15, %s1152_s15  }
   0x3   : > { %p30_p0 = scmp.ge.s32.totalorder %s28_s19, 2  ;;  %p784_p1 = scmp.ge.s32.totalorder %s1057_s17, 1 }
   0x4   : > { %p164_p2 = scmp.lt.s32.totalorder %s1057_s17, 3  ;;  %p971_p4 = scmp.eq.s32.totalorder %s782_s18, 0 }
   0x5   : > { %s1155_s19 = smov (%p30_p0, %s28_s19), 0  ;;  %s175_s22 = sshll.u32 %s1149_s2, 4  ;;  %s176_s22 = int_to_ptr.hbm [resolvable:$true] %s175_s22 }
   0x6   : > { %p165_p3 = pnand %p784_p1, %p164_p2  ;;  %s1059_s23 = smov [#allocation2]  }
   0x7   : > { %s177_s24 = sshll.u32 %s1059_s23, 4  ;;  %s1060_s25 = smov 256   ;;  %s178_s24 = int_to_ptr.vmem [resolvable:$true] %s177_s24 }
   0x8   : > { %p967_p5 = pneg %p165_p3  ;;  %s1061_s26 = smov 16  }
   0x9   : > { %214 = sbr.rel (%p165_p3) target bundleno = 200 (0xc8), region = 32 }
   0xa   : > { %p968_p6 = pnand %p971_p4, %p967_p5 }
   0xc   : > { %970 = dma.hbm_to_vmem [thread:$0]  (!%p968_p6), %s176_s22, 4096, %s178_s24, [#allocation3], %s1060_s25, %s1060_s25, %s1061_s26  }
   0xe   : > { %1044 = dma.done.wait (%p971_p4), [#allocation3], 4096  }
   0xf   : > { %1046 = vsyncadd (%p971_p4), [#allocation3], 4294963200  ;;  %p265_p7 = scmp.lt.s32.totalorder %s1049_s15, 1  ;;  %v911_v4 = vld [vmem:[#allocation2 + $0xe0] sm:$0xf]  ;;  %v1062_v49 = vmov 1.0  }
  0x10   : > { %v961_v5 = vld [vmem:[#allocation2 + $0xec] sm:$0xf0]  ;;  %v959_v10 = vld [vmem:[#allocation2 + $0xe4] sm:$0xf]  ;;  %v913_v11 = vld [vmem:[#allocation2 + $0xf0] sm:$0xf0] }
  0x11   : > { %s1157_s15 = smov (!%p265_p7, %s1049_s15), 1  ;;  %v912_v9 = vor.u32 %v961_v5, %v911_v4  ;;  %v960_v12 = vld [vmem:[#allocation2 + $0xec] sm:$0xf]  ;;  %v916_v13 = vor.u32 %v959_v10, %v913_v11  ;;  %v921_v14 = vld [vmem:[#allocation2 + $0xf8] sm:$0xf0]  ;;  %vm356_vm0 = vcmask 130048  }
  0x12   : > { %s1113_s27 = sshll.u32 %s1157_s15, 4  ;;  %v895_v16 = vld [vmem:[#allocation2 + $0xc0] sm:$0xf]  ;;  %v957_v17 = vld [vmem:[#allocation2 + $0xcc] sm:$0xf0]  ;;  %v924_v18 = vor.u32 %v960_v12, %v921_v14  ;;  %s930_s11 = sshll.u32 %s1157_s15, 5 }
  0x13   : > { %s272_s30 = scalar_lea.vmem %s1147_s0, %s1113_s27  ;;  %s278_s7 = scalar_lea.vmem %s1148_s1, %s1113_s27  ;;  %551 = vmatpush.bf16.msra.mxu2 %v912_v9  ;;  %v896_v19 = vor.u32 %v957_v17, %v895_v16  ;;  %v955_v20 = vld [vmem:[#allocation2 + $0xc4] sm:$0xf]  ;;  %v897_v21 = vld [vmem:[#allocation2 + $0xd0] sm:$0xf0]  ;;  %v919_v22 = vld [vmem:[#allocation2 + $0xe8] sm:$0xf]  ;;  %565 = vmatpush.bf16.msra.mxu3 %v916_v13 }
  0x14   : > { %v301_v0 = vld [vmem:[%s272_s30] sm:$0xff]  ;;  %v304_v1 = vld [vmem:[%s278_s7 + $0x8] sm:$0xff]  ;;  %v900_v23 = vor.u32 %v955_v20, %v897_v21  ;;  %v962_v24 = vld [vmem:[#allocation2 + $0xf4] sm:$0xf0]  ;;  %s287_s10 = scalar_lea.vmem %s1150_s3, %s1113_s27  ;;  %s298_s14 = scalar_lea.vmem %s1151_s4, %s930_s11 }
  0x15   : > { %v312_v2 = vmul.f32 %v304_v1, %v304_v1  ;;  %v303_v3 = vld [vmem:[%s278_s7] sm:$0xff]  ;;  %v305_v6 = vmul.f32 %v301_v0, %v301_v0  ;;  %v302_v7 = vld [vmem:[%s272_s30 + $0x8] sm:$0xff]  ;;  %v905_v26 = vld [vmem:[#allocation2 + $0xd8] sm:$0xf0]  ;;  %v920_v27 = vor.u32 %v962_v24, %v919_v22 }
  0x16   : > { %v334_v8 = vpack.c.bf16 %v304_v1, %v303_v3  ;;  %v311_v15 = vmul.f32 %v303_v3, %v303_v3  ;;  %v956_v25 = vld [vmem:[#allocation2 + $0xcc] sm:$0xf]  ;;  %v879_v29 = vld [vmem:[#allocation2 + $0xa0] sm:$0xf]  ;;  %v953_v30 = vld [vmem:[#allocation2 + $0xac] sm:$0xf0]  ;;  %v1123_v32 = vpack.c.bf16 %v302_v7, %v301_v0  ;;  %v306_v36 = vmul.f32 %v302_v7, %v302_v7 }
  0x17   : > { %327 = vmatpush.xpose.msra.mxu0 %v312_v2  ;;  %307 = vadd.xlane.f32.xlu0 %v305_v6  ;;  %v908_v28 = vor.u32 %v956_v25, %v905_v26  ;;  %v951_v31 = vld [vmem:[#allocation2 + $0xa4] sm:$0xf]  ;;  %v881_v33 = vld [vmem:[#allocation2 + $0xb0] sm:$0xf0]  ;;  %v903_v34 = vld [vmem:[#allocation2 + $0xc8] sm:$0xf]  ;;  %v880_v37 = vor.u32 %v953_v30, %v879_v29 }
  0x18   : > { %342 = vmatpush.bf16.xpose.msra.mxu1 %v334_v8  ;;  %v958_v35 = vld [vmem:[#allocation2 + $0xd4] sm:$0xf0]  ;;  %552 = vmatpush.bf16.msra.mxu2 %v896_v19  ;;  %v952_v39 = vld [vmem:[#allocation2 + $0xac] sm:$0xf]  ;;  %v889_v40 = vld [vmem:[#allocation2 + $0xb8] sm:$0xf0]  ;;  %v884_v41 = vor.u32 %v951_v31, %v881_v33 }
  0x19   : > { %v904_v38 = vor.u32 %v958_v35, %v903_v34  ;;  %566 = vmatpush.bf16.msra.mxu3 %v900_v23  ;;  %v863_v42 = vld [vmem:[#allocation2 + $0x80] sm:$0xf]  ;;  %v949_v43 = vld [vmem:[#allocation2 + $0x8c] sm:$0xf0]  ;;  %v947_v44 = vld [vmem:[#allocation2 + $0x84] sm:$0xf]  ;;  %v892_v45 = vor.u32 %v952_v39, %v889_v40 }
  0x1a   : > { %v865_v46 = vld [vmem:[#allocation2 + $0x90] sm:$0xf0]  ;;  %v887_v47 = vld [vmem:[#allocation2 + $0xa8] sm:$0xf]  ;;  %v954_v48 = vld [vmem:[#allocation2 + $0xb4] sm:$0xf0]  ;;  %v864_v52 = vor.u32 %v949_v43, %v863_v42 }
  0x1b   : > { %328 = vmatpush.xpose.msra.mxu0 %v311_v15  ;;  %v948_v50 = vld [vmem:[#allocation2 + $0x8c] sm:$0xf]  ;;  %v873_v51 = vld [vmem:[#allocation2 + $0x98] sm:$0xf0]  ;;  %v888_v53 = vor.u32 %v954_v48, %v887_v47  ;;  %v847_v54 = vld [vmem:[#allocation2 + $0x60] sm:$0xf]  ;;  %v868_v55 = vor.u32 %v947_v44, %v865_v46 }
  0x1c   : > { %553 = vmatpush.bf16.msra.mxu2 %v880_v37  ;;  %v945_v56 = vld [vmem:[#allocation2 + $0x6c] sm:$0xf0]  ;;  %v871_v57 = vld [vmem:[#allocation2 + $0x88] sm:$0xf]  ;;  %v950_v58 = vld [vmem:[#allocation2 + $0x94] sm:$0xf0]  ;;  %v876_v59 = vor.u32 %v948_v50, %v873_v51 }
  0x1d   : > { %567 = vmatpush.bf16.msra.mxu3 %v884_v41  ;;  %v943_v60 = vld [vmem:[#allocation2 + $0x64] sm:$0xf]  ;;  %v849_v61 = vld [vmem:[#allocation2 + $0x70] sm:$0xf0]  ;;  %v944_v62 = vld [vmem:[#allocation2 + $0x6c] sm:$0xf]  ;;  %v848_v0 = vor.u32 %v945_v56, %v847_v54  ;;  %v872_v1 = vor.u32 %v950_v58, %v871_v57 }
  0x1e   : > { %329 = vmatmul.f32.vlgmr.msra.gmra.mxu0 %v1062_v49  ;;  %v857_v63 = vld [vmem:[#allocation2 + $0x78] sm:$0xf0]  ;;  %v831_v2 = vld [vmem:[#allocation2 + $0x40] sm:$0xf]  ;;  %v852_v3 = vor.u32 %v943_v60, %v849_v61  ;;  %v941_v4 = vld [vmem:[#allocation2 + $0x4c] sm:$0xf0] }
  0x1f   : > { %579 = vmatpush.bf16.msrb.mxu0 %v920_v27  ;;  %343 = vmatmul.bf16.vlgmr.msra.gmra.mxu1 %v1123_v32  ;;  %v855_v5 = vld [vmem:[#allocation2 + $0x68] sm:$0xf]  ;;  %v946_v6 = vld [vmem:[#allocation2 + $0x74] sm:$0xf0]  ;;  %v860_v7 = vor.u32 %v944_v62, %v857_v63  ;;  %v939_v8 = vld [vmem:[#allocation2 + $0x44] sm:$0xf]  ;;  %v832_v12 = vor.u32 %v941_v4, %v831_v2 }
  0x20   : > { %593 = vmatpush.bf16.msrb.mxu1 %v924_v18  ;;  %309 = vadd.xlane.f32.xlu0 %v306_v36  ;;  %v833_v9 = vld [vmem:[#allocation2 + $0x50] sm:$0xf0]  ;;  %v940_v10 = vld [vmem:[#allocation2 + $0x4c] sm:$0xf]  ;;  %v841_v11 = vld [vmem:[#allocation2 + $0x58] sm:$0xf0]  ;;  %v856_v13 = vor.u32 %v946_v6, %v855_v5 }
  0x21   : > { %554 = vmatpush.bf16.msra.mxu2 %v864_v52  ;;  %568 = vmatpush.bf16.msra.mxu3 %v868_v55  ;;  %v815_v14 = vld [vmem:[#allocation2 + $0x20] sm:$0xf]  ;;  %v836_v15 = vor.u32 %v939_v8, %v833_v9  ;;  %v937_v16 = vld [vmem:[#allocation2 + $0x2c] sm:$0xf0]  ;;  %v839_v17 = vld [vmem:[#allocation2 + $0x48] sm:$0xf]  ;;  %v844_v19 = vor.u32 %v940_v10, %v841_v11 }
  0x22   : > { %v942_v18 = vld [vmem:[#allocation2 + $0x54] sm:$0xf0]  ;;  %v935_v20 = vld [vmem:[#allocation2 + $0x24] sm:$0xf]  ;;  %v817_v21 = vld [vmem:[#allocation2 + $0x30] sm:$0xf0]  ;;  %v816_v24 = vor.u32 %v937_v16, %v815_v14 }
  0x23   : > { %580 = vmatpush.bf16.msrb.mxu0 %v904_v38  ;;  %v936_v22 = vld [vmem:[#allocation2 + $0x2c] sm:$0xf]  ;;  %v825_v23 = vld [vmem:[#allocation2 + $0x38] sm:$0xf0]  ;;  %v840_v25 = vor.u32 %v942_v18, %v839_v17  ;;  %v799_v26 = vld [vmem:[#allocation2] sm:$0xf]  ;;  %v820_v27 = vor.u32 %v935_v20, %v817_v21 }
  0x24   : > { %594 = vmatpush.bf16.msrb.mxu1 %v908_v28  ;;  %v933_v28 = vld [vmem:[#allocation2 + $0xc] sm:$0xf0]  ;;  %v823_v29 = vld [vmem:[#allocation2 + $0x28] sm:$0xf]  ;;  %v938_v30 = vld [vmem:[#allocation2 + $0x34] sm:$0xf0]  ;;  %v828_v31 = vor.u32 %v936_v22, %v825_v23 }
  0x25   : > { %555 = vmatpush.bf16.msra.mxu2 %v848_v0  ;;  %569 = vmatpush.bf16.msra.mxu3 %v852_v3  ;;  %v931_v33 = vld [vmem:[#allocation2 + $0x4] sm:$0xf]  ;;  %v801_v34 = vld [vmem:[#allocation2 + $0x10] sm:$0xf0]  ;;  %v932_v35 = vld [vmem:[#allocation2 + $0xc] sm:$0xf]  ;;  %v800_v37 = vor.u32 %v933_v28, %v799_v26  ;;  %v824_v38 = vor.u32 %v938_v30, %v823_v29 }
  0x26   : > { %v809_v36 = vld [vmem:[#allocation2 + $0x18] sm:$0xf0]  ;;  %v804_v39 = vor.u32 %v931_v33, %v801_v34  ;;  %v807_v40 = vld [vmem:[#allocation2 + $0x8] sm:$0xf]  ;;  %v934_v41 = vld [vmem:[#allocation2 + $0x14] sm:$0xf0] }
  0x27   : > { %581 = vmatpush.bf16.msrb.mxu0 %v888_v53  ;;  %v812_v42 = vor.u32 %v932_v35, %v809_v36  ;;  %v808_v43 = vor.u32 %v934_v41, %v807_v40 }
  0x28   : > { %595 = vmatpush.bf16.msrb.mxu1 %v892_v45 }
  0x29   : > { %556 = vmatpush.bf16.msra.mxu2 %v832_v12  ;;  %570 = vmatpush.bf16.msra.mxu3 %v836_v15 }
  0x2b   : > { %582 = vmatpush.bf16.msrb.mxu0 %v872_v1 }
  0x2c   : > { %596 = vmatpush.bf16.msrb.mxu1 %v876_v59 }
  0x2d   : > { %557 = vmatpush.bf16.msra.mxu2 %v816_v24  ;;  %571 = vmatpush.bf16.msra.mxu3 %v820_v27 }
  0x2f   : > { %583 = vmatpush.bf16.msrb.mxu0 %v856_v13 }
  0x30   : > { %597 = vmatpush.bf16.msrb.mxu1 %v860_v7 }
  0x31   : > { %558 = vmatpush.bf16.msra.mxu2 %v800_v37  ;;  %572 = vmatpush.bf16.msra.mxu3 %v804_v39 }
  0x33   : > { %584 = vmatpush.bf16.msrb.mxu0 %v840_v25 }
  0x34   : > { %598 = vmatpush.bf16.msrb.mxu1 %v844_v19  ;;  %559 = vmatmul.bf16.vlgmr.msra.gmra.mxu2 %v1123_v32 }
  0x35   : > { %573 = vmatmul.bf16.vlgmr.msra.gmra.mxu3 %v1123_v32 }
  0x37   : > { %585 = vmatpush.bf16.msrb.mxu0 %v824_v38 }
  0x38   : > { %599 = vmatpush.bf16.msrb.mxu1 %v828_v31 }
  0x3b   : > { %586 = vmatpush.bf16.msrb.mxu0 %v808_v43 }
  0x3c   : > { %600 = vmatpush.bf16.msrb.mxu1 %v812_v42 }
  0x3e   : > { %587 = vmatmul.bf16.vlgmr.msrb.gmra.mxu0 %v1123_v32 }
  0x3f   : > { %601 = vmatmul.bf16.vlgmr.msrb.gmra.mxu1 %v1123_v32 }
  0x8a   : > { %v308_v44 = vpop.xlane.xlu0 %307 }
  0x93   : > { %v310_v52 = vpop.xlane.xlu0 %309 }
  0x9b   : > { %v330_v45 = vpop.f32.mrf.mxu0 }
  0x9c   : > { %v344_v46 = vpop.f32.mrf.mxu1  ;;  %v353_v48 = vperm.slane %v330_v45, 0 }
  0x9d   : > { %v349_v47 = vmul.f32 2.0, %v344_v46 }
  0x9f   : > { %v351_v49 = vsub.f32 %v349_v47, %v308_v44 }
  0xa1   : > { %v354_v50 = vsub.f32 %v351_v49, %v353_v48 }
  0xa3   : > { %357 = vst.msk [vmem:[%s287_s10] sm:$0xff] %vm356_vm0, %v354_v50 }
  0xa4   : > { %v346_v51 = vpop.f32.mrf.mxu1 }
  0xa5   : > { %v350_v53 = vmul.f32 2.0, %v346_v51 }
  0xa7   : > { %v352_v54 = vsub.f32 %v350_v53, %v310_v52 }
  0xa9   : > { %v355_v55 = vsub.f32 %v352_v54, %v353_v48 }
  0xab   : > { %358 = vst.msk [vmem:[%s287_s10 + $0x8] sm:$0xff] %vm356_vm0, %v355_v55 }
  0xb7   : > { %v560_v58 = vpop.f32.mrf.mxu2 }
  0xb8   : > { %v574_v59 = vpop.f32.mrf.mxu3 }
  0xb9   : > { %v607_v60 = vpack.c.bf16 %v574_v59, %v560_v58 }
  0xbb   : > { %v588_v56 = vpop.f32.mrf.mxu0  ;;  %611 = vst [vmem:[%s298_s14] sm:$0xff] %v607_v60 }
  0xbc   : > { %v602_v32 = vpop.f32.mrf.mxu1 }
  0xbd   : > { %v608_v57 = vpack.c.bf16 %v602_v32, %v588_v56 }
  0xbf   : > { %612 = vst [vmem:[%s298_s14 + $0x8] sm:$0xff] %v608_v57  ;;  %v562_v0 = vpop.f32.mrf.mxu2 }
  0xc0   : > { %v576_v1 = vpop.f32.mrf.mxu3 }
  0xc1   : > { %v609_v2 = vpack.c.bf16 %v576_v1, %v562_v0 }
  0xc3   : > { %v590_v62 = vpop.f32.mrf.mxu0  ;;  %613 = vst [vmem:[%s298_s14 + $0x10] sm:$0xff] %v609_v2 }
  0xc4   : > { %v604_v61 = vpop.f32.mrf.mxu1 }
  0xc5   : > { %v610_v63 = vpack.c.bf16 %v604_v61, %v590_v62 }
  0xc7   : > { %614 = vst [vmem:[%s298_s14 + $0x18] sm:$0xff] %v610_v63 }
  0xc8 PF: > { %s16_s17 = sadd.s32 1, %s1057_s17   ;;  %s1152_s15 = smov %s1053_s16 }
  0xc9   : > { %p13_p8 = scmp.ge.s32.totalorder %s16_s17, 4   ;;  %s1153_s16 = smov %s1155_s19 }
  0xcb   :  { %15 = sbr.rel (!%p13_p8) target bundleno = 2 (0x2), region = 82 }
  0xd0   :  { %672 = vsyncpa [#allocation3], 1 }
  0xd1   :  { %674 = vsyncpa [#allocation3 + $0x1], 1 }

// kernel: dgcnn_forward.18
= control target key start
LH: loop header
LB: loop body
LE: loop exit
PB: predicated region body
PF: predicated region fallthrough
CT: control target
= control target key end

     0   :  { %s5616_s0 = inlined_call_operand.vmem [shape: f32[2,16,64], index: 0, kind: input, shape index: {}]   ;;  %s5617_s1 = inlined_call_operand.vmem [shape: f32[2,16,64], index: 1, kind: input, shape index: {}]   ;;  %s5618_s2 = inlined_call_operand.vmem [shape: f32[2,16,128], index: 2, kind: input, shape index: {}]   ;;  %s5619_s3 = inlined_call_operand.vmem [shape: f32[2,16,256], index: 3, kind: input, shape index: {}]   ;;  %s5620_s4 = inlined_call_operand.hbm [shape: bf16[64,1024], index: 4, kind: input, shape index: {}]   ;;  %s5621_s5 = inlined_call_operand.hbm [shape: bf16[64,1024], index: 5, kind: input, shape index: {}]   ;;  %s5622_s6 = inlined_call_operand.vmem [shape: bf16[128,1024], index: 6, kind: input, shape index: {}]   ;;  %s5623_s7 = inlined_call_operand.hbm [shape: bf16[256,1024], index: 7, kind: input, shape index: {}]   ;;  %s5624_s8 = inlined_call_operand.vmem [shape: f32[1,1024], index: 8, kind: input, shape index: {}]   ;;  %s5625_s9 = inlined_call_operand.hbm [shape: f32[1,1024], index: 9, kind: input, shape index: {}]   ;;  %s5626_s10 = inlined_call_operand.vmem [shape: f32[2,2,1024], index: 10, kind: output, shape index: {}]  }
   0x1   :  { %5627 = sst [smem:[#allocation15_spill]] %s5621_s5 }
   0x2   :  { %15 = vsyncpa [#allocation5], 0 }
   0x3   :  { %16 = vsyncpa [#allocation7], 0 }
   0x4   :  { %17 = vsyncpa [#allocation10], 0  ;;  %s4858_s13 = smov 0   ;;  %s4860_s14 = smov 0  }
   0x5   :  { %s4862_s15 = smov 0  }
   0x6 LB: > { %s3248_s16 = sadd.s32 4294967295, %s4795_s15   ;;  %p3250_p0 = scmp.ge.s32.totalorder %s4795_s15, 1  ;;  %s4795_s15 = sphi %s4862_s15, %s23_s15   ;;  %s4791_s14 = sphi %s4860_s14, %s5635_s14   ;;  %s4787_s13 = sphi %s4858_s13, %s5634_s13  }
   0x7   : > { %p304_p1 = scmp.lt.s32.totalorder %s4795_s15, 3  ;;  %p4876_p2 = scmp.eq.s32.totalorder %s3248_s16, 0 }
   0x8   : > { %s5629_s5 = sld [smem:[#allocation15_spill]]  ;;  %s4797_s22 = smov [#allocation6]  }
   0x9   : > { %p4883_p3 = pnand %p3250_p0, %p304_p1  ;;  %s331_s23 = sshll.u32 %s4797_s22, 4  ;;  %s332_s23 = int_to_ptr.vmem [resolvable:$true] %s331_s23 }
   0xa   : > { %s35_s25 = sadd.s32 1, %s4791_s14  ;;  %s4798_s26 = smov 512  }
   0xb   : > { %p4590_p4 = pneg %p4883_p3  ;;  %p37_p6 = scmp.ge.s32.totalorder %s35_s25, 2 }
   0xc   : > { %s4799_s27 = smov 32   ;;  %s315_s30 = sshll.u32 %s5620_s4, 4  ;;  %s316_s30 = int_to_ptr.hbm [resolvable:$true] %s315_s30 }
   0xd   : > { %p4891_p5 = pnand %p4876_p2, %p4590_p4  ;;  %s5637_s25 = smov (%p37_p6, %s35_s25), 0 }
   0xe   : > { %s329_s20 = sshll.u32 %s5629_s5, 4  ;;  %5632 = sst [smem:[#allocation14_spill]] %s5637_s25  ;;  %s330_s20 = int_to_ptr.hbm [resolvable:$true] %s329_s20 }
   0xf   : > { %4596 = dma.hbm_to_vmem [thread:$0]  (!%p4891_p5), %s330_s20, 4096, %s332_s23, [#allocation7], %s4798_s26, %s4798_s26, %s4799_s27  }
  0x10   : > { %s4800_s11 = smov [#allocation4]   ;;  %s346_s19 = sshll.u32 %s5623_s7, 4  ;;  %s347_s19 = int_to_ptr.hbm [resolvable:$true] %s346_s19 }
  0x11   : > { %s317_s12 = sshll.u32 %s4800_s11, 4  ;;  %s4801_s22 = smov [#allocation8]   ;;  %s318_s12 = int_to_ptr.vmem [resolvable:$true] %s317_s12 }
  0x12   : > { %4593 = dma.hbm_to_vmem [thread:$0]  (!%p4891_p5), %s316_s30, 4096, %s318_s12, [#allocation5], %s4798_s26, %s4798_s26, %s4799_s27  }
  0x13   : > { %s348_s20 = sshll.u32 %s4801_s22, 4  ;;  %s364_s25 = sshll.u32 %s5625_s9, 4  ;;  %s349_s20 = int_to_ptr.vmem [resolvable:$true] %s348_s20  ;;  %s365_s25 = int_to_ptr.hbm [resolvable:$true] %s364_s25 }
  0x14   : > { %4599 = dma.hbm_to_vmem [thread:$0]  (!%p4891_p5), %s347_s19, 16384, %s349_s20, [#allocation7], %s4798_s26, %s4798_s26, %s4799_s27  }
  0x15   : > { %s4802_s28 = smov [#allocation9]   ;;  %432 = sbr.rel (%p4883_p3) target bundleno = 475 (0x1db), region = 60 }
  0x16   : > { %s366_s29 = sshll.u32 %s4802_s28, 4  ;;  %s367_s29 = int_to_ptr.vmem [resolvable:$true] %s366_s29 }
  0x17   : > { %4602 = dma.hbm_to_vmem [thread:$0]  (!%p4891_p5), %s365_s25, 128, %s367_s29, [#allocation10]  }
  0x1a   : > { %4774 = dma.done.wait (%p4876_p2), [#allocation5], 4096  }
  0x1b   : > { %4776 = vsyncadd (%p4876_p2), [#allocation5], 4294963200 }
  0x1c   : > { %4778 = dma.done.wait (%p4876_p2), [#allocation7], 20480  }
  0x1d   : > { %4780 = vsyncadd (%p4876_p2), [#allocation7], 4294946816 }
  0x1e   : > { %4782 = dma.done.wait (%p4876_p2), [#allocation10], 128  }
  0x1f   : > { %4784 = vsyncadd (%p4876_p2), [#allocation10], 4294967168  ;;  %p519_p7 = scmp.lt.s32.totalorder %s4787_s13, 1  ;;  %v3369_v0 = vld [vmem:[#allocation6 + $0xc0] sm:$0xf]  ;;  %vm801_vm0 = vcmask 523264  }
  0x20   : > { %v4378_v1 = vld [vmem:[#allocation6 + $0xdc] sm:$0xf0]  ;;  %v4374_v2 = vld [vmem:[#allocation6 + $0xc4] sm:$0xf]  ;;  %v3377_v5 = vld [vmem:[#allocation6 + $0xc8] sm:$0xf] }
  0x21   : > { %s5639_s13 = smov (!%p519_p7, %s4787_s13), 1  ;;  %v3370_v3 = vor.u32 %v4378_v1, %v3369_v0  ;;  %v3371_v4 = vld [vmem:[#allocation6 + $0xe0] sm:$0xf0]  ;;  %v4379_v6 = vld [vmem:[#allocation6 + $0xe4] sm:$0xf0]  ;;  %vm2909_vm5 = vcmask 1040384  }
  0x22   : > { %s4934_s5 = sshll.u32 %s5639_s13, 4  ;;  %v3374_v7 = vor.u32 %v4374_v2, %v3371_v4  ;;  %v3378_v8 = vor.u32 %v4379_v6, %v3377_v5  ;;  %v4375_v9 = vld [vmem:[#allocation6 + $0xcc] sm:$0xf]  ;;  %v3337_v11 = vld [vmem:[#allocation6 + $0x80] sm:$0xf]  ;;  %s4316_s18 = sshll.u32 %s5639_s13, 5 }
  0x23   : > { %v3379_v10 = vld [vmem:[#allocation6 + $0xe8] sm:$0xf0]  ;;  %809 = vmatpush.bf16.msra.mxu0 %v3370_v3  ;;  %v4370_v13 = vld [vmem:[#allocation6 + $0x9c] sm:$0xf0]  ;;  %v4366_v14 = vld [vmem:[#allocation6 + $0x84] sm:$0xf]  ;;  %s536_s24 = scalar_lea.vmem %s5617_s1, %s4934_s5  ;;  %s526_s27 = scalar_lea.vmem %s5616_s0, %s4934_s5 }
  0x24   : > { %v3382_v12 = vor.u32 %v4375_v9, %v3379_v10  ;;  %v3339_v15 = vld [vmem:[#allocation6 + $0xa0] sm:$0xf0]  ;;  %823 = vmatpush.bf16.msra.mxu1 %v3374_v7  ;;  %837 = vmatpush.bf16.msra.mxu2 %v3378_v8  ;;  %v3338_v16 = vor.u32 %v4370_v13, %v3337_v11  ;;  %v3345_v18 = vld [vmem:[#allocation6 + $0x88] sm:$0xf]  ;;  %v4367_v20 = vld [vmem:[#allocation6 + $0x8c] sm:$0xf]  ;;  %s557_s13 = scalar_lea.vmem %s5619_s3, %s4316_s18  ;;  %s563_s17 = scalar_lea.vmem %s5626_s10, %s4934_s5 }
  0x25   : > { %v3342_v17 = vor.u32 %v4366_v14, %v3339_v15  ;;  %v4371_v19 = vld [vmem:[#allocation6 + $0xa4] sm:$0xf0]  ;;  %v3347_v22 = vld [vmem:[#allocation6 + $0xa8] sm:$0xf0]  ;;  %v3305_v23 = vld [vmem:[#allocation6 + $0x40] sm:$0xf] }
  0x26   : > { %851 = vmatpush.bf16.msra.mxu3 %v3382_v12  ;;  %v3346_v21 = vor.u32 %v4371_v19, %v3345_v18  ;;  %v4362_v24 = vld [vmem:[#allocation6 + $0x5c] sm:$0xf0]  ;;  %v3350_v25 = vor.u32 %v4367_v20, %v3347_v22  ;;  %v4358_v26 = vld [vmem:[#allocation6 + $0x44] sm:$0xf]  ;;  %v3313_v28 = vld [vmem:[#allocation6 + $0x48] sm:$0xf] }
  0x27   : > { %v3307_v27 = vld [vmem:[#allocation6 + $0x60] sm:$0xf0]  ;;  %810 = vmatpush.bf16.msra.mxu0 %v3338_v16  ;;  %v3306_v29 = vor.u32 %v4362_v24, %v3305_v23  ;;  %v4363_v30 = vld [vmem:[#allocation6 + $0x64] sm:$0xf0]  ;;  %v4359_v31 = vld [vmem:[#allocation6 + $0x4c] sm:$0xf] }
  0x28   : > { %v3315_v32 = vld [vmem:[#allocation6 + $0x68] sm:$0xf0]  ;;  %824 = vmatpush.bf16.msra.mxu1 %v3342_v17  ;;  %838 = vmatpush.bf16.msra.mxu2 %v3346_v21  ;;  %v3310_v33 = vor.u32 %v4358_v26, %v3307_v27  ;;  %v3314_v34 = vor.u32 %v4363_v30, %v3313_v28  ;;  %v3273_v35 = vld [vmem:[#allocation6] sm:$0xf]  ;;  %v4350_v37 = vld [vmem:[#allocation6 + $0x4] sm:$0xf] }
  0x29   : > { %v4354_v36 = vld [vmem:[#allocation6 + $0x1c] sm:$0xf0]  ;;  %v3318_v38 = vor.u32 %v4359_v31, %v3315_v32  ;;  %v3275_v39 = vld [vmem:[#allocation6 + $0x20] sm:$0xf0]  ;;  %v3281_v40 = vld [vmem:[#allocation6 + $0x8] sm:$0xf] }
  0x2a   : > { %852 = vmatpush.bf16.msra.mxu3 %v3350_v25  ;;  %v4355_v41 = vld [vmem:[#allocation6 + $0x24] sm:$0xf0]  ;;  %v4351_v42 = vld [vmem:[#allocation6 + $0xc] sm:$0xf]  ;;  %v3385_v44 = vld [vmem:[#allocation6 + $0xd0] sm:$0xf]  ;;  %v3274_v45 = vor.u32 %v4354_v36, %v3273_v35  ;;  %v3278_v49 = vor.u32 %v4350_v37, %v3275_v39 }
  0x2b   : > { %v3283_v43 = vld [vmem:[#allocation6 + $0x28] sm:$0xf0]  ;;  %811 = vmatpush.bf16.msra.mxu0 %v3306_v29  ;;  %v4380_v46 = vld [vmem:[#allocation6 + $0xec] sm:$0xf0]  ;;  %v4376_v47 = vld [vmem:[#allocation6 + $0xd4] sm:$0xf]  ;;  %v3282_v50 = vor.u32 %v4355_v41, %v3281_v40 }
  0x2c   : > { %v3387_v48 = vld [vmem:[#allocation6 + $0xf0] sm:$0xf0]  ;;  %825 = vmatpush.bf16.msra.mxu1 %v3310_v33  ;;  %839 = vmatpush.bf16.msra.mxu2 %v3314_v34  ;;  %v3393_v51 = vld [vmem:[#allocation6 + $0xd8] sm:$0xf]  ;;  %v4377_v53 = vld [vmem:[#allocation6 + $0xdc] sm:$0xf]  ;;  %v3286_v54 = vor.u32 %v4351_v42, %v3283_v43  ;;  %v3386_v55 = vor.u32 %v4380_v46, %v3385_v44 }
  0x2d   : > { %v4381_v52 = vld [vmem:[#allocation6 + $0xf4] sm:$0xf0]  ;;  %v3395_v56 = vld [vmem:[#allocation6 + $0xf8] sm:$0xf0]  ;;  %v606_v57 = vld [vmem:[%s536_s24] sm:$0xff]  ;;  %v3390_v59 = vor.u32 %v4376_v47, %v3387_v48  ;;  %vm2911_vm10 = vcmask 1042434  }
  0x2e   : > { %853 = vmatpush.bf16.msra.mxu3 %v3318_v38  ;;  %v607_v58 = vld [vmem:[%s536_s24 + $0x8] sm:$0xff]  ;;  %v3394_v60 = vor.u32 %v4381_v52, %v3393_v51  ;;  %v3353_v61 = vld [vmem:[#allocation6 + $0x90] sm:$0xf]  ;;  %v4368_v63 = vld [vmem:[#allocation6 + $0x94] sm:$0xf]  ;;  %v3398_v0 = vor.u32 %v4377_v53, %v3395_v56  ;;  %s546_s24 = scalar_lea.vmem %s5618_s2, %s4934_s5  ;;  %vm2913_vm11 = vcmask 1041408  }
  0x2f   : > { %v4372_v62 = vld [vmem:[#allocation6 + $0xac] sm:$0xf0]  ;;  %812 = vmatpush.bf16.msra.mxu0 %v3274_v45  ;;  %v4940_v1 = vpack.c.bf16 %v607_v58, %v606_v57  ;;  %v3355_v2 = vld [vmem:[#allocation6 + $0xb0] sm:$0xf0]  ;;  %v3361_v3 = vld [vmem:[#allocation6 + $0x98] sm:$0xf] }
  0x30   : > { %v4373_v4 = vld [vmem:[#allocation6 + $0xb4] sm:$0xf0]  ;;  %826 = vmatpush.bf16.msra.mxu1 %v3278_v49  ;;  %840 = vmatpush.bf16.msra.mxu2 %v3282_v50  ;;  %v4369_v5 = vld [vmem:[#allocation6 + $0x9c] sm:$0xf]  ;;  %v3354_v7 = vor.u32 %v4372_v62, %v3353_v61  ;;  %v3358_v8 = vor.u32 %v4368_v63, %v3355_v2  ;;  %v3321_v10 = vld [vmem:[#allocation6 + $0x50] sm:$0xf] }
  0x31   : > { %v3363_v6 = vld [vmem:[#allocation6 + $0xb8] sm:$0xf0]  ;;  %v3362_v9 = vor.u32 %v4373_v4, %v3361_v3  ;;  %v4364_v11 = vld [vmem:[#allocation6 + $0x6c] sm:$0xf0]  ;;  %v4360_v12 = vld [vmem:[#allocation6 + $0x54] sm:$0xf] }
  0x32   : > { %854 = vmatpush.bf16.msra.mxu3 %v3286_v54  ;;  %3399 = vmatmul.msk.bf16.vlgmr.msra.gmra.mxu0 %vm801_vm0, %v4940_v1  ;;  %v3366_v13 = vor.u32 %v4369_v5, %v3363_v6  ;;  %v3323_v14 = vld [vmem:[#allocation6 + $0x70] sm:$0xf0]  ;;  %v3329_v15 = vld [vmem:[#allocation6 + $0x58] sm:$0xf]  ;;  %v4361_v17 = vld [vmem:[#allocation6 + $0x5c] sm:$0xf]  ;;  %v3322_v19 = vor.u32 %v4364_v11, %v3321_v10 }
  0x33   : > { %865 = vmatpush.bf16.msrb.mxu0 %v3386_v55  ;;  %v4365_v16 = vld [vmem:[#allocation6 + $0x74] sm:$0xf0]  ;;  %3400 = vmatmul.msk.bf16.vlgmr.msra.gmra.mxu1 %vm801_vm0, %v4940_v1  ;;  %v3331_v18 = vld [vmem:[#allocation6 + $0x78] sm:$0xf0]  ;;  %v3289_v20 = vld [vmem:[#allocation6 + $0x10] sm:$0xf]  ;;  %v3326_v22 = vor.u32 %v4360_v12, %v3323_v14 }
  0x34   : > { %879 = vmatpush.bf16.msrb.mxu1 %v3390_v59  ;;  %893 = vmatpush.bf16.msrb.mxu2 %v3394_v60  ;;  %v4356_v21 = vld [vmem:[#allocation6 + $0x2c] sm:$0xf0]  ;;  %v3330_v23 = vor.u32 %v4365_v16, %v3329_v15  ;;  %v4352_v24 = vld [vmem:[#allocation6 + $0x14] sm:$0xf]  ;;  %v3297_v26 = vld [vmem:[#allocation6 + $0x18] sm:$0xf]  ;;  %v3334_v27 = vor.u32 %v4361_v17, %v3331_v18 }
  0x35   : > { %3401 = vmatmul.msk.bf16.vlgmr.msra.gmra.mxu2 %vm801_vm0, %v4940_v1  ;;  %3402 = vmatmul.msk.bf16.vlgmr.msra.gmra.mxu3 %vm801_vm0, %v4940_v1  ;;  %v3291_v25 = vld [vmem:[#allocation6 + $0x30] sm:$0xf0]  ;;  %v4357_v28 = vld [vmem:[#allocation6 + $0x34] sm:$0xf0]  ;;  %v4353_v29 = vld [vmem:[#allocation6 + $0x1c] sm:$0xf]  ;;  %v3290_v34 = vor.u32 %v4356_v21, %v3289_v20 }
  0x36   : > { %907 = vmatpush.bf16.msrb.mxu3 %v3398_v0  ;;  %v3299_v30 = vld [vmem:[#allocation6 + $0x38] sm:$0xf0]  ;;  %v3505_v31 = vld [vmem:[#allocation4 + $0xc0] sm:$0xf]  ;;  %v4342_v33 = vld [vmem:[#allocation4 + $0xc4] sm:$0xf]  ;;  %v3294_v38 = vor.u32 %v4352_v24, %v3291_v25  ;;  %v3298_v39 = vor.u32 %v4357_v28, %v3297_v26 }
  0x37   : > { %866 = vmatpush.bf16.msrb.mxu0 %v3354_v7  ;;  %v4346_v32 = vld [vmem:[#allocation4 + $0xdc] sm:$0xf0]  ;;  %v3507_v35 = vld [vmem:[#allocation4 + $0xe0] sm:$0xf0]  ;;  %v3513_v36 = vld [vmem:[#allocation4 + $0xc8] sm:$0xf]  ;;  %v3302_v42 = vor.u32 %v4353_v29, %v3299_v30 }
  0x38   : > { %880 = vmatpush.bf16.msrb.mxu1 %v3358_v8  ;;  %894 = vmatpush.bf16.msrb.mxu2 %v3362_v9  ;;  %v4347_v37 = vld [vmem:[#allocation4 + $0xe4] sm:$0xf0]  ;;  %v4343_v40 = vld [vmem:[#allocation4 + $0xcc] sm:$0xf]  ;;  %v3506_v43 = vor.u32 %v4346_v32, %v3505_v31  ;;  %v3510_v44 = vor.u32 %v4342_v33, %v3507_v35  ;;  %v3473_v46 = vld [vmem:[#allocation4 + $0x80] sm:$0xf] }
  0x39   : > { %v3515_v41 = vld [vmem:[#allocation4 + $0xe8] sm:$0xf0]  ;;  %v3514_v45 = vor.u32 %v4347_v37, %v3513_v36  ;;  %v4338_v47 = vld [vmem:[#allocation4 + $0x9c] sm:$0xf0]  ;;  %v4334_v48 = vld [vmem:[#allocation4 + $0x84] sm:$0xf] }
  0x3a   : > { %908 = vmatpush.bf16.msrb.mxu3 %v3366_v13  ;;  %v3518_v49 = vor.u32 %v4343_v40, %v3515_v41  ;;  %v3475_v50 = vld [vmem:[#allocation4 + $0xa0] sm:$0xf0]  ;;  %v3481_v51 = vld [vmem:[#allocation4 + $0x88] sm:$0xf]  ;;  %v4335_v53 = vld [vmem:[#allocation4 + $0x8c] sm:$0xf]  ;;  %v3474_v55 = vor.u32 %v4338_v47, %v3473_v46 }
  0x3b   : > { %867 = vmatpush.bf16.msrb.mxu0 %v3322_v19  ;;  %v4339_v52 = vld [vmem:[#allocation4 + $0xa4] sm:$0xf0]  ;;  %v3483_v54 = vld [vmem:[#allocation4 + $0xa8] sm:$0xf0]  ;;  %v3478_v56 = vor.u32 %v4334_v48, %v3475_v50  ;;  %v3441_v58 = vld [vmem:[#allocation4 + $0x40] sm:$0xf] }
  0x3c   : > { %881 = vmatpush.bf16.msrb.mxu1 %v3326_v22  ;;  %895 = vmatpush.bf16.msrb.mxu2 %v3330_v23  ;;  %v3482_v57 = vor.u32 %v4339_v52, %v3481_v51  ;;  %v4330_v59 = vld [vmem:[#allocation4 + $0x5c] sm:$0xf0]  ;;  %v4326_v60 = vld [vmem:[#allocation4 + $0x44] sm:$0xf]  ;;  %v3486_v61 = vor.u32 %v4335_v53, %v3483_v54  ;;  %v3449_v63 = vld [vmem:[#allocation4 + $0x48] sm:$0xf] }
  0x3d   : > { %v3443_v62 = vld [vmem:[#allocation4 + $0x60] sm:$0xf0]  ;;  %v4331_v0 = vld [vmem:[#allocation4 + $0x64] sm:$0xf0]  ;;  %v4327_v2 = vld [vmem:[#allocation4 + $0x4c] sm:$0xf]  ;;  %v3442_v4 = vor.u32 %v4330_v59, %v3441_v58 }
  0x3e   : > { %909 = vmatpush.bf16.msrb.mxu3 %v3334_v27  ;;  %v3451_v3 = vld [vmem:[#allocation4 + $0x68] sm:$0xf0]  ;;  %v3409_v5 = vld [vmem:[#allocation4] sm:$0xf]  ;;  %v3446_v7 = vor.u32 %v4326_v60, %v3443_v62  ;;  %v3450_v8 = vor.u32 %v4331_v0, %v3449_v63  ;;  %v4318_v9 = vld [vmem:[#allocation4 + $0x4] sm:$0xf] }
  0x3f   : > { %868 = vmatpush.bf16.msrb.mxu0 %v3290_v34  ;;  %v4322_v6 = vld [vmem:[#allocation4 + $0x1c] sm:$0xf0]  ;;  %v3411_v10 = vld [vmem:[#allocation4 + $0x20] sm:$0xf0]  ;;  %v3417_v11 = vld [vmem:[#allocation4 + $0x8] sm:$0xf]  ;;  %v3454_v12 = vor.u32 %v4327_v2, %v3451_v3 }
  0x40   : > { %882 = vmatpush.bf16.msrb.mxu1 %v3294_v38  ;;  %896 = vmatpush.bf16.msrb.mxu2 %v3298_v39  ;;  %v4323_v13 = vld [vmem:[#allocation4 + $0x24] sm:$0xf0]  ;;  %v4319_v14 = vld [vmem:[#allocation4 + $0xc] sm:$0xf]  ;;  %v3521_v16 = vld [vmem:[#allocation4 + $0xd0] sm:$0xf]  ;;  %v3410_v19 = vor.u32 %v4322_v6, %v3409_v5  ;;  %v3414_v23 = vor.u32 %v4318_v9, %v3411_v10 }
  0x41   : > { %v3419_v15 = vld [vmem:[#allocation4 + $0x28] sm:$0xf0]  ;;  %v4348_v17 = vld [vmem:[#allocation4 + $0xec] sm:$0xf0]  ;;  %v4344_v18 = vld [vmem:[#allocation4 + $0xd4] sm:$0xf]  ;;  %v3418_v24 = vor.u32 %v4323_v13, %v3417_v11 }
  0x42   : > { %910 = vmatpush.bf16.msrb.mxu3 %v3302_v42  ;;  %3403 = vmatmul.msk.bf16.vlgmr.msrb.gmra.mxu0 %vm801_vm0, %v4940_v1  ;;  %v3523_v20 = vld [vmem:[#allocation4 + $0xf0] sm:$0xf0]  ;;  %v3529_v21 = vld [vmem:[#allocation4 + $0xd8] sm:$0xf]  ;;  %v4345_v25 = vld [vmem:[#allocation4 + $0xdc] sm:$0xf]  ;;  %v3422_v27 = vor.u32 %v4319_v14, %v3419_v15  ;;  %v3522_v28 = vor.u32 %v4348_v17, %v3521_v16 }
  0x43   : > { %1084 = vmatpush.bf16.msra.mxu0 %v3506_v43  ;;  %3404 = vmatmul.msk.bf16.vlgmr.msrb.gmra.mxu1 %vm801_vm0, %v4940_v1  ;;  %v4349_v22 = vld [vmem:[#allocation4 + $0xf4] sm:$0xf0]  ;;  %v3531_v26 = vld [vmem:[#allocation4 + $0xf8] sm:$0xf0]  ;;  %v3526_v29 = vor.u32 %v4344_v18, %v3523_v20  ;;  %v3489_v31 = vld [vmem:[#allocation4 + $0x90] sm:$0xf] }
  0x44   : > { %1098 = vmatpush.bf16.msra.mxu1 %v3510_v44  ;;  %1112 = vmatpush.bf16.msra.mxu2 %v3514_v45  ;;  %v3530_v30 = vor.u32 %v4349_v22, %v3529_v21  ;;  %v4340_v32 = vld [vmem:[#allocation4 + $0xac] sm:$0xf0]  ;;  %v3534_v33 = vor.u32 %v4345_v25, %v3531_v26  ;;  %v3491_v34 = vld [vmem:[#allocation4 + $0xb0] sm:$0xf0]  ;;  %v3497_v35 = vld [vmem:[#allocation4 + $0x98] sm:$0xf] }
  0x45   : > { %3405 = vmatmul.msk.bf16.vlgmr.msrb.gmra.mxu2 %vm801_vm0, %v4940_v1  ;;  %3406 = vmatmul.msk.bf16.vlgmr.msrb.gmra.mxu3 %vm801_vm0, %v4940_v1  ;;  %v4336_v1 = vld [vmem:[#allocation4 + $0x94] sm:$0xf]  ;;  %v4341_v36 = vld [vmem:[#allocation4 + $0xb4] sm:$0xf0]  ;;  %v4337_v37 = vld [vmem:[#allocation4 + $0x9c] sm:$0xf]  ;;  %v3490_v39 = vor.u32 %v4340_v32, %v3489_v31 }
  0x46   : > { %1126 = vmatpush.bf16.msra.mxu3 %v3518_v49  ;;  %v3499_v38 = vld [vmem:[#allocation4 + $0xb8] sm:$0xf0]  ;;  %v3494_v40 = vor.u32 %v4336_v1, %v3491_v34  ;;  %v3498_v41 = vor.u32 %v4341_v36, %v3497_v35  ;;  %v571_v42 = vld [vmem:[%s526_s27] sm:$0xff]  ;;  %v572_v43 = vld [vmem:[%s526_s27 + $0x8] sm:$0xff] }
  0x47   : > { %1085 = vmatpush.bf16.msra.mxu0 %v3474_v55  ;;  %v3502_v44 = vor.u32 %v4337_v37, %v3499_v38  ;;  %v3457_v45 = vld [vmem:[#allocation4 + $0x50] sm:$0xf]  ;;  %v4328_v47 = vld [vmem:[#allocation4 + $0x54] sm:$0xf]  ;;  %v4962_v48 = vpack.c.bf16 %v572_v43, %v571_v42  ;;  %v3465_v50 = vld [vmem:[#allocation4 + $0x58] sm:$0xf] }
  0x48   : > { %1099 = vmatpush.bf16.msra.mxu1 %v3478_v56  ;;  %1113 = vmatpush.bf16.msra.mxu2 %v3482_v57  ;;  %v4332_v46 = vld [vmem:[#allocation4 + $0x6c] sm:$0xf0]  ;;  %v3459_v49 = vld [vmem:[#allocation4 + $0x70] sm:$0xf0]  ;;  %v4333_v51 = vld [vmem:[#allocation4 + $0x74] sm:$0xf0] }
  0x49   : > { %v4329_v52 = vld [vmem:[#allocation4 + $0x5c] sm:$0xf]  ;;  %v3458_v54 = vor.u32 %v4332_v46, %v3457_v45  ;;  %v3425_v55 = vld [vmem:[#allocation4 + $0x10] sm:$0xf]  ;;  %v3462_v57 = vor.u32 %v4328_v47, %v3459_v49  ;;  %v3466_v58 = vor.u32 %v4333_v51, %v3465_v50  ;;  %v4320_v59 = vld [vmem:[#allocation4 + $0x14] sm:$0xf] }
  0x4a   : > { %1127 = vmatpush.bf16.msra.mxu3 %v3486_v61  ;;  %v3467_v53 = vld [vmem:[#allocation4 + $0x78] sm:$0xf0]  ;;  %v4324_v56 = vld [vmem:[#allocation4 + $0x2c] sm:$0xf0]  ;;  %v3427_v60 = vld [vmem:[#allocation4 + $0x30] sm:$0xf0] }
  0x4b   : > { %1086 = vmatpush.bf16.msra.mxu0 %v3442_v4  ;;  %v3433_v61 = vld [vmem:[#allocation4 + $0x18] sm:$0xf]  ;;  %v3470_v62 = vor.u32 %v4329_v52, %v3467_v53  ;;  %v4321_v0 = vld [vmem:[#allocation4 + $0x1c] sm:$0xf]  ;;  %v3769_v3 = vld [vmem:[%s5622_s6 + $0x1c0] sm:$0xf]  ;;  %v3426_v6 = vor.u32 %v4324_v56, %v3425_v55  ;;  %v3430_v10 = vor.u32 %v4320_v59, %v3427_v60 }
  0x4c   : > { %1100 = vmatpush.bf16.msra.mxu1 %v3446_v7  ;;  %1114 = vmatpush.bf16.msra.mxu2 %v3450_v8  ;;  %v4325_v63 = vld [vmem:[#allocation4 + $0x34] sm:$0xf0]  ;;  %v3435_v2 = vld [vmem:[#allocation4 + $0x38] sm:$0xf0]  ;;  %v4442_v4 = vld [vmem:[%s5622_s6 + $0x1dc] sm:$0xf0] }
  0x4d   : > { %v4438_v5 = vld [vmem:[%s5622_s6 + $0x1c4] sm:$0xf]  ;;  %v3777_v8 = vld [vmem:[%s5622_s6 + $0x1c8] sm:$0xf]  ;;  %v3434_v11 = vor.u32 %v4325_v63, %v3433_v61  ;;  %v3779_v13 = vld [vmem:[%s5622_s6 + $0x1e8] sm:$0xf0]  ;;  %v3438_v14 = vor.u32 %v4321_v0, %v3435_v2  ;;  %v3770_v15 = vor.u32 %v4442_v4, %v3769_v3 }
  0x4e   : > { %1128 = vmatpush.bf16.msra.mxu3 %v3454_v12  ;;  %v3771_v7 = vld [vmem:[%s5622_s6 + $0x1e0] sm:$0xf0]  ;;  %v4443_v9 = vld [vmem:[%s5622_s6 + $0x1e4] sm:$0xf0]  ;;  %v4439_v12 = vld [vmem:[%s5622_s6 + $0x1cc] sm:$0xf] }
  0x4f   : > { %1087 = vmatpush.bf16.msra.mxu0 %v3410_v19  ;;  %v3774_v16 = vor.u32 %v4438_v5, %v3771_v7  ;;  %v3778_v17 = vor.u32 %v4443_v9, %v3777_v8  ;;  %v3737_v18 = vld [vmem:[%s5622_s6 + $0x180] sm:$0xf]  ;;  %v4430_v20 = vld [vmem:[%s5622_s6 + $0x184] sm:$0xf]  ;;  %v3782_v21 = vor.u32 %v4439_v12, %v3779_v13  ;;  %v4431_v25 = vld [vmem:[%s5622_s6 + $0x18c] sm:$0xf] }
  0x50   : > { %1101 = vmatpush.bf16.msra.mxu1 %v3414_v23  ;;  %1115 = vmatpush.bf16.msra.mxu2 %v3418_v24  ;;  %v4434_v19 = vld [vmem:[%s5622_s6 + $0x19c] sm:$0xf0]  ;;  %v3739_v22 = vld [vmem:[%s5622_s6 + $0x1a0] sm:$0xf0]  ;;  %v3745_v23 = vld [vmem:[%s5622_s6 + $0x188] sm:$0xf] }
  0x51   : > { %v4435_v24 = vld [vmem:[%s5622_s6 + $0x1a4] sm:$0xf0]  ;;  %v3747_v26 = vld [vmem:[%s5622_s6 + $0x1a8] sm:$0xf0]  ;;  %v4426_v31 = vld [vmem:[%s5622_s6 + $0x15c] sm:$0xf0] }
  0x52   : > { %1129 = vmatpush.bf16.msra.mxu3 %v3422_v27  ;;  %3535 = vmatmul.msk.bf16.vlgmr.msra.gmra.mxu0 %vm801_vm0, %v4962_v48  ;;  %v3738_v27 = vor.u32 %v4434_v19, %v3737_v18  ;;  %v4422_v32 = vld [vmem:[%s5622_s6 + $0x144] sm:$0xf]  ;;  %v3750_v1 = vor.u32 %v4431_v25, %v3747_v26  ;;  %v3713_v34 = vld [vmem:[%s5622_s6 + $0x148] sm:$0xf]  ;;  %v4423_v36 = vld [vmem:[%s5622_s6 + $0x14c] sm:$0xf] }
  0x53   : > { %1140 = vmatpush.bf16.msrb.mxu0 %v3522_v28  ;;  %3536 = vmatmul.msk.bf16.vlgmr.msra.gmra.mxu1 %vm801_vm0, %v4962_v48  ;;  %v3742_v28 = vor.u32 %v4430_v20, %v3739_v22  ;;  %v4427_v35 = vld [vmem:[%s5622_s6 + $0x164] sm:$0xf0]  ;;  %v3715_v37 = vld [vmem:[%s5622_s6 + $0x168] sm:$0xf0]  ;;  %v4418_v42 = vld [vmem:[%s5622_s6 + $0x11c] sm:$0xf0] }
  0x54   : > { %1154 = vmatpush.bf16.msrb.mxu1 %v3526_v29  ;;  %1168 = vmatpush.bf16.msrb.mxu2 %v3530_v30  ;;  %v3746_v29 = vor.u32 %v4435_v24, %v3745_v23  ;;  %v3705_v30 = vld [vmem:[%s5622_s6 + $0x140] sm:$0xf]  ;;  %v4414_v43 = vld [vmem:[%s5622_s6 + $0x104] sm:$0xf]  ;;  %v3681_v46 = vld [vmem:[%s5622_s6 + $0x108] sm:$0xf] }
  0x55   : > { %3537 = vmatmul.msk.bf16.vlgmr.msra.gmra.mxu2 %vm801_vm0, %v4962_v48  ;;  %3538 = vmatmul.msk.bf16.vlgmr.msra.gmra.mxu3 %vm801_vm0, %v4962_v48  ;;  %v3706_v38 = vor.u32 %v4426_v31, %v3705_v30  ;;  %v3675_v45 = vld [vmem:[%s5622_s6 + $0x120] sm:$0xf0]  ;;  %v4419_v47 = vld [vmem:[%s5622_s6 + $0x124] sm:$0xf0]  ;;  %v4415_v49 = vld [vmem:[%s5622_s6 + $0x10c] sm:$0xf] }
  0x56   : > { %1182 = vmatpush.bf16.msrb.mxu3 %v3534_v33  ;;  %v3707_v33 = vld [vmem:[%s5622_s6 + $0x160] sm:$0xf0]  ;;  %v3683_v50 = vld [vmem:[%s5622_s6 + $0x128] sm:$0xf0]  ;;  %v3678_v52 = vor.u32 %v4414_v43, %v3675_v45  ;;  %v3682_v53 = vor.u32 %v4419_v47, %v3681_v46  ;;  %v4410_v55 = vld [vmem:[%s5622_s6 + $0xdc] sm:$0xf0] }
  0x57   : > { %1141 = vmatpush.bf16.msrb.mxu0 %v3490_v39  ;;  %v3710_v39 = vor.u32 %v4422_v32, %v3707_v33  ;;  %v4406_v56 = vld [vmem:[%s5622_s6 + $0xc4] sm:$0xf]  ;;  %v3649_v59 = vld [vmem:[%s5622_s6 + $0xc8] sm:$0xf]  ;;  %v4407_v61 = vld [vmem:[%s5622_s6 + $0xcc] sm:$0xf] }
  0x58   : > { %1155 = vmatpush.bf16.msrb.mxu1 %v3494_v40  ;;  %1169 = vmatpush.bf16.msrb.mxu2 %v3498_v41  ;;  %v3714_v40 = vor.u32 %v4427_v35, %v3713_v34  ;;  %v3673_v41 = vld [vmem:[%s5622_s6 + $0x100] sm:$0xf]  ;;  %v4411_v60 = vld [vmem:[%s5622_s6 + $0xe4] sm:$0xf0]  ;;  %v4398_v5 = vld [vmem:[%s5622_s6 + $0x84] sm:$0xf] }
  0x59   : > { %v3674_v51 = vor.u32 %v4418_v42, %v3673_v41  ;;  %v3650_v2 = vor.u32 %v4411_v60, %v3649_v59  ;;  %v3609_v3 = vld [vmem:[%s5622_s6 + $0x80] sm:$0xf]  ;;  %v3617_v7 = vld [vmem:[%s5622_s6 + $0x88] sm:$0xf]  ;;  %v4399_v9 = vld [vmem:[%s5622_s6 + $0x8c] sm:$0xf] }
  0x5a   : > { %1183 = vmatpush.bf16.msrb.mxu3 %v3502_v44  ;;  %v3718_v44 = vor.u32 %v4423_v36, %v3715_v37  ;;  %v4402_v4 = vld [vmem:[%s5622_s6 + $0x9c] sm:$0xf0]  ;;  %v4403_v8 = vld [vmem:[%s5622_s6 + $0xa4] sm:$0xf0]  ;;  %v3579_v18 = vld [vmem:[%s5622_s6 + $0x60] sm:$0xf0] }
  0x5b   : > { %1142 = vmatpush.bf16.msrb.mxu0 %v3458_v54  ;;  %v3641_v54 = vld [vmem:[%s5622_s6 + $0xc0] sm:$0xf]  ;;  %v3618_v13 = vor.u32 %v4403_v8, %v3617_v7  ;;  %v3585_v19 = vld [vmem:[%s5622_s6 + $0x48] sm:$0xf]  ;;  %v3587_v22 = vld [vmem:[%s5622_s6 + $0x68] sm:$0xf0] }
  0x5c   : > { %1156 = vmatpush.bf16.msrb.mxu1 %v3462_v57  ;;  %1170 = vmatpush.bf16.msrb.mxu2 %v3466_v58  ;;  %v3686_v57 = vor.u32 %v4415_v49, %v3683_v50  ;;  %v3643_v58 = vld [vmem:[%s5622_s6 + $0xe0] sm:$0xf0]  ;;  %v3642_v63 = vor.u32 %v4410_v55, %v3641_v54  ;;  %v4395_v20 = vld [vmem:[%s5622_s6 + $0x64] sm:$0xf0]  ;;  %v3545_v24 = vld [vmem:[%s5622_s6] sm:$0xf] }
  0x5d   : > { %v3646_v0 = vor.u32 %v4406_v56, %v3643_v58  ;;  %v4386_v25 = vld [vmem:[%s5622_s6 + $0x1c] sm:$0xf0]  ;;  %v4382_v26 = vld [vmem:[%s5622_s6 + $0x4] sm:$0xf]  ;;  %v3553_v30 = vld [vmem:[%s5622_s6 + $0x8] sm:$0xf] }
  0x5e   : > { %1184 = vmatpush.bf16.msrb.mxu3 %v3470_v62  ;;  %v3651_v62 = vld [vmem:[%s5622_s6 + $0xe8] sm:$0xf0]  ;;  %v4387_v31 = vld [vmem:[%s5622_s6 + $0x24] sm:$0xf0]  ;;  %v3785_v34 = vld [vmem:[%s5622_s6 + $0x1d0] sm:$0xf] }
  0x5f   : > { %1143 = vmatpush.bf16.msrb.mxu0 %v3426_v6  ;;  %v3611_v6 = vld [vmem:[%s5622_s6 + $0xa0] sm:$0xf0]  ;;  %v3555_v33 = vld [vmem:[%s5622_s6 + $0x28] sm:$0xf0]  ;;  %v4444_v35 = vld [vmem:[%s5622_s6 + $0x1ec] sm:$0xf0]  ;;  %v3554_v43 = vor.u32 %v4387_v31, %v3553_v30 }
  0x60   : > { %1157 = vmatpush.bf16.msrb.mxu1 %v3430_v10  ;;  %1171 = vmatpush.bf16.msrb.mxu2 %v3434_v11  ;;  %v3619_v10 = vld [vmem:[%s5622_s6 + $0xa8] sm:$0xf0]  ;;  %v3610_v11 = vor.u32 %v4402_v4, %v3609_v3  ;;  %v3614_v12 = vor.u32 %v4398_v5, %v3611_v6  ;;  %v4440_v36 = vld [vmem:[%s5622_s6 + $0x1d4] sm:$0xf]  ;;  %v4441_v41 = vld [vmem:[%s5622_s6 + $0x1dc] sm:$0xf]  ;;  %v3786_v49 = vor.u32 %v4444_v35, %v3785_v34 }
  0x61   : > { %v3787_v37 = vld [vmem:[%s5622_s6 + $0x1f0] sm:$0xf0]  ;;  %v1192_v45 = vld [vmem:[%s546_s24] sm:$0xff]  ;;  %v1193_v46 = vld [vmem:[%s546_s24 + $0x8] sm:$0xff] }
  0x62   : > { %1185 = vmatpush.bf16.msrb.mxu3 %v3438_v14  ;;  %3539 = vmatmul.msk.bf16.vlgmr.msrb.gmra.mxu0 %vm801_vm0, %v4962_v48  ;;  %v3577_v14 = vld [vmem:[%s5622_s6 + $0x40] sm:$0xf]  ;;  %v3790_v50 = vor.u32 %v4440_v36, %v3787_v37  ;;  %v4432_v54 = vld [vmem:[%s5622_s6 + $0x194] sm:$0xf]  ;;  %v5209_v56 = vpack.c.bf16 %v1193_v46, %v1192_v45  ;;  %v3761_v58 = vld [vmem:[%s5622_s6 + $0x198] sm:$0xf] }
  0x63   : > { %1579 = vmatpush.bf16.msra.mxu0 %v3770_v15  ;;  %3540 = vmatmul.msk.bf16.vlgmr.msrb.gmra.mxu1 %vm801_vm0, %v4962_v48  ;;  %v4394_v15 = vld [vmem:[%s5622_s6 + $0x5c] sm:$0xf0]  ;;  %v4437_v59 = vld [vmem:[%s5622_s6 + $0x1b4] sm:$0xf0]  ;;  %v4433_v60 = vld [vmem:[%s5622_s6 + $0x19c] sm:$0xf] }
  0x64   : > { %1593 = vmatpush.bf16.msra.mxu1 %v3774_v16  ;;  %1607 = vmatpush.bf16.msra.mxu2 %v3778_v17  ;;  %v4390_v16 = vld [vmem:[%s5622_s6 + $0x44] sm:$0xf]  ;;  %v3622_v17 = vor.u32 %v4399_v9, %v3619_v10  ;;  %v3578_v23 = vor.u32 %v4394_v15, %v3577_v14  ;;  %v4428_v3 = vld [vmem:[%s5622_s6 + $0x16c] sm:$0xf0]  ;;  %v4424_v4 = vld [vmem:[%s5622_s6 + $0x154] sm:$0xf] }
  0x65   : > { %3541 = vmatmul.msk.bf16.vlgmr.msrb.gmra.mxu2 %vm801_vm0, %v4962_v48  ;;  %3542 = vmatmul.msk.bf16.vlgmr.msrb.gmra.mxu3 %vm801_vm0, %v4962_v48  ;;  %v3654_v48 = vor.u32 %v4407_v61, %v3651_v62  ;;  %v3763_v61 = vld [vmem:[%s5622_s6 + $0x1b8] sm:$0xf0]  ;;  %v3729_v6 = vld [vmem:[%s5622_s6 + $0x158] sm:$0xf]  ;;  %v4420_v14 = vld [vmem:[%s5622_s6 + $0x12c] sm:$0xf0] }
  0x66   : > { %1621 = vmatpush.bf16.msra.mxu3 %v3782_v21  ;;  %v4391_v21 = vld [vmem:[%s5622_s6 + $0x4c] sm:$0xf]  ;;  %v3766_v5 = vor.u32 %v4433_v60, %v3763_v61  ;;  %v4429_v7 = vld [vmem:[%s5622_s6 + $0x174] sm:$0xf0]  ;;  %v4425_v8 = vld [vmem:[%s5622_s6 + $0x15c] sm:$0xf] }
  0x67   : > { %1580 = vmatpush.bf16.msra.mxu0 %v3738_v27  ;;  %v3582_v27 = vor.u32 %v4390_v16, %v3579_v18  ;;  %v3590_v32 = vor.u32 %v4391_v21, %v3587_v22  ;;  %v3731_v9 = vld [vmem:[%s5622_s6 + $0x178] sm:$0xf0]  ;;  %v4416_v15 = vld [vmem:[%s5622_s6 + $0x114] sm:$0xf]  ;;  %v3697_v18 = vld [vmem:[%s5622_s6 + $0x118] sm:$0xf] }
  0x68   : > { %1594 = vmatpush.bf16.msra.mxu1 %v3742_v28  ;;  %1608 = vmatpush.bf16.msra.mxu2 %v3746_v29  ;;  %v3586_v28 = vor.u32 %v4395_v20, %v3585_v19  ;;  %v3547_v29 = vld [vmem:[%s5622_s6 + $0x20] sm:$0xf0]  ;;  %v3734_v16 = vor.u32 %v4425_v8, %v3731_v9  ;;  %v4421_v19 = vld [vmem:[%s5622_s6 + $0x134] sm:$0xf0]  ;;  %v4417_v20 = vld [vmem:[%s5622_s6 + $0x11c] sm:$0xf] }
  0x69   : > { %v3550_v42 = vor.u32 %v4382_v26, %v3547_v29  ;;  %v3699_v21 = vld [vmem:[%s5622_s6 + $0x138] sm:$0xf0]  ;;  %v4412_v26 = vld [vmem:[%s5622_s6 + $0xec] sm:$0xf0]  ;;  %v3659_v29 = vld [vmem:[%s5622_s6 + $0xf0] sm:$0xf0] }
  0x6a   : > { %1622 = vmatpush.bf16.msra.mxu3 %v3750_v1  ;;  %v4383_v1 = vld [vmem:[%s5622_s6 + $0xc] sm:$0xf]  ;;  %v3665_v30 = vld [vmem:[%s5622_s6 + $0xd8] sm:$0xf]  ;;  %v3625_v36 = vld [vmem:[%s5622_s6 + $0x90] sm:$0xf] }
  0x6b   : > { %1581 = vmatpush.bf16.msra.mxu0 %v3706_v38  ;;  %v3546_v38 = vor.u32 %v4386_v25, %v3545_v24  ;;  %v3558_v47 = vor.u32 %v4383_v1, %v3555_v33  ;;  %v3698_v24 = vor.u32 %v4421_v19, %v3697_v18  ;;  %v3657_v25 = vld [vmem:[%s5622_s6 + $0xd0] sm:$0xf]  ;;  %v4413_v31 = vld [vmem:[%s5622_s6 + $0xf4] sm:$0xf0]  ;;  %v3667_v1 = vld [vmem:[%s5622_s6 + $0xf8] sm:$0xf0] }
  0x6c   : > { %1595 = vmatpush.bf16.msra.mxu1 %v3710_v39  ;;  %1609 = vmatpush.bf16.msra.mxu2 %v3714_v40  ;;  %v3793_v39 = vld [vmem:[%s5622_s6 + $0x1d8] sm:$0xf]  ;;  %v3658_v33 = vor.u32 %v4412_v26, %v3657_v25  ;;  %v3666_v35 = vor.u32 %v4413_v31, %v3665_v30  ;;  %v4404_v37 = vld [vmem:[%s5622_s6 + $0xac] sm:$0xf0]  ;;  %v4506_v8 = vld [vmem:[#allocation8 + $0x1dc] sm:$0xf0] }
  0x6d   : > { %v4445_v40 = vld [vmem:[%s5622_s6 + $0x1f4] sm:$0xf0]  ;;  %v3626_v45 = vor.u32 %v4404_v37, %v3625_v36  ;;  %v3561_v60 = vld [vmem:[%s5622_s6 + $0x10] sm:$0xf]  ;;  %v4281_v9 = vld [vmem:[#allocation8 + $0x3c0] sm:$0xf] }
  0x6e   : > { %1623 = vmatpush.bf16.msra.mxu3 %v3718_v44  ;;  %v3795_v44 = vld [vmem:[%s5622_s6 + $0x1f8] sm:$0xf0]  ;;  %v4388_v61 = vld [vmem:[%s5622_s6 + $0x2c] sm:$0xf0]  ;;  %v4562_v26 = vld [vmem:[#allocation8 + $0x39c] sm:$0xf0] }
  0x6f   : > { %1582 = vmatpush.bf16.msra.mxu0 %v3674_v51  ;;  %v3794_v51 = vor.u32 %v4445_v40, %v3793_v39  ;;  %v3798_v55 = vor.u32 %v4441_v41, %v3795_v44  ;;  %v3627_v40 = vld [vmem:[%s5622_s6 + $0xb0] sm:$0xf0]  ;;  %v3633_v41 = vld [vmem:[%s5622_s6 + $0x98] sm:$0xf]  ;;  %v3635_v44 = vld [vmem:[%s5622_s6 + $0xb8] sm:$0xf0] }
  0x70   : > { %1596 = vmatpush.bf16.msra.mxu1 %v3678_v52  ;;  %1610 = vmatpush.bf16.msra.mxu2 %v3682_v53  ;;  %v3753_v52 = vld [vmem:[%s5622_s6 + $0x190] sm:$0xf]  ;;  %v4251_v30 = vld [vmem:[#allocation8 + $0x3a0] sm:$0xf0]  ;;  %v4554_v37 = vld [vmem:[#allocation8 + $0x35c] sm:$0xf0] }
  0x71   : > { %v4436_v53 = vld [vmem:[%s5622_s6 + $0x1ac] sm:$0xf0]  ;;  %vm2915_vm0 = vcmask 1044484  }
  0x72   : > { %1624 = vmatpush.bf16.msra.mxu3 %v3686_v57  ;;  %v3755_v57 = vld [vmem:[%s5622_s6 + $0x1b0] sm:$0xf0]  ;;  %v3754_v62 = vor.u32 %v4436_v53, %v3753_v52 }
  0x73   : > { %1583 = vmatpush.bf16.msra.mxu0 %v3642_v63  ;;  %v3758_v63 = vor.u32 %v4432_v54, %v3755_v57  ;;  %v3595_v53 = vld [vmem:[%s5622_s6 + $0x70] sm:$0xf0]  ;;  %v3601_v54 = vld [vmem:[%s5622_s6 + $0x58] sm:$0xf]  ;;  %v4393_v57 = vld [vmem:[%s5622_s6 + $0x5c] sm:$0xf] }
  0x74   : > { %1597 = vmatpush.bf16.msra.mxu1 %v3646_v0  ;;  %1611 = vmatpush.bf16.msra.mxu2 %v3650_v2  ;;  %v3762_v0 = vor.u32 %v4437_v59, %v3761_v58  ;;  %v3721_v2 = vld [vmem:[%s5622_s6 + $0x150] sm:$0xf]  ;;  %v3603_v58 = vld [vmem:[%s5622_s6 + $0x78] sm:$0xf0] }
  0x75   : > { %v3722_v10 = vor.u32 %v4428_v3, %v3721_v2  ;;  %v3563_v2 = vld [vmem:[%s5622_s6 + $0x30] sm:$0xf0]  ;;  %v3569_v3 = vld [vmem:[%s5622_s6 + $0x18] sm:$0xf] }
  0x76   : > { %1625 = vmatpush.bf16.msra.mxu3 %v3654_v48  ;;  %v3723_v48 = vld [vmem:[%s5622_s6 + $0x170] sm:$0xf0] }
  0x77   : > { %1584 = vmatpush.bf16.msra.mxu0 %v3610_v11  ;;  %v3726_v11 = vor.u32 %v4424_v4, %v3723_v48  ;;  %v3606_v4 = vor.u32 %v4393_v57, %v3603_v58  ;;  %v4385_v48 = vld [vmem:[%s5622_s6 + $0x1c] sm:$0xf]  ;;  %v3897_v58 = vld [vmem:[#allocation8 + $0xc0] sm:$0xf] }
  0x78   : > { %1598 = vmatpush.bf16.msra.mxu1 %v3614_v12  ;;  %1612 = vmatpush.bf16.msra.mxu2 %v3618_v13  ;;  %v3730_v12 = vor.u32 %v4429_v7, %v3729_v6  ;;  %v3689_v13 = vld [vmem:[%s5622_s6 + $0x110] sm:$0xf]  ;;  %v3571_v6 = vld [vmem:[%s5622_s6 + $0x38] sm:$0xf0]  ;;  %v4025_v7 = vld [vmem:[#allocation8 + $0x1c0] sm:$0xf] }
  0x79   : > { %v3690_v22 = vor.u32 %v4420_v14, %v3689_v13  ;;  %v4027_v13 = vld [vmem:[#allocation8 + $0x1e0] sm:$0xf0]  ;;  %v3574_v18 = vor.u32 %v4385_v48, %v3571_v6  ;;  %v4026_v19 = vor.u32 %v4506_v8, %v4025_v7  ;;  %v3865_v6 = vld [vmem:[#allocation8 + $0x80] sm:$0xf] }
  0x7a   : > { %1626 = vmatpush.bf16.msra.mxu3 %v3622_v17  ;;  %v3691_v17 = vld [vmem:[%s5622_s6 + $0x130] sm:$0xf0]  ;;  %v4466_v7 = vld [vmem:[#allocation8 + $0x9c] sm:$0xf0] }
  0x7b   : > { %1585 = vmatpush.bf16.msra.mxu0 %v3578_v23  ;;  %v3694_v23 = vor.u32 %v4416_v15, %v3691_v17  ;;  %v4283_v17 = vld [vmem:[#allocation8 + $0x3e0] sm:$0xf0]  ;;  %v4121_v8 = vld [vmem:[#allocation8 + $0x280] sm:$0xf] }
  0x7c   : > { %1599 = vmatpush.bf16.msra.mxu1 %v3582_v27  ;;  %1613 = vmatpush.bf16.msra.mxu2 %v3586_v28  ;;  %v4408_v27 = vld [vmem:[%s5622_s6 + $0xd4] sm:$0xf]  ;;  %v3702_v28 = vor.u32 %v4417_v20, %v3699_v21 }
  0x7d   : > { %v3662_v34 = vor.u32 %v4408_v27, %v3659_v29  ;;  %v4494_v27 = vld [vmem:[#allocation8 + $0x184] sm:$0xf] }
  0x7e   : > { %1627 = vmatpush.bf16.msra.mxu3 %v3590_v32  ;;  %v4409_v32 = vld [vmem:[%s5622_s6 + $0xdc] sm:$0xf]  ;;  %v4558_v29 = vld [vmem:[#allocation8 + $0x384] sm:$0xf] }
  0x7f   : > { %1586 = vmatpush.bf16.msra.mxu0 %v3546_v38  ;;  %v4400_v38 = vld [vmem:[%s5622_s6 + $0x94] sm:$0xf]  ;;  %v3670_v39 = vor.u32 %v4409_v32, %v3667_v1  ;;  %v4254_v36 = vor.u32 %v4558_v29, %v4251_v30  ;;  %v4450_v29 = vld [vmem:[#allocation8 + $0x1c] sm:$0xf0] }
  0x80   : > { %1600 = vmatpush.bf16.msra.mxu1 %v3550_v42  ;;  %1614 = vmatpush.bf16.msra.mxu2 %v3554_v43  ;;  %v4405_v42 = vld [vmem:[%s5622_s6 + $0xb4] sm:$0xf0]  ;;  %v4401_v43 = vld [vmem:[%s5622_s6 + $0x9c] sm:$0xf]  ;;  %v3630_v46 = vor.u32 %v4400_v38, %v3627_v40  ;;  %v4486_v38 = vld [vmem:[#allocation8 + $0x144] sm:$0xf] }
  0x81   : > { %v3638_v52 = vor.u32 %v4401_v43, %v3635_v44  ;;  %v4550_v40 = vld [vmem:[#allocation8 + $0x344] sm:$0xf]  ;;  %v4057_v30 = vld [vmem:[#allocation8 + $0x200] sm:$0xf] }
  0x82   : > { %1628 = vmatpush.bf16.msra.mxu3 %v3558_v47  ;;  %1587 = vmatmul.bf16.vlgmr.msra.gmra.mxu0 %v5209_v56  ;;  %v3634_v47 = vor.u32 %v4405_v42, %v3633_v41  ;;  %v4219_v41 = vld [vmem:[#allocation8 + $0x360] sm:$0xf0] }
  0x83   : > { %1635 = vmatpush.bf16.msrb.mxu0 %v3786_v49  ;;  %1601 = vmatmul.bf16.vlgmr.msra.gmra.mxu1 %v5209_v56  ;;  %v3593_v49 = vld [vmem:[%s5622_s6 + $0x50] sm:$0xf] }
  0x84   : > { %1649 = vmatpush.bf16.msrb.mxu1 %v3790_v50  ;;  %1663 = vmatpush.bf16.msrb.mxu2 %v3794_v51  ;;  %v4396_v50 = vld [vmem:[%s5622_s6 + $0x6c] sm:$0xf0]  ;;  %v4392_v51 = vld [vmem:[%s5622_s6 + $0x54] sm:$0xf] }
  0x85   : > { %1615 = vmatmul.bf16.vlgmr.msra.gmra.mxu2 %v5209_v56  ;;  %1629 = vmatmul.bf16.vlgmr.msra.gmra.mxu3 %v5209_v56  ;;  %v3594_v59 = vor.u32 %v4396_v50, %v3593_v49  ;;  %v4222_v49 = vor.u32 %v4550_v40, %v4219_v41  ;;  %v4546_v50 = vld [vmem:[#allocation8 + $0x31c] sm:$0xf0]  ;;  %v4289_v40 = vld [vmem:[#allocation8 + $0x3c8] sm:$0xf] }
  0x86   : > { %1677 = vmatpush.bf16.msrb.mxu3 %v3798_v55  ;;  %v4397_v55 = vld [vmem:[%s5622_s6 + $0x74] sm:$0xf0]  ;;  %v4571_v41 = vld [vmem:[#allocation8 + $0x3e4] sm:$0xf0] }
  0x87   : > { %1636 = vmatpush.bf16.msrb.mxu0 %v3754_v62  ;;  %v3598_v62 = vor.u32 %v4392_v51, %v3595_v53  ;;  %v4478_v51 = vld [vmem:[#allocation8 + $0x104] sm:$0xf] }
  0x88   : > { %1650 = vmatpush.bf16.msrb.mxu1 %v3758_v63  ;;  %1664 = vmatpush.bf16.msrb.mxu2 %v3762_v0  ;;  %v3602_v63 = vor.u32 %v4397_v55, %v3601_v54  ;;  %v4384_v0 = vld [vmem:[%s5622_s6 + $0x14] sm:$0xf]  ;;  %v4542_v53 = vld [vmem:[#allocation8 + $0x304] sm:$0xf] }
  0x89   : > { %v3566_v14 = vor.u32 %v4384_v0, %v3563_v2  ;;  %v4187_v54 = vld [vmem:[#allocation8 + $0x320] sm:$0xf0] }
  0x8a   : > { %1678 = vmatpush.bf16.msrb.mxu3 %v3766_v5  ;;  %v4389_v5 = vld [vmem:[%s5622_s6 + $0x34] sm:$0xf0]  ;;  %v3899_v0 = vld [vmem:[#allocation8 + $0xe0] sm:$0xf0] }
  0x8b   : > { %1637 = vmatpush.bf16.msrb.mxu0 %v3722_v10  ;;  %v3562_v10 = vor.u32 %v4388_v61, %v3561_v60  ;;  %v3570_v15 = vor.u32 %v4389_v5, %v3569_v3  ;;  %v4153_v60 = vld [vmem:[#allocation8 + $0x2c0] sm:$0xf]  ;;  %v4190_v61 = vor.u32 %v4542_v53, %v4187_v54  ;;  %v4534_v2 = vld [vmem:[#allocation8 + $0x2c4] sm:$0xf]  ;;  %v1709_v53 = vld [vmem:[%s557_s13 + $0x10] sm:$0xff] }
  0x8c   : > { %1651 = vmatpush.bf16.msrb.mxu1 %v3726_v11  ;;  %1665 = vmatpush.bf16.msrb.mxu2 %v3730_v12  ;;  %v4570_v11 = vld [vmem:[#allocation8 + $0x3dc] sm:$0xf0]  ;;  %v4502_v12 = vld [vmem:[#allocation8 + $0x1c4] sm:$0xf] }
  0x8d   : > { %v4282_v20 = vor.u32 %v4570_v11, %v4281_v9  ;;  %v4030_v21 = vor.u32 %v4502_v12, %v4027_v13  ;;  %v4155_v3 = vld [vmem:[#allocation8 + $0x2e0] sm:$0xf0] }
  0x8e   : > { %1679 = vmatpush.bf16.msrb.mxu3 %v3734_v16  ;;  %v4566_v16 = vld [vmem:[#allocation8 + $0x3c4] sm:$0xf]  ;;  %v4158_v9 = vor.u32 %v4534_v2, %v4155_v3  ;;  %v4563_v2 = vld [vmem:[#allocation8 + $0x3a4] sm:$0xf0]  ;;  %v4495_v3 = vld [vmem:[#allocation8 + $0x18c] sm:$0xf] }
  0x8f   : > { %1638 = vmatpush.bf16.msrb.mxu0 %v3690_v22  ;;  %v3993_v22 = vld [vmem:[#allocation8 + $0x180] sm:$0xf]  ;;  %v4286_v25 = vor.u32 %v4566_v16, %v4283_v17  ;;  %v4462_v11 = vld [vmem:[#allocation8 + $0x84] sm:$0xf] }
  0x90   : > { %1652 = vmatpush.bf16.msrb.mxu1 %v3694_v23  ;;  %1666 = vmatpush.bf16.msrb.mxu2 %v3698_v24  ;;  %v4498_v23 = vld [vmem:[#allocation8 + $0x19c] sm:$0xf0]  ;;  %v3867_v12 = vld [vmem:[#allocation8 + $0xa0] sm:$0xf0] }
  0x91   : > { %v4249_v24 = vld [vmem:[#allocation8 + $0x380] sm:$0xf]  ;;  %v3994_v31 = vor.u32 %v4498_v23, %v3993_v22  ;;  %v4526_v13 = vld [vmem:[#allocation8 + $0x284] sm:$0xf]  ;;  %v3870_v17 = vor.u32 %v4462_v11, %v3867_v12  ;;  %v3969_v12 = vld [vmem:[#allocation8 + $0x148] sm:$0xf] }
  0x92   : > { %1680 = vmatpush.bf16.msrb.mxu3 %v3702_v28  ;;  %v3995_v28 = vld [vmem:[#allocation8 + $0x1a0] sm:$0xf0]  ;;  %v4250_v32 = vor.u32 %v4562_v26, %v4249_v24  ;;  %v4522_v22 = vld [vmem:[#allocation8 + $0x25c] sm:$0xf0] }
  0x93   : > { %1639 = vmatpush.bf16.msrb.mxu0 %v3658_v33  ;;  %v3998_v1 = vor.u32 %v4494_v27, %v3995_v28  ;;  %v3961_v33 = vld [vmem:[#allocation8 + $0x140] sm:$0xf]  ;;  %v4454_v23 = vld [vmem:[#allocation8 + $0x44] sm:$0xf] }
  0x94   : > { %1653 = vmatpush.bf16.msrb.mxu1 %v3662_v34  ;;  %1667 = vmatpush.bf16.msrb.mxu2 %v3666_v35  ;;  %v4490_v34 = vld [vmem:[#allocation8 + $0x15c] sm:$0xf0]  ;;  %v3835_v24 = vld [vmem:[#allocation8 + $0x60] sm:$0xf0] }
  0x95   : > { %v4217_v35 = vld [vmem:[#allocation8 + $0x340] sm:$0xf]  ;;  %v3962_v42 = vor.u32 %v4490_v34, %v3961_v33  ;;  %v4091_v26 = vld [vmem:[#allocation8 + $0x260] sm:$0xf0] }
  0x96   : > { %1681 = vmatpush.bf16.msrb.mxu3 %v3670_v39  ;;  %v3963_v39 = vld [vmem:[#allocation8 + $0x160] sm:$0xf0]  ;;  %v4218_v43 = vor.u32 %v4554_v37, %v4217_v35  ;;  %v3801_v28 = vld [vmem:[#allocation8] sm:$0xf] }
  0x97   : > { %1640 = vmatpush.bf16.msrb.mxu0 %v3626_v45  ;;  %v3966_v44 = vor.u32 %v4486_v38, %v3963_v39  ;;  %v3929_v45 = vld [vmem:[#allocation8 + $0x100] sm:$0xf]  ;;  %v4446_v33 = vld [vmem:[#allocation8 + $0x4] sm:$0xf]  ;;  %v4033_v38 = vld [vmem:[#allocation8 + $0x1c8] sm:$0xf] }
  0x98   : > { %1654 = vmatpush.bf16.msrb.mxu1 %v3630_v46  ;;  %1668 = vmatpush.bf16.msrb.mxu2 %v3634_v47  ;;  %v4482_v46 = vld [vmem:[#allocation8 + $0x11c] sm:$0xf0]  ;;  %v3803_v34 = vld [vmem:[#allocation8 + $0x20] sm:$0xf0]  ;;  %v4507_v39 = vld [vmem:[#allocation8 + $0x1e4] sm:$0xf0] }
  0x99   : > { %v4185_v47 = vld [vmem:[#allocation8 + $0x300] sm:$0xf]  ;;  %v3930_v55 = vor.u32 %v4482_v46, %v3929_v45  ;;  %v4059_v37 = vld [vmem:[#allocation8 + $0x220] sm:$0xf0]  ;;  %v4035_v45 = vld [vmem:[#allocation8 + $0x1e8] sm:$0xf0] }
  0x9a   : > { %1682 = vmatpush.bf16.msrb.mxu3 %v3638_v52  ;;  %v3931_v52 = vld [vmem:[#allocation8 + $0x120] sm:$0xf0]  ;;  %v4567_v46 = vld [vmem:[#allocation8 + $0x3cc] sm:$0xf] }
  0x9b   : > { %1641 = vmatpush.bf16.msrb.mxu0 %v3594_v59  ;;  %v3934_v57 = vor.u32 %v4478_v51, %v3931_v52  ;;  %v4474_v59 = vld [vmem:[#allocation8 + $0xdc] sm:$0xf0]  ;;  %v4291_v51 = vld [vmem:[#allocation8 + $0x3e8] sm:$0xf0] }
  0x9c   : > { %1655 = vmatpush.bf16.msrb.mxu1 %v3598_v62  ;;  %1669 = vmatpush.bf16.msrb.mxu2 %v3602_v63  ;;  %v4538_v62 = vld [vmem:[#allocation8 + $0x2dc] sm:$0xf0]  ;;  %v4470_v63 = vld [vmem:[#allocation8 + $0xc4] sm:$0xf] }
  0x9d   : > { %v4154_v5 = vor.u32 %v4538_v62, %v4153_v60  ;;  %v3902_v48 = vor.u32 %v4470_v63, %v3899_v0  ;;  %v1707_v52 = vld [vmem:[%s557_s13] sm:$0xff]  ;;  %v4001_v60 = vld [vmem:[#allocation8 + $0x188] sm:$0xf]  ;;  %v4294_v63 = vor.u32 %v4567_v46, %v4291_v51  ;;  %v3907_v46 = vld [vmem:[#allocation8 + $0xe8] sm:$0xf0] }
  0x9e   : > { %1683 = vmatpush.bf16.msrb.mxu3 %v3606_v4  ;;  %v3898_v4 = vor.u32 %v4474_v59, %v3897_v58  ;;  %v4290_v58 = vor.u32 %v4571_v41, %v4289_v40  ;;  %v4257_v62 = vld [vmem:[#allocation8 + $0x388] sm:$0xf]  ;;  %v5386_v0 = vpack.c.bf16 %v1709_v53, %v1707_v52 }
  0x9f   : > { %1642 = vmatpush.bf16.msrb.mxu0 %v3562_v10  ;;  %v4530_v10 = vld [vmem:[#allocation8 + $0x29c] sm:$0xf0]  ;;  %v4475_v40 = vld [vmem:[#allocation8 + $0xe4] sm:$0xf0] }
  0xa0   : > { %1656 = vmatpush.bf16.msrb.mxu1 %v3566_v14  ;;  %1670 = vmatpush.bf16.msrb.mxu2 %v3570_v15  ;;  %v4123_v14 = vld [vmem:[#allocation8 + $0x2a0] sm:$0xf0]  ;;  %v3866_v15 = vor.u32 %v4466_v7, %v3865_v6  ;;  %v4122_v16 = vor.u32 %v4530_v10, %v4121_v8  ;;  %v4259_v6 = vld [vmem:[#allocation8 + $0x3a8] sm:$0xf0]  ;;  %v4161_v41 = vld [vmem:[#allocation8 + $0x2c8] sm:$0xf] }
  0xa2   : > { %1684 = vmatpush.bf16.msrb.mxu3 %v3574_v18  ;;  %1643 = vmatmul.bf16.vlgmr.msrb.gmra.mxu0 %v5209_v56  ;;  %v3833_v18 = vld [vmem:[#allocation8 + $0x40] sm:$0xf] }
  0xa3   : > { %2481 = vmatpush.bf16.msra.mxu0 %v4026_v19  ;;  %1657 = vmatmul.bf16.vlgmr.msrb.gmra.mxu1 %v5209_v56  ;;  %v4458_v19 = vld [vmem:[#allocation8 + $0x5c] sm:$0xf0] }
  0xa4   : > { %2495 = vmatpush.bf16.msra.mxu1 %v4282_v20  ;;  %2509 = vmatpush.bf16.msra.mxu2 %v4030_v21  ;;  %v4089_v20 = vld [vmem:[#allocation8 + $0x240] sm:$0xf]  ;;  %v4126_v21 = vor.u32 %v4526_v13, %v4123_v14  ;;  %v3834_v27 = vor.u32 %v4458_v19, %v3833_v18  ;;  %v4491_v13 = vld [vmem:[#allocation8 + $0x164] sm:$0xf0]  ;;  %v4487_v18 = vld [vmem:[#allocation8 + $0x14c] sm:$0xf] }
  0xa5   : > { %1671 = vmatmul.bf16.vlgmr.msrb.gmra.mxu2 %v5209_v56  ;;  %1685 = vmatmul.bf16.vlgmr.msrb.gmra.mxu3 %v5209_v56  ;;  %v4186_v56 = vor.u32 %v4546_v50, %v4185_v47  ;;  %v3806_v50 = vor.u32 %v4446_v33, %v3803_v34  ;;  %v4225_v14 = vld [vmem:[#allocation8 + $0x348] sm:$0xf]  ;;  %v3971_v19 = vld [vmem:[#allocation8 + $0x168] sm:$0xf0] }
  0xa6   : > { %2523 = vmatpush.bf16.msra.mxu3 %v4286_v25  ;;  %v4518_v25 = vld [vmem:[#allocation8 + $0x244] sm:$0xf]  ;;  %v4195_v33 = vld [vmem:[#allocation8 + $0x328] sm:$0xf0] }
  0xa7   : > { %2482 = vmatpush.bf16.msra.mxu0 %v3994_v31  ;;  %v4090_v31 = vor.u32 %v4522_v22, %v4089_v20  ;;  %v4094_v35 = vor.u32 %v4518_v25, %v4091_v26  ;;  %v4227_v22 = vld [vmem:[#allocation8 + $0x368] sm:$0xf0]  ;;  %v3974_v25 = vor.u32 %v4487_v18, %v3971_v19  ;;  %v3937_v26 = vld [vmem:[#allocation8 + $0x108] sm:$0xf] }
  0xa8   : > { %2496 = vmatpush.bf16.msra.mxu1 %v4250_v32  ;;  %2510 = vmatpush.bf16.msra.mxu2 %v3998_v1  ;;  %v3838_v32 = vor.u32 %v4454_v23, %v3835_v24  ;;  %v4514_v1 = vld [vmem:[#allocation8 + $0x21c] sm:$0xf0]  ;;  %v3970_v23 = vor.u32 %v4491_v13, %v3969_v12  ;;  %v4523_v13 = vld [vmem:[#allocation8 + $0x264] sm:$0xf0]  ;;  %v4519_v18 = vld [vmem:[#allocation8 + $0x24c] sm:$0xf] }
  0xa9   : > { %v4099_v19 = vld [vmem:[#allocation8 + $0x268] sm:$0xf0] }
  0xaa   : > { %2524 = vmatpush.bf16.msra.mxu3 %v4254_v36  ;;  %v4510_v36 = vld [vmem:[#allocation8 + $0x204] sm:$0xf] }
  0xab   : > { %2483 = vmatpush.bf16.msra.mxu0 %v3962_v42  ;;  %v4062_v54 = vor.u32 %v4510_v36, %v4059_v37 }
  0xac   : > { %2497 = vmatpush.bf16.msra.mxu1 %v4218_v43  ;;  %2511 = vmatpush.bf16.msra.mxu2 %v3966_v44  ;;  %v3802_v43 = vor.u32 %v4450_v29, %v3801_v28  ;;  %v4503_v44 = vld [vmem:[#allocation8 + $0x1cc] sm:$0xf]  ;;  %v4193_v28 = vld [vmem:[#allocation8 + $0x308] sm:$0xf] }
  0xad   : > { %v4038_v59 = vor.u32 %v4503_v44, %v4035_v45  ;;  %v4539_v44 = vld [vmem:[#allocation8 + $0x2e4] sm:$0xf0]  ;;  %v4471_v45 = vld [vmem:[#allocation8 + $0xcc] sm:$0xf] }
  0xae   : > { %2525 = vmatpush.bf16.msra.mxu3 %v4222_v49  ;;  %v4058_v49 = vor.u32 %v4514_v1, %v4057_v30  ;;  %v4547_v30 = vld [vmem:[#allocation8 + $0x324] sm:$0xf0]  ;;  %v4543_v1 = vld [vmem:[#allocation8 + $0x30c] sm:$0xf] }
  0xaf   : > { %2484 = vmatpush.bf16.msra.mxu0 %v3930_v55  ;;  %v5382_v42 = vpop.f32.mrf.mxu0  ;;  %v4034_v55 = vor.u32 %v4507_v39, %v4033_v38  ;;  %v4194_v36 = vor.u32 %v4547_v30, %v4193_v28  ;;  %v3905_v39 = vld [vmem:[#allocation8 + $0xc8] sm:$0xf]  ;;  %v4447_v30 = vld [vmem:[#allocation8 + $0xc] sm:$0xf] }
  0xb0   : > { %2498 = vmatpush.bf16.msra.mxu1 %v4186_v56  ;;  %2512 = vmatpush.bf16.msra.mxu2 %v3934_v57  ;;  %v5384_v47 = vpop.f32.mrf.mxu1  ;;  %v1708_v56 = vld [vmem:[%s557_s13 + $0x8] sm:$0xff]  ;;  %v1710_v57 = vld [vmem:[%s557_s13 + $0x18] sm:$0xff]  ;;  %v3906_v52 = vor.u32 %v4475_v40, %v3905_v39  ;;  %v4572_v40 = vld [vmem:[#allocation8 + $0x3ec] sm:$0xf0] }
  0xb1   : > { %v4065_v28 = vld [vmem:[#allocation8 + $0x208] sm:$0xf] }
  0xb2   : > { %2526 = vmatpush.bf16.msra.mxu3 %v4190_v61  ;;  %v4499_v61 = vld [vmem:[#allocation8 + $0x1a4] sm:$0xf0] }
  0xb3   : > { %2485 = vmatpush.bf16.msra.mxu0 %v3898_v4  ;;  %v4003_v4 = vld [vmem:[#allocation8 + $0x1a8] sm:$0xf0]  ;;  %v4002_v7 = vor.u32 %v4499_v61, %v4001_v60  ;;  %v4531_v60 = vld [vmem:[#allocation8 + $0x2a4] sm:$0xf0] }
  0xb4   : > { %2499 = vmatpush.bf16.msra.mxu1 %v4154_v5  ;;  %2513 = vmatpush.bf16.msra.mxu2 %v3902_v48  ;;  %v5388_v5 = vpack.c.bf16 %v1710_v57, %v1708_v56  ;;  %v4559_v48 = vld [vmem:[#allocation8 + $0x38c] sm:$0xf]  ;;  %v4006_v10 = vor.u32 %v4495_v3, %v4003_v4  ;;  %v3873_v56 = vld [vmem:[#allocation8 + $0x88] sm:$0xf] }
  0xb5   : > { %v4467_v57 = vld [vmem:[#allocation8 + $0xa4] sm:$0xf0]  ;;  %v4463_v61 = vld [vmem:[#allocation8 + $0x8c] sm:$0xf] }
  0xb6   : > { %2527 = vmatpush.bf16.msra.mxu3 %v4158_v9  ;;  %v4258_v9 = vor.u32 %v4563_v2, %v4257_v62  ;;  %v3875_v62 = vld [vmem:[#allocation8 + $0xa8] sm:$0xf0]  ;;  %v3874_v3 = vor.u32 %v4467_v57, %v3873_v56 }
  0xb7   : > { %2486 = vmatpush.bf16.msra.mxu0 %v3866_v15  ;;  %v5394_v15 = vpop.f32.mrf.mxu0  ;;  %v4131_v2 = vld [vmem:[#allocation8 + $0x2a8] sm:$0xf0] }
  0xb8   : > { %2500 = vmatpush.bf16.msra.mxu1 %v4122_v16  ;;  %2514 = vmatpush.bf16.msra.mxu2 %v3870_v17  ;;  %v5390_v8 = vpop.f32.mrf.mxu2  ;;  %v5392_v11 = vpop.f32.mrf.mxu3  ;;  %v4262_v16 = vor.u32 %v4559_v48, %v4259_v6  ;;  %v4555_v17 = vld [vmem:[#allocation8 + $0x364] sm:$0xf0]  ;;  %v3878_v48 = vor.u32 %v4463_v61, %v3875_v62  ;;  %v4265_v61 = vld [vmem:[#allocation8 + $0x390] sm:$0xf] }
  0xb9   : > { %v5397_v20 = vpop.f32.mrf.mxu1  ;;  %v4226_v24 = vor.u32 %v4555_v17, %v4225_v14  ;;  %v3841_v6 = vld [vmem:[#allocation8 + $0x48] sm:$0xf]  ;;  %v4455_v14 = vld [vmem:[#allocation8 + $0x4c] sm:$0xf] }
  0xba   : > { %2528 = vmatpush.bf16.msra.mxu3 %v4126_v21  ;;  %v4551_v21 = vld [vmem:[#allocation8 + $0x34c] sm:$0xf] }
  0xbb   : > { %2487 = vmatpush.bf16.msra.mxu0 %v3834_v27  ;;  %v4483_v27 = vld [vmem:[#allocation8 + $0x124] sm:$0xf0]  ;;  %v4230_v29 = vor.u32 %v4551_v21, %v4227_v22 }
  0xbc   : > { %2501 = vmatpush.bf16.msra.mxu1 %v4090_v31  ;;  %2515 = vmatpush.bf16.msra.mxu2 %v3838_v32  ;;  %v4479_v31 = vld [vmem:[#allocation8 + $0x10c] sm:$0xf]  ;;  %v3938_v34 = vor.u32 %v4483_v27, %v3937_v26 }
  0xbd   : > { %v3939_v32 = vld [vmem:[#allocation8 + $0x128] sm:$0xf0] }
  0xbe   : > { %2529 = vmatpush.bf16.msra.mxu3 %v4094_v35  ;;  %v3942_v37 = vor.u32 %v4479_v31, %v3939_v32  ;;  %v4102_v31 = vor.u32 %v4519_v18, %v4099_v19  ;;  %v3811_v32 = vld [vmem:[#allocation8 + $0x28] sm:$0xf0]  ;;  %v4233_v18 = vld [vmem:[#allocation8 + $0x350] sm:$0xf] }
  0xbf   : > { %2488 = vmatpush.bf16.msra.mxu0 %v3802_v43  ;;  %v4198_v43 = vor.u32 %v4543_v1, %v4195_v33  ;;  %v5406_v51 = vpop.f32.mrf.mxu0  ;;  %v4511_v1 = vld [vmem:[#allocation8 + $0x20c] sm:$0xf] }
  0xc0   : > { %2502 = vmatpush.bf16.msra.mxu1 %v4058_v49  ;;  %2516 = vmatpush.bf16.msra.mxu2 %v3806_v50  ;;  %v5402_v35 = vpop.f32.mrf.mxu2  ;;  %v5404_v38 = vpop.f32.mrf.mxu3  ;;  %v4535_v49 = vld [vmem:[#allocation8 + $0x2cc] sm:$0xf] }
  0xc1   : > { %v4163_v50 = vld [vmem:[#allocation8 + $0x2e8] sm:$0xf0]  ;;  %v5408_v53 = vpop.f32.mrf.mxu1 }
  0xc2   : > { %2530 = vmatpush.bf16.msra.mxu3 %v4062_v54  ;;  %2489 = vmatmul.bf16.vlgmr.msra.gmra.mxu0 %v5386_v0  ;;  %v4162_v54 = vor.u32 %v4539_v44, %v4161_v41  ;;  %v4067_v33 = vld [vmem:[#allocation8 + $0x228] sm:$0xf0]  ;;  %v4504_v41 = vld [vmem:[#allocation8 + $0x1d4] sm:$0xf] }
  0xc3   : > { %2537 = vmatpush.bf16.msrb.mxu0 %v4034_v55  ;;  %2503 = vmatmul.bf16.vlgmr.msra.gmra.mxu1 %v5388_v5  ;;  %v3910_v55 = vor.u32 %v4471_v45, %v3907_v46  ;;  %v3814_v45 = vor.u32 %v4447_v30, %v3811_v32  ;;  %v4568_v46 = vld [vmem:[#allocation8 + $0x3d4] sm:$0xf] }
  0xc4   : > { %2551 = vmatpush.bf16.msrb.mxu1 %v4290_v58  ;;  %2565 = vmatpush.bf16.msrb.mxu2 %v4038_v59  ;;  %v4129_v58 = vld [vmem:[#allocation8 + $0x288] sm:$0xf]  ;;  %v4166_v59 = vor.u32 %v4535_v49, %v4163_v50  ;;  %v4299_v49 = vld [vmem:[#allocation8 + $0x3f0] sm:$0xf0]  ;;  %v4070_v50 = vor.u32 %v4511_v1, %v4067_v33  ;;  %v3945_v33 = vld [vmem:[#allocation8 + $0x110] sm:$0xf] }
  0xc5   : > { %2517 = vmatmul.bf16.vlgmr.msra.gmra.mxu2 %v5386_v0  ;;  %2531 = vmatmul.bf16.vlgmr.msra.gmra.mxu3 %v5388_v5  ;;  %v4130_v4 = vor.u32 %v4531_v60, %v4129_v58  ;;  %v4500_v60 = vld [vmem:[#allocation8 + $0x1ac] sm:$0xf0]  ;;  %v4302_v62 = vor.u32 %v4568_v46, %v4299_v49  ;;  %v4544_v46 = vld [vmem:[#allocation8 + $0x314] sm:$0xf] }
  0xc6   : > { %2579 = vmatpush.bf16.msrb.mxu3 %v4294_v63  ;;  %v4527_v63 = vld [vmem:[#allocation8 + $0x28c] sm:$0xf]  ;;  %v4203_v49 = vld [vmem:[#allocation8 + $0x330] sm:$0xf0] }
  0xc7   : > { %2538 = vmatpush.bf16.msrb.mxu0 %v4002_v7  ;;  %v4459_v7 = vld [vmem:[#allocation8 + $0x64] sm:$0xf0]  ;;  %v5414_v21 = vpop.f32.mrf.mxu0 }
  0xc8   : > { %2552 = vmatpush.bf16.msrb.mxu1 %v4258_v9  ;;  %2566 = vmatpush.bf16.msrb.mxu2 %v4006_v10  ;;  %v4097_v9 = vld [vmem:[#allocation8 + $0x248] sm:$0xf]  ;;  %v4134_v10 = vor.u32 %v4527_v63, %v4131_v2  ;;  %v5410_v12 = vpop.f32.mrf.mxu2  ;;  %v5412_v17 = vpop.f32.mrf.mxu3  ;;  %v3842_v22 = vor.u32 %v4459_v7, %v3841_v6  ;;  %v4560_v7 = vld [vmem:[#allocation8 + $0x394] sm:$0xf] }
  0xc9   : > { %v4098_v26 = vor.u32 %v4523_v13, %v4097_v9  ;;  %v4267_v9 = vld [vmem:[#allocation8 + $0x3b0] sm:$0xf0] }
  0xca   : > { %2580 = vmatpush.bf16.msrb.mxu3 %v4262_v16  ;;  %v3843_v16 = vld [vmem:[#allocation8 + $0x68] sm:$0xf0]  ;;  %v4270_v19 = vor.u32 %v4560_v7, %v4267_v9 }
  0xcb   : > { %2539 = vmatpush.bf16.msrb.mxu0 %v3970_v23  ;;  %v5416_v23 = vpop.f32.mrf.mxu1  ;;  %v3846_v27 = vor.u32 %v4455_v14, %v3843_v16  ;;  %v4492_v16 = vld [vmem:[#allocation8 + $0x16c] sm:$0xf0] }
  0xcc   : > { %2553 = vmatpush.bf16.msrb.mxu1 %v4226_v24  ;;  %2567 = vmatpush.bf16.msrb.mxu2 %v3974_v25  ;;  %v3809_v24 = vld [vmem:[#allocation8 + $0x8] sm:$0xf] }
  0xcd   : > { %v4451_v25 = vld [vmem:[#allocation8 + $0x24] sm:$0xf0] }
  0xce   : > { %2581 = vmatpush.bf16.msrb.mxu3 %v4230_v29  ;;  %v4515_v29 = vld [vmem:[#allocation8 + $0x224] sm:$0xf0]  ;;  %v3810_v39 = vor.u32 %v4451_v25, %v3809_v24  ;;  %v4488_v24 = vld [vmem:[#allocation8 + $0x154] sm:$0xf] }
  0xcf   : > { %2540 = vmatpush.bf16.msrb.mxu0 %v3938_v34  ;;  %v4041_v34 = vld [vmem:[#allocation8 + $0x1d0] sm:$0xf]  ;;  %v4066_v44 = vor.u32 %v4515_v29, %v4065_v28  ;;  %v1089_v58 = vpop.f32.mrf.mxu0  ;;  %v4552_v25 = vld [vmem:[#allocation8 + $0x354] sm:$0xf] }
  0xd0   : > { %2554 = vmatpush.bf16.msrb.mxu1 %v4194_v36  ;;  %2568 = vmatpush.bf16.msrb.mxu2 %v3942_v37  ;;  %v4508_v36 = vld [vmem:[#allocation8 + $0x1ec] sm:$0xf0]  ;;  %v5420_v57 = vpop.f32.mrf.mxu3  ;;  %v5423_v63 = vadd.f32 %v1089_v58, %v5382_v42 }
  0xd1   : > { %v4297_v37 = vld [vmem:[#allocation8 + $0x3d0] sm:$0xf] }
  0xd2   : > { %2582 = vmatpush.bf16.msrb.mxu3 %v4198_v43  ;;  %v4043_v43 = vld [vmem:[#allocation8 + $0x1f0] sm:$0xf0]  ;;  %v3977_v42 = vld [vmem:[#allocation8 + $0x150] sm:$0xf] }
  0xd3   : > { %2541 = vmatpush.bf16.msrb.mxu0 %v3906_v52  ;;  %v4042_v52 = vor.u32 %v4508_v36, %v4041_v34  ;;  %v4046_v56 = vor.u32 %v4504_v41, %v4043_v43  ;;  %v1103_v2 = vpop.f32.mrf.mxu1  ;;  %v4484_v34 = vld [vmem:[#allocation8 + $0x12c] sm:$0xf0] }
  0xd4   : > { %2555 = vmatpush.bf16.msrb.mxu1 %v4162_v54  ;;  %2569 = vmatpush.bf16.msrb.mxu2 %v3910_v55  ;;  %v5418_v54 = vpop.f32.mrf.mxu2  ;;  %v4298_v55 = vor.u32 %v4572_v40, %v4297_v37  ;;  %v5426_v6 = vadd.f32 %v1103_v2, %v5384_v47  ;;  %v3979_v47 = vld [vmem:[#allocation8 + $0x170] sm:$0xf0]  ;;  %v4201_v36 = vld [vmem:[#allocation8 + $0x310] sm:$0xf] }
  0xd5   : > { %v3982_v30 = vor.u32 %v4488_v24, %v3979_v47  ;;  %v4548_v43 = vld [vmem:[#allocation8 + $0x32c] sm:$0xf0]  ;;  %v4171_v2 = vld [vmem:[#allocation8 + $0x2f0] sm:$0xf0] }
  0xd6   : > { %2583 = vmatpush.bf16.msrb.mxu3 %v4166_v59  ;;  %v4009_v59 = vld [vmem:[#allocation8 + $0x190] sm:$0xf]  ;;  %v4528_v47 = vld [vmem:[#allocation8 + $0x294] sm:$0xf] }
  0xd7   : > { %2542 = vmatpush.bf16.msrb.mxu0 %v3874_v3  ;;  %v4564_v3 = vld [vmem:[#allocation8 + $0x3ac] sm:$0xf0]  ;;  %v1091_v1 = vpop.f32.mrf.mxu0 }
  0xd8   : > { %2556 = vmatpush.bf16.msrb.mxu1 %v4130_v4  ;;  %2570 = vmatpush.bf16.msrb.mxu2 %v3878_v48  ;;  %v4496_v4 = vld [vmem:[#allocation8 + $0x194] sm:$0xf]  ;;  %v4266_v13 = vor.u32 %v4564_v3, %v4265_v61  ;;  %v1131_v32 = vpop.f32.mrf.mxu3  ;;  %v5439_v40 = vadd.f32 %v1091_v1, %v5394_v15  ;;  %v4169_v58 = vld [vmem:[#allocation8 + $0x2d0] sm:$0xf]  ;;  %v4206_v15 = vor.u32 %v4544_v46, %v4203_v49 }
  0xd9   : > { %v4011_v48 = vld [vmem:[#allocation8 + $0x1b0] sm:$0xf0]  ;;  %v4105_v1 = vld [vmem:[#allocation8 + $0x250] sm:$0xf] }
  0xda   : > { %2584 = vmatpush.bf16.msrb.mxu3 %v4134_v10  ;;  %v4010_v10 = vor.u32 %v4500_v60, %v4009_v59  ;;  %v4014_v14 = vor.u32 %v4496_v4, %v4011_v48  ;;  %v4540_v59 = vld [vmem:[#allocation8 + $0x2ec] sm:$0xf0]  ;;  %v4472_v60 = vld [vmem:[#allocation8 + $0xd4] sm:$0xf] }
  0xdb   : > { %2543 = vmatpush.bf16.msrb.mxu0 %v3842_v22  ;;  %v4556_v22 = vld [vmem:[#allocation8 + $0x36c] sm:$0xf0]  ;;  %v1105_v41 = vpop.f32.mrf.mxu1  ;;  %v3915_v61 = vld [vmem:[#allocation8 + $0xf0] sm:$0xf0]  ;;  %v4170_v4 = vor.u32 %v4540_v59, %v4169_v58 }
  0xdc   : > { %2557 = vmatpush.bf16.msrb.mxu1 %v4098_v26  ;;  %2571 = vmatpush.bf16.msrb.mxu2 %v3846_v27  ;;  %v4235_v26 = vld [vmem:[#allocation8 + $0x370] sm:$0xf0]  ;;  %v3978_v27 = vor.u32 %v4492_v16, %v3977_v42  ;;  %v1117_v28 = vpop.f32.mrf.mxu2  ;;  %v4234_v29 = vor.u32 %v4556_v22, %v4233_v18  ;;  %v3918_v48 = vor.u32 %v4472_v60, %v3915_v61  ;;  %v4532_v18 = vld [vmem:[#allocation8 + $0x2ac] sm:$0xf0] }
  0xdd   : > { %v4238_v37 = vor.u32 %v4552_v25, %v4235_v26  ;;  %v3883_v22 = vld [vmem:[#allocation8 + $0xb0] sm:$0xf0]  ;;  %v4073_v49 = vld [vmem:[#allocation8 + $0x210] sm:$0xf] }
  0xde   : > { %2585 = vmatpush.bf16.msrb.mxu3 %v4102_v31  ;;  %v5433_v31 = vadd.f32 %v1117_v28, %v5390_v8  ;;  %v5442_v8 = vadd.f32 %v1105_v41, %v5397_v20  ;;  %v4139_v25 = vld [vmem:[#allocation8 + $0x2b0] sm:$0xf0] }
  0xdf   : > { %2544 = vmatpush.bf16.msrb.mxu0 %v3810_v39  ;;  %v5436_v39 = vadd.f32 %v1131_v32, %v5392_v11  ;;  %v3913_v11 = vld [vmem:[#allocation8 + $0xd0] sm:$0xf]  ;;  %v1145_v24 = vpop.f32.mrf.mxu0  ;;  %v4520_v41 = vld [vmem:[#allocation8 + $0x254] sm:$0xf] }
  0xe0   : > { %2558 = vmatpush.bf16.msrb.mxu1 %v4066_v44  ;;  %2572 = vmatpush.bf16.msrb.mxu2 %v3814_v45  ;;  %v4480_v44 = vld [vmem:[#allocation8 + $0x114] sm:$0xf]  ;;  %v1133_v9 = vpop.f32.mrf.mxu3  ;;  %v5451_v26 = vadd.f32 %v1145_v24, %v5406_v51  ;;  %v4460_v32 = vld [vmem:[#allocation8 + $0x6c] sm:$0xf0] }
  0xe1   : > { %v3947_v45 = vld [vmem:[#allocation8 + $0x130] sm:$0xf0]  ;;  %v5448_v16 = vadd.f32 %v1133_v9, %v5404_v38 }
  0xe2   : > { %2586 = vmatpush.bf16.msrb.mxu3 %v4070_v50  ;;  %2545 = vmatmul.bf16.vlgmr.msrb.gmra.mxu0 %v5386_v0  ;;  %v3946_v50 = vor.u32 %v4484_v34, %v3945_v33  ;;  %v4142_v33 = vor.u32 %v4528_v47, %v4139_v25  ;;  %v4524_v34 = vld [vmem:[#allocation8 + $0x26c] sm:$0xf0]  ;;  %v4107_v51 = vld [vmem:[#allocation8 + $0x270] sm:$0xf0]  ;;  %v4017_v25 = vld [vmem:[#allocation8 + $0x198] sm:$0xf] }
  0xe3   : > { %2593 = vmatpush.bf16.msra.mxu0 %v4042_v52  ;;  %2559 = vmatmul.bf16.vlgmr.msrb.gmra.mxu1 %v5388_v5  ;;  %v4202_v52 = vor.u32 %v4548_v43, %v4201_v36  ;;  %v4456_v36 = vld [vmem:[#allocation8 + $0x54] sm:$0xf] }
  0xe4   : > { %2607 = vmatpush.bf16.msra.mxu1 %v4298_v55  ;;  %2621 = vmatpush.bf16.msra.mxu2 %v4046_v56  ;;  %v3950_v55 = vor.u32 %v4480_v44, %v3947_v45  ;;  %v4476_v56 = vld [vmem:[#allocation8 + $0xec] sm:$0xf0]  ;;  %v1119_v3 = vpop.f32.mrf.mxu2  ;;  %v4512_v58 = vld [vmem:[#allocation8 + $0x214] sm:$0xf] }
  0xe5   : > { %2573 = vmatmul.bf16.vlgmr.msrb.gmra.mxu2 %v5386_v0  ;;  %2587 = vmatmul.bf16.vlgmr.msrb.gmra.mxu3 %v5388_v5  ;;  %v3914_v20 = vor.u32 %v4476_v56, %v3913_v11  ;;  %v5445_v7 = vadd.f32 %v1119_v3, %v5402_v35  ;;  %v1159_v35 = vpop.f32.mrf.mxu1  ;;  %v3817_v44 = vld [vmem:[#allocation8 + $0x10] sm:$0xf]  ;;  %v3819_v56 = vld [vmem:[#allocation8 + $0x30] sm:$0xf0] }
  0xe6   : > { %2635 = vmatpush.bf16.msra.mxu3 %v4302_v62  ;;  %v4536_v62 = vld [vmem:[#allocation8 + $0x2d4] sm:$0xf]  ;;  %v5454_v28 = vadd.f32 %v1159_v35, %v5408_v53  ;;  %v4452_v45 = vld [vmem:[#allocation8 + $0x2c] sm:$0xf0]  ;;  %v4106_v53 = vor.u32 %v4524_v34, %v4105_v1  ;;  %v4501_v35 = vld [vmem:[#allocation8 + $0x1b4] sm:$0xf0] }
  0xe7   : > { %2594 = vmatpush.bf16.msra.mxu0 %v4010_v10  ;;  %v3881_v10 = vld [vmem:[#allocation8 + $0x90] sm:$0xf]  ;;  %v4174_v42 = vor.u32 %v4536_v62, %v4171_v2  ;;  %v1147_v61 = vpop.f32.mrf.mxu0  ;;  %v4049_v62 = vld [vmem:[#allocation8 + $0x1d8] sm:$0xf]  ;;  %v3818_v9 = vor.u32 %v4452_v45, %v3817_v44  ;;  %v4275_v1 = vld [vmem:[#allocation8 + $0x3b8] sm:$0xf0] }
  0xe8   : > { %2608 = vmatpush.bf16.msra.mxu1 %v4266_v13  ;;  %2622 = vmatpush.bf16.msra.mxu2 %v4014_v14  ;;  %v4468_v13 = vld [vmem:[#allocation8 + $0xac] sm:$0xf0]  ;;  %v1187_v60 = vpop.f32.mrf.mxu3  ;;  %v4509_v2 = vld [vmem:[#allocation8 + $0x1f4] sm:$0xf0] }
  0xe9   : > { %v4137_v14 = vld [vmem:[#allocation8 + $0x290] sm:$0xf]  ;;  %v5460_v3 = vadd.f32 %v1187_v60, %v5412_v17  ;;  %v4050_v24 = vor.u32 %v4509_v2, %v4049_v62  ;;  %v4493_v44 = vld [vmem:[#allocation8 + $0x174] sm:$0xf0]  ;;  %v4481_v2 = vld [vmem:[#allocation8 + $0x11c] sm:$0xf] }
  0xea   : > { %2636 = vmatpush.bf16.msra.mxu3 %v4270_v19  ;;  %v4464_v19 = vld [vmem:[#allocation8 + $0x94] sm:$0xf]  ;;  %v4241_v45 = vld [vmem:[#allocation8 + $0x358] sm:$0xf] }
  0xeb   : > { %2595 = vmatpush.bf16.msra.mxu0 %v3978_v27  ;;  %v3882_v27 = vor.u32 %v4468_v13, %v3881_v10  ;;  %v3886_v38 = vor.u32 %v4464_v19, %v3883_v22  ;;  %v4573_v10 = vld [vmem:[#allocation8 + $0x3f4] sm:$0xf0]  ;;  %v4505_v13 = vld [vmem:[#allocation8 + $0x1dc] sm:$0xf] }
  0xec   : > { %2609 = vmatpush.bf16.msra.mxu1 %v4234_v29  ;;  %2623 = vmatpush.bf16.msra.mxu2 %v3982_v30  ;;  %v4138_v29 = vor.u32 %v4532_v18, %v4137_v14  ;;  %v3849_v30 = vld [vmem:[#allocation8 + $0x50] sm:$0xf]  ;;  %v1173_v11 = vpop.f32.mrf.mxu2  ;;  %v4051_v14 = vld [vmem:[#allocation8 + $0x1f8] sm:$0xf0]  ;;  %v4209_v60 = vld [vmem:[#allocation8 + $0x318] sm:$0xf] }
  0xed   : > { %v3850_v43 = vor.u32 %v4460_v32, %v3849_v30  ;;  %v5457_v59 = vadd.f32 %v1173_v11, %v5410_v12  ;;  %v4569_v19 = vld [vmem:[#allocation8 + $0x3dc] sm:$0xf]  ;;  %v4549_v62 = vld [vmem:[#allocation8 + $0x334] sm:$0xf0] }
  0xee   : > { %2637 = vmatpush.bf16.msra.mxu3 %v4238_v37  ;;  %v3851_v37 = vld [vmem:[#allocation8 + $0x70] sm:$0xf0]  ;;  %v4307_v22 = vld [vmem:[#allocation8 + $0x3f8] sm:$0xf0] }
  0xef   : > { %2596 = vmatpush.bf16.msra.mxu0 %v3946_v50  ;;  %v3854_v46 = vor.u32 %v4456_v36, %v3851_v37  ;;  %v4516_v50 = vld [vmem:[#allocation8 + $0x22c] sm:$0xf0]  ;;  %v4497_v30 = vld [vmem:[#allocation8 + $0x19c] sm:$0xf] }
  0xf0   : > { %2610 = vmatpush.bf16.msra.mxu1 %v4202_v52  ;;  %2624 = vmatpush.bf16.msra.mxu2 %v3950_v55  ;;  %v4448_v52 = vld [vmem:[#allocation8 + $0x14] sm:$0xf]  ;;  %v4110_v55 = vor.u32 %v4520_v41, %v4107_v51  ;;  %v4019_v32 = vld [vmem:[#allocation8 + $0x1b8] sm:$0xf0]  ;;  %v1189_v51 = vpop.f32.mrf.mxu3 }
  0xf1   : > { %v3822_v18 = vor.u32 %v4448_v52, %v3819_v56  ;;  %v4022_v37 = vor.u32 %v4497_v30, %v4019_v32  ;;  %v3987_v52 = vld [vmem:[#allocation8 + $0x178] sm:$0xf0] }
  0xf2   : > { %2638 = vmatpush.bf16.msra.mxu3 %v4206_v15  ;;  %v4075_v15 = vld [vmem:[#allocation8 + $0x230] sm:$0xf0] }
  0xf3   : > { %2597 = vmatpush.bf16.msra.mxu0 %v3914_v20  ;;  %v4305_v20 = vld [vmem:[#allocation8 + $0x3d8] sm:$0xf]  ;;  %v4078_v17 = vor.u32 %v4512_v58, %v4075_v15 }
  0xf4   : > { %2611 = vmatpush.bf16.msra.mxu1 %v4170_v4  ;;  %2625 = vmatpush.bf16.msra.mxu2 %v3918_v48  ;;  %v5463_v4 = vadd.f32 %v1147_v61, %v5414_v21  ;;  %v1161_v48 = vpop.f32.mrf.mxu1  ;;  %v4306_v47 = vor.u32 %v4573_v10, %v4305_v20  ;;  %v4054_v21 = vor.u32 %v4505_v13, %v4051_v14  ;;  %v1175_v34 = vpop.f32.mrf.mxu2  ;;  %v3953_v15 = vld [vmem:[#allocation8 + $0x118] sm:$0xf]  ;;  %v3955_v20 = vld [vmem:[#allocation8 + $0x138] sm:$0xf0] }
  0xf5   : > { %v5466_v12 = vadd.f32 %v1161_v48, %v5416_v23  ;;  %v4561_v23 = vld [vmem:[#allocation8 + $0x39c] sm:$0xf]  ;;  %v5469_v41 = vadd.f32 %v1175_v34, %v5418_v54 }
  0xf6   : > { %2639 = vmatpush.bf16.msra.mxu3 %v4174_v42  ;;  %v4074_v42 = vor.u32 %v4516_v50, %v4073_v49  ;;  %v4557_v49 = vld [vmem:[#allocation8 + $0x374] sm:$0xf0]  ;;  %v4489_v50 = vld [vmem:[#allocation8 + $0x15c] sm:$0xf] }
  0xf7   : > { %2598 = vmatpush.bf16.msra.mxu0 %v3882_v27  ;;  %v4273_v27 = vld [vmem:[#allocation8 + $0x398] sm:$0xf]  ;;  %v4553_v54 = vld [vmem:[#allocation8 + $0x35c] sm:$0xf]  ;;  %v4242_v56 = vor.u32 %v4557_v49, %v4241_v45  ;;  %v3990_v58 = vor.u32 %v4489_v50, %v3987_v52 }
  0xf8   : > { %2612 = vmatpush.bf16.msra.mxu1 %v4138_v29  ;;  %2626 = vmatpush.bf16.msra.mxu2 %v3886_v38  ;;  %v4310_v29 = vor.u32 %v4569_v19, %v4307_v22  ;;  %v4565_v38 = vld [vmem:[#allocation8 + $0x3b4] sm:$0xf0]  ;;  %v4211_v10 = vld [vmem:[#allocation8 + $0x338] sm:$0xf0]  ;;  %v4210_v19 = vor.u32 %v4549_v62, %v4209_v60  ;;  %v3958_v22 = vor.u32 %v4481_v2, %v3955_v20 }
  0xf9   : > { %v4274_v36 = vor.u32 %v4565_v38, %v4273_v27  ;;  %v3923_v27 = vld [vmem:[#allocation8 + $0xf8] sm:$0xf0] }
  0xfa   : > { %2640 = vmatpush.bf16.msra.mxu3 %v4142_v33  ;;  %v4018_v33 = vor.u32 %v4501_v35, %v4017_v25  ;;  %v4541_v25 = vld [vmem:[#allocation8 + $0x2f4] sm:$0xf0]  ;;  %v4473_v35 = vld [vmem:[#allocation8 + $0xdc] sm:$0xf] }
  0xfb   : > { %2599 = vmatpush.bf16.msra.mxu0 %v3850_v43  ;;  %v3985_v43 = vld [vmem:[#allocation8 + $0x158] sm:$0xf]  ;;  %v3926_v32 = vor.u32 %v4473_v35, %v3923_v27  ;;  %v4147_v49 = vld [vmem:[#allocation8 + $0x2b8] sm:$0xf0] }
  0xfc   : > { %2613 = vmatpush.bf16.msra.mxu1 %v4106_v53  ;;  %2627 = vmatpush.bf16.msra.mxu2 %v3854_v46  ;;  %v4278_v53 = vor.u32 %v4561_v23, %v4275_v1  ;;  %v5473_v46 = vadd.f32 %v1189_v51, %v5420_v57  ;;  %v3986_v11 = vor.u32 %v4493_v44, %v3985_v43  ;;  %v4485_v57 = vld [vmem:[#allocation8 + $0x134] sm:$0xf0]  ;;  %v3891_v51 = vld [vmem:[#allocation8 + $0xb8] sm:$0xf0] }
  0xfd   : > { %v4469_v23 = vld [vmem:[#allocation8 + $0xb4] sm:$0xf0]  ;;  %v3859_v62 = vld [vmem:[#allocation8 + $0x78] sm:$0xf0] }
  0xfe   : > { %2641 = vmatpush.bf16.msra.mxu3 %v4110_v55  ;;  %v4243_v55 = vld [vmem:[#allocation8 + $0x378] sm:$0xf0]  ;;  %v4145_v1 = vld [vmem:[#allocation8 + $0x298] sm:$0xf] }
  0xff   : > { %2600 = vmatpush.bf16.msra.mxu0 %v3818_v9  ;;  %v4246_v61 = vor.u32 %v4553_v54, %v4243_v55  ;;  %v1588_v48 = vpop.f32.mrf.mxu0  ;;  %v4545_v9 = vld [vmem:[#allocation8 + $0x31c] sm:$0xf] }
 0x100   : > { %2614 = vmatpush.bf16.msra.mxu1 %v4074_v42  ;;  %2628 = vmatpush.bf16.msra.mxu2 %v3822_v18  ;;  %v5479_v13 = vadd.f32 %v1588_v48, %v5423_v63  ;;  %v1602_v14 = vpop.f32.mrf.mxu1  ;;  %v3954_v42 = vor.u32 %v4485_v57, %v3953_v15  ;;  %v4179_v63 = vld [vmem:[#allocation8 + $0x2f8] sm:$0xf0]  ;;  %v4461_v15 = vld [vmem:[#allocation8 + $0x74] sm:$0xf0] }
 0x101   : > { %v5482_v18 = vadd.f32 %v1602_v14, %v5426_v6  ;;  %v3889_v6 = vld [vmem:[#allocation8 + $0x98] sm:$0xf]  ;;  %v4521_v2 = vld [vmem:[#allocation8 + $0x25c] sm:$0xf] }
 0x102   : > { %2642 = vmatpush.bf16.msra.mxu3 %v4078_v17  ;;  %2601 = vmatmul.bf16.vlgmr.msra.gmra.mxu0 %v5386_v0  ;;  %v3921_v17 = vld [vmem:[#allocation8 + $0xd8] sm:$0xf]  ;;  %v3890_v55 = vor.u32 %v4469_v23, %v3889_v6  ;;  %v4083_v35 = vld [vmem:[#allocation8 + $0x238] sm:$0xf0] }
 0x103   : > { %2649 = vmatpush.bf16.msrb.mxu0 %v4050_v24  ;;  %2615 = vmatmul.bf16.vlgmr.msra.gmra.mxu1 %v5388_v5  ;;  %v4477_v24 = vld [vmem:[#allocation8 + $0xf4] sm:$0xf0] }
 0x104   : > { %2663 = vmatpush.bf16.msrb.mxu1 %v4306_v47  ;;  %2677 = vmatpush.bf16.msrb.mxu2 %v4054_v21  ;;  %v4177_v47 = vld [vmem:[#allocation8 + $0x2d8] sm:$0xf]  ;;  %v4214_v21 = vor.u32 %v4545_v9, %v4211_v10  ;;  %v3922_v38 = vor.u32 %v4477_v24, %v3921_v17  ;;  %v4449_v17 = vld [vmem:[#allocation8 + $0x1c] sm:$0xf] }
 0x105   : > { %2629 = vmatmul.bf16.vlgmr.msra.gmra.mxu2 %v5386_v0  ;;  %2643 = vmatmul.bf16.vlgmr.msra.gmra.mxu3 %v5388_v5  ;;  %v4178_v30 = vor.u32 %v4541_v25, %v4177_v47  ;;  %v4113_v57 = vld [vmem:[#allocation8 + $0x258] sm:$0xf]  ;;  %v3827_v24 = vld [vmem:[#allocation8 + $0x38] sm:$0xf0] }
 0x106   : > { %2691 = vmatpush.bf16.msrb.mxu3 %v4310_v29  ;;  %v4537_v29 = vld [vmem:[#allocation8 + $0x2dc] sm:$0xf]  ;;  %v4453_v10 = vld [vmem:[#allocation8 + $0x34] sm:$0xf0] }
 0x107   : > { %2650 = vmatpush.bf16.msrb.mxu0 %v4018_v33  ;;  %v4182_v33 = vor.u32 %v4537_v29, %v4179_v63  ;;  %v1590_v45 = vpop.f32.mrf.mxu0  ;;  %v4081_v14 = vld [vmem:[#allocation8 + $0x218] sm:$0xf]  ;;  %v4513_v25 = vld [vmem:[#allocation8 + $0x21c] sm:$0xf] }
 0x108   : > { %2664 = vmatpush.bf16.msrb.mxu1 %v4274_v36  ;;  %2678 = vmatpush.bf16.msrb.mxu2 %v4022_v37  ;;  %v1616_v34 = vpop.f32.mrf.mxu2  ;;  %v4533_v36 = vld [vmem:[#allocation8 + $0x2b4] sm:$0xf0]  ;;  %v4465_v37 = vld [vmem:[#allocation8 + $0x9c] sm:$0xf]  ;;  %v1630_v44 = vpop.f32.mrf.mxu3  ;;  %v5491_v52 = vadd.f32 %v1590_v45, %v5439_v40 }
 0x109   : > { %v5485_v43 = vadd.f32 %v1616_v34, %v5433_v31  ;;  %v5488_v50 = vadd.f32 %v1630_v44, %v5436_v39  ;;  %v1604_v54 = vpop.f32.mrf.mxu1  ;;  %v4146_v31 = vor.u32 %v4533_v36, %v4145_v1  ;;  %v4457_v39 = vld [vmem:[#allocation8 + $0x5c] sm:$0xf] }
 0x10a   : > { %2692 = vmatpush.bf16.msrb.mxu3 %v4278_v53  ;;  %v4529_v53 = vld [vmem:[#allocation8 + $0x29c] sm:$0xf]  ;;  %v3862_v9 = vor.u32 %v4457_v39, %v3859_v62 }
 0x10b   : > { %2651 = vmatpush.bf16.msrb.mxu0 %v3986_v11  ;;  %v5494_v11 = vadd.f32 %v1604_v54, %v5442_v8  ;;  %v4150_v60 = vor.u32 %v4529_v53, %v4147_v49  ;;  %v4115_v40 = vld [vmem:[#allocation8 + $0x278] sm:$0xf0]  ;;  %v3825_v8 = vld [vmem:[#allocation8 + $0x18] sm:$0xf]  ;;  %v5537_v49 = vld [vmem:[#allocation9] sm:$0xff] }
 0x10c   : > { %2665 = vmatpush.bf16.msrb.mxu1 %v4242_v56  ;;  %2679 = vmatpush.bf16.msrb.mxu2 %v3990_v58  ;;  %v3894_v56 = vor.u32 %v4465_v37, %v3891_v51  ;;  %v3857_v58 = vld [vmem:[#allocation8 + $0x58] sm:$0xf]  ;;  %v3826_v29 = vor.u32 %v4453_v10, %v3825_v8 }
 0x10d   : > { %v3858_v20 = vor.u32 %v4461_v15, %v3857_v58 }
 0x10e   : > { %2693 = vmatpush.bf16.msrb.mxu3 %v4246_v61  ;;  %v4525_v61 = vld [vmem:[#allocation8 + $0x274] sm:$0xf0] }
 0x10f   : > { %2652 = vmatpush.bf16.msrb.mxu0 %v3954_v42  ;;  %v4114_v48 = vor.u32 %v4525_v61, %v4113_v57  ;;  %v4118_v42 = vor.u32 %v4521_v2, %v4115_v40  ;;  %v2758_v2 = vperm.slane %v5537_v49, 1 }
 0x110   : > { %2666 = vmatpush.bf16.msrb.mxu1 %v4210_v19  ;;  %2680 = vmatpush.bf16.msrb.mxu2 %v3958_v22  ;;  %v1618_v19 = vpop.f32.mrf.mxu2  ;;  %v4517_v22 = vld [vmem:[#allocation8 + $0x234] sm:$0xf0] }
 0x111   : > { %v5497_v47 = vadd.f32 %v1618_v19, %v5445_v7  ;;  %v4082_v63 = vor.u32 %v4517_v22, %v4081_v14 }
 0x112   : > { %2694 = vmatpush.bf16.msrb.mxu3 %v4214_v21  ;;  %v1632_v21 = vpop.f32.mrf.mxu3 }
 0x113   : > { %2653 = vmatpush.bf16.msrb.mxu0 %v3922_v38  ;;  %v5500_v27 = vadd.f32 %v1632_v21, %v5448_v16  ;;  %v3830_v38 = vor.u32 %v4449_v17, %v3827_v24 }
 0x114   : > { %2667 = vmatpush.bf16.msrb.mxu1 %v4178_v30  ;;  %2681 = vmatpush.bf16.msrb.mxu2 %v3926_v32  ;;  %v4086_v30 = vor.u32 %v4513_v25, %v4083_v35 }
 0x116   : > { %2695 = vmatpush.bf16.msrb.mxu3 %v4182_v33 }
 0x117   : > { %2654 = vmatpush.bf16.msrb.mxu0 %v3890_v55  ;;  %v2757_v55 = vperm.slane %v5537_v49, 0 }
 0x118   : > { %2668 = vmatpush.bf16.msrb.mxu1 %v4146_v31  ;;  %2682 = vmatpush.bf16.msrb.mxu2 %v3894_v56 }
 0x11a   : > { %2696 = vmatpush.bf16.msrb.mxu3 %v4150_v60 }
 0x11b   : > { %2655 = vmatpush.bf16.msrb.mxu0 %v3858_v20 }
 0x11c   : > { %2669 = vmatpush.bf16.msrb.mxu1 %v4114_v48  ;;  %2683 = vmatpush.bf16.msrb.mxu2 %v3862_v9 }
 0x11e   : > { %2697 = vmatpush.bf16.msrb.mxu3 %v4118_v42 }
 0x11f   : > { %2656 = vmatpush.bf16.msrb.mxu0 %v3826_v29  ;;  %v1644_v7 = vpop.f32.mrf.mxu0 }
 0x120   : > { %2670 = vmatpush.bf16.msrb.mxu1 %v4082_v63  ;;  %2684 = vmatpush.bf16.msrb.mxu2 %v3830_v38  ;;  %v5507_v16 = vadd.f32 %v1644_v7, %v5451_v26  ;;  %v1658_v32 = vpop.f32.mrf.mxu1 }
 0x121   : > { %v5510_v6 = vadd.f32 %v1658_v32, %v5454_v28 }
 0x122   : > { %2698 = vmatpush.bf16.msrb.mxu3 %v4086_v30  ;;  %2657 = vmatmul.bf16.vlgmr.msrb.gmra.mxu0 %v5386_v0 }
 0x123   : > { %2671 = vmatmul.bf16.vlgmr.msrb.gmra.mxu1 %v5388_v5  ;;  %2685 = vmatmul.bf16.vlgmr.msrb.gmra.mxu2 %v5386_v0 }
 0x125   : > { %2699 = vmatmul.bf16.vlgmr.msrb.gmra.mxu3 %v5388_v5 }
 0x127   : > { %v1646_v34 = vpop.f32.mrf.mxu0 }
 0x128   : > { %v1672_v23 = vpop.f32.mrf.mxu2  ;;  %v1686_v33 = vpop.f32.mrf.mxu3  ;;  %v5519_v0 = vadd.f32 %v1646_v34, %v5463_v4 }
 0x129   : > { %v5513_v1 = vadd.f32 %v1672_v23, %v5457_v59  ;;  %v5516_v36 = vadd.f32 %v1686_v33, %v5460_v3  ;;  %v1660_v5 = vpop.f32.mrf.mxu1  ;;  %v5533_v3 = vld [vmem:[%s5624_s8] sm:$0xff] }
 0x12a   : > { %v5522_v26 = vadd.f32 %v1660_v5, %v5466_v12  ;;  %v2723_v12 = vperm.slane %v5533_v3, 0  ;;  %v2724_v60 = vperm.slane %v5533_v3, 1 }
 0x130   : > { %v1674_v37 = vpop.f32.mrf.mxu2  ;;  %v1688_v51 = vpop.f32.mrf.mxu3 }
 0x131   : > { %v5525_v28 = vadd.f32 %v1674_v37, %v5469_v41  ;;  %v5528_v59 = vadd.f32 %v1688_v51, %v5473_v46 }
 0x13f   : > { %v2490_v44 = vpop.f32.mrf.mxu0 }
 0x140   : > { %v2504_v45 = vpop.f32.mrf.mxu1 }
 0x141   : > { %v2505_v4 = vadd.f32 %v2504_v45, %v2490_v44 }
 0x143   : > { %v2705_v53 = vadd.f32 %v2505_v4, %v5479_v13 }
 0x145   : > { %v2739_v54 = vmul.f32 %v2723_v12, %v2705_v53 }
 0x147   : > { %v2492_v31 = vpop.f32.mrf.mxu0  ;;  %v2773_v61 = vadd.f32 %v2757_v55, %v2739_v54 }
 0x148   : > { %v2518_v41 = vpop.f32.mrf.mxu2  ;;  %v2532_v46 = vpop.f32.mrf.mxu3 }
 0x149   : > { %v2533_v56 = vadd.f32 %v2532_v46, %v2518_v41  ;;  %v2506_v58 = vpop.f32.mrf.mxu1  ;;  %v2805_v20 = vmul.f32 0.2, %v2773_v61  ;;  %vm2789_vm1 = vcmp.gt.f32.partialorder %v2773_v61, 0.0  ;;  %v2725_v46 = vperm.slane %v5533_v3, 2 }
 0x14a   : > { %v2507_v15 = vadd.f32 %v2506_v58, %v2492_v31 }
 0x14b   : > { %v2706_v57 = vadd.f32 %v2533_v56, %v5482_v18  ;;  %v2821_v42 = vsel %vm2789_vm1, %v2773_v61, %v2805_v20 }
 0x14c   : > { %v2713_v13 = vadd.f32 %v2507_v15, %v5491_v52 }
 0x14d   : > { %v2740_v62 = vmul.f32 %v2724_v60, %v2706_v57 }
 0x14e   : > { %v2747_v39 = vmul.f32 %v2723_v12, %v2713_v13 }
 0x14f   : > { %v2774_v14 = vadd.f32 %v2758_v2, %v2740_v62 }
 0x150   : > { %v2520_v40 = vpop.f32.mrf.mxu2  ;;  %v2781_v48 = vadd.f32 %v2757_v55, %v2747_v39  ;;  %v2534_v9 = vpop.f32.mrf.mxu3 }
 0x151   : > { %v2535_v8 = vadd.f32 %v2534_v9, %v2520_v40  ;;  %v2806_v24 = vmul.f32 0.2, %v2774_v14  ;;  %vm2790_vm3 = vcmp.gt.f32.partialorder %v2774_v14, 0.0 }
 0x152   : > { %vm2797_vm2 = vcmp.gt.f32.partialorder %v2781_v48, 0.0  ;;  %v2813_v10 = vmul.f32 0.2, %v2781_v48 }
 0x153   : > { %v2714_v18 = vadd.f32 %v2535_v8, %v5494_v11  ;;  %v2822_v30 = vsel %vm2790_vm3, %v2774_v14, %v2806_v24  ;;  %v2726_v8 = vperm.slane %v5533_v3, 3 }
 0x154   : > { %v2829_v19 = vsel %vm2797_vm2, %v2781_v48, %v2813_v10 }
 0x155   : > { %v2838_v22 = vmax.f32 %v2821_v42, %v2829_v19  ;;  %v2927_v17 = vadd.f32 %v2829_v19, %v2821_v42  ;;  %v2748_v52 = vmul.f32 %v2724_v60, %v2714_v18 }
 0x157   : > { %v2839_v21 = vrot.slane %v2838_v22, 4  ;;  %v2928_v25 = vrot.slane %v2927_v17, 4  ;;  %v2782_v35 = vadd.f32 %v2758_v2, %v2748_v52  ;;  %v2759_v2 = vperm.slane %v5537_v49, 2 }
 0x159   : > { %vm2798_vm4 = vcmp.gt.f32.partialorder %v2782_v35, 0.0  ;;  %v2814_v29 = vmul.f32 0.2, %v2782_v35  ;;  %v2840_v63 = vmax.f32 %v2838_v22, %v2839_v21  ;;  %v2929_v38 = vadd.f32 %v2928_v25, %v2927_v17 }
 0x15a   : > { %v2760_v25 = vperm.slane %v5537_v49, 3 }
 0x15b   : > { %v2830_v7 = vsel %vm2798_vm4, %v2782_v35, %v2814_v29  ;;  %v2841_v33 = vrot.slane %v2840_v63, 2  ;;  %v2930_v11 = vrot.slane %v2929_v38, 2 }
 0x15c   : > { %v2845_v32 = vmax.f32 %v2822_v30, %v2830_v7  ;;  %v2934_v23 = vadd.f32 %v2830_v7, %v2822_v30 }
 0x15d   : > { %v2842_v53 = vmax.f32 %v2840_v63, %v2841_v33  ;;  %v2931_v12 = vadd.f32 %v2930_v11, %v2929_v38 }
 0x15e   : > { %v2846_v34 = vrot.slane %v2845_v32, 4  ;;  %v2935_v5 = vrot.slane %v2934_v23, 4 }
 0x15f   : > { %v2546_v37 = vpop.f32.mrf.mxu0  ;;  %v2843_v15 = vrot.slane %v2842_v53, 1  ;;  %v2932_v57 = vrot.slane %v2931_v12, 1 }
 0x160   : > { %v2560_v51 = vpop.f32.mrf.mxu1  ;;  %v2847_v44 = vmax.f32 %v2845_v32, %v2846_v34  ;;  %v2936_v45 = vadd.f32 %v2935_v5, %v2934_v23 }
 0x161   : > { %v2561_v4 = vadd.f32 %v2560_v51, %v2546_v37  ;;  %v2844_v14 = vmax.f32 %v2842_v53, %v2843_v15  ;;  %v2933_v18 = vadd.f32 %v2932_v57, %v2931_v12 }
 0x162   : > { %v2848_v41 = vrot.slane %v2847_v44, 2  ;;  %v2937_v54 = vrot.slane %v2936_v45, 2 }
 0x163   : > { %v2707_v55 = vadd.f32 %v2561_v4, %v5485_v43 }
 0x164   : > { %v2849_v31 = vmax.f32 %v2847_v44, %v2848_v41  ;;  %v2938_v56 = vadd.f32 %v2937_v54, %v2936_v45 }
 0x165   : > { %v2741_v62 = vmul.f32 %v2725_v46, %v2707_v55 }
 0x166   : > { %v2850_v60 = vrot.slane %v2849_v31, 1  ;;  %v2939_v61 = vrot.slane %v2938_v56, 1 }
 0x167   : > { %v2548_v39 = vpop.f32.mrf.mxu0  ;;  %v2775_v22 = vadd.f32 %v2759_v2, %v2741_v62 }
 0x168   : > { %v2574_v58 = vpop.f32.mrf.mxu2  ;;  %v2588_v13 = vpop.f32.mrf.mxu3  ;;  %v2851_v48 = vmax.f32 %v2849_v31, %v2850_v60  ;;  %v2940_v9 = vadd.f32 %v2939_v61, %v2938_v56 }
 0x169   : > { %v2589_v40 = vadd.f32 %v2588_v13, %v2574_v58  ;;  %v2562_v20 = vpop.f32.mrf.mxu1  ;;  %v2807_v63 = vmul.f32 0.2, %v2775_v22  ;;  %vm2791_vm6 = vcmp.gt.f32.partialorder %v2775_v22, 0.0 }
 0x16a   : > { %v2563_v10 = vadd.f32 %v2562_v20, %v2548_v39  ;;  %v2902_v42 = vrot.slane %v2851_v48, 7  ;;  %v2991_v19 = vrot.slane %v2940_v9, 7  ;;  %v2727_v9 = vperm.slane %v5533_v3, 4 }
 0x16b   : > { %v2708_v43 = vadd.f32 %v2589_v40, %v5488_v50  ;;  %v2823_v23 = vsel %vm2791_vm6, %v2775_v22, %v2807_v63  ;;  %vm2917_vm6 = vcmask 1046534  }
 0x16c   : > { %v2715_v17 = vadd.f32 %v2563_v10, %v5497_v47  ;;  %v5552_v52 = vsel %vm2909_vm5, %v2844_v14, %v2902_v42  ;;  %v5555_v24 = vsel %vm2909_vm5, %v2933_v18, %v2991_v19 }
 0x16d   : > { %v2742_v21 = vmul.f32 %v2726_v8, %v2708_v43 }
 0x16e   : > { %v2749_v50 = vmul.f32 %v2725_v46, %v2715_v17 }
 0x16f   : > { %v2776_v7 = vadd.f32 %v2760_v25, %v2742_v21  ;;  %v2761_v21 = vperm.slane %v5537_v49, 4 }
 0x170   : > { %v2576_v35 = vpop.f32.mrf.mxu2  ;;  %v2590_v29 = vpop.f32.mrf.mxu3  ;;  %v2783_v38 = vadd.f32 %v2759_v2, %v2749_v50 }
 0x171   : > { %v2591_v30 = vadd.f32 %v2590_v29, %v2576_v35  ;;  %v2808_v37 = vmul.f32 0.2, %v2776_v7  ;;  %vm2792_vm8 = vcmp.gt.f32.partialorder %v2776_v7, 0.0  ;;  %v2728_v29 = vperm.slane %v5533_v3, 5 }
 0x172   : > { %vm2799_vm7 = vcmp.gt.f32.partialorder %v2783_v38, 0.0  ;;  %v2815_v32 = vmul.f32 0.2, %v2783_v38 }
 0x173   : > { %v2716_v47 = vadd.f32 %v2591_v30, %v5500_v27  ;;  %v2824_v41 = vsel %vm2792_vm8, %v2776_v7, %v2808_v37  ;;  %vm2921_vm8 = vcmask 1043456  }
 0x174   : > { %v2831_v33 = vsel %vm2799_vm7, %v2783_v38, %v2815_v32  ;;  %vm2919_vm7 = vcmask 1045508  }
 0x175   : > { %v2750_v11 = vmul.f32 %v2726_v8, %v2716_v47  ;;  %v2852_v34 = vmax.f32 %v2823_v23, %v2831_v33  ;;  %v2941_v5 = vadd.f32 %v2831_v33, %v2823_v23 }
 0x177   : > { %v2784_v51 = vadd.f32 %v2760_v25, %v2750_v11  ;;  %v2853_v44 = vrot.slane %v2852_v34, 4  ;;  %v2942_v45 = vrot.slane %v2941_v5, 4 }
 0x179   : > { %vm2800_vm9 = vcmp.gt.f32.partialorder %v2784_v51, 0.0  ;;  %v2816_v4 = vmul.f32 0.2, %v2784_v51  ;;  %v2854_v53 = vmax.f32 %v2852_v34, %v2853_v44  ;;  %v2943_v12 = vadd.f32 %v2942_v45, %v2941_v5 }
 0x17b   : > { %v2832_v54 = vsel %vm2800_vm9, %v2784_v51, %v2816_v4  ;;  %v2855_v55 = vrot.slane %v2854_v53, 2  ;;  %v2944_v46 = vrot.slane %v2943_v12, 2 }
 0x17c   : > { %v2859_v31 = vmax.f32 %v2824_v41, %v2832_v54  ;;  %v2948_v27 = vadd.f32 %v2832_v54, %v2824_v41 }
 0x17d   : > { %v2856_v56 = vmax.f32 %v2854_v53, %v2855_v55  ;;  %v2945_v58 = vadd.f32 %v2944_v46, %v2943_v12  ;;  %v2762_v53 = vperm.slane %v5537_v49, 5 }
 0x17e   : > { %v2860_v15 = vrot.slane %v2859_v31, 4  ;;  %v2949_v57 = vrot.slane %v2948_v27, 4 }
 0x17f   : > { %v2602_v60 = vpop.f32.mrf.mxu0  ;;  %v2857_v62 = vrot.slane %v2856_v56, 1  ;;  %v2946_v2 = vrot.slane %v2945_v58, 1 }
 0x180   : > { %v2616_v61 = vpop.f32.mrf.mxu1  ;;  %v2861_v13 = vmax.f32 %v2859_v31, %v2860_v15  ;;  %v2950_v39 = vadd.f32 %v2949_v57, %v2948_v27 }
 0x181   : > { %v2617_v40 = vadd.f32 %v2616_v61, %v2602_v60  ;;  %v2858_v14 = vmax.f32 %v2856_v56, %v2857_v62  ;;  %v2947_v18 = vadd.f32 %v2946_v2, %v2945_v58 }
 0x182   : > { %v2862_v20 = vrot.slane %v2861_v13, 2  ;;  %v2951_v48 = vrot.slane %v2950_v39, 2 }
 0x183   : > { %v2709_v43 = vadd.f32 %v2617_v40, %v5507_v16  ;;  %v2903_v7 = vrot.slane %v2858_v14, 6  ;;  %v2992_v32 = vrot.slane %v2947_v18, 6 }
 0x184   : > { %v2863_v8 = vmax.f32 %v2861_v13, %v2862_v20  ;;  %v2952_v10 = vadd.f32 %v2951_v48, %v2950_v39 }
 0x185   : > { %v2743_v17 = vmul.f32 %v2727_v9, %v2709_v43 }
 0x186   : > { %v2864_v19 = vrot.slane %v2863_v8, 1  ;;  %v2953_v22 = vrot.slane %v2952_v10, 1 }
 0x187   : > { %v2604_v50 = vpop.f32.mrf.mxu0  ;;  %v2777_v11 = vadd.f32 %v2761_v21, %v2743_v17 }
 0x188   : > { %v2630_v42 = vpop.f32.mrf.mxu2  ;;  %v2644_v25 = vpop.f32.mrf.mxu3  ;;  %v2865_v38 = vmax.f32 %v2863_v8, %v2864_v19  ;;  %v2954_v30 = vadd.f32 %v2953_v22, %v2952_v10 }
 0x189   : > { %v2645_v35 = vadd.f32 %v2644_v25, %v2630_v42  ;;  %v2618_v63 = vpop.f32.mrf.mxu1  ;;  %v2809_v12 = vmul.f32 0.2, %v2777_v11  ;;  %vm2793_vm12 = vcmp.gt.f32.partialorder %v2777_v11, 0.0 }
 0x18a   : > { %v2619_v16 = vadd.f32 %v2618_v63, %v2604_v50  ;;  %v2904_v23 = vrot.slane %v2865_v38, 5  ;;  %v2993_v33 = vrot.slane %v2954_v30, 5  ;;  %v2729_v50 = vperm.slane %v5533_v3, 6 }
 0x18b   : > { %v2710_v47 = vadd.f32 %v2645_v35, %v5510_v6 }
 0x18c   : > { %v2717_v34 = vadd.f32 %v2619_v16, %v5519_v0  ;;  %v2912_v5 = vsel %vm2911_vm10, %v2903_v7, %v2904_v23  ;;  %v2999_v37 = vsel %vm2911_vm10, %v2992_v32, %v2993_v33 }
 0x18d   : > { %v5567_v44 = vsel %vm2913_vm11, %v5552_v52, %v2912_v5  ;;  %v5571_v45 = vsel %vm2913_vm11, %v5555_v24, %v2999_v37  ;;  %v2744_v4 = vmul.f32 %v2728_v29, %v2710_v47  ;;  %v2825_v52 = vsel %vm2793_vm12, %v2777_v11, %v2809_v12 }
 0x18e   : > { %v2751_v51 = vmul.f32 %v2727_v9, %v2717_v34  ;;  %v2763_v47 = vperm.slane %v5537_v49, 6  ;;  %v2730_v12 = vperm.slane %v5533_v3, 7 }
 0x18f   : > { %v2778_v46 = vadd.f32 %v2762_v53, %v2744_v4 }
 0x190   : > { %v2632_v6 = vpop.f32.mrf.mxu2  ;;  %v2785_v41 = vadd.f32 %v2761_v21, %v2751_v51  ;;  %v2646_v54 = vpop.f32.mrf.mxu3 }
 0x191   : > { %v2647_v0 = vadd.f32 %v2646_v54, %v2632_v6  ;;  %v2810_v15 = vmul.f32 0.2, %v2778_v46  ;;  %vm2794_vm14 = vcmp.gt.f32.partialorder %v2778_v46, 0.0 }
 0x192   : > { %vm2801_vm13 = vcmp.gt.f32.partialorder %v2785_v41, 0.0  ;;  %v2817_v55 = vmul.f32 0.2, %v2785_v41 }
 0x193   : > { %v2718_v31 = vadd.f32 %v2647_v0, %v5522_v26  ;;  %v2826_v2 = vsel %vm2794_vm14, %v2778_v46, %v2810_v15 }
 0x194   : > { %v2833_v27 = vsel %vm2801_vm13, %v2785_v41, %v2817_v55 }
 0x195   : > { %v2866_v56 = vmax.f32 %v2825_v52, %v2833_v27  ;;  %v2955_v58 = vadd.f32 %v2833_v27, %v2825_v52  ;;  %v2752_v24 = vmul.f32 %v2728_v29, %v2718_v31 }
 0x197   : > { %v2867_v57 = vrot.slane %v2866_v56, 4  ;;  %v2956_v60 = vrot.slane %v2955_v58, 4  ;;  %v2786_v61 = vadd.f32 %v2762_v53, %v2752_v24  ;;  %v2764_v24 = vperm.slane %v5537_v49, 7 }
 0x199   : > { %v2868_v13 = vmax.f32 %v2866_v56, %v2867_v57  ;;  %v2957_v39 = vadd.f32 %v2956_v60, %v2955_v58  ;;  %vm2802_vm15 = vcmp.gt.f32.partialorder %v2786_v61, 0.0  ;;  %v2818_v62 = vmul.f32 0.2, %v2786_v61 }
 0x19b   : > { %v2869_v40 = vrot.slane %v2868_v13, 2  ;;  %v2958_v20 = vrot.slane %v2957_v39, 2  ;;  %v2834_v48 = vsel %vm2802_vm15, %v2786_v61, %v2818_v62 }
 0x19c   : > { %v2873_v9 = vmax.f32 %v2826_v2, %v2834_v48  ;;  %v2962_v26 = vadd.f32 %v2834_v48, %v2826_v2 }
 0x19d   : > { %v2870_v43 = vmax.f32 %v2868_v13, %v2869_v40  ;;  %v2959_v10 = vadd.f32 %v2958_v20, %v2957_v39 }
 0x19e   : > { %v2874_v14 = vrot.slane %v2873_v9, 4  ;;  %v2963_v18 = vrot.slane %v2962_v26, 4 }
 0x19f   : > { %v2658_v8 = vpop.f32.mrf.mxu0  ;;  %v2871_v21 = vrot.slane %v2870_v43, 1  ;;  %v2960_v35 = vrot.slane %v2959_v10, 1 }
 0x1a0   : > { %v2672_v42 = vpop.f32.mrf.mxu1  ;;  %v2875_v22 = vmax.f32 %v2873_v9, %v2874_v14  ;;  %v2964_v17 = vadd.f32 %v2963_v18, %v2962_v26 }
 0x1a1   : > { %v2673_v19 = vadd.f32 %v2672_v42, %v2658_v8  ;;  %v2872_v7 = vmax.f32 %v2870_v43, %v2871_v21  ;;  %v2961_v11 = vadd.f32 %v2960_v35, %v2959_v10 }
 0x1a2   : > { %v2876_v29 = vrot.slane %v2875_v22, 2  ;;  %v2965_v63 = vrot.slane %v2964_v17, 2 }
 0x1a3   : > { %v2711_v25 = vadd.f32 %v2673_v19, %v5513_v1  ;;  %v2905_v0 = vrot.slane %v2872_v7, 4  ;;  %v2994_v55 = vrot.slane %v2961_v11, 4 }
 0x1a4   : > { %v2877_v38 = vmax.f32 %v2875_v22, %v2876_v29  ;;  %v2966_v30 = vadd.f32 %v2965_v63, %v2964_v17 }
 0x1a5   : > { %v2745_v32 = vmul.f32 %v2729_v50, %v2711_v25 }
 0x1a6   : > { %v2686_v16 = vpop.f32.mrf.mxu2  ;;  %v2878_v34 = vrot.slane %v2877_v38, 1  ;;  %v2967_v5 = vrot.slane %v2966_v30, 1 }
 0x1a7   : > { %v2660_v33 = vpop.f32.mrf.mxu0  ;;  %v2779_v41 = vadd.f32 %v2763_v47, %v2745_v32 }
 0x1a8   : > { %v2700_v23 = vpop.f32.mrf.mxu3  ;;  %v2674_v51 = vpop.f32.mrf.mxu1  ;;  %v2879_v4 = vmax.f32 %v2877_v38, %v2878_v34  ;;  %v2968_v53 = vadd.f32 %v2967_v5, %v2966_v30 }
 0x1a9   : > { %v2701_v37 = vadd.f32 %v2700_v23, %v2686_v16  ;;  %v2675_v1 = vadd.f32 %v2674_v51, %v2660_v33  ;;  %v2811_v57 = vmul.f32 0.2, %v2779_v41  ;;  %vm2795_vm1 = vcmp.gt.f32.partialorder %v2779_v41, 0.0 }
 0x1aa   : > { %v2906_v46 = vrot.slane %v2879_v4, 3  ;;  %v2995_v31 = vrot.slane %v2968_v53, 3 }
 0x1ab   : > { %v2712_v6 = vadd.f32 %v2701_v37, %v5516_v36  ;;  %v2719_v54 = vadd.f32 %v2675_v1, %v5525_v28  ;;  %v2827_v39 = vsel %vm2795_vm1, %v2779_v41, %v2811_v57 }
 0x1ac   : > { %v2916_v27 = vsel %vm2915_vm0, %v2905_v0, %v2906_v46  ;;  %v3001_v56 = vsel %vm2915_vm0, %v2994_v55, %v2995_v31 }
 0x1ad   : > { %v2753_v52 = vmul.f32 %v2729_v50, %v2719_v54  ;;  %v2746_v58 = vmul.f32 %v2730_v12, %v2712_v6 }
 0x1ae   : > { %v2688_v15 = vpop.f32.mrf.mxu2 }
 0x1af   : > { %v2787_v60 = vadd.f32 %v2763_v47, %v2753_v52  ;;  %v2780_v13 = vadd.f32 %v2764_v24, %v2746_v58 }
 0x1b0   : > { %v2702_v36 = vpop.f32.mrf.mxu3 }
 0x1b1   : > { %v2703_v3 = vadd.f32 %v2702_v36, %v2688_v15  ;;  %vm2803_vm2 = vcmp.gt.f32.partialorder %v2787_v60, 0.0  ;;  %v2819_v61 = vmul.f32 0.2, %v2787_v60  ;;  %v2812_v48 = vmul.f32 0.2, %v2780_v13 }
 0x1b2   : > { %vm2796_vm3 = vcmp.gt.f32.partialorder %v2780_v13, 0.0 }
 0x1b3   : > { %v2720_v28 = vadd.f32 %v2703_v3, %v5528_v59  ;;  %v2835_v62 = vsel %vm2803_vm2, %v2787_v60, %v2819_v61  ;;  %v2828_v14 = vsel %vm2796_vm3, %v2780_v13, %v2812_v48 }
 0x1b4   : > { %v2880_v2 = vmax.f32 %v2827_v39, %v2835_v62  ;;  %v2969_v40 = vadd.f32 %v2835_v62, %v2827_v39 }
 0x1b5   : > { %v2754_v20 = vmul.f32 %v2730_v12, %v2720_v28 }
 0x1b6   : > { %v2881_v9 = vrot.slane %v2880_v2, 4  ;;  %v2970_v26 = vrot.slane %v2969_v40, 4 }
 0x1b7   : > { %v2788_v49 = vadd.f32 %v2764_v24, %v2754_v20 }
 0x1b8   : > { %v2882_v43 = vmax.f32 %v2880_v2, %v2881_v9  ;;  %v2971_v8 = vadd.f32 %v2970_v26, %v2969_v40 }
 0x1b9   : > { %vm2804_vm4 = vcmp.gt.f32.partialorder %v2788_v49, 0.0  ;;  %v2820_v10 = vmul.f32 0.2, %v2788_v49 }
 0x1ba   : > { %v2883_v18 = vrot.slane %v2882_v43, 2  ;;  %v2972_v42 = vrot.slane %v2971_v8, 2 }
 0x1bb   : > { %v2836_v19 = vsel %vm2804_vm4, %v2788_v49, %v2820_v10 }
 0x1bc   : > { %v2887_v22 = vmax.f32 %v2828_v14, %v2836_v19  ;;  %v2976_v59 = vadd.f32 %v2836_v19, %v2828_v14  ;;  %v2884_v17 = vmax.f32 %v2882_v43, %v2883_v18  ;;  %v2973_v21 = vadd.f32 %v2972_v42, %v2971_v8 }
 0x1be   : > { %v2888_v25 = vrot.slane %v2887_v22, 4  ;;  %v2977_v50 = vrot.slane %v2976_v59, 4  ;;  %v2885_v63 = vrot.slane %v2884_v17, 1  ;;  %v2974_v38 = vrot.slane %v2973_v21, 1 }
 0x1c0   : > { %v2889_v35 = vmax.f32 %v2887_v22, %v2888_v25  ;;  %v2978_v29 = vadd.f32 %v2977_v50, %v2976_v59  ;;  %v2886_v47 = vmax.f32 %v2884_v17, %v2885_v63  ;;  %v2975_v23 = vadd.f32 %v2974_v38, %v2973_v21 }
 0x1c2   : > { %v2890_v30 = vrot.slane %v2889_v35, 2  ;;  %v2979_v16 = vrot.slane %v2978_v29, 2  ;;  %v2907_v37 = vrot.slane %v2886_v47, 2  ;;  %v2996_v51 = vrot.slane %v2975_v23, 2 }
 0x1c4   : > { %v2891_v7 = vmax.f32 %v2889_v35, %v2890_v30  ;;  %v2980_v32 = vadd.f32 %v2979_v16, %v2978_v29 }
 0x1c6   : > { %v2892_v33 = vrot.slane %v2891_v7, 1  ;;  %v2981_v11 = vrot.slane %v2980_v32, 1 }
 0x1c8   : > { %v2893_v34 = vmax.f32 %v2891_v7, %v2892_v33  ;;  %v2982_v5 = vadd.f32 %v2981_v11, %v2980_v32 }
 0x1ca   : > { %v2908_v1 = vrot.slane %v2893_v34, 1  ;;  %v2997_v4 = vrot.slane %v2982_v5, 1 }
 0x1cc   : > { %v2918_v53 = vsel %vm2917_vm6, %v2907_v37, %v2908_v1  ;;  %v3002_v6 = vsel %vm2917_vm6, %v2996_v51, %v2997_v4 }
 0x1cd   : > { %v2920_v12 = vsel %vm2919_vm7, %v2916_v27, %v2918_v53  ;;  %v3003_v41 = vsel %vm2919_vm7, %v3001_v56, %v3002_v6 }
 0x1ce   : > { %v2922_v54 = vsel %vm2921_vm8, %v5567_v44, %v2920_v12  ;;  %v3004_v0 = vsel %vm2921_vm8, %v5571_v45, %v3003_v41 }
 0x1cf   : > { %v3013_v55 = vmul.f32 0.0625, %v3004_v0  ;;  %v3015_v46 = vperm.slane %v2922_v54, 0  ;;  %v3016_v31 = vperm.slane %v2922_v54, 1  ;;  %v3017_v52 = vperm.slane %v2922_v54, 2 }
 0x1d0   : > { %v3018_v58 = vperm.slane %v2922_v54, 3  ;;  %v3019_v24 = vperm.slane %v2922_v54, 4  ;;  %v3020_v15 = vperm.slane %v2922_v54, 5  ;;  %v3021_v57 = vperm.slane %v2922_v54, 6 }
 0x1d1   : > { %v3022_v60 = vperm.slane %v2922_v54, 7  ;;  %v3032_v36 = vperm.slane %v3013_v55, 0  ;;  %v3033_v3 = vperm.slane %v3013_v55, 1  ;;  %v3034_v27 = vperm.slane %v3013_v55, 2 }
 0x1d2   : > { %v3035_v61 = vperm.slane %v3013_v55, 3  ;;  %v3036_v56 = vperm.slane %v3013_v55, 4  ;;  %v3037_v13 = vperm.slane %v3013_v55, 5  ;;  %v3038_v44 = vperm.slane %v3013_v55, 6 }
 0x1d3   : > { %v3039_v28 = vperm.slane %v3013_v55, 7  ;;  %v3048_v45 = vsel %vm2909_vm5, %v3015_v46, %v3032_v36  ;;  %v3049_v39 = vsel %vm2909_vm5, %v3016_v31, %v3033_v3  ;;  %v3050_v62 = vsel %vm2909_vm5, %v3017_v52, %v3034_v27 }
 0x1d4   : > { %v3051_v2 = vsel %vm2909_vm5, %v3018_v58, %v3035_v61  ;;  %v3052_v40 = vsel %vm2909_vm5, %v3019_v24, %v3036_v56  ;;  %v3053_v20 = vsel %vm2909_vm5, %v3020_v15, %v3037_v13  ;;  %v3054_v48 = vsel %vm2909_vm5, %v3021_v57, %v3038_v44 }
 0x1d5   : > { %v3055_v9 = vsel %vm2909_vm5, %v3022_v60, %v3039_v28  ;;  %v3064_v26 = vrot.slane %v3049_v39, 6  ;;  %v3065_v49 = vrot.slane %v3050_v62, 4  ;;  %v3066_v43 = vrot.slane %v3051_v2, 2 }
 0x1d6   : > { %v3067_v8 = vrot.slane %v3053_v20, 6  ;;  %v3068_v10 = vrot.slane %v3054_v48, 4  ;;  %v3069_v14 = vrot.slane %v3055_v9, 2 }
 0x1d7   : > { %v3070_v18 = vsel %vm2913_vm11, %v3048_v45, %v3064_v26  ;;  %v3071_v42 = vsel %vm2919_vm7, %v3065_v49, %v3066_v43 }
 0x1d8   : > { %v3072_v19 = vsel %vm2921_vm8, %v3070_v18, %v3071_v42  ;;  %v3073_v22 = vsel %vm2913_vm11, %v3052_v40, %v3067_v8  ;;  %v3074_v59 = vsel %vm2919_vm7, %v3068_v10, %v3069_v14 }
 0x1d9   : > { %v3075_v17 = vsel %vm2921_vm8, %v3073_v22, %v3074_v59  ;;  %3078 = vst [vmem:[%s563_s17] sm:$0xff] %v3072_v19 }
 0x1da   : > { %3079 = vst [vmem:[%s563_s17 + $0x8] sm:$0xff] %v3075_v17 }
 0x1db PF: > { %s23_s15 = sadd.s32 1, %s4795_s15   ;;  %s5633_s5 = sld [smem:[#allocation14_spill]] }
 0x1dc   : > { %p20_p8 = scmp.ge.s32.totalorder %s23_s15, 4   ;;  %s5634_s13 = smov %s4791_s14 }
 0x1de   :  { %22 = sbr.rel (!%p20_p8) target bundleno = 6 (0x6), region = 124 }
 0x1e1   : > { %s5635_s14 = smov %s5633_s5 }
 0x1e3   :  { %3101 = vsyncpa [#allocation5], 1 }
 0x1e4   :  { %3103 = vsyncpa [#allocation5 + $0x1], 1 }
 0x1e5   :  { %3104 = vsyncpa [#allocation7], 1 }
 0x1e6   :  { %3105 = vsyncpa [#allocation10], 1 }

// kernel: dgcnn_forward.19
= control target key start
LH: loop header
LB: loop body
LE: loop exit
PB: predicated region body
PF: predicated region fallthrough
CT: control target
= control target key end

     0   :  { %16 = vsyncpa [#allocation3], 0  ;;  %s11637_s0 = inlined_call_operand.vmem [shape: f32[2,2,1024], index: 0, kind: input, shape index: {}]   ;;  %s11638_s1 = inlined_call_operand.vmem [shape: bf16[1024,512], index: 1, kind: input, shape index: {}]   ;;  %s11639_s2 = inlined_call_operand.vmem [shape: bf16[1024,512], index: 2, kind: input, shape index: {}]   ;;  %s11640_s3 = inlined_call_operand.hbm [shape: f32[1,512], index: 3, kind: input, shape index: {}]   ;;  %s11641_s4 = inlined_call_operand.hbm [shape: f32[1,512], index: 4, kind: input, shape index: {}]   ;;  %s11642_s5 = inlined_call_operand.hbm [shape: bf16[512,256], index: 5, kind: input, shape index: {}]   ;;  %s11643_s6 = inlined_call_operand.hbm [shape: f32[1,256], index: 6, kind: input, shape index: {}]   ;;  %s11644_s7 = inlined_call_operand.hbm [shape: f32[1,256], index: 7, kind: input, shape index: {}]   ;;  %s11645_s8 = inlined_call_operand.hbm [shape: f32[1,256], index: 8, kind: input, shape index: {}]   ;;  %s11646_s9 = inlined_call_operand.vmem [shape: bf16[256,40], index: 9, kind: input, shape index: {}]   ;;  %s11647_s10 = inlined_call_operand.hbm [shape: f32[1,40], index: 10, kind: input, shape index: {}]   ;;  %s11648_s11 = inlined_call_operand.hbm [shape: f32[2,40], index: 11, kind: output, shape index: {}]  }
   0x1   :  { %17 = vsyncpa [#allocation6], 0 }
   0x2   :  { %18 = vsyncpa [#allocation9], 0 }
   0x3   :  { %19 = vsyncpa [#allocation12], 0  ;;  %s43_s19 = sshll.u32 %s11641_s4, 4  ;;  %s44_s19 = int_to_ptr.hbm [resolvable:$true] %s43_s19 }
   0x4   :  { %20 = vsyncpa [#allocation4], 0  ;;  %s8192_s20 = smov [#allocation5]   ;;  %s67_s24 = sshll.u32 %s11643_s6, 4  ;;  %s68_s24 = int_to_ptr.hbm [resolvable:$true] %s67_s24 }
   0x5   :  { %s45_s21 = sshll.u32 %s8192_s20, 4  ;;  %s8193_s25 = smov [#allocation8]   ;;  %s46_s21 = int_to_ptr.vmem [resolvable:$true] %s45_s21 }
   0x6   :  { %48 = dma.hbm_to_vmem [thread:$0]  %s44_s19, 64, %s46_s21, [#allocation6]  }
   0x7   :  { %s69_s26 = sshll.u32 %s8193_s25, 4  ;;  %s89_s29 = sshll.u32 %s11645_s8, 4  ;;  %s70_s26 = int_to_ptr.vmem [resolvable:$true] %s69_s26  ;;  %s90_s29 = int_to_ptr.hbm [resolvable:$true] %s89_s29 }
   0x8   :  { %72 = dma.hbm_to_vmem [thread:$0]  %s68_s24, 32, %s70_s26, [#allocation9]  }
   0x9   :  { %s32_s12 = sshll.u32 %s11640_s3, 4  ;;  %s8194_s13 = smov [#allocation11]   ;;  %s33_s12 = int_to_ptr.hbm [resolvable:$true] %s32_s12 }
   0xa   :  { %s91_s14 = sshll.u32 %s8194_s13, 4  ;;  %s8195_s6 = smov [#allocation2]   ;;  %s92_s14 = int_to_ptr.vmem [resolvable:$true] %s91_s14 }
   0xb   :  { %94 = dma.hbm_to_vmem [thread:$0]  %s90_s29, 32, %s92_s14, [#allocation12]  }
   0xc   :  { %s34_s15 = sshll.u32 %s8195_s6, 4  ;;  %s53_s18 = sshll.u32 %s11642_s5, 4  ;;  %s35_s15 = int_to_ptr.vmem [resolvable:$true] %s34_s15  ;;  %s54_s18 = int_to_ptr.hbm [resolvable:$true] %s53_s18 }
   0xd   :  { %37 = dma.hbm_to_vmem [thread:$0]  %s33_s12, 64, %s35_s15, [#allocation3]  }
   0xe   :  { %s8196_s8 = smov [#allocation7]   ;;  %s78_s3 = sshll.u32 %s11644_s7, 4  ;;  %s79_s3 = int_to_ptr.hbm [resolvable:$true] %s78_s3 }
   0xf   :  { %s55_s19 = sshll.u32 %s8196_s8, 4  ;;  %s8197_s22 = smov 128   ;;  %s56_s19 = int_to_ptr.vmem [resolvable:$true] %s55_s19 }
  0x10   :  { %s8198_s23 = smov 8   ;;  %s8199_s24 = smov [#allocation10]  }
  0x11   :  { %61 = dma.hbm_to_vmem [thread:$0]  %s54_s18, 8192, %s56_s19, [#allocation6], %s8197_s22, %s8197_s22, %s8198_s23  }
  0x12   :  { %s80_s25 = sshll.u32 %s8199_s24, 4  ;;  %s102_s5 = sshll.u32 %s11647_s10, 4  ;;  %s81_s25 = int_to_ptr.vmem [resolvable:$true] %s80_s25  ;;  %s103_s5 = int_to_ptr.hbm [resolvable:$true] %s102_s5 }
  0x13   :  { %83 = dma.hbm_to_vmem [thread:$0]  %s79_s3, 32, %s81_s25, [#allocation9]  }
  0x14   :  { %s8200_s28 = smov [#allocation13]  }
  0x15   :  { %s104_s29 = sshll.u32 %s8200_s28, 4  ;;  %s105_s29 = int_to_ptr.vmem [resolvable:$true] %s104_s29 }
  0x16   :  { %107 = dma.hbm_to_vmem [thread:$0]  %s103_s5, 16, %s105_s29, [#allocation12]  }
  0x17   :  { %8182 = dma.done.wait [#allocation3], 64  }
  0x18   :  { %8183 = vsyncadd [#allocation3], 4294967232 }
  0x19   :  { %8184 = dma.done.wait [#allocation6], 8256  }
  0x1a   :  { %8185 = vsyncadd [#allocation6], 4294959040 }
  0x1b   :  { %8186 = dma.done.wait [#allocation9], 64  }
  0x1c   :  { %8187 = vsyncadd [#allocation9], 4294967232 }
  0x1d   :  { %8188 = dma.done.wait [#allocation12], 48  }
  0x1e   :  { %8189 = vsyncadd [#allocation12], 4294967248  ;;  %v5129_v0 = vld [vmem:[%s11639_s2 + $0xe0] sm:$0xf]  ;;  %v7669_v1 = vld [vmem:[%s11639_s2 + $0xec] sm:$0xf0] }
  0x1f   :  { %v5257_v2 = vld [vmem:[%s11639_s2 + $0x1e0] sm:$0xf]  ;;  %v5130_v3 = vor.u32 %v7669_v1, %v5129_v0  ;;  %v7701_v4 = vld [vmem:[%s11639_s2 + $0x1ec] sm:$0xf0]  ;;  %vm785_vm0 = vcmask 1041409   ;;  %s5002_s7 = sshll.u32 %s11648_s11, 4  ;;  %s5003_s7 = int_to_ptr.hbm [resolvable:$true] %s5002_s7 }
  0x20   :  { %v5385_v5 = vld [vmem:[%s11639_s2 + $0x2e0] sm:$0xf]  ;;  %v7733_v6 = vld [vmem:[%s11639_s2 + $0x2ec] sm:$0xf0]  ;;  %v5258_v7 = vor.u32 %v7701_v4, %v5257_v2  ;;  %vm4993_vm7 = vcmask 320512  }
  0x21   :  { %v5386_v8 = vor.u32 %v7733_v6, %v5385_v5  ;;  %v5513_v9 = vld [vmem:[%s11639_s2 + $0x3e0] sm:$0xf]  ;;  %v7765_v10 = vld [vmem:[%s11639_s2 + $0x3ec] sm:$0xf0]  ;;  %2097 = vmatpush.bf16.msra.mxu0 %v5130_v3 }
  0x22   :  { %v5113_v11 = vld [vmem:[%s11639_s2 + $0xc0] sm:$0xf]  ;;  %v5514_v12 = vor.u32 %v7765_v10, %v5513_v9  ;;  %v7665_v13 = vld [vmem:[%s11639_s2 + $0xcc] sm:$0xf0]  ;;  %2110 = vmatpush.bf16.msra.mxu1 %v5258_v7 }
  0x23   :  { %v5241_v14 = vld [vmem:[%s11639_s2 + $0x1c0] sm:$0xf]  ;;  %v7697_v15 = vld [vmem:[%s11639_s2 + $0x1cc] sm:$0xf0]  ;;  %2123 = vmatpush.bf16.msra.mxu2 %v5386_v8  ;;  %v5114_v16 = vor.u32 %v7665_v13, %v5113_v11 }
  0x24   :  { %v5242_v17 = vor.u32 %v7697_v15, %v5241_v14  ;;  %v5369_v18 = vld [vmem:[%s11639_s2 + $0x2c0] sm:$0xf]  ;;  %v7729_v19 = vld [vmem:[%s11639_s2 + $0x2cc] sm:$0xf0]  ;;  %2136 = vmatpush.bf16.msra.mxu3 %v5514_v12 }
  0x25   :  { %v5497_v20 = vld [vmem:[%s11639_s2 + $0x3c0] sm:$0xf]  ;;  %v5370_v21 = vor.u32 %v7729_v19, %v5369_v18  ;;  %v7761_v22 = vld [vmem:[%s11639_s2 + $0x3cc] sm:$0xf0]  ;;  %2098 = vmatpush.bf16.msra.mxu0 %v5114_v16 }
  0x26   :  { %v5097_v23 = vld [vmem:[%s11639_s2 + $0xa0] sm:$0xf]  ;;  %v7661_v24 = vld [vmem:[%s11639_s2 + $0xac] sm:$0xf0]  ;;  %v5498_v25 = vor.u32 %v7761_v22, %v5497_v20  ;;  %2111 = vmatpush.bf16.msra.mxu1 %v5242_v17 }
  0x27   :  { %v5225_v26 = vld [vmem:[%s11639_s2 + $0x1a0] sm:$0xf]  ;;  %v7693_v27 = vld [vmem:[%s11639_s2 + $0x1ac] sm:$0xf0]  ;;  %v5098_v29 = vor.u32 %v7661_v24, %v5097_v23  ;;  %2124 = vmatpush.bf16.msra.mxu2 %v5370_v21 }
  0x28   :  { %v5353_v28 = vld [vmem:[%s11639_s2 + $0x2a0] sm:$0xf]  ;;  %v7725_v30 = vld [vmem:[%s11639_s2 + $0x2ac] sm:$0xf0]  ;;  %v5226_v33 = vor.u32 %v7693_v27, %v5225_v26  ;;  %2137 = vmatpush.bf16.msra.mxu3 %v5498_v25 }
  0x29   :  { %v5481_v31 = vld [vmem:[%s11639_s2 + $0x3a0] sm:$0xf]  ;;  %v7757_v32 = vld [vmem:[%s11639_s2 + $0x3ac] sm:$0xf0]  ;;  %v5354_v34 = vor.u32 %v7725_v30, %v5353_v28  ;;  %2099 = vmatpush.bf16.msra.mxu0 %v5098_v29 }
  0x2a   :  { %v5081_v35 = vld [vmem:[%s11639_s2 + $0x80] sm:$0xf]  ;;  %v7657_v36 = vld [vmem:[%s11639_s2 + $0x8c] sm:$0xf0]  ;;  %v5482_v38 = vor.u32 %v7757_v32, %v5481_v31  ;;  %2112 = vmatpush.bf16.msra.mxu1 %v5226_v33 }
  0x2b   :  { %v5209_v37 = vld [vmem:[%s11639_s2 + $0x180] sm:$0xf]  ;;  %v7689_v39 = vld [vmem:[%s11639_s2 + $0x18c] sm:$0xf0]  ;;  %v5082_v44 = vor.u32 %v7657_v36, %v5081_v35  ;;  %2125 = vmatpush.bf16.msra.mxu2 %v5354_v34 }
  0x2c   :  { %v5337_v40 = vld [vmem:[%s11639_s2 + $0x280] sm:$0xf]  ;;  %v7721_v41 = vld [vmem:[%s11639_s2 + $0x28c] sm:$0xf0]  ;;  %v5210_v45 = vor.u32 %v7689_v39, %v5209_v37  ;;  %2138 = vmatpush.bf16.msra.mxu3 %v5482_v38 }
  0x2d   :  { %v5465_v42 = vld [vmem:[%s11639_s2 + $0x380] sm:$0xf]  ;;  %v7753_v43 = vld [vmem:[%s11639_s2 + $0x38c] sm:$0xf0]  ;;  %v5338_v46 = vor.u32 %v7721_v41, %v5337_v40  ;;  %2100 = vmatpush.bf16.msra.mxu0 %v5082_v44 }
  0x2e   :  { %v5065_v47 = vld [vmem:[%s11639_s2 + $0x60] sm:$0xf]  ;;  %v7653_v48 = vld [vmem:[%s11639_s2 + $0x6c] sm:$0xf0]  ;;  %v5466_v50 = vor.u32 %v7753_v43, %v5465_v42  ;;  %2113 = vmatpush.bf16.msra.mxu1 %v5210_v45 }
  0x2f   :  { %v5193_v49 = vld [vmem:[%s11639_s2 + $0x160] sm:$0xf]  ;;  %v7685_v51 = vld [vmem:[%s11639_s2 + $0x16c] sm:$0xf0]  ;;  %v5066_v56 = vor.u32 %v7653_v48, %v5065_v47  ;;  %2126 = vmatpush.bf16.msra.mxu2 %v5338_v46 }
  0x30   :  { %v5321_v52 = vld [vmem:[%s11639_s2 + $0x260] sm:$0xf]  ;;  %v7717_v53 = vld [vmem:[%s11639_s2 + $0x26c] sm:$0xf0]  ;;  %v5194_v57 = vor.u32 %v7685_v51, %v5193_v49  ;;  %2139 = vmatpush.bf16.msra.mxu3 %v5466_v50 }
  0x31   :  { %v5449_v54 = vld [vmem:[%s11639_s2 + $0x360] sm:$0xf]  ;;  %v7749_v55 = vld [vmem:[%s11639_s2 + $0x36c] sm:$0xf0]  ;;  %v5322_v58 = vor.u32 %v7717_v53, %v5321_v52  ;;  %2101 = vmatpush.bf16.msra.mxu0 %v5066_v56 }
  0x32   :  { %v5049_v59 = vld [vmem:[%s11639_s2 + $0x40] sm:$0xf]  ;;  %v7649_v60 = vld [vmem:[%s11639_s2 + $0x4c] sm:$0xf0]  ;;  %v5450_v62 = vor.u32 %v7749_v55, %v5449_v54  ;;  %2114 = vmatpush.bf16.msra.mxu1 %v5194_v57 }
  0x33   :  { %v5177_v61 = vld [vmem:[%s11639_s2 + $0x140] sm:$0xf]  ;;  %v7681_v63 = vld [vmem:[%s11639_s2 + $0x14c] sm:$0xf0]  ;;  %v5050_v4 = vor.u32 %v7649_v60, %v5049_v59  ;;  %2127 = vmatpush.bf16.msra.mxu2 %v5322_v58 }
  0x34   :  { %v5305_v0 = vld [vmem:[%s11639_s2 + $0x240] sm:$0xf]  ;;  %v7713_v1 = vld [vmem:[%s11639_s2 + $0x24c] sm:$0xf0]  ;;  %v5178_v5 = vor.u32 %v7681_v63, %v5177_v61  ;;  %2140 = vmatpush.bf16.msra.mxu3 %v5450_v62 }
  0x35   :  { %v5433_v2 = vld [vmem:[%s11639_s2 + $0x340] sm:$0xf]  ;;  %v7745_v3 = vld [vmem:[%s11639_s2 + $0x34c] sm:$0xf0]  ;;  %v5306_v6 = vor.u32 %v7713_v1, %v5305_v0  ;;  %2102 = vmatpush.bf16.msra.mxu0 %v5050_v4 }
  0x36   :  { %v5033_v7 = vld [vmem:[%s11639_s2 + $0x20] sm:$0xf]  ;;  %v7645_v8 = vld [vmem:[%s11639_s2 + $0x2c] sm:$0xf0]  ;;  %v5434_v10 = vor.u32 %v7745_v3, %v5433_v2  ;;  %2115 = vmatpush.bf16.msra.mxu1 %v5178_v5 }
  0x37   :  { %v5161_v9 = vld [vmem:[%s11639_s2 + $0x120] sm:$0xf]  ;;  %v7677_v11 = vld [vmem:[%s11639_s2 + $0x12c] sm:$0xf0]  ;;  %v5034_v16 = vor.u32 %v7645_v8, %v5033_v7  ;;  %2128 = vmatpush.bf16.msra.mxu2 %v5306_v6 }
  0x38   :  { %v5289_v12 = vld [vmem:[%s11639_s2 + $0x220] sm:$0xf]  ;;  %v7709_v13 = vld [vmem:[%s11639_s2 + $0x22c] sm:$0xf0]  ;;  %v5162_v20 = vor.u32 %v7677_v11, %v5161_v9  ;;  %2141 = vmatpush.bf16.msra.mxu3 %v5434_v10 }
  0x39   :  { %v5417_v14 = vld [vmem:[%s11639_s2 + $0x320] sm:$0xf]  ;;  %v7741_v15 = vld [vmem:[%s11639_s2 + $0x32c] sm:$0xf0]  ;;  %v5290_v21 = vor.u32 %v7709_v13, %v5289_v12  ;;  %2103 = vmatpush.bf16.msra.mxu0 %v5034_v16 }
  0x3a   :  { %v5017_v17 = vld [vmem:[%s11639_s2] sm:$0xf]  ;;  %v7641_v18 = vld [vmem:[%s11639_s2 + $0xc] sm:$0xf0]  ;;  %v5418_v25 = vor.u32 %v7741_v15, %v5417_v14  ;;  %2116 = vmatpush.bf16.msra.mxu1 %v5162_v20 }
  0x3b   :  { %v5145_v19 = vld [vmem:[%s11639_s2 + $0x100] sm:$0xf]  ;;  %v7673_v22 = vld [vmem:[%s11639_s2 + $0x10c] sm:$0xf0]  ;;  %v5018_v32 = vor.u32 %v7641_v18, %v5017_v17  ;;  %2129 = vmatpush.bf16.msra.mxu2 %v5290_v21 }
  0x3c   :  { %v5273_v23 = vld [vmem:[%s11639_s2 + $0x200] sm:$0xf]  ;;  %v7705_v24 = vld [vmem:[%s11639_s2 + $0x20c] sm:$0xf0]  ;;  %v5146_v36 = vor.u32 %v7673_v22, %v5145_v19  ;;  %2142 = vmatpush.bf16.msra.mxu3 %v5418_v25 }
  0x3d   :  { %v5401_v26 = vld [vmem:[%s11639_s2 + $0x300] sm:$0xf]  ;;  %v7737_v27 = vld [vmem:[%s11639_s2 + $0x30c] sm:$0xf0]  ;;  %v5274_v37 = vor.u32 %v7705_v24, %v5273_v23  ;;  %2104 = vmatpush.bf16.msra.mxu0 %v5018_v32 }
  0x3e   :  { %v5641_v28 = vld [vmem:[%s11639_s2 + $0x4e0] sm:$0xf]  ;;  %v7797_v29 = vld [vmem:[%s11639_s2 + $0x4ec] sm:$0xf0]  ;;  %v5402_v41 = vor.u32 %v7737_v27, %v5401_v26  ;;  %2117 = vmatpush.bf16.msra.mxu1 %v5146_v36 }
  0x3f   :  { %v5769_v30 = vld [vmem:[%s11639_s2 + $0x5e0] sm:$0xf]  ;;  %v7829_v31 = vld [vmem:[%s11639_s2 + $0x5ec] sm:$0xf0]  ;;  %v5642_v42 = vor.u32 %v7797_v29, %v5641_v28  ;;  %2130 = vmatpush.bf16.msra.mxu2 %v5274_v37 }
  0x40   :  { %v5897_v33 = vld [vmem:[%s11639_s2 + $0x6e0] sm:$0xf]  ;;  %v7861_v34 = vld [vmem:[%s11639_s2 + $0x6ec] sm:$0xf0]  ;;  %v5770_v47 = vor.u32 %v7829_v31, %v5769_v30  ;;  %2143 = vmatpush.bf16.msra.mxu3 %v5402_v41 }
  0x41   :  { %v6025_v35 = vld [vmem:[%s11639_s2 + $0x7e0] sm:$0xf]  ;;  %v7893_v38 = vld [vmem:[%s11639_s2 + $0x7ec] sm:$0xf0]  ;;  %v5898_v48 = vor.u32 %v7861_v34, %v5897_v33  ;;  %2149 = vmatpush.bf16.msrb.mxu0 %v5642_v42 }
  0x42   :  { %v5625_v39 = vld [vmem:[%s11639_s2 + $0x4c0] sm:$0xf]  ;;  %v7793_v40 = vld [vmem:[%s11639_s2 + $0x4cc] sm:$0xf0]  ;;  %v6026_v52 = vor.u32 %v7893_v38, %v6025_v35  ;;  %2162 = vmatpush.bf16.msrb.mxu1 %v5770_v47 }
  0x43   :  { %v5753_v43 = vld [vmem:[%s11639_s2 + $0x5c0] sm:$0xf]  ;;  %v7825_v44 = vld [vmem:[%s11639_s2 + $0x5cc] sm:$0xf0]  ;;  %v5626_v59 = vor.u32 %v7793_v40, %v5625_v39  ;;  %2175 = vmatpush.bf16.msrb.mxu2 %v5898_v48 }
  0x44   :  { %v5881_v45 = vld [vmem:[%s11639_s2 + $0x6c0] sm:$0xf]  ;;  %v7857_v46 = vld [vmem:[%s11639_s2 + $0x6cc] sm:$0xf0]  ;;  %v5754_v63 = vor.u32 %v7825_v44, %v5753_v43  ;;  %2188 = vmatpush.bf16.msrb.mxu3 %v6026_v52 }
  0x45   :  { %v6009_v49 = vld [vmem:[%s11639_s2 + $0x7c0] sm:$0xf]  ;;  %v7889_v50 = vld [vmem:[%s11639_s2 + $0x7cc] sm:$0xf0]  ;;  %v5882_v0 = vor.u32 %v7857_v46, %v5881_v45  ;;  %2150 = vmatpush.bf16.msrb.mxu0 %v5626_v59 }
  0x46   :  { %v5609_v51 = vld [vmem:[%s11639_s2 + $0x4a0] sm:$0xf]  ;;  %v7789_v53 = vld [vmem:[%s11639_s2 + $0x4ac] sm:$0xf0]  ;;  %v6010_v4 = vor.u32 %v7889_v50, %v6009_v49  ;;  %2163 = vmatpush.bf16.msrb.mxu1 %v5754_v63 }
  0x47   :  { %v5737_v54 = vld [vmem:[%s11639_s2 + $0x5a0] sm:$0xf]  ;;  %v7821_v55 = vld [vmem:[%s11639_s2 + $0x5ac] sm:$0xf0]  ;;  %v5610_v5 = vor.u32 %v7789_v53, %v5609_v51  ;;  %2176 = vmatpush.bf16.msrb.mxu2 %v5882_v0 }
  0x48   :  { %v5865_v56 = vld [vmem:[%s11639_s2 + $0x6a0] sm:$0xf]  ;;  %v7853_v57 = vld [vmem:[%s11639_s2 + $0x6ac] sm:$0xf0]  ;;  %v5738_v10 = vor.u32 %v7821_v55, %v5737_v54  ;;  %2189 = vmatpush.bf16.msrb.mxu3 %v6010_v4 }
  0x49   :  { %v5993_v58 = vld [vmem:[%s11639_s2 + $0x7a0] sm:$0xf]  ;;  %v7885_v60 = vld [vmem:[%s11639_s2 + $0x7ac] sm:$0xf0]  ;;  %v5866_v11 = vor.u32 %v7853_v57, %v5865_v56  ;;  %2151 = vmatpush.bf16.msrb.mxu0 %v5610_v5 }
  0x4a   :  { %v8550_v61 = vld [vmem:[%s11639_s2 + $0x480] sm:$0xf]  ;;  %v8555_v62 = vld [vmem:[%s11639_s2 + $0x48c] sm:$0xf0]  ;;  %v5994_v14 = vor.u32 %v7885_v60, %v5993_v58  ;;  %2164 = vmatpush.bf16.msrb.mxu1 %v5738_v10 }
  0x4b   :  { %v8560_v1 = vld [vmem:[%s11639_s2 + $0x580] sm:$0xf]  ;;  %v8565_v2 = vld [vmem:[%s11639_s2 + $0x58c] sm:$0xf0]  ;;  %v5594_v15 = vor.u32 %v8555_v62, %v8550_v61  ;;  %2177 = vmatpush.bf16.msrb.mxu2 %v5866_v11  ;;  %v8664_v11 = vld [vmem:[%s11637_s0 + $0x8] sm:$0xff] }
  0x4c   :  { %v136_v3 = vld [vmem:[%s11637_s0] sm:$0xff]  ;;  %v8578_v7 = vld [vmem:[%s11639_s2 + $0x68c] sm:$0xf0]  ;;  %v5722_v16 = vor.u32 %v8565_v2, %v8560_v1  ;;  %2190 = vmatpush.bf16.msrb.mxu3 %v5994_v14 }
  0x4d   :  { %v8573_v6 = vld [vmem:[%s11639_s2 + $0x680] sm:$0xf]  ;;  %v138_v8 = vld [vmem:[%s11637_s0 + $0x10] sm:$0xff]  ;;  %v194_v9 = vperm.slane %v136_v3, 5  ;;  %v192_v13 = vperm.slane %v136_v3, 1  ;;  %v195_v25 = vperm.slane %v136_v3, 7  ;;  %2152 = vmatpush.bf16.msrb.mxu0 %v5594_v15 }
  0x4e   :  { %v202_v12 = vperm.slane %v138_v8, 5  ;;  %v5850_v18 = vor.u32 %v8578_v7, %v8573_v6  ;;  %v5977_v19 = vld [vmem:[%s11639_s2 + $0x780] sm:$0xf]  ;;  %v200_v21 = vperm.slane %v138_v8, 1  ;;  %v7881_v23 = vld [vmem:[%s11639_s2 + $0x78c] sm:$0xf0]  ;;  %2165 = vmatpush.bf16.msrb.mxu1 %v5722_v16 }
  0x4f   :  { %v226_v17 = vpack.c.bf16 %v194_v9, %v194_v9  ;;  %v224_v22 = vpack.c.bf16 %v192_v13, %v192_v13  ;;  %v203_v26 = vperm.slane %v138_v8, 7  ;;  %v193_v30 = vperm.slane %v136_v3, 3  ;;  %v5577_v31 = vld [vmem:[%s11639_s2 + $0x460] sm:$0xf]  ;;  %v7781_v32 = vld [vmem:[%s11639_s2 + $0x46c] sm:$0xf0] }
  0x50   :  { %v234_v20 = vpack.c.bf16 %v202_v12, %v202_v12  ;;  %v232_v28 = vpack.c.bf16 %v200_v21, %v200_v21  ;;  %v227_v34 = vpack.c.bf16 %v195_v25, %v195_v25  ;;  %v201_v36 = vperm.slane %v138_v8, 3  ;;  %v5705_v38 = vld [vmem:[%s11639_s2 + $0x560] sm:$0xf]  ;;  %v7813_v39 = vld [vmem:[%s11639_s2 + $0x56c] sm:$0xf0]  ;;  %2178 = vmatpush.bf16.msrb.mxu2 %v5850_v18  ;;  %v8669_v12 = vld [vmem:[%s11637_s0 + $0x18] sm:$0xff] }
  0x51   :  { %v770_v24 = vunpack.c.l.b16 %v226_v17  ;;  %v768_v29 = vunpack.c.l.b16 %v224_v22  ;;  %v235_v35 = vpack.c.bf16 %v203_v26, %v203_v26  ;;  %v5978_v37 = vor.u32 %v7881_v23, %v5977_v19  ;;  %v5833_v43 = vld [vmem:[%s11639_s2 + $0x660] sm:$0xf]  ;;  %v7845_v44 = vld [vmem:[%s11639_s2 + $0x66c] sm:$0xf0] }
  0x52   :  { %v778_v27 = vunpack.c.l.b16 %v234_v20  ;;  %v776_v40 = vunpack.c.l.b16 %v232_v28  ;;  %v225_v42 = vpack.c.bf16 %v193_v30, %v193_v30  ;;  %v5961_v45 = vld [vmem:[%s11639_s2 + $0x760] sm:$0xf]  ;;  %v771_v47 = vunpack.c.l.b16 %v227_v34  ;;  %v7877_v50 = vld [vmem:[%s11639_s2 + $0x76c] sm:$0xf0] }
  0x53   :  { %v789_v33 = vrot.slane %v770_v24, 1  ;;  %v784_v41 = vrot.slane %v768_v29, 1  ;;  %v779_v48 = vunpack.c.l.b16 %v235_v35  ;;  %v233_v49 = vpack.c.bf16 %v201_v36, %v201_v36  ;;  %v5561_v52 = vld [vmem:[%s11639_s2 + $0x440] sm:$0xf]  ;;  %v7777_v53 = vld [vmem:[%s11639_s2 + $0x44c] sm:$0xf0]  ;;  %2191 = vmatpush.bf16.msrb.mxu3 %v5978_v37 }
  0x54   :  { %v769_v55 = vunpack.c.l.b16 %v225_v42  ;;  %v5578_v56 = vor.u32 %v7781_v32, %v5577_v31  ;;  %v5689_v57 = vld [vmem:[%s11639_s2 + $0x540] sm:$0xf]  ;;  %v7809_v58 = vld [vmem:[%s11639_s2 + $0x54c] sm:$0xf0]  ;;  %v791_v60 = vrot.slane %v771_v47, 1  ;;  %v5706_v62 = vor.u32 %v7813_v39, %v5705_v38 }
  0x55   :  { %v790_v46 = vsel %vm785_vm0, %v778_v27, %v789_v33  ;;  %v786_v54 = vsel %vm785_vm0, %v776_v40, %v784_v41  ;;  %v777_v61 = vunpack.c.l.b16 %v233_v49  ;;  %v5834_v63 = vor.u32 %v7845_v44, %v5833_v43  ;;  %v5817_v0 = vld [vmem:[%s11639_s2 + $0x640] sm:$0xf]  ;;  %v7841_v1 = vld [vmem:[%s11639_s2 + $0x64c] sm:$0xf0]  ;;  %v7667_v47 = vld [vmem:[%s11639_s2 + $0xe4] sm:$0xf] }
  0x56   :  { %v8620_v51 = vpack.c.b16 %v790_v46, %v790_v46  ;;  %v8635_v59 = vpack.c.b16 %v786_v54, %v786_v54  ;;  %v787_v2 = vrot.slane %v769_v55, 1  ;;  %v5962_v3 = vor.u32 %v7877_v50, %v5961_v45  ;;  %v5945_v4 = vld [vmem:[%s11639_s2 + $0x740] sm:$0xf]  ;;  %v7873_v5 = vld [vmem:[%s11639_s2 + $0x74c] sm:$0xf0]  ;;  %2153 = vmatpush.bf16.msrb.mxu0 %v5578_v56  ;;  %2166 = vmatpush.bf16.msrb.mxu1 %v5706_v62 }
  0x57   :  { %v792_v6 = vsel %vm785_vm0, %v779_v48, %v791_v60  ;;  %v5545_v7 = vld [vmem:[%s11639_s2 + $0x420] sm:$0xf]  ;;  %v7773_v10 = vld [vmem:[%s11639_s2 + $0x42c] sm:$0xf0]  ;;  %v5562_v13 = vor.u32 %v7777_v53, %v5561_v52  ;;  %2179 = vmatpush.bf16.msrb.mxu2 %v5834_v63  ;;  %v5690_v17 = vor.u32 %v7809_v58, %v5689_v57  ;;  %v5818_v18 = vor.u32 %v7841_v1, %v5817_v0  ;;  %v5131_v48 = vld [vmem:[%s11639_s2 + $0xf0] sm:$0xf0] }
  0x58   :  { %2131 = vmatmul.bf16.vlgmr.msra.gmra.mxu2 %v8620_v51  ;;  %2105 = vmatmul.bf16.vlgmr.msra.gmra.mxu0 %v8635_v59  ;;  %v8655_v8 = vpack.c.b16 %v792_v6, %v792_v6  ;;  %v788_v9 = vsel %vm785_vm0, %v777_v61, %v787_v2  ;;  %v5673_v15 = vld [vmem:[%s11639_s2 + $0x520] sm:$0xf]  ;;  %v7805_v16 = vld [vmem:[%s11639_s2 + $0x52c] sm:$0xf0]  ;;  %v5946_v19 = vor.u32 %v7873_v5, %v5945_v4  ;;  %v198_v25 = vperm.slane %v8664_v11, 5 }
  0x59   :  { %v8671_v14 = vpack.c.b16 %v788_v9, %v788_v9  ;;  %v5801_v20 = vld [vmem:[%s11639_s2 + $0x620] sm:$0xf]  ;;  %v7837_v21 = vld [vmem:[%s11639_s2 + $0x62c] sm:$0xf0]  ;;  %2192 = vmatpush.bf16.msrb.mxu3 %v5962_v3  ;;  %v5546_v23 = vor.u32 %v7773_v10, %v5545_v7  ;;  %v206_v26 = vperm.slane %v8669_v12, 5  ;;  %v196_v27 = vperm.slane %v8664_v11, 1 }
  0x5a   :  { %v5929_v22 = vld [vmem:[%s11639_s2 + $0x720] sm:$0xf]  ;;  %v7869_v24 = vld [vmem:[%s11639_s2 + $0x72c] sm:$0xf0]  ;;  %2144 = vmatmul.bf16.vlgmr.msra.gmra.mxu3 %v8655_v8  ;;  %v5674_v28 = vor.u32 %v7805_v16, %v5673_v15  ;;  %v204_v30 = vperm.slane %v8669_v12, 1  ;;  %v199_v31 = vperm.slane %v8664_v11, 7  ;;  %2154 = vmatpush.bf16.msrb.mxu0 %v5562_v13  ;;  %v5802_v33 = vor.u32 %v7837_v21, %v5801_v20 }
  0x5b   :  { %2118 = vmatmul.bf16.vlgmr.msra.gmra.mxu1 %v8671_v14  ;;  %v5529_v29 = vld [vmem:[%s11639_s2 + $0x400] sm:$0xf]  ;;  %v207_v32 = vperm.slane %v8669_v12, 7  ;;  %v7769_v34 = vld [vmem:[%s11639_s2 + $0x40c] sm:$0xf0]  ;;  %v230_v37 = vpack.c.bf16 %v198_v25, %v198_v25  ;;  %v238_v38 = vpack.c.bf16 %v206_v26, %v206_v26  ;;  %v228_v39 = vpack.c.bf16 %v196_v27, %v196_v27  ;;  %2180 = vmatpush.bf16.msrb.mxu2 %v5818_v18 }
  0x5c   :  { %v5657_v35 = vld [vmem:[%s11639_s2 + $0x500] sm:$0xf]  ;;  %v7801_v36 = vld [vmem:[%s11639_s2 + $0x50c] sm:$0xf0]  ;;  %2167 = vmatpush.bf16.msrb.mxu1 %v5690_v17  ;;  %v5930_v40 = vor.u32 %v7869_v24, %v5929_v22  ;;  %v236_v44 = vpack.c.bf16 %v204_v30, %v204_v30  ;;  %v231_v45 = vpack.c.bf16 %v199_v31, %v199_v31  ;;  %v5530_v54 = vor.u32 %v7769_v34, %v5529_v29  ;;  %v7699_v55 = vld [vmem:[%s11639_s2 + $0x1e4] sm:$0xf] }
  0x5d   :  { %v5785_v41 = vld [vmem:[%s11639_s2 + $0x600] sm:$0xf]  ;;  %v7833_v42 = vld [vmem:[%s11639_s2 + $0x60c] sm:$0xf0]  ;;  %2193 = vmatpush.bf16.msrb.mxu3 %v5946_v19  ;;  %v774_v49 = vunpack.c.l.b16 %v230_v37  ;;  %v782_v50 = vunpack.c.l.b16 %v238_v38  ;;  %v772_v52 = vunpack.c.l.b16 %v228_v39  ;;  %v239_v53 = vpack.c.bf16 %v207_v32, %v207_v32  ;;  %v5259_v56 = vld [vmem:[%s11639_s2 + $0x1f0] sm:$0xf0] }
  0x5e   :  { %v5913_v43 = vld [vmem:[%s11639_s2 + $0x700] sm:$0xf]  ;;  %v7865_v46 = vld [vmem:[%s11639_s2 + $0x70c] sm:$0xf0]  ;;  %v780_v57 = vunpack.c.l.b16 %v236_v44  ;;  %v775_v58 = vunpack.c.l.b16 %v231_v45  ;;  %2155 = vmatpush.bf16.msrb.mxu0 %v5546_v23  ;;  %v5658_v60 = vor.u32 %v7801_v36, %v5657_v35  ;;  %v5786_v61 = vor.u32 %v7833_v42, %v5785_v41  ;;  %v7731_v62 = vld [vmem:[%s11639_s2 + $0x2e4] sm:$0xf] }
  0x5f   :  { %v5387_v63 = vld [vmem:[%s11639_s2 + $0x2f0] sm:$0xf0]  ;;  %v797_v0 = vrot.slane %v774_v49, 1  ;;  %v793_v1 = vrot.slane %v772_v52, 1  ;;  %2181 = vmatpush.bf16.msrb.mxu2 %v5802_v33  ;;  %v5914_v2 = vor.u32 %v7865_v46, %v5913_v43  ;;  %v5134_v3 = vor.u32 %v7667_v47, %v5131_v48  ;;  %v7763_v4 = vld [vmem:[%s11639_s2 + $0x3e4] sm:$0xf] }
  0x60   :  { %2168 = vmatpush.bf16.msrb.mxu1 %v5674_v28  ;;  %v5515_v5 = vld [vmem:[%s11639_s2 + $0x3f0] sm:$0xf0]  ;;  %v197_v6 = vperm.slane %v8664_v11, 3  ;;  %v205_v7 = vperm.slane %v8669_v12, 3  ;;  %v783_v13 = vunpack.c.l.b16 %v239_v53  ;;  %v799_v15 = vrot.slane %v775_v58, 1 }
  0x61   :  { %2194 = vmatpush.bf16.msrb.mxu3 %v5930_v40  ;;  %v798_v9 = vsel %vm785_vm0, %v782_v50, %v797_v0  ;;  %v794_v10 = vsel %vm785_vm0, %v780_v57, %v793_v1  ;;  %v5262_v16 = vor.u32 %v7699_v55, %v5259_v56  ;;  %v5390_v17 = vor.u32 %v7731_v62, %v5387_v63  ;;  %v7663_v18 = vld [vmem:[%s11639_s2 + $0xc4] sm:$0xf]  ;;  %v5115_v19 = vld [vmem:[%s11639_s2 + $0xd0] sm:$0xf0] }
  0x62   :  { %v7695_v11 = vld [vmem:[%s11639_s2 + $0x1c4] sm:$0xf]  ;;  %v229_v12 = vpack.c.bf16 %v197_v6, %v197_v6  ;;  %2156 = vmatpush.bf16.msrb.mxu0 %v5530_v54  ;;  %v5518_v20 = vor.u32 %v7763_v4, %v5515_v5  ;;  %v5243_v21 = vld [vmem:[%s11639_s2 + $0x1d0] sm:$0xf0]  ;;  %v8769_v24 = vpack.c.b16 %v798_v9, %v798_v9  ;;  %v237_v25 = vpack.c.bf16 %v205_v7, %v205_v7 }
  0x63   :  { %v7727_v22 = vld [vmem:[%s11639_s2 + $0x2c4] sm:$0xf]  ;;  %v5371_v23 = vld [vmem:[%s11639_s2 + $0x2d0] sm:$0xf0]  ;;  %2182 = vmatpush.bf16.msrb.mxu2 %v5786_v61  ;;  %v8777_v28 = vpack.c.b16 %v794_v10, %v794_v10  ;;  %v5118_v30 = vor.u32 %v7663_v18, %v5115_v19  ;;  %v800_v31 = vsel %vm785_vm0, %v783_v13, %v799_v15  ;;  %v5246_v34 = vor.u32 %v7695_v11, %v5243_v21 }
  0x64   :  { %2169 = vmatpush.bf16.msrb.mxu1 %v5658_v60  ;;  %v7759_v26 = vld [vmem:[%s11639_s2 + $0x3c4] sm:$0xf]  ;;  %v5499_v27 = vld [vmem:[%s11639_s2 + $0x3d0] sm:$0xf0]  ;;  %v773_v29 = vunpack.c.l.b16 %v229_v12  ;;  %v781_v33 = vunpack.c.l.b16 %v237_v25  ;;  %v5374_v35 = vor.u32 %v7727_v22, %v5371_v23  ;;  %v8800_v43 = vpack.c.b16 %v800_v31, %v800_v31 }
  0x65   :  { %2195 = vmatpush.bf16.msrb.mxu3 %v5914_v2  ;;  %v7659_v32 = vld [vmem:[%s11639_s2 + $0xa4] sm:$0xf]  ;;  %v5099_v36 = vld [vmem:[%s11639_s2 + $0xb0] sm:$0xf0]  ;;  %v5502_v39 = vor.u32 %v7759_v26, %v5499_v27 }
  0x66   :  { %2201 = vmatpush.bf16.msra.mxu0 %v5134_v3  ;;  %v7691_v37 = vld [vmem:[%s11639_s2 + $0x1a4] sm:$0xf]  ;;  %v795_v38 = vrot.slane %v773_v29, 1  ;;  %v5227_v40 = vld [vmem:[%s11639_s2 + $0x1b0] sm:$0xf0]  ;;  %v5102_v47 = vor.u32 %v7659_v32, %v5099_v36 }
  0x67   :  { %2227 = vmatpush.bf16.msra.mxu2 %v5390_v17  ;;  %v7723_v41 = vld [vmem:[%s11639_s2 + $0x2a4] sm:$0xf]  ;;  %v5355_v42 = vld [vmem:[%s11639_s2 + $0x2b0] sm:$0xf0]  ;;  %v5230_v49 = vor.u32 %v7691_v37, %v5227_v40 }
  0x68   :  { %2214 = vmatpush.bf16.msra.mxu1 %v5262_v16  ;;  %2183 = vmatmul.bf16.vlgmr.msrb.gmra.mxu2 %v8769_v24  ;;  %v7755_v44 = vld [vmem:[%s11639_s2 + $0x3a4] sm:$0xf]  ;;  %v5483_v45 = vld [vmem:[%s11639_s2 + $0x3b0] sm:$0xf0]  ;;  %v796_v46 = vsel %vm785_vm0, %v781_v33, %v795_v38  ;;  %v5358_v50 = vor.u32 %v7723_v41, %v5355_v42 }
  0x69   :  { %2240 = vmatpush.bf16.msra.mxu3 %v5518_v20  ;;  %2157 = vmatmul.bf16.vlgmr.msrb.gmra.mxu0 %v8777_v28  ;;  %v8809_v48 = vpack.c.b16 %v796_v46, %v796_v46  ;;  %v7655_v52 = vld [vmem:[%s11639_s2 + $0x84] sm:$0xf]  ;;  %v5083_v53 = vld [vmem:[%s11639_s2 + $0x90] sm:$0xf0]  ;;  %v5486_v55 = vor.u32 %v7755_v44, %v5483_v45 }
  0x6a   :  { %2202 = vmatpush.bf16.msra.mxu0 %v5118_v30  ;;  %v7687_v54 = vld [vmem:[%s11639_s2 + $0x184] sm:$0xf]  ;;  %v5211_v56 = vld [vmem:[%s11639_s2 + $0x190] sm:$0xf0]  ;;  %2196 = vmatmul.bf16.vlgmr.msrb.gmra.mxu3 %v8800_v43  ;;  %v5086_v62 = vor.u32 %v7655_v52, %v5083_v53 }
  0x6b   :  { %2228 = vmatpush.bf16.msra.mxu2 %v5374_v35  ;;  %2170 = vmatmul.bf16.vlgmr.msrb.gmra.mxu1 %v8809_v48  ;;  %v7719_v57 = vld [vmem:[%s11639_s2 + $0x284] sm:$0xf]  ;;  %v5339_v58 = vld [vmem:[%s11639_s2 + $0x290] sm:$0xf0]  ;;  %v5214_v63 = vor.u32 %v7687_v54, %v5211_v56 }
  0x6c   :  { %2215 = vmatpush.bf16.msra.mxu1 %v5246_v34  ;;  %v7751_v60 = vld [vmem:[%s11639_s2 + $0x384] sm:$0xf]  ;;  %v5467_v61 = vld [vmem:[%s11639_s2 + $0x390] sm:$0xf0]  ;;  %v5342_v0 = vor.u32 %v7719_v57, %v5339_v58 }
  0x6d   :  { %2241 = vmatpush.bf16.msra.mxu3 %v5502_v39  ;;  %v7651_v1 = vld [vmem:[%s11639_s2 + $0x64] sm:$0xf]  ;;  %v5067_v2 = vld [vmem:[%s11639_s2 + $0x70] sm:$0xf0]  ;;  %v5470_v4 = vor.u32 %v7751_v60, %v5467_v61 }
  0x6e   :  { %2203 = vmatpush.bf16.msra.mxu0 %v5102_v47  ;;  %v7683_v3 = vld [vmem:[%s11639_s2 + $0x164] sm:$0xf]  ;;  %v5195_v5 = vld [vmem:[%s11639_s2 + $0x170] sm:$0xf0]  ;;  %v5070_v13 = vor.u32 %v7651_v1, %v5067_v2 }
  0x6f   :  { %2229 = vmatpush.bf16.msra.mxu2 %v5358_v50  ;;  %v7715_v6 = vld [vmem:[%s11639_s2 + $0x264] sm:$0xf]  ;;  %v5323_v7 = vld [vmem:[%s11639_s2 + $0x270] sm:$0xf0]  ;;  %v5198_v15 = vor.u32 %v7683_v3, %v5195_v5 }
  0x70   :  { %2216 = vmatpush.bf16.msra.mxu1 %v5230_v49  ;;  %v7747_v9 = vld [vmem:[%s11639_s2 + $0x364] sm:$0xf]  ;;  %v5451_v10 = vld [vmem:[%s11639_s2 + $0x370] sm:$0xf0]  ;;  %v5326_v16 = vor.u32 %v7715_v6, %v5323_v7 }
  0x71   :  { %2242 = vmatpush.bf16.msra.mxu3 %v5486_v55  ;;  %v7647_v17 = vld [vmem:[%s11639_s2 + $0x44] sm:$0xf]  ;;  %v5051_v18 = vld [vmem:[%s11639_s2 + $0x50] sm:$0xf0]  ;;  %v5454_v11 = vor.u32 %v7747_v9, %v5451_v10 }
  0x72   :  { %2204 = vmatpush.bf16.msra.mxu0 %v5086_v62  ;;  %v7679_v19 = vld [vmem:[%s11639_s2 + $0x144] sm:$0xf]  ;;  %v5179_v12 = vld [vmem:[%s11639_s2 + $0x150] sm:$0xf0]  ;;  %v5054_v25 = vor.u32 %v7647_v17, %v5051_v18 }
  0x73   :  { %2230 = vmatpush.bf16.msra.mxu2 %v5342_v0  ;;  %v7711_v20 = vld [vmem:[%s11639_s2 + $0x244] sm:$0xf]  ;;  %v5307_v21 = vld [vmem:[%s11639_s2 + $0x250] sm:$0xf0]  ;;  %v5182_v26 = vor.u32 %v7679_v19, %v5179_v12 }
  0x74   :  { %2217 = vmatpush.bf16.msra.mxu1 %v5214_v63  ;;  %v7743_v22 = vld [vmem:[%s11639_s2 + $0x344] sm:$0xf]  ;;  %v5435_v23 = vld [vmem:[%s11639_s2 + $0x350] sm:$0xf0]  ;;  %v5310_v27 = vor.u32 %v7711_v20, %v5307_v21 }
  0x75   :  { %2243 = vmatpush.bf16.msra.mxu3 %v5470_v4  ;;  %v7643_v29 = vld [vmem:[%s11639_s2 + $0x24] sm:$0xf]  ;;  %v5035_v30 = vld [vmem:[%s11639_s2 + $0x30] sm:$0xf0]  ;;  %v5438_v32 = vor.u32 %v7743_v22, %v5435_v23 }
  0x76   :  { %2205 = vmatpush.bf16.msra.mxu0 %v5070_v13  ;;  %v7675_v31 = vld [vmem:[%s11639_s2 + $0x124] sm:$0xf]  ;;  %v5163_v33 = vld [vmem:[%s11639_s2 + $0x130] sm:$0xf0]  ;;  %v5038_v38 = vor.u32 %v7643_v29, %v5035_v30 }
  0x77   :  { %2231 = vmatpush.bf16.msra.mxu2 %v5326_v16  ;;  %v7707_v34 = vld [vmem:[%s11639_s2 + $0x224] sm:$0xf]  ;;  %v5291_v35 = vld [vmem:[%s11639_s2 + $0x230] sm:$0xf0]  ;;  %v5166_v41 = vor.u32 %v7675_v31, %v5163_v33 }
  0x78   :  { %2218 = vmatpush.bf16.msra.mxu1 %v5198_v15  ;;  %v7739_v36 = vld [vmem:[%s11639_s2 + $0x324] sm:$0xf]  ;;  %v5419_v37 = vld [vmem:[%s11639_s2 + $0x330] sm:$0xf0]  ;;  %v5294_v42 = vor.u32 %v7707_v34, %v5291_v35 }
  0x79   :  { %2244 = vmatpush.bf16.msra.mxu3 %v5454_v11  ;;  %v7639_v39 = vld [vmem:[%s11639_s2 + $0x4] sm:$0xf]  ;;  %v5019_v40 = vld [vmem:[%s11639_s2 + $0x10] sm:$0xf0]  ;;  %v5422_v47 = vor.u32 %v7739_v36, %v5419_v37 }
  0x7a   :  { %2206 = vmatpush.bf16.msra.mxu0 %v5054_v25  ;;  %v7671_v44 = vld [vmem:[%s11639_s2 + $0x104] sm:$0xf]  ;;  %v5147_v45 = vld [vmem:[%s11639_s2 + $0x110] sm:$0xf0]  ;;  %v5022_v56 = vor.u32 %v7639_v39, %v5019_v40 }
  0x7b   :  { %2232 = vmatpush.bf16.msra.mxu2 %v5310_v27  ;;  %v7703_v46 = vld [vmem:[%s11639_s2 + $0x204] sm:$0xf]  ;;  %v5275_v49 = vld [vmem:[%s11639_s2 + $0x210] sm:$0xf0]  ;;  %v5150_v61 = vor.u32 %v7671_v44, %v5147_v45 }
  0x7c   :  { %2219 = vmatpush.bf16.msra.mxu1 %v5182_v26  ;;  %v7735_v50 = vld [vmem:[%s11639_s2 + $0x304] sm:$0xf]  ;;  %v5403_v52 = vld [vmem:[%s11639_s2 + $0x310] sm:$0xf0]  ;;  %v5278_v62 = vor.u32 %v7703_v46, %v5275_v49 }
  0x7d   :  { %2245 = vmatpush.bf16.msra.mxu3 %v5438_v32  ;;  %v7795_v53 = vld [vmem:[%s11639_s2 + $0x4e4] sm:$0xf]  ;;  %v5643_v54 = vld [vmem:[%s11639_s2 + $0x4f0] sm:$0xf0]  ;;  %v5406_v1 = vor.u32 %v7735_v50, %v5403_v52 }
  0x7e   :  { %v7827_v55 = vld [vmem:[%s11639_s2 + $0x5e4] sm:$0xf]  ;;  %2207 = vmatpush.bf16.msra.mxu0 %v5038_v38  ;;  %v5771_v57 = vld [vmem:[%s11639_s2 + $0x5f0] sm:$0xf0]  ;;  %v5646_v2 = vor.u32 %v7795_v53, %v5643_v54 }
  0x7f   :  { %v7859_v58 = vld [vmem:[%s11639_s2 + $0x6e4] sm:$0xf]  ;;  %v5899_v60 = vld [vmem:[%s11639_s2 + $0x6f0] sm:$0xf0]  ;;  %2233 = vmatpush.bf16.msra.mxu2 %v5294_v42  ;;  %v5774_v3 = vor.u32 %v7827_v55, %v5771_v57 }
  0x80   :  { %2220 = vmatpush.bf16.msra.mxu1 %v5166_v41  ;;  %v7891_v63 = vld [vmem:[%s11639_s2 + $0x7e4] sm:$0xf]  ;;  %v6027_v0 = vld [vmem:[%s11639_s2 + $0x7f0] sm:$0xf0]  ;;  %v5902_v4 = vor.u32 %v7859_v58, %v5899_v60 }
  0x81   :  { %2246 = vmatpush.bf16.msra.mxu3 %v5422_v47  ;;  %v7791_v5 = vld [vmem:[%s11639_s2 + $0x4c4] sm:$0xf]  ;;  %v5627_v6 = vld [vmem:[%s11639_s2 + $0x4d0] sm:$0xf0]  ;;  %v6030_v9 = vor.u32 %v7891_v63, %v6027_v0 }
  0x82   :  { %v7823_v7 = vld [vmem:[%s11639_s2 + $0x5c4] sm:$0xf]  ;;  %2208 = vmatpush.bf16.msra.mxu0 %v5022_v56  ;;  %v5755_v10 = vld [vmem:[%s11639_s2 + $0x5d0] sm:$0xf0]  ;;  %v5630_v18 = vor.u32 %v7791_v5, %v5627_v6 }
  0x83   :  { %v7855_v13 = vld [vmem:[%s11639_s2 + $0x6c4] sm:$0xf]  ;;  %v5883_v15 = vld [vmem:[%s11639_s2 + $0x6d0] sm:$0xf0]  ;;  %2234 = vmatpush.bf16.msra.mxu2 %v5278_v62  ;;  %v5758_v19 = vor.u32 %v7823_v7, %v5755_v10 }
  0x84   :  { %2221 = vmatpush.bf16.msra.mxu1 %v5150_v61  ;;  %v7887_v16 = vld [vmem:[%s11639_s2 + $0x7c4] sm:$0xf]  ;;  %v6011_v17 = vld [vmem:[%s11639_s2 + $0x7d0] sm:$0xf0]  ;;  %v5886_v11 = vor.u32 %v7855_v13, %v5883_v15 }
  0x85   :  { %2247 = vmatpush.bf16.msra.mxu3 %v5406_v1  ;;  %v7787_v12 = vld [vmem:[%s11639_s2 + $0x4a4] sm:$0xf]  ;;  %v5611_v20 = vld [vmem:[%s11639_s2 + $0x4b0] sm:$0xf0]  ;;  %v6014_v22 = vor.u32 %v7887_v16, %v6011_v17  ;;  %2209 = vmatmul.bf16.vlgmr.msra.gmra.mxu0 %v8635_v59 }
  0x86   :  { %2253 = vmatpush.bf16.msrb.mxu0 %v5646_v2  ;;  %v7819_v21 = vld [vmem:[%s11639_s2 + $0x5a4] sm:$0xf]  ;;  %v5739_v23 = vld [vmem:[%s11639_s2 + $0x5b0] sm:$0xf0]  ;;  %2235 = vmatmul.bf16.vlgmr.msra.gmra.mxu2 %v8620_v51  ;;  %v5614_v30 = vor.u32 %v7787_v12, %v5611_v20 }
  0x87   :  { %2279 = vmatpush.bf16.msrb.mxu2 %v5902_v4  ;;  %v7851_v25 = vld [vmem:[%s11639_s2 + $0x6a4] sm:$0xf]  ;;  %v5867_v26 = vld [vmem:[%s11639_s2 + $0x6b0] sm:$0xf0]  ;;  %2222 = vmatmul.bf16.vlgmr.msra.gmra.mxu1 %v8671_v14  ;;  %v5742_v31 = vor.u32 %v7819_v21, %v5739_v23 }
  0x88   :  { %2266 = vmatpush.bf16.msrb.mxu1 %v5774_v3  ;;  %v7883_v27 = vld [vmem:[%s11639_s2 + $0x7a4] sm:$0xf]  ;;  %v5995_v29 = vld [vmem:[%s11639_s2 + $0x7b0] sm:$0xf0]  ;;  %2248 = vmatmul.bf16.vlgmr.msra.gmra.mxu3 %v8655_v8  ;;  %v5870_v32 = vor.u32 %v7851_v25, %v5867_v26 }
  0x89   :  { %2292 = vmatpush.bf16.msrb.mxu3 %v6030_v9  ;;  %v7783_v33 = vld [vmem:[%s11639_s2 + $0x484] sm:$0xf]  ;;  %v5595_v34 = vld [vmem:[%s11639_s2 + $0x490] sm:$0xf0]  ;;  %v5998_v36 = vor.u32 %v7883_v27, %v5995_v29 }
  0x8a   :  { %2254 = vmatpush.bf16.msrb.mxu0 %v5630_v18  ;;  %v7815_v35 = vld [vmem:[%s11639_s2 + $0x584] sm:$0xf]  ;;  %v5723_v37 = vld [vmem:[%s11639_s2 + $0x590] sm:$0xf0]  ;;  %v5598_v42 = vor.u32 %v7783_v33, %v5595_v34  ;;  %v5137_v34 = vld [vmem:[%s11639_s2 + $0xe8] sm:$0xf] }
  0x8b   :  { %2280 = vmatpush.bf16.msrb.mxu2 %v5886_v11  ;;  %v7847_v38 = vld [vmem:[%s11639_s2 + $0x684] sm:$0xf]  ;;  %v5851_v39 = vld [vmem:[%s11639_s2 + $0x690] sm:$0xf0]  ;;  %v5726_v44 = vor.u32 %v7815_v35, %v5723_v37  ;;  %v7670_v35 = vld [vmem:[%s11639_s2 + $0xf4] sm:$0xf0] }
  0x8c   :  { %2267 = vmatpush.bf16.msrb.mxu1 %v5758_v19  ;;  %v7879_v40 = vld [vmem:[%s11639_s2 + $0x784] sm:$0xf]  ;;  %v5979_v41 = vld [vmem:[%s11639_s2 + $0x790] sm:$0xf0]  ;;  %v5854_v45 = vor.u32 %v7847_v38, %v5851_v39  ;;  %v7702_v38 = vld [vmem:[%s11639_s2 + $0x1f4] sm:$0xf0] }
  0x8d   :  { %2293 = vmatpush.bf16.msrb.mxu3 %v6014_v22  ;;  %v7779_v46 = vld [vmem:[%s11639_s2 + $0x464] sm:$0xf]  ;;  %v5579_v47 = vld [vmem:[%s11639_s2 + $0x470] sm:$0xf0]  ;;  %v5982_v50 = vor.u32 %v7879_v40, %v5979_v41  ;;  %v5393_v39 = vld [vmem:[%s11639_s2 + $0x2e8] sm:$0xf] }
  0x8e   :  { %2255 = vmatpush.bf16.msrb.mxu0 %v5614_v30  ;;  %v7811_v49 = vld [vmem:[%s11639_s2 + $0x564] sm:$0xf]  ;;  %v5707_v52 = vld [vmem:[%s11639_s2 + $0x570] sm:$0xf0]  ;;  %v5582_v57 = vor.u32 %v7779_v46, %v5579_v47  ;;  %v7734_v40 = vld [vmem:[%s11639_s2 + $0x2f4] sm:$0xf0]  ;;  %v5138_v47 = vor.u32 %v7670_v35, %v5137_v34 }
  0x8f   :  { %2281 = vmatpush.bf16.msrb.mxu2 %v5870_v32  ;;  %v7843_v53 = vld [vmem:[%s11639_s2 + $0x664] sm:$0xf]  ;;  %v5835_v54 = vld [vmem:[%s11639_s2 + $0x670] sm:$0xf0]  ;;  %v5710_v58 = vor.u32 %v7811_v49, %v5707_v52  ;;  %v5121_v52 = vld [vmem:[%s11639_s2 + $0xc8] sm:$0xf] }
  0x90   :  { %2268 = vmatpush.bf16.msrb.mxu1 %v5742_v31  ;;  %v7875_v55 = vld [vmem:[%s11639_s2 + $0x764] sm:$0xf]  ;;  %v5963_v56 = vld [vmem:[%s11639_s2 + $0x770] sm:$0xf0]  ;;  %v5838_v60 = vor.u32 %v7843_v53, %v5835_v54  ;;  %v7666_v53 = vld [vmem:[%s11639_s2 + $0xd4] sm:$0xf0] }
  0x91   :  { %2294 = vmatpush.bf16.msrb.mxu3 %v5998_v36  ;;  %v7775_v61 = vld [vmem:[%s11639_s2 + $0x444] sm:$0xf]  ;;  %v5563_v62 = vld [vmem:[%s11639_s2 + $0x450] sm:$0xf0]  ;;  %v5966_v0 = vor.u32 %v7875_v55, %v5963_v56  ;;  %v5265_v36 = vld [vmem:[%s11639_s2 + $0x1e8] sm:$0xf] }
  0x92   :  { %2256 = vmatpush.bf16.msrb.mxu0 %v5598_v42  ;;  %v7807_v63 = vld [vmem:[%s11639_s2 + $0x544] sm:$0xf]  ;;  %v5691_v1 = vld [vmem:[%s11639_s2 + $0x550] sm:$0xf0]  ;;  %v5566_v6 = vor.u32 %v7775_v61, %v5563_v62  ;;  %v5266_v49 = vor.u32 %v7702_v38, %v5265_v36  ;;  %v5249_v54 = vld [vmem:[%s11639_s2 + $0x1c8] sm:$0xf]  ;;  %v5122_v62 = vor.u32 %v7666_v53, %v5121_v52 }
  0x93   :  { %2282 = vmatpush.bf16.msrb.mxu2 %v5854_v45  ;;  %v7839_v2 = vld [vmem:[%s11639_s2 + $0x644] sm:$0xf]  ;;  %v5819_v3 = vld [vmem:[%s11639_s2 + $0x650] sm:$0xf0]  ;;  %v5694_v7 = vor.u32 %v7807_v63, %v5691_v1  ;;  %v7766_v45 = vld [vmem:[%s11639_s2 + $0x3f4] sm:$0xf0] }
  0x94   :  { %2269 = vmatpush.bf16.msrb.mxu1 %v5726_v44  ;;  %v7871_v4 = vld [vmem:[%s11639_s2 + $0x744] sm:$0xf]  ;;  %v5947_v5 = vld [vmem:[%s11639_s2 + $0x750] sm:$0xf0]  ;;  %v5822_v9 = vor.u32 %v7839_v2, %v5819_v3  ;;  %v5521_v44 = vld [vmem:[%s11639_s2 + $0x3e8] sm:$0xf] }
  0x95   :  { %2295 = vmatpush.bf16.msrb.mxu3 %v5982_v50  ;;  %v7771_v10 = vld [vmem:[%s11639_s2 + $0x424] sm:$0xf]  ;;  %v5547_v13 = vld [vmem:[%s11639_s2 + $0x430] sm:$0xf0]  ;;  %v5950_v16 = vor.u32 %v7871_v4, %v5947_v5  ;;  %v5394_v50 = vor.u32 %v7734_v40, %v5393_v39  ;;  %v5522_v55 = vor.u32 %v7766_v45, %v5521_v44  ;;  %v7698_v56 = vld [vmem:[%s11639_s2 + $0x1d4] sm:$0xf0] }
  0x96   :  { %2257 = vmatpush.bf16.msrb.mxu0 %v5582_v57  ;;  %v7803_v15 = vld [vmem:[%s11639_s2 + $0x524] sm:$0xf]  ;;  %v5675_v17 = vld [vmem:[%s11639_s2 + $0x530] sm:$0xf0]  ;;  %v5550_v20 = vor.u32 %v7771_v10, %v5547_v13  ;;  %v5377_v57 = vld [vmem:[%s11639_s2 + $0x2c8] sm:$0xf]  ;;  %v5250_v63 = vor.u32 %v7698_v56, %v5249_v54 }
  0x97   :  { %2283 = vmatpush.bf16.msrb.mxu2 %v5838_v60  ;;  %v7835_v18 = vld [vmem:[%s11639_s2 + $0x624] sm:$0xf]  ;;  %v5803_v19 = vld [vmem:[%s11639_s2 + $0x630] sm:$0xf0]  ;;  %v5678_v23 = vor.u32 %v7803_v15, %v5675_v17  ;;  %v5505_v60 = vld [vmem:[%s11639_s2 + $0x3c8] sm:$0xf] }
  0x98   :  { %2270 = vmatpush.bf16.msrb.mxu1 %v5710_v58  ;;  %v7867_v11 = vld [vmem:[%s11639_s2 + $0x724] sm:$0xf]  ;;  %v5931_v12 = vld [vmem:[%s11639_s2 + $0x730] sm:$0xf0]  ;;  %v5806_v25 = vor.u32 %v7835_v18, %v5803_v19  ;;  %v7730_v58 = vld [vmem:[%s11639_s2 + $0x2d4] sm:$0xf0] }
  0x99   :  { %2296 = vmatpush.bf16.msrb.mxu3 %v5966_v0  ;;  %v7767_v21 = vld [vmem:[%s11639_s2 + $0x404] sm:$0xf]  ;;  %v5531_v22 = vld [vmem:[%s11639_s2 + $0x410] sm:$0xf0]  ;;  %v5934_v30 = vor.u32 %v7867_v11, %v5931_v12  ;;  %v7762_v61 = vld [vmem:[%s11639_s2 + $0x3d4] sm:$0xf0]  ;;  %v5378_v0 = vor.u32 %v7730_v58, %v5377_v57 }
  0x9a   :  { %2258 = vmatpush.bf16.msrb.mxu0 %v5566_v6  ;;  %v7799_v26 = vld [vmem:[%s11639_s2 + $0x504] sm:$0xf]  ;;  %v5659_v27 = vld [vmem:[%s11639_s2 + $0x510] sm:$0xf0]  ;;  %v5534_v37 = vor.u32 %v7767_v21, %v5531_v22  ;;  %v5105_v1 = vld [vmem:[%s11639_s2 + $0xa8] sm:$0xf]  ;;  %v5506_v4 = vor.u32 %v7762_v61, %v5505_v60 }
  0x9b   :  { %2284 = vmatpush.bf16.msrb.mxu2 %v5822_v9  ;;  %v7831_v29 = vld [vmem:[%s11639_s2 + $0x604] sm:$0xf]  ;;  %v5787_v31 = vld [vmem:[%s11639_s2 + $0x610] sm:$0xf0]  ;;  %v5662_v41 = vor.u32 %v7799_v26, %v5659_v27  ;;  %v7662_v2 = vld [vmem:[%s11639_s2 + $0xb4] sm:$0xf0] }
  0x9c   :  { %2271 = vmatpush.bf16.msrb.mxu1 %v5694_v7  ;;  %v7863_v32 = vld [vmem:[%s11639_s2 + $0x704] sm:$0xf]  ;;  %v5915_v33 = vld [vmem:[%s11639_s2 + $0x710] sm:$0xf0]  ;;  %v5790_v42 = vor.u32 %v7831_v29, %v5787_v31  ;;  %v5233_v3 = vld [vmem:[%s11639_s2 + $0x1a8] sm:$0xf]  ;;  %v5106_v13 = vor.u32 %v7662_v2, %v5105_v1 }
  0x9d   :  { %2297 = vmatpush.bf16.msrb.mxu3 %v5950_v16  ;;  %v5918_v46 = vor.u32 %v7863_v32, %v5915_v33  ;;  %v7694_v5 = vld [vmem:[%s11639_s2 + $0x1b4] sm:$0xf0]  ;;  %v5361_v6 = vld [vmem:[%s11639_s2 + $0x2a8] sm:$0xf] }
  0x9e   :  { %2259 = vmatpush.bf16.msrb.mxu0 %v5550_v20  ;;  %v7726_v7 = vld [vmem:[%s11639_s2 + $0x2b4] sm:$0xf0]  ;;  %v5489_v9 = vld [vmem:[%s11639_s2 + $0x3a8] sm:$0xf]  ;;  %v5234_v15 = vor.u32 %v7694_v5, %v5233_v3 }
  0x9f   :  { %2285 = vmatpush.bf16.msrb.mxu2 %v5806_v25  ;;  %v7758_v10 = vld [vmem:[%s11639_s2 + $0x3b4] sm:$0xf0]  ;;  %v5362_v16 = vor.u32 %v7726_v7, %v5361_v6  ;;  %v5089_v17 = vld [vmem:[%s11639_s2 + $0x88] sm:$0xf] }
  0xa0   :  { %2272 = vmatpush.bf16.msrb.mxu1 %v5678_v23  ;;  %v7658_v18 = vld [vmem:[%s11639_s2 + $0x94] sm:$0xf0]  ;;  %v5217_v19 = vld [vmem:[%s11639_s2 + $0x188] sm:$0xf]  ;;  %v5490_v11 = vor.u32 %v7758_v10, %v5489_v9 }
  0xa1   :  { %2298 = vmatpush.bf16.msrb.mxu3 %v5934_v30  ;;  %v7690_v12 = vld [vmem:[%s11639_s2 + $0x194] sm:$0xf0]  ;;  %v5345_v20 = vld [vmem:[%s11639_s2 + $0x288] sm:$0xf]  ;;  %v5090_v25 = vor.u32 %v7658_v18, %v5089_v17 }
  0xa2   :  { %2260 = vmatpush.bf16.msrb.mxu0 %v5534_v37  ;;  %v7722_v21 = vld [vmem:[%s11639_s2 + $0x294] sm:$0xf0]  ;;  %v5473_v22 = vld [vmem:[%s11639_s2 + $0x388] sm:$0xf]  ;;  %v5218_v26 = vor.u32 %v7690_v12, %v5217_v19 }
  0xa3   :  { %2286 = vmatpush.bf16.msrb.mxu2 %v5790_v42  ;;  %v7754_v23 = vld [vmem:[%s11639_s2 + $0x394] sm:$0xf0]  ;;  %v5346_v27 = vor.u32 %v7722_v21, %v5345_v20  ;;  %v5073_v29 = vld [vmem:[%s11639_s2 + $0x68] sm:$0xf] }
  0xa4   :  { %2273 = vmatpush.bf16.msrb.mxu1 %v5662_v41  ;;  %v7654_v30 = vld [vmem:[%s11639_s2 + $0x74] sm:$0xf0]  ;;  %v5201_v31 = vld [vmem:[%s11639_s2 + $0x168] sm:$0xf]  ;;  %v5474_v32 = vor.u32 %v7754_v23, %v5473_v22 }
  0xa5   :  { %2299 = vmatpush.bf16.msrb.mxu3 %v5918_v46  ;;  %2261 = vmatmul.bf16.vlgmr.msrb.gmra.mxu0 %v8777_v28  ;;  %v7686_v33 = vld [vmem:[%s11639_s2 + $0x174] sm:$0xf0]  ;;  %v5329_v34 = vld [vmem:[%s11639_s2 + $0x268] sm:$0xf]  ;;  %v5074_v38 = vor.u32 %v7654_v30, %v5073_v29 }
  0xa6   :  { %2305 = vmatpush.bf16.msra.mxu0 %v5138_v47  ;;  %2287 = vmatmul.bf16.vlgmr.msrb.gmra.mxu2 %v8769_v24  ;;  %v7718_v35 = vld [vmem:[%s11639_s2 + $0x274] sm:$0xf0]  ;;  %v5457_v36 = vld [vmem:[%s11639_s2 + $0x368] sm:$0xf]  ;;  %v5202_v39 = vor.u32 %v7686_v33, %v5201_v31 }
  0xa7   :  { %2331 = vmatpush.bf16.msra.mxu2 %v5394_v50  ;;  %2274 = vmatmul.bf16.vlgmr.msrb.gmra.mxu1 %v8809_v48  ;;  %v7750_v37 = vld [vmem:[%s11639_s2 + $0x374] sm:$0xf0]  ;;  %v5330_v40 = vor.u32 %v7718_v35, %v5329_v34  ;;  %v5057_v41 = vld [vmem:[%s11639_s2 + $0x48] sm:$0xf] }
  0xa8   :  { %2318 = vmatpush.bf16.msra.mxu1 %v5266_v49  ;;  %2300 = vmatmul.bf16.vlgmr.msrb.gmra.mxu3 %v8800_v43  ;;  %v7650_v42 = vld [vmem:[%s11639_s2 + $0x54] sm:$0xf0]  ;;  %v5185_v44 = vld [vmem:[%s11639_s2 + $0x148] sm:$0xf]  ;;  %v5458_v45 = vor.u32 %v7750_v37, %v5457_v36 }
  0xa9   :  { %2344 = vmatpush.bf16.msra.mxu3 %v5522_v55  ;;  %v7682_v46 = vld [vmem:[%s11639_s2 + $0x154] sm:$0xf0]  ;;  %v5313_v47 = vld [vmem:[%s11639_s2 + $0x248] sm:$0xf]  ;;  %v5058_v53 = vor.u32 %v7650_v42, %v5057_v41 }
  0xaa   :  { %2306 = vmatpush.bf16.msra.mxu0 %v5122_v62  ;;  %v7714_v49 = vld [vmem:[%s11639_s2 + $0x254] sm:$0xf0]  ;;  %v5441_v50 = vld [vmem:[%s11639_s2 + $0x348] sm:$0xf]  ;;  %v5186_v54 = vor.u32 %v7682_v46, %v5185_v44 }
  0xab   :  { %2332 = vmatpush.bf16.msra.mxu2 %v5378_v0  ;;  %v7746_v52 = vld [vmem:[%s11639_s2 + $0x354] sm:$0xf0]  ;;  %v5314_v55 = vor.u32 %v7714_v49, %v5313_v47  ;;  %v5041_v56 = vld [vmem:[%s11639_s2 + $0x28] sm:$0xf] }
  0xac   :  { %2319 = vmatpush.bf16.msra.mxu1 %v5250_v63  ;;  %v7646_v57 = vld [vmem:[%s11639_s2 + $0x34] sm:$0xf0]  ;;  %v5169_v58 = vld [vmem:[%s11639_s2 + $0x128] sm:$0xf]  ;;  %v5442_v60 = vor.u32 %v7746_v52, %v5441_v50 }
  0xad   :  { %2345 = vmatpush.bf16.msra.mxu3 %v5506_v4  ;;  %v7678_v61 = vld [vmem:[%s11639_s2 + $0x134] sm:$0xf0]  ;;  %v5297_v62 = vld [vmem:[%s11639_s2 + $0x228] sm:$0xf]  ;;  %v5042_v2 = vor.u32 %v7646_v57, %v5041_v56 }
  0xae   :  { %2307 = vmatpush.bf16.msra.mxu0 %v5106_v13  ;;  %v7710_v63 = vld [vmem:[%s11639_s2 + $0x234] sm:$0xf0]  ;;  %v5425_v0 = vld [vmem:[%s11639_s2 + $0x328] sm:$0xf]  ;;  %v5170_v5 = vor.u32 %v7678_v61, %v5169_v58 }
  0xaf   :  { %2333 = vmatpush.bf16.msra.mxu2 %v5362_v16  ;;  %v7742_v1 = vld [vmem:[%s11639_s2 + $0x334] sm:$0xf0]  ;;  %v5025_v3 = vld [vmem:[%s11639_s2 + $0x8] sm:$0xf]  ;;  %v5298_v6 = vor.u32 %v7710_v63, %v5297_v62 }
  0xb0   :  { %2320 = vmatpush.bf16.msra.mxu1 %v5234_v15  ;;  %v7642_v4 = vld [vmem:[%s11639_s2 + $0x14] sm:$0xf0]  ;;  %v5153_v7 = vld [vmem:[%s11639_s2 + $0x108] sm:$0xf]  ;;  %v5426_v13 = vor.u32 %v7742_v1, %v5425_v0 }
  0xb1   :  { %2346 = vmatpush.bf16.msra.mxu3 %v5490_v11  ;;  %v7674_v9 = vld [vmem:[%s11639_s2 + $0x114] sm:$0xf0]  ;;  %v5281_v10 = vld [vmem:[%s11639_s2 + $0x208] sm:$0xf]  ;;  %v5026_v12 = vor.u32 %v7642_v4, %v5025_v3 }
  0xb2   :  { %2308 = vmatpush.bf16.msra.mxu0 %v5090_v25  ;;  %v7706_v15 = vld [vmem:[%s11639_s2 + $0x214] sm:$0xf0]  ;;  %v5409_v16 = vld [vmem:[%s11639_s2 + $0x308] sm:$0xf]  ;;  %v5154_v23 = vor.u32 %v7674_v9, %v5153_v7 }
  0xb3   :  { %2334 = vmatpush.bf16.msra.mxu2 %v5346_v27  ;;  %v7738_v17 = vld [vmem:[%s11639_s2 + $0x314] sm:$0xf0]  ;;  %v5649_v18 = vld [vmem:[%s11639_s2 + $0x4e8] sm:$0xf]  ;;  %v5282_v25 = vor.u32 %v7706_v15, %v5281_v10 }
  0xb4   :  { %2321 = vmatpush.bf16.msra.mxu1 %v5218_v26  ;;  %v7798_v19 = vld [vmem:[%s11639_s2 + $0x4f4] sm:$0xf0]  ;;  %v5777_v11 = vld [vmem:[%s11639_s2 + $0x5e8] sm:$0xf]  ;;  %v5410_v29 = vor.u32 %v7738_v17, %v5409_v16 }
  0xb5   :  { %2347 = vmatpush.bf16.msra.mxu3 %v5474_v32  ;;  %v7830_v20 = vld [vmem:[%s11639_s2 + $0x5f4] sm:$0xf0]  ;;  %v5905_v21 = vld [vmem:[%s11639_s2 + $0x6e8] sm:$0xf]  ;;  %v5650_v30 = vor.u32 %v7798_v19, %v5649_v18 }
  0xb6   :  { %2309 = vmatpush.bf16.msra.mxu0 %v5074_v38  ;;  %v7862_v22 = vld [vmem:[%s11639_s2 + $0x6f4] sm:$0xf0]  ;;  %v6033_v26 = vld [vmem:[%s11639_s2 + $0x7e8] sm:$0xf]  ;;  %v5778_v31 = vor.u32 %v7830_v20, %v5777_v11 }
  0xb7   :  { %2335 = vmatpush.bf16.msra.mxu2 %v5330_v40  ;;  %v7894_v27 = vld [vmem:[%s11639_s2 + $0x7f4] sm:$0xf0]  ;;  %v5906_v32 = vor.u32 %v7862_v22, %v5905_v21  ;;  %v5633_v33 = vld [vmem:[%s11639_s2 + $0x4c8] sm:$0xf] }
  0xb8   :  { %2322 = vmatpush.bf16.msra.mxu1 %v5202_v39  ;;  %v7794_v34 = vld [vmem:[%s11639_s2 + $0x4d4] sm:$0xf0]  ;;  %v5761_v35 = vld [vmem:[%s11639_s2 + $0x5c8] sm:$0xf]  ;;  %v6034_v36 = vor.u32 %v7894_v27, %v6033_v26 }
  0xb9   :  { %2348 = vmatpush.bf16.msra.mxu3 %v5458_v45  ;;  %v7826_v37 = vld [vmem:[%s11639_s2 + $0x5d4] sm:$0xf0]  ;;  %v5889_v38 = vld [vmem:[%s11639_s2 + $0x6c8] sm:$0xf]  ;;  %v5634_v42 = vor.u32 %v7794_v34, %v5633_v33 }
  0xba   :  { %2310 = vmatpush.bf16.msra.mxu0 %v5058_v53  ;;  %v7858_v39 = vld [vmem:[%s11639_s2 + $0x6d4] sm:$0xf0]  ;;  %v6017_v40 = vld [vmem:[%s11639_s2 + $0x7c8] sm:$0xf]  ;;  %v5762_v44 = vor.u32 %v7826_v37, %v5761_v35 }
  0xbb   :  { %2336 = vmatpush.bf16.msra.mxu2 %v5314_v55  ;;  %v7890_v41 = vld [vmem:[%s11639_s2 + $0x7d4] sm:$0xf0]  ;;  %v5890_v45 = vor.u32 %v7858_v39, %v5889_v38  ;;  %v5617_v46 = vld [vmem:[%s11639_s2 + $0x4a8] sm:$0xf] }
  0xbc   :  { %2323 = vmatpush.bf16.msra.mxu1 %v5186_v54  ;;  %v7790_v47 = vld [vmem:[%s11639_s2 + $0x4b4] sm:$0xf0]  ;;  %v5745_v49 = vld [vmem:[%s11639_s2 + $0x5a8] sm:$0xf]  ;;  %v6018_v50 = vor.u32 %v7890_v41, %v6017_v40 }
  0xbd   :  { %2349 = vmatpush.bf16.msra.mxu3 %v5442_v60  ;;  %v7822_v52 = vld [vmem:[%s11639_s2 + $0x5b4] sm:$0xf0]  ;;  %v5873_v53 = vld [vmem:[%s11639_s2 + $0x6a8] sm:$0xf]  ;;  %v5618_v57 = vor.u32 %v7790_v47, %v5617_v46 }
  0xbe   :  { %2311 = vmatpush.bf16.msra.mxu0 %v5042_v2  ;;  %v7854_v54 = vld [vmem:[%s11639_s2 + $0x6b4] sm:$0xf0]  ;;  %v6001_v55 = vld [vmem:[%s11639_s2 + $0x7a8] sm:$0xf]  ;;  %v5746_v58 = vor.u32 %v7822_v52, %v5745_v49 }
  0xbf   :  { %2337 = vmatpush.bf16.msra.mxu2 %v5298_v6  ;;  %v7886_v56 = vld [vmem:[%s11639_s2 + $0x7b4] sm:$0xf0]  ;;  %v5874_v60 = vor.u32 %v7854_v54, %v5873_v53  ;;  %v5601_v61 = vld [vmem:[%s11639_s2 + $0x488] sm:$0xf] }
  0xc0   :  { %2324 = vmatpush.bf16.msra.mxu1 %v5170_v5  ;;  %v7786_v62 = vld [vmem:[%s11639_s2 + $0x494] sm:$0xf0]  ;;  %v5729_v63 = vld [vmem:[%s11639_s2 + $0x588] sm:$0xf]  ;;  %v6002_v0 = vor.u32 %v7886_v56, %v6001_v55 }
  0xc1   :  { %2350 = vmatpush.bf16.msra.mxu3 %v5426_v13  ;;  %v7818_v1 = vld [vmem:[%s11639_s2 + $0x594] sm:$0xf0]  ;;  %v5857_v2 = vld [vmem:[%s11639_s2 + $0x688] sm:$0xf]  ;;  %v5602_v6 = vor.u32 %v7786_v62, %v5601_v61 }
  0xc2   :  { %2312 = vmatpush.bf16.msra.mxu0 %v5026_v12  ;;  %v7850_v3 = vld [vmem:[%s11639_s2 + $0x694] sm:$0xf0]  ;;  %v5985_v4 = vld [vmem:[%s11639_s2 + $0x788] sm:$0xf]  ;;  %v5730_v7 = vor.u32 %v7818_v1, %v5729_v63  ;;  %v7668_v63 = vld [vmem:[%s11639_s2 + $0xec] sm:$0xf] }
  0xc3   :  { %2338 = vmatpush.bf16.msra.mxu2 %v5282_v25  ;;  %v7882_v5 = vld [vmem:[%s11639_s2 + $0x794] sm:$0xf0]  ;;  %v5858_v9 = vor.u32 %v7850_v3, %v5857_v2  ;;  %v5585_v10 = vld [vmem:[%s11639_s2 + $0x468] sm:$0xf]  ;;  %v7700_v1 = vld [vmem:[%s11639_s2 + $0x1ec] sm:$0xf] }
  0xc4   :  { %2325 = vmatpush.bf16.msra.mxu1 %v5154_v23  ;;  %v7782_v13 = vld [vmem:[%s11639_s2 + $0x474] sm:$0xf0]  ;;  %v5713_v15 = vld [vmem:[%s11639_s2 + $0x568] sm:$0xf]  ;;  %v5986_v16 = vor.u32 %v7882_v5, %v5985_v4  ;;  %v5267_v4 = vld [vmem:[%s11639_s2 + $0x1f8] sm:$0xf0] }
  0xc5   :  { %2351 = vmatpush.bf16.msra.mxu3 %v5410_v29  ;;  %2313 = vmatmul.bf16.vlgmr.msra.gmra.mxu0 %v8635_v59  ;;  %v7814_v17 = vld [vmem:[%s11639_s2 + $0x574] sm:$0xf0]  ;;  %v5841_v18 = vld [vmem:[%s11639_s2 + $0x668] sm:$0xf]  ;;  %v5586_v20 = vor.u32 %v7782_v13, %v5585_v10  ;;  %v7732_v5 = vld [vmem:[%s11639_s2 + $0x2ec] sm:$0xf] }
  0xc6   :  { %2357 = vmatpush.bf16.msrb.mxu0 %v5650_v30  ;;  %2339 = vmatmul.bf16.vlgmr.msra.gmra.mxu2 %v8620_v51  ;;  %v7846_v19 = vld [vmem:[%s11639_s2 + $0x674] sm:$0xf0]  ;;  %v5969_v11 = vld [vmem:[%s11639_s2 + $0x768] sm:$0xf]  ;;  %v5714_v21 = vor.u32 %v7814_v17, %v5713_v15  ;;  %v7764_v13 = vld [vmem:[%s11639_s2 + $0x3ec] sm:$0xf] }
  0xc7   :  { %2383 = vmatpush.bf16.msrb.mxu2 %v5906_v32  ;;  %2326 = vmatmul.bf16.vlgmr.msra.gmra.mxu1 %v8671_v14  ;;  %v7878_v12 = vld [vmem:[%s11639_s2 + $0x774] sm:$0xf0]  ;;  %v5842_v22 = vor.u32 %v7846_v19, %v5841_v18  ;;  %v5569_v23 = vld [vmem:[%s11639_s2 + $0x448] sm:$0xf]  ;;  %v5523_v15 = vld [vmem:[%s11639_s2 + $0x3f8] sm:$0xf0] }
  0xc8   :  { %2370 = vmatpush.bf16.msrb.mxu1 %v5778_v31  ;;  %2352 = vmatmul.bf16.vlgmr.msra.gmra.mxu3 %v8655_v8  ;;  %v7778_v25 = vld [vmem:[%s11639_s2 + $0x454] sm:$0xf0]  ;;  %v5697_v26 = vld [vmem:[%s11639_s2 + $0x548] sm:$0xf]  ;;  %v5970_v27 = vor.u32 %v7878_v12, %v5969_v11  ;;  %v5270_v11 = vor.u32 %v7700_v1, %v5267_v4 }
  0xc9   :  { %2396 = vmatpush.bf16.msrb.mxu3 %v6034_v36  ;;  %v7810_v29 = vld [vmem:[%s11639_s2 + $0x554] sm:$0xf0]  ;;  %v5825_v30 = vld [vmem:[%s11639_s2 + $0x648] sm:$0xf]  ;;  %v5570_v34 = vor.u32 %v7778_v25, %v5569_v23  ;;  %v5526_v23 = vor.u32 %v7764_v13, %v5523_v15  ;;  %v5251_v25 = vld [vmem:[%s11639_s2 + $0x1d8] sm:$0xf0] }
  0xca   :  { %2358 = vmatpush.bf16.msrb.mxu0 %v5634_v42  ;;  %v7842_v31 = vld [vmem:[%s11639_s2 + $0x654] sm:$0xf0]  ;;  %v5953_v32 = vld [vmem:[%s11639_s2 + $0x748] sm:$0xf]  ;;  %v5698_v35 = vor.u32 %v7810_v29, %v5697_v26  ;;  %v7728_v26 = vld [vmem:[%s11639_s2 + $0x2cc] sm:$0xf] }
  0xcb   :  { %2384 = vmatpush.bf16.msrb.mxu2 %v5890_v45  ;;  %v7874_v33 = vld [vmem:[%s11639_s2 + $0x754] sm:$0xf0]  ;;  %v5826_v36 = vor.u32 %v7842_v31, %v5825_v30  ;;  %v5553_v37 = vld [vmem:[%s11639_s2 + $0x428] sm:$0xf]  ;;  %v7760_v30 = vld [vmem:[%s11639_s2 + $0x3cc] sm:$0xf] }
  0xcc   :  { %2371 = vmatpush.bf16.msrb.mxu1 %v5762_v44  ;;  %v7774_v38 = vld [vmem:[%s11639_s2 + $0x434] sm:$0xf0]  ;;  %v5681_v39 = vld [vmem:[%s11639_s2 + $0x528] sm:$0xf]  ;;  %v5954_v40 = vor.u32 %v7874_v33, %v5953_v32  ;;  %v5507_v31 = vld [vmem:[%s11639_s2 + $0x3d8] sm:$0xf0] }
  0xcd   :  { %2397 = vmatpush.bf16.msrb.mxu3 %v6018_v50  ;;  %v7806_v41 = vld [vmem:[%s11639_s2 + $0x534] sm:$0xf0]  ;;  %v5809_v42 = vld [vmem:[%s11639_s2 + $0x628] sm:$0xf]  ;;  %v5554_v47 = vor.u32 %v7774_v38, %v5553_v37  ;;  %v7660_v37 = vld [vmem:[%s11639_s2 + $0xac] sm:$0xf] }
  0xce   :  { %2359 = vmatpush.bf16.msrb.mxu0 %v5618_v57  ;;  %v7838_v44 = vld [vmem:[%s11639_s2 + $0x634] sm:$0xf0]  ;;  %v5937_v45 = vld [vmem:[%s11639_s2 + $0x728] sm:$0xf]  ;;  %v5682_v53 = vor.u32 %v7806_v41, %v5681_v39  ;;  %v5107_v38 = vld [vmem:[%s11639_s2 + $0xb8] sm:$0xf0]  ;;  %v5510_v41 = vor.u32 %v7760_v30, %v5507_v31 }
  0xcf   :  { %2385 = vmatpush.bf16.msrb.mxu2 %v5874_v60  ;;  %v7870_v46 = vld [vmem:[%s11639_s2 + $0x734] sm:$0xf0]  ;;  %v5537_v49 = vld [vmem:[%s11639_s2 + $0x408] sm:$0xf]  ;;  %v5810_v54 = vor.u32 %v7838_v44, %v5809_v42  ;;  %v7692_v39 = vld [vmem:[%s11639_s2 + $0x1ac] sm:$0xf] }
  0xd0   :  { %2372 = vmatpush.bf16.msrb.mxu1 %v5746_v58  ;;  %v7770_v50 = vld [vmem:[%s11639_s2 + $0x414] sm:$0xf0]  ;;  %v5665_v55 = vld [vmem:[%s11639_s2 + $0x508] sm:$0xf]  ;;  %v5938_v58 = vor.u32 %v7870_v46, %v5937_v45  ;;  %v5235_v42 = vld [vmem:[%s11639_s2 + $0x1b8] sm:$0xf0] }
  0xd1   :  { %2398 = vmatpush.bf16.msrb.mxu3 %v6002_v0  ;;  %v7802_v56 = vld [vmem:[%s11639_s2 + $0x514] sm:$0xf0]  ;;  %v5793_v57 = vld [vmem:[%s11639_s2 + $0x608] sm:$0xf]  ;;  %v5139_v0 = vld [vmem:[%s11639_s2 + $0xf8] sm:$0xf0]  ;;  %v5538_v3 = vor.u32 %v7770_v50, %v5537_v49  ;;  %v5110_v50 = vor.u32 %v7660_v37, %v5107_v38 }
  0xd2   :  { %2360 = vmatpush.bf16.msrb.mxu0 %v5602_v6  ;;  %v7834_v60 = vld [vmem:[%s11639_s2 + $0x614] sm:$0xf0]  ;;  %v5921_v61 = vld [vmem:[%s11639_s2 + $0x708] sm:$0xf]  ;;  %v5395_v6 = vld [vmem:[%s11639_s2 + $0x2f8] sm:$0xf0]  ;;  %v5142_v18 = vor.u32 %v7668_v63, %v5139_v0 }
  0xd3   :  { %2386 = vmatpush.bf16.msrb.mxu2 %v5858_v9  ;;  %v7866_v62 = vld [vmem:[%s11639_s2 + $0x714] sm:$0xf0]  ;;  %v5666_v9 = vor.u32 %v7802_v56, %v5665_v55  ;;  %v5794_v10 = vor.u32 %v7834_v60, %v5793_v57  ;;  %v5398_v12 = vor.u32 %v7732_v5, %v5395_v6  ;;  %v7724_v44 = vld [vmem:[%s11639_s2 + $0x2ac] sm:$0xf]  ;;  %v5363_v45 = vld [vmem:[%s11639_s2 + $0x2b8] sm:$0xf0] }
  0xd4   :  { %2373 = vmatpush.bf16.msrb.mxu1 %v5730_v7  ;;  %v5922_v17 = vor.u32 %v7866_v62, %v5921_v61  ;;  %v7756_v46 = vld [vmem:[%s11639_s2 + $0x3ac] sm:$0xf]  ;;  %v5091_v55 = vld [vmem:[%s11639_s2 + $0x98] sm:$0xf0] }
  0xd5   :  { %2399 = vmatpush.bf16.msrb.mxu3 %v5986_v16  ;;  %v2106_v52 = vpop.f32.mrf.mxu0  ;;  %v7688_v56 = vld [vmem:[%s11639_s2 + $0x18c] sm:$0xf]  ;;  %v5347_v61 = vld [vmem:[%s11639_s2 + $0x298] sm:$0xf0] }
  0xd6   :  { %2361 = vmatpush.bf16.msrb.mxu0 %v5586_v20  ;;  %v7664_v20 = vld [vmem:[%s11639_s2 + $0xcc] sm:$0xf]  ;;  %v5475_v63 = vld [vmem:[%s11639_s2 + $0x398] sm:$0xf0] }
  0xd7   :  { %2387 = vmatpush.bf16.msrb.mxu2 %v5842_v22  ;;  %v7696_v22 = vld [vmem:[%s11639_s2 + $0x1cc] sm:$0xf]  ;;  %v5075_v6 = vld [vmem:[%s11639_s2 + $0x78] sm:$0xf0] }
  0xd8   :  { %2374 = vmatpush.bf16.msrb.mxu1 %v5714_v21  ;;  %v2119_v2 = vpop.f32.mrf.mxu1  ;;  %v5123_v21 = vld [vmem:[%s11639_s2 + $0xd8] sm:$0xf0]  ;;  %v7720_v60 = vld [vmem:[%s11639_s2 + $0x28c] sm:$0xf] }
  0xd9   :  { %2400 = vmatpush.bf16.msrb.mxu3 %v5970_v27  ;;  %v2120_v7 = vadd.f32 %v2119_v2, %v2106_v52  ;;  %v5379_v27 = vld [vmem:[%s11639_s2 + $0x2d8] sm:$0xf0]  ;;  %v5126_v32 = vor.u32 %v7664_v20, %v5123_v21  ;;  %v5238_v52 = vor.u32 %v7692_v39, %v5235_v42  ;;  %v7752_v62 = vld [vmem:[%s11639_s2 + $0x38c] sm:$0xf]  ;;  %v5350_v4 = vor.u32 %v7720_v60, %v5347_v61 }
  0xda   :  { %2362 = vmatpush.bf16.msrb.mxu0 %v5570_v34  ;;  %v5254_v34 = vor.u32 %v7696_v22, %v5251_v25  ;;  %v7652_v5 = vld [vmem:[%s11639_s2 + $0x6c] sm:$0xf]  ;;  %v5203_v13 = vld [vmem:[%s11639_s2 + $0x178] sm:$0xf0] }
  0xdb   :  { %2388 = vmatpush.bf16.msrb.mxu2 %v5826_v36  ;;  %v2132_v16 = vpop.f32.mrf.mxu2  ;;  %v7716_v15 = vld [vmem:[%s11639_s2 + $0x26c] sm:$0xf]  ;;  %v5315_v31 = vld [vmem:[%s11639_s2 + $0x258] sm:$0xf0] }
  0xdc   :  { %2375 = vmatpush.bf16.msrb.mxu1 %v5698_v35  ;;  %v2133_v19 = vadd.f32 %v2132_v16, %v2120_v7  ;;  %v5382_v35 = vor.u32 %v7728_v26, %v5379_v27  ;;  %v7684_v7 = vld [vmem:[%s11639_s2 + $0x16c] sm:$0xf]  ;;  %v5331_v16 = vld [vmem:[%s11639_s2 + $0x278] sm:$0xf0] }
  0xdd   :  { %2401 = vmatpush.bf16.msrb.mxu3 %v5954_v40  ;;  %v2108_v29 = vpop.f32.mrf.mxu0  ;;  %v2145_v33 = vpop.f32.mrf.mxu3  ;;  %v5206_v20 = vor.u32 %v7684_v7, %v5203_v13  ;;  %v5334_v21 = vor.u32 %v7716_v15, %v5331_v16  ;;  %v7648_v22 = vld [vmem:[%s11639_s2 + $0x4c] sm:$0xf]  ;;  %v5155_v61 = vld [vmem:[%s11639_s2 + $0x118] sm:$0xf0] }
  0xde   :  { %2363 = vmatpush.bf16.msrb.mxu0 %v5554_v47  ;;  %v2146_v36 = vadd.f32 %v2145_v33, %v2133_v19  ;;  %v5491_v47 = vld [vmem:[%s11639_s2 + $0x3b8] sm:$0xf0]  ;;  %v7680_v25 = vld [vmem:[%s11639_s2 + $0x14c] sm:$0xf] }
  0xdf   :  { %2389 = vmatpush.bf16.msrb.mxu2 %v5810_v54  ;;  %v7656_v54 = vld [vmem:[%s11639_s2 + $0x8c] sm:$0xf]  ;;  %v5494_v57 = vor.u32 %v7756_v46, %v5491_v47  ;;  %v5187_v29 = vld [vmem:[%s11639_s2 + $0x158] sm:$0xf0] }
  0xe0   :  { %2376 = vmatpush.bf16.msrb.mxu1 %v5682_v53  ;;  %v2121_v40 = vpop.f32.mrf.mxu1  ;;  %v5366_v53 = vor.u32 %v7724_v44, %v5363_v45  ;;  %v5094_v0 = vor.u32 %v7656_v54, %v5091_v55  ;;  %v7712_v30 = vld [vmem:[%s11639_s2 + $0x24c] sm:$0xf]  ;;  %v5190_v37 = vor.u32 %v7680_v25, %v5187_v29  ;;  %v5171_v45 = vld [vmem:[%s11639_s2 + $0x138] sm:$0xf0] }
  0xe1   :  { %2402 = vmatpush.bf16.msrb.mxu3 %v5938_v58  ;;  %v5219_v58 = vld [vmem:[%s11639_s2 + $0x198] sm:$0xf0]  ;;  %v7744_v33 = vld [vmem:[%s11639_s2 + $0x34c] sm:$0xf]  ;;  %v5318_v38 = vor.u32 %v7712_v30, %v5315_v31 }
  0xe2   :  { %2364 = vmatpush.bf16.msrb.mxu0 %v5538_v3  ;;  %v5222_v3 = vor.u32 %v7688_v56, %v5219_v58  ;;  %v7644_v39 = vld [vmem:[%s11639_s2 + $0x2c] sm:$0xf]  ;;  %v5043_v40 = vld [vmem:[%s11639_s2 + $0x38] sm:$0xf0] }
  0xe3   :  { %2390 = vmatpush.bf16.msrb.mxu2 %v5794_v10  ;;  %v2134_v49 = vpop.f32.mrf.mxu2  ;;  %v5478_v10 = vor.u32 %v7752_v62, %v5475_v63  ;;  %v7708_v46 = vld [vmem:[%s11639_s2 + $0x22c] sm:$0xf]  ;;  %v5299_v47 = vld [vmem:[%s11639_s2 + $0x238] sm:$0xf0]  ;;  %v5046_v54 = vor.u32 %v7644_v39, %v5043_v40 }
  0xe4   :  { %2377 = vmatpush.bf16.msrb.mxu1 %v5666_v9  ;;  %v7640_v55 = vld [vmem:[%s11639_s2 + $0xc] sm:$0xf]  ;;  %v5027_v56 = vld [vmem:[%s11639_s2 + $0x18] sm:$0xf0]  ;;  %v5302_v58 = vor.u32 %v7708_v46, %v5299_v47 }
  0xe5   :  { %2403 = vmatpush.bf16.msrb.mxu3 %v5922_v17  ;;  %2365 = vmatmul.bf16.vlgmr.msrb.gmra.mxu0 %v8777_v28  ;;  %v2147_v1 = vpop.f32.mrf.mxu3  ;;  %v7748_v17 = vld [vmem:[%s11639_s2 + $0x36c] sm:$0xf]  ;;  %v5030_v7 = vor.u32 %v7640_v55, %v5027_v56  ;;  %v5907_v13 = vld [vmem:[%s11639_s2 + $0x6f8] sm:$0xf0] }
  0xe6   :  { %2409 = vmatpush.bf16.msra.mxu0 %v5142_v18  ;;  %2391 = vmatmul.bf16.vlgmr.msrb.gmra.mxu2 %v8769_v24  ;;  %v2158_v2 = vpop.f32.mrf.mxu0  ;;  %v5459_v18 = vld [vmem:[%s11639_s2 + $0x378] sm:$0xf0]  ;;  %v7672_v60 = vld [vmem:[%s11639_s2 + $0x10c] sm:$0xf] }
  0xe7   :  { %2435 = vmatpush.bf16.msra.mxu2 %v5398_v12  ;;  %2378 = vmatmul.bf16.vlgmr.msrb.gmra.mxu1 %v8809_v48  ;;  %v2159_v9 = vadd.f32 %v2158_v2, %v2146_v36  ;;  %v5462_v27 = vor.u32 %v7748_v17, %v5459_v18  ;;  %v7704_v62 = vld [vmem:[%s11639_s2 + $0x20c] sm:$0xf]  ;;  %v5283_v1 = vld [vmem:[%s11639_s2 + $0x218] sm:$0xf0]  ;;  %v5158_v15 = vor.u32 %v7672_v60, %v5155_v61 }
  0xe8   :  { %2422 = vmatpush.bf16.msra.mxu1 %v5270_v11  ;;  %2404 = vmatmul.bf16.vlgmr.msrb.gmra.mxu3 %v8800_v43  ;;  %v2171_v19 = vpop.f32.mrf.mxu1  ;;  %v5078_v11 = vor.u32 %v7652_v5, %v5075_v6  ;;  %v7736_v2 = vld [vmem:[%s11639_s2 + $0x30c] sm:$0xf]  ;;  %v5651_v5 = vld [vmem:[%s11639_s2 + $0x4f8] sm:$0xf0]  ;;  %v5286_v16 = vor.u32 %v7704_v62, %v5283_v1 }
  0xe9   :  { %2448 = vmatpush.bf16.msra.mxu3 %v5526_v23  ;;  %v2172_v12 = vadd.f32 %v2171_v19, %v2159_v9  ;;  %v5059_v23 = vld [vmem:[%s11639_s2 + $0x58] sm:$0xf0]  ;;  %v7828_v6 = vld [vmem:[%s11639_s2 + $0x5ec] sm:$0xf] }
  0xea   :  { %2410 = vmatpush.bf16.msra.mxu0 %v5126_v32  ;;  %v5779_v9 = vld [vmem:[%s11639_s2 + $0x5f8] sm:$0xf0]  ;;  %v7892_v17 = vld [vmem:[%s11639_s2 + $0x7ec] sm:$0xf] }
  0xeb   :  { %2436 = vmatpush.bf16.msra.mxu2 %v5382_v35  ;;  %v2184_v26 = vpop.f32.mrf.mxu2  ;;  %v5062_v35 = vor.u32 %v7648_v22, %v5059_v23  ;;  %v6035_v18 = vld [vmem:[%s11639_s2 + $0x7f8] sm:$0xf0]  ;;  %v7792_v22 = vld [vmem:[%s11639_s2 + $0x4cc] sm:$0xf] }
  0xec   :  { %2423 = vmatpush.bf16.msra.mxu1 %v5254_v34  ;;  %v2185_v32 = vadd.f32 %v2184_v26, %v2172_v12  ;;  %v5443_v34 = vld [vmem:[%s11639_s2 + $0x358] sm:$0xf0]  ;;  %v7824_v25 = vld [vmem:[%s11639_s2 + $0x5cc] sm:$0xf]  ;;  %v6038_v26 = vor.u32 %v7892_v17, %v6035_v18 }
  0xed   :  { %2449 = vmatpush.bf16.msra.mxu3 %v5510_v41  ;;  %v7676_v41 = vld [vmem:[%s11639_s2 + $0x12c] sm:$0xf]  ;;  %v5446_v42 = vor.u32 %v7744_v33, %v5443_v34  ;;  %v2197_v44 = vpop.f32.mrf.mxu3  ;;  %v5635_v23 = vld [vmem:[%s11639_s2 + $0x4d8] sm:$0xf0] }
  0xee   :  { %2411 = vmatpush.bf16.msra.mxu0 %v5110_v50  ;;  %v2160_v36 = vpop.f32.mrf.mxu0  ;;  %v9687_v49 = vadd.f32 %v2197_v44, %v2185_v32  ;;  %v7740_v50 = vld [vmem:[%s11639_s2 + $0x32c] sm:$0xf]  ;;  %v5891_v30 = vld [vmem:[%s11639_s2 + $0x6d8] sm:$0xf0]  ;;  %v5638_v33 = vor.u32 %v7792_v22, %v5635_v23 }
  0xef   :  { %2437 = vmatpush.bf16.msra.mxu2 %v5366_v53  ;;  %v7856_v29 = vld [vmem:[%s11639_s2 + $0x6cc] sm:$0xf]  ;;  %v6019_v32 = vld [vmem:[%s11639_s2 + $0x7d8] sm:$0xf0] }
  0xf0   :  { %2424 = vmatpush.bf16.msra.mxu1 %v5238_v52  ;;  %v5427_v52 = vld [vmem:[%s11639_s2 + $0x338] sm:$0xf0]  ;;  %v2173_v53 = vpop.f32.mrf.mxu1  ;;  %v7888_v31 = vld [vmem:[%s11639_s2 + $0x7cc] sm:$0xf] }
  0xf1   :  { %2450 = vmatpush.bf16.msra.mxu3 %v5494_v57  ;;  %v5174_v57 = vor.u32 %v7676_v41, %v5171_v45  ;;  %v7788_v36 = vld [vmem:[%s11639_s2 + $0x4ac] sm:$0xf]  ;;  %v6022_v39 = vor.u32 %v7888_v31, %v6019_v32  ;;  %v5747_v40 = vld [vmem:[%s11639_s2 + $0x5b8] sm:$0xf0] }
  0xf2   :  { %2412 = vmatpush.bf16.msra.mxu0 %v5094_v0  ;;  %v5430_v0 = vor.u32 %v7740_v50, %v5427_v52  ;;  %v7852_v41 = vld [vmem:[%s11639_s2 + $0x6ac] sm:$0xf]  ;;  %v6003_v45 = vld [vmem:[%s11639_s2 + $0x7b8] sm:$0xf0] }
  0xf3   :  { %2438 = vmatpush.bf16.msra.mxu2 %v5350_v4  ;;  %v2186_v63 = vpop.f32.mrf.mxu2  ;;  %v7796_v4 = vld [vmem:[%s11639_s2 + $0x4ec] sm:$0xf]  ;;  %v5603_v52 = vld [vmem:[%s11639_s2 + $0x498] sm:$0xf0] }
  0xf4   :  { %2425 = vmatpush.bf16.msra.mxu1 %v5222_v3  ;;  %v5411_v3 = vld [vmem:[%s11639_s2 + $0x318] sm:$0xf0]  ;;  %v7884_v44 = vld [vmem:[%s11639_s2 + $0x7ac] sm:$0xf] }
  0xf5   :  { %2451 = vmatpush.bf16.msra.mxu3 %v5478_v10  ;;  %v7860_v10 = vld [vmem:[%s11639_s2 + $0x6ec] sm:$0xf]  ;;  %v5414_v19 = vor.u32 %v7736_v2, %v5411_v3  ;;  %v2199_v12 = vpop.f32.mrf.mxu3  ;;  %v5987_v56 = vld [vmem:[%s11639_s2 + $0x798] sm:$0xf0] }
  0xf6   :  { %2413 = vmatpush.bf16.msra.mxu0 %v5078_v11  ;;  %v5654_v11 = vor.u32 %v7796_v4, %v5651_v5  ;;  %v7784_v50 = vld [vmem:[%s11639_s2 + $0x48c] sm:$0xf]  ;;  %v5587_v63 = vld [vmem:[%s11639_s2 + $0x478] sm:$0xf0] }
  0xf7   :  { %2439 = vmatpush.bf16.msra.mxu2 %v5334_v21  ;;  %v5910_v21 = vor.u32 %v7860_v10, %v5907_v13  ;;  %v7848_v53 = vld [vmem:[%s11639_s2 + $0x68c] sm:$0xf]  ;;  %v5715_v3 = vld [vmem:[%s11639_s2 + $0x578] sm:$0xf0] }
  0xf8   :  { %2426 = vmatpush.bf16.msra.mxu1 %v5206_v20  ;;  %v5782_v20 = vor.u32 %v7828_v6, %v5779_v9  ;;  %v7880_v55 = vld [vmem:[%s11639_s2 + $0x78c] sm:$0xf]  ;;  %v5843_v5 = vld [vmem:[%s11639_s2 + $0x678] sm:$0xf0] }
  0xf9   :  { %2452 = vmatpush.bf16.msra.mxu3 %v5462_v27  ;;  %v5763_v27 = vld [vmem:[%s11639_s2 + $0x5d8] sm:$0xf0]  ;;  %v7780_v62 = vld [vmem:[%s11639_s2 + $0x46c] sm:$0xf]  ;;  %v5990_v2 = vor.u32 %v7880_v55, %v5987_v56 }
  0xfa   :  { %2414 = vmatpush.bf16.msra.mxu0 %v5062_v35  ;;  %v5766_v34 = vor.u32 %v7824_v25, %v5763_v27  ;;  %v5894_v35 = vor.u32 %v7856_v29, %v5891_v30  ;;  %v7844_v4 = vld [vmem:[%s11639_s2 + $0x66c] sm:$0xf]  ;;  %v5971_v9 = vld [vmem:[%s11639_s2 + $0x778] sm:$0xf0]  ;;  %v5590_v10 = vor.u32 %v7780_v62, %v5587_v63  ;;  %v7445_v62 = vld [vmem:[%s11638_s1 + $0x1ec] sm:$0xf0] }
  0xfb   :  { %2440 = vmatpush.bf16.msra.mxu2 %v5318_v38  ;;  %v7820_v38 = vld [vmem:[%s11639_s2 + $0x5ac] sm:$0xf]  ;;  %v5571_v17 = vld [vmem:[%s11639_s2 + $0x458] sm:$0xf0]  ;;  %v6409_v63 = vld [vmem:[%s11638_s1 + $0x2e0] sm:$0xf] }
  0xfc   :  { %2427 = vmatpush.bf16.msra.mxu1 %v5190_v37  ;;  %v5619_v37 = vld [vmem:[%s11639_s2 + $0x4b8] sm:$0xf0]  ;;  %v5750_v47 = vor.u32 %v7820_v38, %v5747_v40  ;;  %v7808_v18 = vld [vmem:[%s11639_s2 + $0x54c] sm:$0xf] }
  0xfd   :  { %2453 = vmatpush.bf16.msra.mxu3 %v5446_v42  ;;  %v5875_v42 = vld [vmem:[%s11639_s2 + $0x6b8] sm:$0xf0]  ;;  %v5622_v46 = vor.u32 %v7788_v36, %v5619_v37  ;;  %v7872_v25 = vld [vmem:[%s11639_s2 + $0x74c] sm:$0xf] }
  0xfe   :  { %2415 = vmatpush.bf16.msra.mxu0 %v5046_v54  ;;  %v5859_v54 = vld [vmem:[%s11639_s2 + $0x698] sm:$0xf0] }
  0xff   :  { %2441 = vmatpush.bf16.msra.mxu2 %v5302_v58  ;;  %v5862_v61 = vor.u32 %v7848_v53, %v5859_v54  ;;  %v5699_v12 = vld [vmem:[%s11639_s2 + $0x558] sm:$0xf0]  ;;  %v7864_v54 = vld [vmem:[%s11639_s2 + $0x70c] sm:$0xf] }
 0x100   :  { %2428 = vmatpush.bf16.msra.mxu1 %v5174_v57  ;;  %v5606_v57 = vor.u32 %v7784_v50, %v5603_v52  ;;  %v5702_v31 = vor.u32 %v7808_v18, %v5699_v12  ;;  %v5683_v38 = vld [vmem:[%s11639_s2 + $0x538] sm:$0xf0]  ;;  %v7800_v50 = vld [vmem:[%s11639_s2 + $0x50c] sm:$0xf]  ;;  %v6393_v18 = vld [vmem:[%s11638_s1 + $0x2c0] sm:$0xf] }
 0x101   :  { %2454 = vmatpush.bf16.msra.mxu3 %v5430_v0  ;;  %v7812_v0 = vld [vmem:[%s11639_s2 + $0x56c] sm:$0xf]  ;;  %v5811_v40 = vld [vmem:[%s11639_s2 + $0x638] sm:$0xf0]  ;;  %v7505_v12 = vld [vmem:[%s11638_s1 + $0x3cc] sm:$0xf0] }
 0x102   :  { %2416 = vmatpush.bf16.msra.mxu0 %v5030_v7  ;;  %v2210_v58 = vpop.f32.mrf.mxu0  ;;  %v7876_v7 = vld [vmem:[%s11639_s2 + $0x76c] sm:$0xf]  ;;  %v5718_v13 = vor.u32 %v7812_v0, %v5715_v3  ;;  %v5667_v52 = vld [vmem:[%s11639_s2 + $0x518] sm:$0xf0]  ;;  %v7477_v0 = vld [vmem:[%s11638_s1 + $0x2ec] sm:$0xf0] }
 0x103   :  { %2442 = vmatpush.bf16.msra.mxu2 %v5286_v16  ;;  %v7776_v16 = vld [vmem:[%s11639_s2 + $0x44c] sm:$0xf]  ;;  %v5795_v53 = vld [vmem:[%s11639_s2 + $0x618] sm:$0xf0]  ;;  %v6537_v3 = vld [vmem:[%s11638_s1 + $0x3e0] sm:$0xf] }
 0x104   :  { %2429 = vmatpush.bf16.msra.mxu1 %v5158_v15  ;;  %v2223_v1 = vpop.f32.mrf.mxu1  ;;  %v5846_v15 = vor.u32 %v7844_v4, %v5843_v5  ;;  %v5574_v27 = vor.u32 %v7776_v16, %v5571_v17  ;;  %v5923_v55 = vld [vmem:[%s11639_s2 + $0x718] sm:$0xf0]  ;;  %v7509_v4 = vld [vmem:[%s11638_s1 + $0x3ec] sm:$0xf0] }
 0x105   :  { %2455 = vmatpush.bf16.msra.mxu3 %v5414_v19  ;;  %2417 = vmatmul.bf16.vlgmr.msra.gmra.mxu0 %v8635_v59  ;;  %v7816_v59 = vld [vmem:[%s11639_s2 + $0x58c] sm:$0xf]  ;;  %v2224_v6 = vadd.f32 %v2223_v1, %v2210_v58  ;;  %v7413_v58 = vld [vmem:[%s11638_s1 + $0xec] sm:$0xf0]  ;;  %v5670_v1 = vor.u32 %v7800_v50, %v5667_v52  ;;  %v5926_v5 = vor.u32 %v7864_v54, %v5923_v55 }
 0x106   :  { %2461 = vmatpush.bf16.msrb.mxu0 %v5654_v11  ;;  %2443 = vmatmul.bf16.vlgmr.msra.gmra.mxu2 %v8620_v51  ;;  %v5878_v51 = vor.u32 %v7852_v41, %v5875_v42  ;;  %v5974_v11 = vor.u32 %v7876_v7, %v5971_v9  ;;  %v7868_v41 = vld [vmem:[%s11639_s2 + $0x72c] sm:$0xf]  ;;  %v5939_v42 = vld [vmem:[%s11639_s2 + $0x738] sm:$0xf0]  ;;  %v6410_v9 = vor.u32 %v7477_v0, %v6409_v63  ;;  %v7441_v17 = vld [vmem:[%s11638_s1 + $0x1cc] sm:$0xf0] }
 0x107   :  { %2487 = vmatpush.bf16.msrb.mxu2 %v5910_v21  ;;  %2430 = vmatmul.bf16.vlgmr.msra.gmra.mxu1 %v8671_v14  ;;  %v5731_v14 = vld [vmem:[%s11639_s2 + $0x598] sm:$0xf0]  ;;  %v6538_v16 = vor.u32 %v7509_v4, %v6537_v3  ;;  %v7986_v55 = vld [vmem:[%s11637_s0 + $0x10] sm:$0xff] }
 0x108   :  { %2474 = vmatpush.bf16.msrb.mxu1 %v5782_v20  ;;  %2456 = vmatmul.bf16.vlgmr.msra.gmra.mxu3 %v8655_v8  ;;  %v6006_v8 = vor.u32 %v7884_v44, %v6003_v45  ;;  %v5734_v60 = vor.u32 %v7816_v59, %v5731_v14  ;;  %v7840_v20 = vld [vmem:[%s11639_s2 + $0x64c] sm:$0xf]  ;;  %v5827_v21 = vld [vmem:[%s11639_s2 + $0x658] sm:$0xf0]  ;;  %v5942_v14 = vor.u32 %v7868_v41, %v5939_v42  ;;  %v6489_v41 = vld [vmem:[%s11638_s1 + $0x380] sm:$0xf] }
 0x109   :  { %2500 = vmatpush.bf16.msrb.mxu3 %v6038_v26  ;;  %v2236_v19 = vpop.f32.mrf.mxu2  ;;  %v5955_v26 = vld [vmem:[%s11639_s2 + $0x758] sm:$0xf0]  ;;  %v5830_v32 = vor.u32 %v7840_v20, %v5827_v21  ;;  %v7768_v45 = vld [vmem:[%s11639_s2 + $0x40c] sm:$0xf]  ;;  %v7497_v42 = vld [vmem:[%s11638_s1 + $0x38c] sm:$0xf0] }
 0x10a   :  { %2462 = vmatpush.bf16.msrb.mxu0 %v5638_v33  ;;  %v2237_v22 = vadd.f32 %v2236_v19, %v2224_v6  ;;  %v2212_v30 = vpop.f32.mrf.mxu0  ;;  %v7772_v33 = vld [vmem:[%s11639_s2 + $0x42c] sm:$0xf]  ;;  %v5958_v37 = vor.u32 %v7872_v25, %v5955_v26  ;;  %v7473_v19 = vld [vmem:[%s11638_s1 + $0x2cc] sm:$0xf0]  ;;  %v6249_v26 = vld [vmem:[%s11638_s1 + $0x1a0] sm:$0xf] }
 0x10b   :  { %2488 = vmatpush.bf16.msrb.mxu2 %v5894_v35  ;;  %v2249_v23 = vpop.f32.mrf.mxu3  ;;  %v7804_v35 = vld [vmem:[%s11639_s2 + $0x52c] sm:$0xf]  ;;  %v7405_v25 = vld [vmem:[%s11638_s1 + $0xac] sm:$0xf0]  ;;  %v155_v0 = vperm.slane %v7986_v55, 6 }
 0x10c   :  { %2475 = vmatpush.bf16.msrb.mxu1 %v5766_v34  ;;  %v9867_v29 = vadd.f32 %v2249_v23, %v2237_v22  ;;  %v5555_v34 = vld [vmem:[%s11639_s2 + $0x438] sm:$0xf0]  ;;  %v2225_v36 = vpop.f32.mrf.mxu1  ;;  %v7832_v59 = vld [vmem:[%s11639_s2 + $0x60c] sm:$0xf]  ;;  %v6394_v22 = vor.u32 %v7473_v19, %v6393_v18  ;;  %v6121_v23 = vld [vmem:[%s11638_s1 + $0xa0] sm:$0xf] }
 0x10d   :  { %2501 = vmatpush.bf16.msrb.mxu3 %v6022_v39  ;;  %v7836_v39 = vld [vmem:[%s11639_s2 + $0x62c] sm:$0xf]  ;;  %v5558_v44 = vor.u32 %v7772_v33, %v5555_v34  ;;  %v7437_v30 = vld [vmem:[%s11638_s1 + $0x1ac] sm:$0xf0]  ;;  %v6122_v34 = vor.u32 %v7405_v25, %v6121_v23  ;;  %v6457_v19 = vld [vmem:[%s11638_s1 + $0x340] sm:$0xf] }
 0x10e   :  { %2463 = vmatpush.bf16.msrb.mxu0 %v5622_v46  ;;  %v5539_v46 = vld [vmem:[%s11639_s2 + $0x418] sm:$0xf0]  ;;  %v7501_v33 = vld [vmem:[%s11638_s1 + $0x3ac] sm:$0xf0] }
 0x10f   :  { %2489 = vmatpush.bf16.msrb.mxu2 %v5878_v51  ;;  %v5814_v51 = vor.u32 %v7836_v39, %v5811_v40  ;;  %v6361_v39 = vld [vmem:[%s11638_s1 + $0x280] sm:$0xf]  ;;  %v7465_v40 = vld [vmem:[%s11638_s1 + $0x28c] sm:$0xf0] }
 0x110   :  { %2476 = vmatpush.bf16.msrb.mxu1 %v5750_v47  ;;  %v5686_v47 = vor.u32 %v7804_v35, %v5683_v38  ;;  %v6250_v35 = vor.u32 %v7437_v30, %v6249_v26  ;;  %v7393_v4 = vld [vmem:[%s11638_s1 + $0x4c] sm:$0xf0]  ;;  %v187_v26 = vpack.c.bf16 %v155_v0, %v155_v0 }
 0x111   :  { %2502 = vmatpush.bf16.msrb.mxu3 %v6006_v8  ;;  %v2238_v8 = vpop.f32.mrf.mxu2 }
 0x112   :  { %2464 = vmatpush.bf16.msrb.mxu0 %v5606_v57  ;;  %v6153_v57 = vld [vmem:[%s11638_s1 + $0xe0] sm:$0xf] }
 0x113   :  { %2490 = vmatpush.bf16.msrb.mxu2 %v5862_v61  ;;  %v2251_v56 = vpop.f32.mrf.mxu3  ;;  %v5542_v61 = vor.u32 %v7768_v45, %v5539_v46  ;;  %v6154_v6 = vor.u32 %v7413_v58, %v6153_v57  ;;  %v7397_v46 = vld [vmem:[%s11638_s1 + $0x6c] sm:$0xf0]  ;;  %v6345_v8 = vld [vmem:[%s11638_s1 + $0x260] sm:$0xf]  ;;  %v6490_v57 = vor.u32 %v7497_v42, %v6489_v41 }
 0x114   :  { %2477 = vmatpush.bf16.msrb.mxu1 %v5734_v60  ;;  %v6281_v60 = vld [vmem:[%s11638_s1 + $0x1e0] sm:$0xf]  ;;  %v152_v56 = vperm.slane %v7986_v55, 0  ;;  %v7485_v41 = vld [vmem:[%s11638_s1 + $0x32c] sm:$0xf0] }
 0x115   :  { %2503 = vmatpush.bf16.msrb.mxu3 %v5990_v2  ;;  %v5798_v2 = vor.u32 %v7832_v59, %v5795_v53  ;;  %v6282_v7 = vor.u32 %v7445_v62, %v6281_v60  ;;  %v6362_v59 = vor.u32 %v7465_v40, %v6361_v39  ;;  %v6473_v58 = vld [vmem:[%s11638_s1 + $0x360] sm:$0xf]  ;;  %v7493_v60 = vld [vmem:[%s11638_s1 + $0x36c] sm:$0xf0]  ;;  %v153_v62 = vperm.slane %v7986_v55, 2 }
 0x116   :  { %2465 = vmatpush.bf16.msrb.mxu0 %v5590_v10  ;;  %v6137_v10 = vld [vmem:[%s11638_s1 + $0xc0] sm:$0xf]  ;;  %v7453_v39 = vld [vmem:[%s11638_s1 + $0x22c] sm:$0xf0] }
 0x117   :  { %2491 = vmatpush.bf16.msrb.mxu2 %v5846_v15  ;;  %v6265_v15 = vld [vmem:[%s11638_s1 + $0x1c0] sm:$0xf]  ;;  %v185_v23 = vpack.c.bf16 %v153_v62, %v153_v62 }
 0x118   :  { %2478 = vmatpush.bf16.msrb.mxu1 %v5718_v13  ;;  %v7409_v13 = vld [vmem:[%s11638_s1 + $0xcc] sm:$0xf0]  ;;  %v6266_v21 = vor.u32 %v7441_v17, %v6265_v15  ;;  %v7987_v15 = vld [vmem:[%s11637_s0] sm:$0xff]  ;;  %v184_v17 = vpack.c.bf16 %v152_v56, %v152_v56 }
 0x119   :  { %2504 = vmatpush.bf16.msrb.mxu3 %v5974_v11  ;;  %v6521_v11 = vld [vmem:[%s11638_s1 + $0x3c0] sm:$0xf]  ;;  %v6138_v20 = vor.u32 %v7409_v13, %v6137_v10  ;;  %v7457_v10 = vld [vmem:[%s11638_s1 + $0x24c] sm:$0xf0]  ;;  %v146_v18 = vperm.slane %v7987_v15, 4  ;;  %v147_v25 = vperm.slane %v7987_v15, 6 }
 0x11a   :  { %2466 = vmatpush.bf16.msrb.mxu0 %v5574_v27  ;;  %v6522_v27 = vor.u32 %v7505_v12, %v6521_v11  ;;  %v7489_v11 = vld [vmem:[%s11638_s1 + $0x34c] sm:$0xf0]  ;;  %v6441_v40 = vld [vmem:[%s11638_s1 + $0x320] sm:$0xf] }
 0x11b   :  { %2492 = vmatpush.bf16.msrb.mxu2 %v5830_v32  ;;  %v7469_v32 = vld [vmem:[%s11638_s1 + $0x2ac] sm:$0xf0]  ;;  %v178_v42 = vpack.c.bf16 %v146_v18, %v146_v18  ;;  %v6442_v56 = vor.u32 %v7485_v41, %v6441_v40 }
 0x11c   :  { %2479 = vmatpush.bf16.msrb.mxu1 %v5702_v31  ;;  %v6377_v31 = vld [vmem:[%s11638_s1 + $0x2a0] sm:$0xf] }
 0x11d   :  { %2505 = vmatpush.bf16.msrb.mxu3 %v5958_v37  ;;  %v6378_v36 = vor.u32 %v7469_v32, %v6377_v31  ;;  %v6233_v37 = vld [vmem:[%s11638_s1 + $0x180] sm:$0xf]  ;;  %v2531_v0 = vunpack.c.l.b16 %v178_v42 }
 0x11e   :  { %2467 = vmatpush.bf16.msrb.mxu0 %v5558_v44  ;;  %v6089_v44 = vld [vmem:[%s11638_s1 + $0x60] sm:$0xf] }
 0x11f   :  { %2493 = vmatpush.bf16.msrb.mxu2 %v5814_v51  ;;  %v7429_v51 = vld [vmem:[%s11638_s1 + $0x16c] sm:$0xf0]  ;;  %v6057_v32 = vld [vmem:[%s11638_s1 + $0x20] sm:$0xf] }
 0x120   :  { %2480 = vmatpush.bf16.msrb.mxu1 %v5686_v47  ;;  %v6217_v47 = vld [vmem:[%s11638_s1 + $0x160] sm:$0xf] }
 0x121   :  { %2506 = vmatpush.bf16.msrb.mxu3 %v5942_v14  ;;  %v7461_v14 = vld [vmem:[%s11638_s1 + $0x26c] sm:$0xf0] }
 0x122   :  { %2468 = vmatpush.bf16.msrb.mxu0 %v5542_v61  ;;  %v2262_v50 = vpop.f32.mrf.mxu0  ;;  %v154_v61 = vperm.slane %v7986_v55, 4  ;;  %v6346_v3 = vor.u32 %v7461_v14, %v6345_v8  ;;  %v6169_v14 = vld [vmem:[%s11638_s1 + $0x100] sm:$0xf] }
 0x123   :  { %2494 = vmatpush.bf16.msrb.mxu2 %v5798_v2  ;;  %v2263_v53 = vadd.f32 %v2262_v50, %v9867_v29  ;;  %v6073_v29 = vld [vmem:[%s11638_s1 + $0x40] sm:$0xf]  ;;  %v6218_v2 = vor.u32 %v7429_v51, %v6217_v47  ;;  %v7385_v51 = vld [vmem:[%s11638_s1 + $0xc] sm:$0xf0]  ;;  %v179_v50 = vpack.c.bf16 %v147_v25, %v147_v25 }
 0x124   :  { %2481 = vmatpush.bf16.msrb.mxu1 %v5670_v1  ;;  %v2275_v54 = vpop.f32.mrf.mxu1  ;;  %v6090_v1 = vor.u32 %v7397_v46, %v6089_v44  ;;  %v2538_v46 = vunpack.c.l.b16 %v185_v23  ;;  %v6041_v47 = vld [vmem:[%s11638_s1] sm:$0xf] }
 0x125   :  { %2507 = vmatpush.bf16.msrb.mxu3 %v5926_v5  ;;  %2469 = vmatmul.bf16.vlgmr.msrb.gmra.mxu0 %v8777_v28  ;;  %v6105_v28 = vld [vmem:[%s11638_s1 + $0x80] sm:$0xf]  ;;  %v2276_v63 = vadd.f32 %v2275_v54, %v2263_v53  ;;  %v7417_v53 = vld [vmem:[%s11638_s1 + $0x10c] sm:$0xf0] }
 0x126   :  { %3857 = vmatpush.bf16.msra.mxu0 %v6154_v6  ;;  %2495 = vmatmul.bf16.vlgmr.msrb.gmra.mxu2 %v8769_v24  ;;  %v6505_v24 = vld [vmem:[%s11638_s1 + $0x3a0] sm:$0xf]  ;;  %v7425_v6 = vld [vmem:[%s11638_s1 + $0x14c] sm:$0xf0] }
 0x127   :  { %3883 = vmatpush.bf16.msra.mxu2 %v6410_v9  ;;  %2482 = vmatmul.bf16.vlgmr.msrb.gmra.mxu1 %v8809_v48  ;;  %v6506_v38 = vor.u32 %v7501_v33, %v6505_v24  ;;  %v7433_v48 = vld [vmem:[%s11638_s1 + $0x18c] sm:$0xf0]  ;;  %v6201_v5 = vld [vmem:[%s11638_s1 + $0x140] sm:$0xf] }
 0x128   :  { %3870 = vmatpush.bf16.msra.mxu1 %v6282_v7  ;;  %2508 = vmatmul.bf16.vlgmr.msrb.gmra.mxu3 %v8800_v43  ;;  %v7401_v43 = vld [vmem:[%s11638_s1 + $0x8c] sm:$0xf0]  ;;  %v6234_v52 = vor.u32 %v7433_v48, %v6233_v37  ;;  %v6474_v7 = vor.u32 %v7493_v60, %v6473_v58  ;;  %v6329_v9 = vld [vmem:[%s11638_s1 + $0x240] sm:$0xf]  ;;  %v6202_v30 = vor.u32 %v7425_v6, %v6201_v5 }
 0x129   :  { %3896 = vmatpush.bf16.msra.mxu3 %v6538_v16  ;;  %v6106_v45 = vor.u32 %v7401_v43, %v6105_v28  ;;  %v2288_v13 = vpop.f32.mrf.mxu2  ;;  %v144_v16 = vperm.slane %v7987_v15, 0  ;;  %v7389_v24 = vld [vmem:[%s11638_s1 + $0x2c] sm:$0xf0]  ;;  %v6313_v43 = vld [vmem:[%s11638_s1 + $0x220] sm:$0xf] }
 0x12a   :  { %3858 = vmatpush.bf16.msra.mxu0 %v6138_v20  ;;  %v2289_v12 = vadd.f32 %v2288_v13, %v2276_v63  ;;  %v2264_v33 = vpop.f32.mrf.mxu0  ;;  %v7421_v28 = vld [vmem:[%s11638_s1 + $0x12c] sm:$0xf0]  ;;  %v6297_v54 = vld [vmem:[%s11638_s1 + $0x200] sm:$0xf]  ;;  %v6314_v55 = vor.u32 %v7453_v39, %v6313_v43 }
 0x12b   :  { %3884 = vmatpush.bf16.msra.mxu2 %v6394_v22  ;;  %v2301_v20 = vpop.f32.mrf.mxu3  ;;  %v145_v22 = vperm.slane %v7987_v15, 2  ;;  %v176_v37 = vpack.c.bf16 %v144_v16, %v144_v16  ;;  %v6425_v58 = vld [vmem:[%s11638_s1 + $0x300] sm:$0xf]  ;;  %v7481_v63 = vld [vmem:[%s11638_s1 + $0x30c] sm:$0xf0] }
 0x12c   :  { %3871 = vmatpush.bf16.msra.mxu1 %v6266_v21  ;;  %v186_v21 = vpack.c.bf16 %v154_v61, %v154_v61  ;;  %v10072_v31 = vadd.f32 %v2301_v20, %v2289_v12  ;;  %v2277_v48 = vpop.f32.mrf.mxu1  ;;  %v7541_v5 = vld [vmem:[%s11638_s1 + $0x4ec] sm:$0xf0]  ;;  %v6793_v6 = vld [vmem:[%s11638_s1 + $0x5e0] sm:$0xf]  ;;  %v6426_v20 = vor.u32 %v7481_v63, %v6425_v58 }
 0x12d   :  { %3897 = vmatpush.bf16.msra.mxu3 %v6522_v27  ;;  %v6074_v27 = vor.u32 %v7393_v4, %v6073_v29  ;;  %v2529_v60 = vunpack.c.l.b16 %v176_v37  ;;  %v6665_v29 = vld [vmem:[%s11638_s1 + $0x4e0] sm:$0xf]  ;;  %v7573_v13 = vld [vmem:[%s11638_s1 + $0x5ec] sm:$0xf0] }
 0x12e   :  { %3859 = vmatpush.bf16.msra.mxu0 %v6122_v34  ;;  %v6330_v34 = vor.u32 %v7457_v10, %v6329_v9  ;;  %v2539_v44 = vunpack.c.l.b16 %v186_v21  ;;  %v6042_v10 = vor.u32 %v7385_v51, %v6041_v47  ;;  %v6921_v15 = vld [vmem:[%s11638_s1 + $0x6e0] sm:$0xf]  ;;  %v7605_v16 = vld [vmem:[%s11638_s1 + $0x6ec] sm:$0xf0]  ;;  %v6666_v21 = vor.u32 %v7541_v5, %v6665_v29 }
 0x12f   :  { %3885 = vmatpush.bf16.msra.mxu2 %v6378_v36  ;;  %v6185_v36 = vld [vmem:[%s11638_s1 + $0x120] sm:$0xf]  ;;  %v6794_v25 = vor.u32 %v7573_v13, %v6793_v6  ;;  %v7633_v48 = vld [vmem:[%s11638_s1 + $0x7cc] sm:$0xf0]  ;;  %v7988_v13 = vld [vmem:[%s11637_s0 + $0x18] sm:$0xff] }
 0x130   :  { %3872 = vmatpush.bf16.msra.mxu1 %v6250_v35  ;;  %v6458_v35 = vor.u32 %v7489_v11, %v6457_v19  ;;  %v6186_v8 = vor.u32 %v7421_v28, %v6185_v36  ;;  %v7049_v19 = vld [vmem:[%s11638_s1 + $0x7e0] sm:$0xf]  ;;  %v7637_v11 = vld [vmem:[%s11638_s1 + $0x7ec] sm:$0xf0] }
 0x131   :  { %3898 = vmatpush.bf16.msra.mxu3 %v6506_v38  ;;  %v2537_v38 = vunpack.c.l.b16 %v184_v17  ;;  %v2290_v62 = vpop.f32.mrf.mxu2  ;;  %v6170_v17 = vor.u32 %v7417_v53, %v6169_v14  ;;  %v7050_v33 = vor.u32 %v7637_v11, %v7049_v19  ;;  %v6905_v36 = vld [vmem:[%s11638_s1 + $0x6c0] sm:$0xf]  ;;  %v7601_v28 = vld [vmem:[%s11638_s1 + $0x6cc] sm:$0xf0]  ;;  %v158_v11 = vperm.slane %v7988_v13, 4 }
 0x132   :  { %3860 = vmatpush.bf16.msra.mxu0 %v6106_v45  ;;  %v177_v45 = vpack.c.bf16 %v145_v22, %v145_v22  ;;  %v6906_v42 = vor.u32 %v7601_v28, %v6905_v36  ;;  %v7565_v51 = vld [vmem:[%s11638_s1 + $0x5ac] sm:$0xf0]  ;;  %v7001_v63 = vld [vmem:[%s11638_s1 + $0x780] sm:$0xf]  ;;  %v7989_v36 = vld [vmem:[%s11637_s0 + $0x8] sm:$0xff] }
 0x133   :  { %3886 = vmatpush.bf16.msra.mxu2 %v6362_v59  ;;  %v6058_v59 = vor.u32 %v7389_v24, %v6057_v32  ;;  %v2545_v61 = vrot.slane %v2537_v38, 7  ;;  %v2303_v4 = vpop.f32.mrf.mxu3  ;;  %v7537_v32 = vld [vmem:[%s11638_s1 + $0x4cc] sm:$0xf0]  ;;  %v6777_v24 = vld [vmem:[%s11638_s1 + $0x5c0] sm:$0xf]  ;;  %v148_v28 = vperm.slane %v7989_v36, 0 }
 0x134   :  { %3873 = vmatpush.bf16.msra.mxu1 %v6234_v52  ;;  %v2540_v52 = vunpack.c.l.b16 %v187_v26  ;;  %v6922_v26 = vor.u32 %v7605_v16, %v6921_v15  ;;  %v7033_v38 = vld [vmem:[%s11638_s1 + $0x7c0] sm:$0xf]  ;;  %v7593_v62 = vld [vmem:[%s11638_s1 + $0x68c] sm:$0xf0]  ;;  %v156_v15 = vperm.slane %v7988_v13, 0 }
 0x135   :  { %3899 = vmatpush.bf16.msra.mxu3 %v6490_v57  ;;  %v7449_v57 = vld [vmem:[%s11638_s1 + $0x20c] sm:$0xf0]  ;;  %v2546_v12 = vsel %vm785_vm0, %v2545_v61, %v2529_v60  ;;  %v7034_v47 = vor.u32 %v7633_v48, %v7033_v38  ;;  %v6873_v61 = vld [vmem:[%s11638_s1 + $0x680] sm:$0xf]  ;;  %v150_v48 = vperm.slane %v7989_v36, 4 }
 0x136   :  { %3861 = vmatpush.bf16.msra.mxu0 %v6090_v1  ;;  %v2549_v1 = vrot.slane %v2539_v44, 7  ;;  %v2551_v9 = vrot.slane %v2540_v52, 7  ;;  %v6298_v18 = vor.u32 %v7449_v57, %v6297_v54  ;;  %v6633_v44 = vld [vmem:[%s11638_s1 + $0x4a0] sm:$0xf]  ;;  %v7597_v52 = vld [vmem:[%s11638_s1 + $0x6ac] sm:$0xf0]  ;;  %v188_v38 = vpack.c.bf16 %v156_v15, %v156_v15 }
 0x137   :  { %3887 = vmatpush.bf16.msra.mxu2 %v6346_v3  ;;  %v2547_v3 = vrot.slane %v2538_v46, 7  ;;  %v6761_v46 = vld [vmem:[%s11638_s1 + $0x5a0] sm:$0xf]  ;;  %v7561_v60 = vld [vmem:[%s11638_s1 + $0x58c] sm:$0xf0] }
 0x138   :  { %3874 = vmatpush.bf16.msra.mxu1 %v6218_v2  ;;  %v2530_v2 = vunpack.c.l.b16 %v177_v45  ;;  %v2550_v22 = vsel %vm785_vm0, %v2549_v1, %v2531_v0  ;;  %v7533_v45 = vld [vmem:[%s11638_s1 + $0x4ac] sm:$0xf0]  ;;  %v6762_v53 = vor.u32 %v7565_v51, %v6761_v46  ;;  %v6745_v57 = vld [vmem:[%s11638_s1 + $0x580] sm:$0xf] }
 0x139   :  { %3900 = vmatpush.bf16.msra.mxu3 %v6474_v7  ;;  %v2532_v7 = vunpack.c.l.b16 %v179_v50  ;;  %v10170_v43 = vpack.c.b16 %v2550_v22, %v2550_v22  ;;  %v6889_v50 = vld [vmem:[%s11638_s1 + $0x6a0] sm:$0xf]  ;;  %v6634_v14 = vor.u32 %v7533_v45, %v6633_v44  ;;  %v7625_v29 = vld [vmem:[%s11638_s1 + $0x78c] sm:$0xf0]  ;;  %v6746_v6 = vor.u32 %v7561_v60, %v6745_v57 }
 0x13a   :  { %3862 = vmatpush.bf16.msra.mxu0 %v6074_v27  ;;  %v2548_v23 = vsel %vm785_vm0, %v2547_v3, %v2530_v2  ;;  %v6890_v54 = vor.u32 %v7597_v52, %v6889_v50  ;;  %v6601_v0 = vld [vmem:[%s11638_s1 + $0x460] sm:$0xf]  ;;  %v7525_v2 = vld [vmem:[%s11638_s1 + $0x46c] sm:$0xf0]  ;;  %v159_v22 = vperm.slane %v7988_v13, 6  ;;  %v190_v44 = vpack.c.bf16 %v158_v11, %v158_v11 }
 0x13b   :  { %3888 = vmatpush.bf16.msra.mxu2 %v6330_v34  ;;  %v2552_v27 = vsel %vm785_vm0, %v2551_v9, %v2532_v7  ;;  %v10159_v34 = vpack.c.b16 %v2546_v12, %v2546_v12  ;;  %v10172_v37 = vpack.c.b16 %v2548_v23, %v2548_v23  ;;  %v6729_v3 = vld [vmem:[%s11638_s1 + $0x560] sm:$0xf]  ;;  %v7557_v4 = vld [vmem:[%s11638_s1 + $0x56c] sm:$0xf0]  ;;  %v6874_v7 = vor.u32 %v7593_v62, %v6873_v61 }
 0x13c   :  { %3875 = vmatpush.bf16.msra.mxu1 %v6202_v30  ;;  %v6649_v30 = vld [vmem:[%s11638_s1 + $0x4c0] sm:$0xf]  ;;  %v10180_v39 = vpack.c.b16 %v2552_v27, %v2552_v27  ;;  %v7621_v19 = vld [vmem:[%s11638_s1 + $0x76c] sm:$0xf0]  ;;  %v6602_v23 = vor.u32 %v7525_v2, %v6601_v0  ;;  %v149_v45 = vperm.slane %v7989_v36, 2  ;;  %v151_v50 = vperm.slane %v7989_v36, 6 }
 0x13d   :  { %3901 = vmatpush.bf16.msra.mxu3 %v6458_v35  ;;  %v7569_v35 = vld [vmem:[%s11638_s1 + $0x5cc] sm:$0xf0]  ;;  %v6650_v40 = vor.u32 %v7537_v32, %v6649_v30  ;;  %v6857_v9 = vld [vmem:[%s11638_s1 + $0x660] sm:$0xf]  ;;  %v191_v52 = vpack.c.bf16 %v159_v22, %v159_v22  ;;  %v180_v62 = vpack.c.bf16 %v148_v28, %v148_v28  ;;  %v6155_v36 = vld [vmem:[%s11638_s1 + $0xf0] sm:$0xf0] }
 0x13e   :  { %3863 = vmatpush.bf16.msra.mxu0 %v6058_v59  ;;  %v6778_v41 = vor.u32 %v7569_v35, %v6777_v24  ;;  %v7017_v59 = vld [vmem:[%s11638_s1 + $0x7a0] sm:$0xf]  ;;  %v7521_v27 = vld [vmem:[%s11638_s1 + $0x44c] sm:$0xf0]  ;;  %v7443_v28 = vld [vmem:[%s11638_s1 + $0x1e4] sm:$0xf] }
 0x13f   :  { %3889 = vmatpush.bf16.msra.mxu2 %v6314_v55  ;;  %v6617_v55 = vld [vmem:[%s11638_s1 + $0x480] sm:$0xf]  ;;  %v7553_v32 = vld [vmem:[%s11638_s1 + $0x54c] sm:$0xf0]  ;;  %v2533_v22 = vunpack.c.l.b16 %v180_v62 }
 0x140   :  { %3876 = vmatpush.bf16.msra.mxu1 %v6186_v8  ;;  %v7629_v8 = vld [vmem:[%s11638_s1 + $0x7ac] sm:$0xf0]  ;;  %v6713_v30 = vld [vmem:[%s11638_s1 + $0x540] sm:$0xf] }
 0x141   :  { %3902 = vmatpush.bf16.msra.mxu3 %v6442_v56  ;;  %v7529_v56 = vld [vmem:[%s11638_s1 + $0x48c] sm:$0xf0]  ;;  %v7018_v58 = vor.u32 %v7629_v8, %v7017_v59  ;;  %v6714_v8 = vor.u32 %v7553_v32, %v6713_v30  ;;  %v6825_v61 = vld [vmem:[%s11638_s1 + $0x620] sm:$0xf] }
 0x142   :  { %3864 = vmatpush.bf16.msra.mxu0 %v6042_v10  ;;  %v6618_v1 = vor.u32 %v7529_v56, %v6617_v55  ;;  %v2314_v5 = vpop.f32.mrf.mxu0  ;;  %v7589_v10 = vld [vmem:[%s11638_s1 + $0x66c] sm:$0xf0] }
 0x143   :  { %3890 = vmatpush.bf16.msra.mxu2 %v6298_v18  ;;  %v6985_v18 = vld [vmem:[%s11638_s1 + $0x760] sm:$0xf]  ;;  %v7585_v35 = vld [vmem:[%s11638_s1 + $0x64c] sm:$0xf0] }
 0x144   :  { %3877 = vmatpush.bf16.msra.mxu1 %v6170_v17  ;;  %v2327_v16 = vpop.f32.mrf.mxu1  ;;  %v7002_v17 = vor.u32 %v7625_v29, %v7001_v63  ;;  %v6986_v24 = vor.u32 %v7621_v19, %v6985_v18  ;;  %v7549_v60 = vld [vmem:[%s11638_s1 + $0x52c] sm:$0xf0]  ;;  %v2541_v63 = vunpack.c.l.b16 %v188_v38  ;;  %v6809_v19 = vld [vmem:[%s11638_s1 + $0x600] sm:$0xf] }
 0x145   :  { %3903 = vmatpush.bf16.msra.mxu3 %v6426_v20  ;;  %3865 = vmatmul.bf16.vlgmr.msra.gmra.mxu0 %v10159_v34  ;;  %v2328_v12 = vadd.f32 %v2327_v16, %v2314_v5  ;;  %v157_v20 = vperm.slane %v7988_v13, 2  ;;  %v7581_v0 = vld [vmem:[%s11638_s1 + $0x62c] sm:$0xf0]  ;;  %v181_v5 = vpack.c.bf16 %v149_v45, %v149_v45  ;;  %v2544_v13 = vunpack.c.l.b16 %v191_v52 }
 0x146   :  { %3909 = vmatpush.bf16.msrb.mxu0 %v6666_v21  ;;  %3891 = vmatmul.bf16.vlgmr.msra.gmra.mxu2 %v10170_v43  ;;  %v6585_v21 = vld [vmem:[%s11638_s1 + $0x440] sm:$0xf]  ;;  %v7613_v2 = vld [vmem:[%s11638_s1 + $0x72c] sm:$0xf0]  ;;  %v6826_v11 = vor.u32 %v7581_v0, %v6825_v61  ;;  %v6395_v0 = vld [vmem:[%s11638_s1 + $0x2d0] sm:$0xf0] }
 0x147   :  { %3935 = vmatpush.bf16.msrb.mxu2 %v6922_v26  ;;  %3878 = vmatmul.bf16.vlgmr.msra.gmra.mxu1 %v10172_v37  ;;  %v6858_v26 = vor.u32 %v7589_v10, %v6857_v9  ;;  %v189_v46 = vpack.c.bf16 %v157_v20, %v157_v20  ;;  %v6586_v59 = vor.u32 %v7521_v27, %v6585_v21  ;;  %v7513_v9 = vld [vmem:[%s11638_s1 + $0x40c] sm:$0xf0]  ;;  %v6937_v21 = vld [vmem:[%s11638_s1 + $0x700] sm:$0xf]  ;;  %v7411_v27 = vld [vmem:[%s11638_s1 + $0xe4] sm:$0xf] }
 0x148   :  { %3922 = vmatpush.bf16.msrb.mxu1 %v6794_v25  ;;  %3904 = vmatmul.bf16.vlgmr.msra.gmra.mxu3 %v10180_v39  ;;  %v6730_v25 = vor.u32 %v7557_v4, %v6729_v3  ;;  %v182_v3 = vpack.c.bf16 %v150_v48, %v150_v48  ;;  %v2543_v4 = vunpack.c.l.b16 %v190_v44  ;;  %v183_v10 = vpack.c.bf16 %v151_v50, %v151_v50  ;;  %v7545_v18 = vld [vmem:[%s11638_s1 + $0x50c] sm:$0xf0]  ;;  %v6411_v44 = vld [vmem:[%s11638_s1 + $0x2f0] sm:$0xf0] }
 0x149   :  { %3948 = vmatpush.bf16.msrb.mxu3 %v7050_v33  ;;  %v6841_v33 = vld [vmem:[%s11638_s1 + $0x640] sm:$0xf]  ;;  %v7577_v20 = vld [vmem:[%s11638_s1 + $0x60c] sm:$0xf0]  ;;  %v2559_v48 = vrot.slane %v2544_v13, 7 }
 0x14a   :  { %3910 = vmatpush.bf16.msrb.mxu0 %v6650_v40  ;;  %v2340_v40 = vpop.f32.mrf.mxu2  ;;  %v2316_v55 = vpop.f32.mrf.mxu0  ;;  %v6842_v56 = vor.u32 %v7585_v35, %v6841_v33  ;;  %v2535_v30 = vunpack.c.l.b16 %v182_v3  ;;  %v2557_v32 = vrot.slane %v2543_v4, 7  ;;  %v2536_v38 = vunpack.c.l.b16 %v183_v10  ;;  %v7503_v3 = vld [vmem:[%s11638_s1 + $0x3c4] sm:$0xf]  ;;  %v6523_v4 = vld [vmem:[%s11638_s1 + $0x3d0] sm:$0xf0] }
 0x14b   :  { %3936 = vmatpush.bf16.msrb.mxu2 %v6906_v42  ;;  %v7617_v42 = vld [vmem:[%s11638_s1 + $0x74c] sm:$0xf0]  ;;  %v2353_v51 = vpop.f32.mrf.mxu3  ;;  %v7403_v10 = vld [vmem:[%s11638_s1 + $0xa4] sm:$0xf]  ;;  %v6123_v13 = vld [vmem:[%s11638_s1 + $0xb0] sm:$0xf0] }
 0x14c   :  { %3923 = vmatpush.bf16.msrb.mxu1 %v6778_v41  ;;  %v6969_v41 = vld [vmem:[%s11638_s1 + $0x740] sm:$0xf]  ;;  %v2329_v29 = vpop.f32.mrf.mxu1 }
 0x14d   :  { %3949 = vmatpush.bf16.msrb.mxu3 %v7034_v47  ;;  %v2341_v47 = vadd.f32 %v2340_v40, %v2328_v12  ;;  %v6970_v57 = vor.u32 %v7617_v42, %v6969_v41  ;;  %v6283_v41 = vld [vmem:[%s11638_s1 + $0x1f0] sm:$0xf0]  ;;  %v7475_v42 = vld [vmem:[%s11638_s1 + $0x2e4] sm:$0xf] }
 0x14e   :  { %3911 = vmatpush.bf16.msrb.mxu0 %v6634_v14  ;;  %v6569_v14 = vld [vmem:[%s11638_s1 + $0x420] sm:$0xf]  ;;  %v6414_v55 = vor.u32 %v7475_v42, %v6411_v44  ;;  %v7471_v29 = vld [vmem:[%s11638_s1 + $0x2c4] sm:$0xf] }
 0x14f   :  { %3937 = vmatpush.bf16.msrb.mxu2 %v6890_v54  ;;  %v10294_v54 = vadd.f32 %v2353_v51, %v2341_v47  ;;  %v7507_v47 = vld [vmem:[%s11638_s1 + $0x3e4] sm:$0xf]  ;;  %v6539_v51 = vld [vmem:[%s11638_s1 + $0x3f0] sm:$0xf0] }
 0x150   :  { %3924 = vmatpush.bf16.msrb.mxu1 %v6762_v53  ;;  %v7517_v53 = vld [vmem:[%s11638_s1 + $0x42c] sm:$0xf0]  ;;  %v6542_v61 = vor.u32 %v7507_v47, %v6539_v51  ;;  %v7427_v42 = vld [vmem:[%s11638_s1 + $0x164] sm:$0xf]  ;;  %v6219_v47 = vld [vmem:[%s11638_s1 + $0x170] sm:$0xf0] }
 0x151   :  { %3950 = vmatpush.bf16.msrb.mxu3 %v7018_v58  ;;  %v6697_v58 = vld [vmem:[%s11638_s1 + $0x520] sm:$0xf]  ;;  %v6570_v15 = vor.u32 %v7517_v53, %v6569_v14  ;;  %v6286_v53 = vor.u32 %v7443_v28, %v6283_v41  ;;  %v6091_v41 = vld [vmem:[%s11638_s1 + $0x70] sm:$0xf0]  ;;  %v7459_v51 = vld [vmem:[%s11638_s1 + $0x264] sm:$0xf] }
 0x152   :  { %3912 = vmatpush.bf16.msrb.mxu0 %v6618_v1  ;;  %v6953_v1 = vld [vmem:[%s11638_s1 + $0x720] sm:$0xf]  ;;  %v6698_v16 = vor.u32 %v7549_v60, %v6697_v58  ;;  %v6139_v58 = vld [vmem:[%s11638_s1 + $0xd0] sm:$0xf0]  ;;  %v7439_v60 = vld [vmem:[%s11638_s1 + $0x1c4] sm:$0xf] }
 0x153   :  { %3938 = vmatpush.bf16.msrb.mxu2 %v6874_v7  ;;  %v6553_v7 = vld [vmem:[%s11638_s1 + $0x400] sm:$0xf]  ;;  %v6954_v12 = vor.u32 %v7613_v2, %v6953_v1  ;;  %v2355_v35 = vpop.f32.mrf.mxu3 }
 0x154   :  { %3925 = vmatpush.bf16.msrb.mxu1 %v6746_v6  ;;  %v2542_v6 = vunpack.c.l.b16 %v189_v46  ;;  %v6554_v40 = vor.u32 %v7513_v9, %v6553_v7  ;;  %v6810_v46 = vor.u32 %v7577_v20, %v6809_v19  ;;  %v6398_v9 = vor.u32 %v7471_v29, %v6395_v0  ;;  %v6379_v19 = vld [vmem:[%s11638_s1 + $0x2b0] sm:$0xf0] }
 0x155   :  { %3951 = vmatpush.bf16.msrb.mxu3 %v7002_v17  ;;  %v6681_v17 = vld [vmem:[%s11638_s1 + $0x500] sm:$0xf]  ;;  %v6126_v20 = vor.u32 %v7403_v10, %v6123_v13  ;;  %v6491_v35 = vld [vmem:[%s11638_s1 + $0x390] sm:$0xf0] }
 0x156   :  { %3913 = vmatpush.bf16.msrb.mxu0 %v6602_v23  ;;  %v2553_v23 = vrot.slane %v2541_v63, 7  ;;  %v2555_v33 = vrot.slane %v2542_v6, 7  ;;  %v6682_v45 = vor.u32 %v7545_v18, %v6681_v17  ;;  %v6267_v63 = vld [vmem:[%s11638_s1 + $0x1d0] sm:$0xf0]  ;;  %v7467_v18 = vld [vmem:[%s11638_s1 + $0x2a4] sm:$0xf] }
 0x157   :  { %3939 = vmatpush.bf16.msrb.mxu2 %v6858_v26  ;;  %v7609_v26 = vld [vmem:[%s11638_s1 + $0x70c] sm:$0xf0]  ;;  %v6270_v7 = vor.u32 %v7439_v60, %v6267_v63  ;;  %v6251_v17 = vld [vmem:[%s11638_s1 + $0x1b0] sm:$0xf0]  ;;  %v7455_v63 = vld [vmem:[%s11638_s1 + $0x244] sm:$0xf] }
 0x158   :  { %3926 = vmatpush.bf16.msrb.mxu1 %v6730_v25  ;;  %v2342_v25 = vpop.f32.mrf.mxu2  ;;  %v2554_v50 = vsel %vm785_vm0, %v2553_v23, %v2533_v22  ;;  %v6938_v52 = vor.u32 %v7609_v26, %v6937_v21  ;;  %v6382_v22 = vor.u32 %v7467_v18, %v6379_v19  ;;  %v7399_v23 = vld [vmem:[%s11638_s1 + $0x84] sm:$0xf]  ;;  %v6331_v29 = vld [vmem:[%s11638_s1 + $0x250] sm:$0xf0] }
 0x159   :  { %3952 = vmatpush.bf16.msrb.mxu3 %v6986_v24  ;;  %v2534_v24 = vunpack.c.l.b16 %v181_v5  ;;  %v10375_v62 = vpack.c.b16 %v2554_v50, %v2554_v50  ;;  %v6107_v25 = vld [vmem:[%s11638_s1 + $0x90] sm:$0xf0]  ;;  %v7431_v26 = vld [vmem:[%s11638_s1 + $0x184] sm:$0xf] }
 0x15a   :  { %3914 = vmatpush.bf16.msrb.mxu0 %v6586_v59  ;;  %v6158_v59 = vor.u32 %v7411_v27, %v6155_v36  ;;  %v6110_v36 = vor.u32 %v7399_v23, %v6107_v25  ;;  %v6347_v50 = vld [vmem:[%s11638_s1 + $0x270] sm:$0xf0]  ;;  %v7419_v18 = vld [vmem:[%s11638_s1 + $0x124] sm:$0xf] }
 0x15b   :  { %3940 = vmatpush.bf16.msrb.mxu2 %v6842_v56  ;;  %v2556_v14 = vsel %vm785_vm0, %v2555_v33, %v2534_v24  ;;  %v2560_v56 = vsel %vm785_vm0, %v2559_v48, %v2536_v38  ;;  %v6363_v24 = vld [vmem:[%s11638_s1 + $0x290] sm:$0xf0]  ;;  %v7495_v33 = vld [vmem:[%s11638_s1 + $0x384] sm:$0xf] }
 0x15c   :  { %3927 = vmatpush.bf16.msrb.mxu1 %v6714_v8  ;;  %v2558_v8 = vsel %vm785_vm0, %v2557_v32, %v2535_v30  ;;  %v10388_v2 = vpack.c.b16 %v2556_v14, %v2556_v14  ;;  %v10396_v5 = vpack.c.b16 %v2560_v56, %v2560_v56  ;;  %v6235_v30 = vld [vmem:[%s11638_s1 + $0x190] sm:$0xf0]  ;;  %v7463_v32 = vld [vmem:[%s11638_s1 + $0x284] sm:$0xf]  ;;  %v6222_v14 = vor.u32 %v7427_v42, %v6219_v47 }
 0x15d   :  { %3953 = vmatpush.bf16.msrb.mxu3 %v6970_v57  ;;  %v7407_v57 = vld [vmem:[%s11638_s1 + $0xc4] sm:$0xf]  ;;  %v10386_v1 = vpack.c.b16 %v2558_v8, %v2558_v8  ;;  %v6238_v38 = vor.u32 %v7431_v26, %v6235_v30  ;;  %v6366_v48 = vor.u32 %v7463_v32, %v6363_v24  ;;  %v6075_v56 = vld [vmem:[%s11638_s1 + $0x50] sm:$0xf0] }
 0x15e   :  { %3915 = vmatpush.bf16.msrb.mxu0 %v6570_v15  ;;  %v6142_v6 = vor.u32 %v7407_v57, %v6139_v58  ;;  %v7435_v15 = vld [vmem:[%s11638_s1 + $0x1a4] sm:$0xf]  ;;  %v6443_v23 = vld [vmem:[%s11638_s1 + $0x330] sm:$0xf0] }
 0x15f   :  { %3941 = vmatpush.bf16.msrb.mxu2 %v6826_v11  ;;  %v7499_v11 = vld [vmem:[%s11638_s1 + $0x3a4] sm:$0xf]  ;;  %v6254_v21 = vor.u32 %v7435_v15, %v6251_v17  ;;  %v6334_v15 = vor.u32 %v7455_v63, %v6331_v29  ;;  %v6059_v17 = vld [vmem:[%s11638_s1 + $0x30] sm:$0xf0] }
 0x160   :  { %3928 = vmatpush.bf16.msrb.mxu1 %v6698_v16  ;;  %v6526_v16 = vor.u32 %v7503_v3, %v6523_v4  ;;  %v7423_v57 = vld [vmem:[%s11638_s1 + $0x144] sm:$0xf]  ;;  %v6795_v47 = vld [vmem:[%s11638_s1 + $0x5f0] sm:$0xf0] }
 0x161   :  { %3954 = vmatpush.bf16.msrb.mxu3 %v6954_v12  ;;  %v6507_v12 = vld [vmem:[%s11638_s1 + $0x3b0] sm:$0xf0]  ;;  %v7487_v4 = vld [vmem:[%s11638_s1 + $0x344] sm:$0xf] }
 0x162   :  { %3916 = vmatpush.bf16.msrb.mxu0 %v6554_v40  ;;  %v6510_v27 = vor.u32 %v7499_v11, %v6507_v12  ;;  %v2366_v28 = vpop.f32.mrf.mxu0  ;;  %v7395_v40 = vld [vmem:[%s11638_s1 + $0x64] sm:$0xf]  ;;  %v6187_v12 = vld [vmem:[%s11638_s1 + $0x130] sm:$0xf0] }
 0x163   :  { %3942 = vmatpush.bf16.msrb.mxu2 %v6810_v46  ;;  %v2367_v44 = vadd.f32 %v2366_v28, %v10294_v54  ;;  %v6494_v46 = vor.u32 %v7495_v33, %v6491_v35  ;;  %v6475_v54 = vld [vmem:[%s11638_s1 + $0x370] sm:$0xf0]  ;;  %v6094_v8 = vor.u32 %v7395_v40, %v6091_v41  ;;  %v7383_v26 = vld [vmem:[%s11638_s1 + $0x4] sm:$0xf]  ;;  %v6190_v30 = vor.u32 %v7419_v18, %v6187_v12 }
 0x164   :  { %3929 = vmatpush.bf16.msrb.mxu1 %v6682_v45  ;;  %v2379_v45 = vpop.f32.mrf.mxu1  ;;  %v7415_v24 = vld [vmem:[%s11638_s1 + $0x104] sm:$0xf]  ;;  %v6171_v33 = vld [vmem:[%s11638_s1 + $0x110] sm:$0xf0] }
 0x165   :  { %3955 = vmatpush.bf16.msrb.mxu3 %v6938_v52  ;;  %3917 = vmatmul.bf16.vlgmr.msrb.gmra.mxu0 %v10375_v62  ;;  %v7491_v52 = vld [vmem:[%s11638_s1 + $0x364] sm:$0xf]  ;;  %v6427_v40 = vld [vmem:[%s11638_s1 + $0x310] sm:$0xf0] }
 0x166   :  { %3961 = vmatpush.bf16.msra.mxu0 %v6158_v59  ;;  %3943 = vmatmul.bf16.vlgmr.msrb.gmra.mxu2 %v10386_v1  ;;  %v2380_v59 = vadd.f32 %v2379_v45, %v2367_v44  ;;  %v6478_v60 = vor.u32 %v7491_v52, %v6475_v54  ;;  %v7447_v35 = vld [vmem:[%s11638_s1 + $0x204] sm:$0xf]  ;;  %v6667_v44 = vld [vmem:[%s11638_s1 + $0x4f0] sm:$0xf0]  ;;  %v6174_v52 = vor.u32 %v7415_v24, %v6171_v33 }
 0x167   :  { %3987 = vmatpush.bf16.msra.mxu2 %v6414_v55  ;;  %3930 = vmatmul.bf16.vlgmr.msrb.gmra.mxu1 %v10388_v2  ;;  %v7391_v55 = vld [vmem:[%s11638_s1 + $0x44] sm:$0xf]  ;;  %v6779_v63 = vld [vmem:[%s11638_s1 + $0x5d0] sm:$0xf0] }
 0x168   :  { %3974 = vmatpush.bf16.msra.mxu1 %v6286_v53  ;;  %3956 = vmatmul.bf16.vlgmr.msrb.gmra.mxu3 %v10396_v5  ;;  %v6350_v53 = vor.u32 %v7459_v51, %v6347_v50  ;;  %v7539_v42 = vld [vmem:[%s11638_s1 + $0x4e4] sm:$0xf]  ;;  %v6923_v50 = vld [vmem:[%s11638_s1 + $0x6f0] sm:$0xf0] }
 0x169   :  { %4000 = vmatpush.bf16.msra.mxu3 %v6542_v61  ;;  %v2392_v58 = vpop.f32.mrf.mxu2  ;;  %v6203_v61 = vld [vmem:[%s11638_s1 + $0x150] sm:$0xf0]  ;;  %v7571_v45 = vld [vmem:[%s11638_s1 + $0x5e4] sm:$0xf] }
 0x16a   :  { %3962 = vmatpush.bf16.msra.mxu0 %v6142_v6  ;;  %v2393_v0 = vadd.f32 %v2392_v58, %v2380_v59  ;;  %v6459_v6 = vld [vmem:[%s11638_s1 + $0x350] sm:$0xf0]  ;;  %v2368_v10 = vpop.f32.mrf.mxu0  ;;  %v6206_v13 = vor.u32 %v7423_v57, %v6203_v61  ;;  %v7603_v51 = vld [vmem:[%s11638_s1 + $0x6e4] sm:$0xf] }
 0x16b   :  { %3988 = vmatpush.bf16.msra.mxu2 %v6398_v9  ;;  %v2405_v3 = vpop.f32.mrf.mxu3  ;;  %v6462_v11 = vor.u32 %v7487_v4, %v6459_v6  ;;  %v7635_v59 = vld [vmem:[%s11638_s1 + $0x7e4] sm:$0xf]  ;;  %v6651_v58 = vld [vmem:[%s11638_s1 + $0x4d0] sm:$0xf0] }
 0x16c   :  { %3975 = vmatpush.bf16.msra.mxu1 %v6270_v7  ;;  %v6078_v7 = vor.u32 %v7391_v55, %v6075_v56  ;;  %v10499_v9 = vadd.f32 %v2405_v3, %v2393_v0  ;;  %v2381_v19 = vpop.f32.mrf.mxu1  ;;  %v6798_v55 = vor.u32 %v7571_v45, %v6795_v47  ;;  %v6926_v56 = vor.u32 %v7603_v51, %v6923_v50  ;;  %v7535_v57 = vld [vmem:[%s11638_s1 + $0x4c4] sm:$0xf]  ;;  %v6907_v0 = vld [vmem:[%s11638_s1 + $0x6d0] sm:$0xf0] }
 0x16d   :  { %4001 = vmatpush.bf16.msra.mxu3 %v6526_v16  ;;  %v7387_v16 = vld [vmem:[%s11638_s1 + $0x24] sm:$0xf]  ;;  %v7035_v4 = vld [vmem:[%s11638_s1 + $0x7d0] sm:$0xf0]  ;;  %v6654_v6 = vor.u32 %v7535_v57, %v6651_v58 }
 0x16e   :  { %3963 = vmatpush.bf16.msra.mxu0 %v6126_v20  ;;  %v7451_v20 = vld [vmem:[%s11638_s1 + $0x224] sm:$0xf]  ;;  %v6062_v25 = vor.u32 %v7387_v16, %v6059_v17  ;;  %v6763_v18 = vld [vmem:[%s11638_s1 + $0x5b0] sm:$0xf0] }
 0x16f   :  { %3989 = vmatpush.bf16.msra.mxu2 %v6382_v22  ;;  %v7483_v22 = vld [vmem:[%s11638_s1 + $0x324] sm:$0xf]  ;;  %v6875_v33 = vld [vmem:[%s11638_s1 + $0x690] sm:$0xf0] }
 0x170   :  { %3976 = vmatpush.bf16.msra.mxu1 %v6254_v21  ;;  %v6315_v21 = vld [vmem:[%s11638_s1 + $0x230] sm:$0xf0]  ;;  %v6446_v28 = vor.u32 %v7483_v22, %v6443_v23  ;;  %v7599_v29 = vld [vmem:[%s11638_s1 + $0x6c4] sm:$0xf] }
 0x171   :  { %4002 = vmatpush.bf16.msra.mxu3 %v6510_v27  ;;  %v6043_v27 = vld [vmem:[%s11638_s1 + $0x10] sm:$0xf0]  ;;  %v6318_v32 = vor.u32 %v7451_v20, %v6315_v21  ;;  %v7631_v3 = vld [vmem:[%s11638_s1 + $0x7c4] sm:$0xf]  ;;  %v6910_v10 = vor.u32 %v7599_v29, %v6907_v0 }
 0x172   :  { %3964 = vmatpush.bf16.msra.mxu0 %v6110_v36  ;;  %v2394_v36 = vpop.f32.mrf.mxu2  ;;  %v7563_v16 = vld [vmem:[%s11638_s1 + $0x5a4] sm:$0xf]  ;;  %v7038_v17 = vor.u32 %v7631_v3, %v7035_v4  ;;  %v7019_v20 = vld [vmem:[%s11638_s1 + $0x7b0] sm:$0xf0] }
 0x173   :  { %3990 = vmatpush.bf16.msra.mxu2 %v6366_v48  ;;  %v7479_v48 = vld [vmem:[%s11638_s1 + $0x304] sm:$0xf]  ;;  %v2407_v41 = vpop.f32.mrf.mxu3  ;;  %v6766_v22 = vor.u32 %v7563_v16, %v6763_v18  ;;  %v7003_v36 = vld [vmem:[%s11638_s1 + $0x790] sm:$0xf0] }
 0x174   :  { %3977 = vmatpush.bf16.msra.mxu1 %v6238_v38  ;;  %v6299_v38 = vld [vmem:[%s11638_s1 + $0x210] sm:$0xf0]  ;;  %v7595_v19 = vld [vmem:[%s11638_s1 + $0x6a4] sm:$0xf] }
 0x175   :  { %4003 = vmatpush.bf16.msra.mxu3 %v6494_v46  ;;  %v6046_v46 = vor.u32 %v7383_v26, %v6043_v27  ;;  %v6302_v54 = vor.u32 %v7447_v35, %v6299_v38  ;;  %v7627_v12 = vld [vmem:[%s11638_s1 + $0x7a4] sm:$0xf]  ;;  %v6619_v26 = vld [vmem:[%s11638_s1 + $0x490] sm:$0xf0] }
 0x176   :  { %3965 = vmatpush.bf16.msra.mxu0 %v6094_v8  ;;  %v7051_v8 = vld [vmem:[%s11638_s1 + $0x7f0] sm:$0xf0]  ;;  %v7559_v27 = vld [vmem:[%s11638_s1 + $0x584] sm:$0xf] }
 0x177   :  { %3991 = vmatpush.bf16.msra.mxu2 %v6350_v53  ;;  %v6670_v53 = vor.u32 %v7539_v42, %v6667_v44  ;;  %v7054_v61 = vor.u32 %v7635_v59, %v7051_v8  ;;  %v7591_v24 = vld [vmem:[%s11638_s1 + $0x684] sm:$0xf]  ;;  %v6603_v42 = vld [vmem:[%s11638_s1 + $0x470] sm:$0xf0] }
 0x178   :  { %3978 = vmatpush.bf16.msra.mxu1 %v6222_v14  ;;  %v6430_v14 = vor.u32 %v7479_v48, %v6427_v40  ;;  %v7623_v35 = vld [vmem:[%s11638_s1 + $0x784] sm:$0xf]  ;;  %v6878_v40 = vor.u32 %v7591_v24, %v6875_v33  ;;  %v6731_v47 = vld [vmem:[%s11638_s1 + $0x570] sm:$0xf0] }
 0x179   :  { %4004 = vmatpush.bf16.msra.mxu3 %v6478_v60  ;;  %v7567_v60 = vld [vmem:[%s11638_s1 + $0x5c4] sm:$0xf]  ;;  %v6859_v50 = vld [vmem:[%s11638_s1 + $0x670] sm:$0xf0] }
 0x17a   :  { %3966 = vmatpush.bf16.msra.mxu0 %v6078_v7  ;;  %v6782_v7 = vor.u32 %v7567_v60, %v6779_v63  ;;  %v7523_v41 = vld [vmem:[%s11638_s1 + $0x464] sm:$0xf]  ;;  %v6987_v59 = vld [vmem:[%s11638_s1 + $0x770] sm:$0xf0] }
 0x17b   :  { %3992 = vmatpush.bf16.msra.mxu2 %v6334_v15  ;;  %v6635_v15 = vld [vmem:[%s11638_s1 + $0x4b0] sm:$0xf0]  ;;  %v7555_v44 = vld [vmem:[%s11638_s1 + $0x564] sm:$0xf]  ;;  %v6606_v8 = vor.u32 %v7523_v41, %v6603_v42 }
 0x17c   :  { %3979 = vmatpush.bf16.msra.mxu1 %v6206_v13  ;;  %v7531_v13 = vld [vmem:[%s11638_s1 + $0x4a4] sm:$0xf]  ;;  %v6843_v29 = vld [vmem:[%s11638_s1 + $0x650] sm:$0xf0] }
 0x17d   :  { %4005 = vmatpush.bf16.msra.mxu3 %v6462_v11  ;;  %v6891_v11 = vld [vmem:[%s11638_s1 + $0x6b0] sm:$0xf0]  ;;  %v6638_v21 = vor.u32 %v7531_v13, %v6635_v15  ;;  %v7587_v51 = vld [vmem:[%s11638_s1 + $0x664] sm:$0xf] }
 0x17e   :  { %3967 = vmatpush.bf16.msra.mxu0 %v6062_v25  ;;  %v6894_v23 = vor.u32 %v7595_v19, %v6891_v11  ;;  %v7527_v25 = vld [vmem:[%s11638_s1 + $0x484] sm:$0xf]  ;;  %v6571_v18 = vld [vmem:[%s11638_s1 + $0x430] sm:$0xf0] }
 0x17f   :  { %3993 = vmatpush.bf16.msra.mxu2 %v6318_v32  ;;  %v6747_v32 = vld [vmem:[%s11638_s1 + $0x590] sm:$0xf0]  ;;  %v7551_v57 = vld [vmem:[%s11638_s1 + $0x544] sm:$0xf] }
 0x180   :  { %3980 = vmatpush.bf16.msra.mxu1 %v6190_v30  ;;  %v7022_v30 = vor.u32 %v7627_v12, %v7019_v20  ;;  %v6750_v48 = vor.u32 %v7559_v27, %v6747_v32  ;;  %v7583_v63 = vld [vmem:[%s11638_s1 + $0x644] sm:$0xf]  ;;  %v6699_v20 = vld [vmem:[%s11638_s1 + $0x530] sm:$0xf0] }
 0x181   :  { %4006 = vmatpush.bf16.msra.mxu3 %v6446_v28  ;;  %v6622_v28 = vor.u32 %v7527_v25, %v6619_v26  ;;  %v7615_v4 = vld [vmem:[%s11638_s1 + $0x744] sm:$0xf]  ;;  %v6846_v16 = vor.u32 %v7583_v63, %v6843_v29  ;;  %v6955_v25 = vld [vmem:[%s11638_s1 + $0x730] sm:$0xf0]  ;;  %v7442_v29 = vld [vmem:[%s11638_s1 + $0x1d4] sm:$0xf0] }
 0x182   :  { %3968 = vmatpush.bf16.msra.mxu0 %v6046_v46  ;;  %v2418_v38 = vpop.f32.mrf.mxu0  ;;  %v7006_v46 = vor.u32 %v7623_v35, %v7003_v36  ;;  %v7547_v19 = vld [vmem:[%s11638_s1 + $0x524] sm:$0xf]  ;;  %v6683_v35 = vld [vmem:[%s11638_s1 + $0x510] sm:$0xf0] }
 0x183   :  { %3994 = vmatpush.bf16.msra.mxu2 %v6302_v54  ;;  %v7619_v54 = vld [vmem:[%s11638_s1 + $0x764] sm:$0xf]  ;;  %v6702_v32 = vor.u32 %v7547_v19, %v6699_v20  ;;  %v6939_v41 = vld [vmem:[%s11638_s1 + $0x710] sm:$0xf0]  ;;  %v7470_v20 = vld [vmem:[%s11638_s1 + $0x2b4] sm:$0xf0] }
 0x184   :  { %3981 = vmatpush.bf16.msra.mxu1 %v6174_v52  ;;  %v2431_v45 = vpop.f32.mrf.mxu1  ;;  %v6990_v60 = vor.u32 %v7619_v54, %v6987_v59  ;;  %v7511_v27 = vld [vmem:[%s11638_s1 + $0x404] sm:$0xf] }
 0x185   :  { %4007 = vmatpush.bf16.msra.mxu3 %v6430_v14  ;;  %3969 = vmatmul.bf16.vlgmr.msra.gmra.mxu0 %v10159_v34  ;;  %v2432_v52 = vadd.f32 %v2431_v45, %v2418_v38  ;;  %v6734_v14 = vor.u32 %v7555_v44, %v6731_v47  ;;  %v7543_v33 = vld [vmem:[%s11638_s1 + $0x504] sm:$0xf]  ;;  %v6161_v44 = vld [vmem:[%s11638_s1 + $0xe8] sm:$0xf]  ;;  %v7414_v45 = vld [vmem:[%s11638_s1 + $0xf4] sm:$0xf0] }
 0x186   :  { %4013 = vmatpush.bf16.msrb.mxu0 %v6670_v53  ;;  %3995 = vmatmul.bf16.vlgmr.msra.gmra.mxu2 %v10170_v43  ;;  %v6862_v53 = vor.u32 %v7587_v51, %v6859_v50  ;;  %v7575_v36 = vld [vmem:[%s11638_s1 + $0x604] sm:$0xf]  ;;  %v7446_v51 = vld [vmem:[%s11638_s1 + $0x1f4] sm:$0xf0]  ;;  %v6417_v50 = vld [vmem:[%s11638_s1 + $0x2e8] sm:$0xf]  ;;  %v6686_v54 = vor.u32 %v7543_v33, %v6683_v35 }
 0x187   :  { %4039 = vmatpush.bf16.msrb.mxu2 %v6926_v56  ;;  %3982 = vmatmul.bf16.vlgmr.msra.gmra.mxu1 %v10172_v37  ;;  %v6587_v56 = vld [vmem:[%s11638_s1 + $0x450] sm:$0xf0]  ;;  %v7434_v33 = vld [vmem:[%s11638_s1 + $0x194] sm:$0xf0]  ;;  %v6369_v35 = vld [vmem:[%s11638_s1 + $0x288] sm:$0xf] }
 0x188   :  { %4026 = vmatpush.bf16.msrb.mxu1 %v6798_v55  ;;  %4008 = vmatmul.bf16.vlgmr.msra.gmra.mxu3 %v10180_v39  ;;  %v7519_v55 = vld [vmem:[%s11638_s1 + $0x444] sm:$0xf] }
 0x189   :  { %4052 = vmatpush.bf16.msrb.mxu3 %v7054_v61  ;;  %v2444_v58 = vpop.f32.mrf.mxu2  ;;  %v6715_v61 = vld [vmem:[%s11638_s1 + $0x550] sm:$0xf0] }
 0x18a   :  { %4014 = vmatpush.bf16.msrb.mxu0 %v6654_v6  ;;  %v2445_v0 = vadd.f32 %v2444_v58, %v2432_v52  ;;  %v6971_v6 = vld [vmem:[%s11638_s1 + $0x750] sm:$0xf0]  ;;  %v2420_v13 = vpop.f32.mrf.mxu0  ;;  %v6718_v15 = vor.u32 %v7551_v57, %v6715_v61  ;;  %v7478_v52 = vld [vmem:[%s11638_s1 + $0x2f4] sm:$0xf0]  ;;  %v6145_v58 = vld [vmem:[%s11638_s1 + $0xc8] sm:$0xf] }
 0x18b   :  { %4040 = vmatpush.bf16.msrb.mxu2 %v6910_v10  ;;  %v2457_v3 = vpop.f32.mrf.mxu3  ;;  %v6974_v12 = vor.u32 %v7615_v4, %v6971_v6  ;;  %v6418_v57 = vor.u32 %v7478_v52, %v6417_v50  ;;  %v6273_v61 = vld [vmem:[%s11638_s1 + $0x1c8] sm:$0xf]  ;;  %v7506_v6 = vld [vmem:[%s11638_s1 + $0x3d4] sm:$0xf0] }
 0x18c   :  { %4027 = vmatpush.bf16.msrb.mxu1 %v6782_v7  ;;  %v6590_v7 = vor.u32 %v7519_v55, %v6587_v56  ;;  %v10697_v10 = vadd.f32 %v2457_v3, %v2445_v0  ;;  %v2433_v11 = vpop.f32.mrf.mxu1  ;;  %v6162_v55 = vor.u32 %v7414_v45, %v6161_v44  ;;  %v6401_v0 = vld [vmem:[%s11638_s1 + $0x2c8] sm:$0xf]  ;;  %v7474_v3 = vld [vmem:[%s11638_s1 + $0x2d4] sm:$0xf0]  ;;  %v6274_v13 = vor.u32 %v7442_v29, %v6273_v61 }
 0x18d   :  { %4053 = vmatpush.bf16.msrb.mxu3 %v7038_v17  ;;  %v7515_v17 = vld [vmem:[%s11638_s1 + $0x424] sm:$0xf]  ;;  %v6529_v4 = vld [vmem:[%s11638_s1 + $0x3c8] sm:$0xf]  ;;  %v7438_v11 = vld [vmem:[%s11638_s1 + $0x1b4] sm:$0xf0] }
 0x18e   :  { %4015 = vmatpush.bf16.msrb.mxu0 %v6638_v21  ;;  %v7579_v21 = vld [vmem:[%s11638_s1 + $0x624] sm:$0xf]  ;;  %v6574_v26 = vor.u32 %v7515_v17, %v6571_v18  ;;  %v7406_v17 = vld [vmem:[%s11638_s1 + $0xb4] sm:$0xf0]  ;;  %v6257_v18 = vld [vmem:[%s11638_s1 + $0x1a8] sm:$0xf]  ;;  %v6530_v19 = vor.u32 %v7506_v6, %v6529_v4 }
 0x18f   :  { %4041 = vmatpush.bf16.msrb.mxu2 %v6894_v23  ;;  %v7611_v23 = vld [vmem:[%s11638_s1 + $0x724] sm:$0xf]  ;;  %v6097_v44 = vld [vmem:[%s11638_s1 + $0x68] sm:$0xf]  ;;  %v7398_v45 = vld [vmem:[%s11638_s1 + $0x74] sm:$0xf0] }
 0x190   :  { %4028 = vmatpush.bf16.msrb.mxu1 %v6766_v22  ;;  %v6827_v22 = vld [vmem:[%s11638_s1 + $0x630] sm:$0xf0]  ;;  %v6958_v38 = vor.u32 %v7611_v23, %v6955_v25  ;;  %v6258_v25 = vor.u32 %v7438_v11, %v6257_v18  ;;  %v7430_v52 = vld [vmem:[%s11638_s1 + $0x174] sm:$0xf0]  ;;  %v6065_v11 = vld [vmem:[%s11638_s1 + $0x28] sm:$0xf] }
 0x191   :  { %4054 = vmatpush.bf16.msrb.mxu3 %v7022_v30  ;;  %v6555_v30 = vld [vmem:[%s11638_s1 + $0x410] sm:$0xf0]  ;;  %v6830_v24 = vor.u32 %v7579_v21, %v6827_v22  ;;  %v6513_v21 = vld [vmem:[%s11638_s1 + $0x3a8] sm:$0xf]  ;;  %v7502_v22 = vld [vmem:[%s11638_s1 + $0x3b4] sm:$0xf0] }
 0x192   :  { %4016 = vmatpush.bf16.msrb.mxu0 %v6622_v28  ;;  %v2446_v28 = vpop.f32.mrf.mxu2  ;;  %v6558_v47 = vor.u32 %v7511_v27, %v6555_v30  ;;  %v6113_v27 = vld [vmem:[%s11638_s1 + $0x88] sm:$0xf]  ;;  %v7402_v30 = vld [vmem:[%s11638_s1 + $0x94] sm:$0xf0] }
 0x193   :  { %4042 = vmatpush.bf16.msrb.mxu2 %v6878_v40  ;;  %v7607_v40 = vld [vmem:[%s11638_s1 + $0x704] sm:$0xf]  ;;  %v2459_v42 = vpop.f32.mrf.mxu3  ;;  %v6497_v28 = vld [vmem:[%s11638_s1 + $0x388] sm:$0xf]  ;;  %v7426_v29 = vld [vmem:[%s11638_s1 + $0x154] sm:$0xf0] }
 0x194   :  { %4029 = vmatpush.bf16.msrb.mxu1 %v6750_v48  ;;  %v6811_v48 = vld [vmem:[%s11638_s1 + $0x610] sm:$0xf0] }
 0x195   :  { %4055 = vmatpush.bf16.msrb.mxu3 %v7006_v46  ;;  %v6289_v46 = vld [vmem:[%s11638_s1 + $0x1e8] sm:$0xf]  ;;  %v6814_v59 = vor.u32 %v7575_v36, %v6811_v48  ;;  %v7466_v36 = vld [vmem:[%s11638_s1 + $0x294] sm:$0xf0]  ;;  %v6114_v48 = vor.u32 %v7402_v30, %v6113_v27 }
 0x196   :  { %4017 = vmatpush.bf16.msrb.mxu0 %v6606_v8  ;;  %v6545_v8 = vld [vmem:[%s11638_s1 + $0x3e8] sm:$0xf]  ;;  %v6290_v56 = vor.u32 %v7446_v51, %v6289_v46  ;;  %v6370_v42 = vor.u32 %v7466_v36, %v6369_v35  ;;  %v7486_v30 = vld [vmem:[%s11638_s1 + $0x334] sm:$0xf0] }
 0x197   :  { %4043 = vmatpush.bf16.msrb.mxu2 %v6862_v53  ;;  %v6942_v53 = vor.u32 %v7607_v40, %v6939_v41  ;;  %v6225_v46 = vld [vmem:[%s11638_s1 + $0x168] sm:$0xf] }
 0x198   :  { %4030 = vmatpush.bf16.msrb.mxu1 %v6734_v14  ;;  %v7510_v14 = vld [vmem:[%s11638_s1 + $0x3f4] sm:$0xf0]  ;;  %v6449_v27 = vld [vmem:[%s11638_s1 + $0x328] sm:$0xf] }
 0x199   :  { %4056 = vmatpush.bf16.msrb.mxu3 %v6990_v60  ;;  %v7410_v60 = vld [vmem:[%s11638_s1 + $0xd4] sm:$0xf0]  ;;  %v6546_v63 = vor.u32 %v7510_v14, %v6545_v8  ;;  %v6481_v8 = vld [vmem:[%s11638_s1 + $0x368] sm:$0xf] }
 0x19a   :  { %4018 = vmatpush.bf16.msrb.mxu0 %v6590_v7  ;;  %v6146_v7 = vor.u32 %v7410_v60, %v6145_v58  ;;  %v7394_v58 = vld [vmem:[%s11638_s1 + $0x54] sm:$0xf0]  ;;  %v6209_v60 = vld [vmem:[%s11638_s1 + $0x148] sm:$0xf] }
 0x19b   :  { %4044 = vmatpush.bf16.msrb.mxu2 %v6846_v16  ;;  %v6129_v16 = vld [vmem:[%s11638_s1 + $0xa8] sm:$0xf]  ;;  %v6210_v18 = vor.u32 %v7426_v29, %v6209_v60 }
 0x19c   :  { %4031 = vmatpush.bf16.msrb.mxu1 %v6718_v15  ;;  %v6402_v15 = vor.u32 %v7474_v3, %v6401_v0  ;;  %v6130_v23 = vor.u32 %v7406_v17, %v6129_v16  ;;  %v6337_v0 = vld [vmem:[%s11638_s1 + $0x248] sm:$0xf]  ;;  %v7458_v3 = vld [vmem:[%s11638_s1 + $0x254] sm:$0xf0] }
 0x19d   :  { %4057 = vmatpush.bf16.msrb.mxu3 %v6974_v12  ;;  %v6385_v12 = vld [vmem:[%s11638_s1 + $0x2a8] sm:$0xf] }
 0x19e   :  { %4019 = vmatpush.bf16.msrb.mxu0 %v6574_v26  ;;  %v6386_v26 = vor.u32 %v7470_v20, %v6385_v12  ;;  %v7390_v12 = vld [vmem:[%s11638_s1 + $0x34] sm:$0xf0]  ;;  %v6193_v20 = vld [vmem:[%s11638_s1 + $0x128] sm:$0xf] }
 0x19f   :  { %4045 = vmatpush.bf16.msrb.mxu2 %v6830_v24  ;;  %v6514_v24 = vor.u32 %v7502_v22, %v6513_v21  ;;  %v6785_v29 = vld [vmem:[%s11638_s1 + $0x5c8] sm:$0xf] }
 0x1a0   :  { %4032 = vmatpush.bf16.msrb.mxu1 %v6702_v32  ;;  %v6241_v32 = vld [vmem:[%s11638_s1 + $0x188] sm:$0xf] }
 0x1a1   :  { %4058 = vmatpush.bf16.msrb.mxu3 %v6958_v38  ;;  %v7498_v38 = vld [vmem:[%s11638_s1 + $0x394] sm:$0xf0]  ;;  %v6242_v41 = vor.u32 %v7434_v33, %v6241_v32  ;;  %v6066_v32 = vor.u32 %v7390_v12, %v6065_v11  ;;  %v6769_v12 = vld [vmem:[%s11638_s1 + $0x5a8] sm:$0xf] }
 0x1a2   :  { %4020 = vmatpush.bf16.msrb.mxu0 %v6558_v47  ;;  %v2470_v40 = vpop.f32.mrf.mxu0  ;;  %v6498_v50 = vor.u32 %v7498_v38, %v6497_v28  ;;  %v7386_v33 = vld [vmem:[%s11638_s1 + $0x14] sm:$0xf0]  ;;  %v6177_v28 = vld [vmem:[%s11638_s1 + $0x108] sm:$0xf] }
 0x1a3   :  { %4046 = vmatpush.bf16.msrb.mxu2 %v6814_v59  ;;  %v2471_v47 = vadd.f32 %v2470_v40, %v10697_v10  ;;  %v7462_v59 = vld [vmem:[%s11638_s1 + $0x274] sm:$0xf0] }
 0x1a4   :  { %4033 = vmatpush.bf16.msrb.mxu1 %v6686_v54  ;;  %v2483_v51 = vpop.f32.mrf.mxu1  ;;  %v6353_v54 = vld [vmem:[%s11638_s1 + $0x268] sm:$0xf]  ;;  %v7494_v10 = vld [vmem:[%s11638_s1 + $0x374] sm:$0xf0] }
 0x1a5   :  { %4059 = vmatpush.bf16.msrb.mxu3 %v6942_v53  ;;  %4021 = vmatmul.bf16.vlgmr.msrb.gmra.mxu0 %v10375_v62  ;;  %v2484_v14 = vadd.f32 %v2483_v51, %v2471_v47  ;;  %v6098_v53 = vor.u32 %v7398_v45, %v6097_v44  ;;  %v7418_v38 = vld [vmem:[%s11638_s1 + $0x114] sm:$0xf0]  ;;  %v6433_v44 = vld [vmem:[%s11638_s1 + $0x308] sm:$0xf] }
 0x1a6   :  { %4065 = vmatpush.bf16.msra.mxu0 %v6162_v55  ;;  %4047 = vmatmul.bf16.vlgmr.msrb.gmra.mxu2 %v10386_v1  ;;  %v6226_v55 = vor.u32 %v7430_v52, %v6225_v46  ;;  %v7482_v45 = vld [vmem:[%s11638_s1 + $0x314] sm:$0xf0]  ;;  %v6673_v47 = vld [vmem:[%s11638_s1 + $0x4e8] sm:$0xf] }
 0x1a7   :  { %4091 = vmatpush.bf16.msra.mxu2 %v6418_v57  ;;  %4034 = vmatmul.bf16.vlgmr.msrb.gmra.mxu1 %v10388_v2  ;;  %v6081_v57 = vld [vmem:[%s11638_s1 + $0x48] sm:$0xf]  ;;  %v7542_v51 = vld [vmem:[%s11638_s1 + $0x4f4] sm:$0xf0] }
 0x1a8   :  { %4078 = vmatpush.bf16.msra.mxu1 %v6290_v56  ;;  %4060 = vmatmul.bf16.vlgmr.msrb.gmra.mxu3 %v10396_v5  ;;  %v6354_v56 = vor.u32 %v7462_v59, %v6353_v54  ;;  %v7574_v54 = vld [vmem:[%s11638_s1 + $0x5f4] sm:$0xf0]  ;;  %v6929_v59 = vld [vmem:[%s11638_s1 + $0x6e8] sm:$0xf] }
 0x1a9   :  { %4104 = vmatpush.bf16.msra.mxu3 %v6546_v63  ;;  %v2496_v61 = vpop.f32.mrf.mxu2  ;;  %v6482_v63 = vor.u32 %v7494_v10, %v6481_v8  ;;  %v7606_v8 = vld [vmem:[%s11638_s1 + $0x6f4] sm:$0xf0]  ;;  %v6178_v10 = vor.u32 %v7418_v38, %v6177_v28  ;;  %v6881_v38 = vld [vmem:[%s11638_s1 + $0x688] sm:$0xf] }
 0x1aa   :  { %4066 = vmatpush.bf16.msra.mxu0 %v6146_v7  ;;  %v2497_v4 = vadd.f32 %v2496_v61, %v2484_v14  ;;  %v6465_v7 = vld [vmem:[%s11638_s1 + $0x348] sm:$0xf]  ;;  %v2472_v17 = vpop.f32.mrf.mxu0  ;;  %v6930_v60 = vor.u32 %v7606_v8, %v6929_v59  ;;  %v7534_v11 = vld [vmem:[%s11638_s1 + $0x4b4] sm:$0xf0] }
 0x1ab   :  { %4092 = vmatpush.bf16.msra.mxu2 %v6402_v15  ;;  %v2509_v6 = vpop.f32.mrf.mxu3  ;;  %v6082_v15 = vor.u32 %v7394_v58, %v6081_v57  ;;  %v6674_v57 = vor.u32 %v7542_v51, %v6673_v47  ;;  %v6657_v61 = vld [vmem:[%s11638_s1 + $0x4c8] sm:$0xf]  ;;  %v7562_v28 = vld [vmem:[%s11638_s1 + $0x594] sm:$0xf0] }
 0x1ac   :  { %4079 = vmatpush.bf16.msra.mxu1 %v6274_v13  ;;  %v7490_v13 = vld [vmem:[%s11638_s1 + $0x354] sm:$0xf0]  ;;  %v10896_v16 = vadd.f32 %v2509_v6, %v2497_v4  ;;  %v2485_v21 = vpop.f32.mrf.mxu1  ;;  %v6913_v4 = vld [vmem:[%s11638_s1 + $0x6c8] sm:$0xf] }
 0x1ad   :  { %4105 = vmatpush.bf16.msra.mxu3 %v6530_v19  ;;  %v6338_v19 = vor.u32 %v7458_v3, %v6337_v0  ;;  %v6466_v22 = vor.u32 %v7490_v13, %v6465_v7  ;;  %v7570_v3 = vld [vmem:[%s11638_s1 + $0x5d4] sm:$0xf0]  ;;  %v7041_v7 = vld [vmem:[%s11638_s1 + $0x7c8] sm:$0xf] }
 0x1ae   :  { %4067 = vmatpush.bf16.msra.mxu0 %v6130_v23  ;;  %v7422_v23 = vld [vmem:[%s11638_s1 + $0x134] sm:$0xf0]  ;;  %v6786_v17 = vor.u32 %v7570_v3, %v6785_v29 }
 0x1af   :  { %4093 = vmatpush.bf16.msra.mxu2 %v6386_v26  ;;  %v7454_v26 = vld [vmem:[%s11638_s1 + $0x234] sm:$0xf0]  ;;  %v6194_v35 = vor.u32 %v7422_v23, %v6193_v20 }
 0x1b0   :  { %4080 = vmatpush.bf16.msra.mxu1 %v6258_v25  ;;  %v6321_v25 = vld [vmem:[%s11638_s1 + $0x228] sm:$0xf]  ;;  %v7602_v6 = vld [vmem:[%s11638_s1 + $0x6d4] sm:$0xf0] }
 0x1b1   :  { %4106 = vmatpush.bf16.msra.mxu3 %v6514_v24  ;;  %v6049_v24 = vld [vmem:[%s11638_s1 + $0x8] sm:$0xf]  ;;  %v6322_v36 = vor.u32 %v7454_v26, %v6321_v25  ;;  %v2498_v40 = vpop.f32.mrf.mxu2  ;;  %v7634_v13 = vld [vmem:[%s11638_s1 + $0x7d4] sm:$0xf0] }
 0x1b2   :  { %4068 = vmatpush.bf16.msra.mxu0 %v6114_v48  ;;  %v6305_v48 = vld [vmem:[%s11638_s1 + $0x208] sm:$0xf]  ;;  %v6050_v52 = vor.u32 %v7386_v33, %v6049_v24  ;;  %v7042_v20 = vor.u32 %v7634_v13, %v7041_v7  ;;  %v7566_v21 = vld [vmem:[%s11638_s1 + $0x5b4] sm:$0xf0] }
 0x1b3   :  { %4094 = vmatpush.bf16.msra.mxu2 %v6370_v42  ;;  %v7450_v42 = vld [vmem:[%s11638_s1 + $0x214] sm:$0xf0]  ;;  %v2511_v46 = vpop.f32.mrf.mxu3  ;;  %v7025_v25 = vld [vmem:[%s11638_s1 + $0x7a8] sm:$0xf] }
 0x1b4   :  { %4081 = vmatpush.bf16.msra.mxu1 %v6242_v41  ;;  %v6450_v41 = vor.u32 %v7486_v30, %v6449_v27  ;;  %v6306_v14 = vor.u32 %v7450_v42, %v6305_v48  ;;  %v7598_v23 = vld [vmem:[%s11638_s1 + $0x6b4] sm:$0xf0]  ;;  %v6770_v30 = vor.u32 %v7566_v21, %v6769_v12  ;;  %v6625_v24 = vld [vmem:[%s11638_s1 + $0x488] sm:$0xf] }
 0x1b5   :  { %4107 = vmatpush.bf16.msra.mxu3 %v6498_v50  ;;  %v6801_v50 = vld [vmem:[%s11638_s1 + $0x5e8] sm:$0xf]  ;;  %v7630_v26 = vld [vmem:[%s11638_s1 + $0x7b4] sm:$0xf0] }
 0x1b6   :  { %4069 = vmatpush.bf16.msra.mxu0 %v6098_v53  ;;  %v7057_v53 = vld [vmem:[%s11638_s1 + $0x7e8] sm:$0xf]  ;;  %v6802_v58 = vor.u32 %v7574_v54, %v6801_v50  ;;  %v7530_v33 = vld [vmem:[%s11638_s1 + $0x494] sm:$0xf0] }
 0x1b7   :  { %4095 = vmatpush.bf16.msra.mxu2 %v6354_v56  ;;  %v6434_v56 = vor.u32 %v7482_v45, %v6433_v44  ;;  %v7594_v48 = vld [vmem:[%s11638_s1 + $0x694] sm:$0xf0]  ;;  %v6626_v45 = vor.u32 %v7530_v33, %v6625_v24  ;;  %v6609_v50 = vld [vmem:[%s11638_s1 + $0x468] sm:$0xf] }
 0x1b8   :  { %4082 = vmatpush.bf16.msra.mxu1 %v6226_v55  ;;  %v7638_v55 = vld [vmem:[%s11638_s1 + $0x7f4] sm:$0xf0]  ;;  %v6882_v51 = vor.u32 %v7594_v48, %v6881_v38  ;;  %v6737_v54 = vld [vmem:[%s11638_s1 + $0x568] sm:$0xf] }
 0x1b9   :  { %4108 = vmatpush.bf16.msra.mxu3 %v6482_v63  ;;  %v7538_v63 = vld [vmem:[%s11638_s1 + $0x4d4] sm:$0xf0]  ;;  %v7058_v0 = vor.u32 %v7638_v55, %v7057_v53  ;;  %v6993_v53 = vld [vmem:[%s11638_s1 + $0x768] sm:$0xf] }
 0x1ba   :  { %4070 = vmatpush.bf16.msra.mxu0 %v6082_v15  ;;  %v6658_v15 = vor.u32 %v7538_v63, %v6657_v61  ;;  %v7626_v42 = vld [vmem:[%s11638_s1 + $0x794] sm:$0xf0]  ;;  %v6721_v63 = vld [vmem:[%s11638_s1 + $0x548] sm:$0xf] }
 0x1bb   :  { %4096 = vmatpush.bf16.msra.mxu2 %v6338_v19  ;;  %v6641_v19 = vld [vmem:[%s11638_s1 + $0x4a8] sm:$0xf]  ;;  %v7558_v8 = vld [vmem:[%s11638_s1 + $0x574] sm:$0xf0] }
 0x1bc   :  { %4083 = vmatpush.bf16.msra.mxu1 %v6210_v18  ;;  %v6914_v18 = vor.u32 %v7602_v6, %v6913_v4  ;;  %v6642_v27 = vor.u32 %v7534_v11, %v6641_v19  ;;  %v7622_v55 = vld [vmem:[%s11638_s1 + $0x774] sm:$0xf0]  ;;  %v6849_v4 = vld [vmem:[%s11638_s1 + $0x648] sm:$0xf] }
 0x1bd   :  { %4109 = vmatpush.bf16.msra.mxu3 %v6466_v22  ;;  %v6897_v22 = vld [vmem:[%s11638_s1 + $0x6a8] sm:$0xf]  ;;  %v7522_v61 = vld [vmem:[%s11638_s1 + $0x454] sm:$0xf0]  ;;  %v6994_v29 = vor.u32 %v7622_v55, %v6993_v53 }
 0x1be   :  { %4071 = vmatpush.bf16.msra.mxu0 %v6066_v32  ;;  %v6898_v32 = vor.u32 %v7598_v23, %v6897_v22  ;;  %v7554_v3 = vld [vmem:[%s11638_s1 + $0x554] sm:$0xf0]  ;;  %v6577_v22 = vld [vmem:[%s11638_s1 + $0x428] sm:$0xf] }
 0x1bf   :  { %4097 = vmatpush.bf16.msra.mxu2 %v6322_v36  ;;  %v7026_v36 = vor.u32 %v7630_v26, %v7025_v25  ;;  %v7586_v6 = vld [vmem:[%s11638_s1 + $0x654] sm:$0xf0]  ;;  %v6705_v25 = vld [vmem:[%s11638_s1 + $0x528] sm:$0xf] }
 0x1c0   :  { %4084 = vmatpush.bf16.msra.mxu1 %v6194_v35  ;;  %v6753_v35 = vld [vmem:[%s11638_s1 + $0x588] sm:$0xf]  ;;  %v6850_v21 = vor.u32 %v7586_v6, %v6849_v4  ;;  %v7518_v23 = vld [vmem:[%s11638_s1 + $0x434] sm:$0xf0]  ;;  %v6275_v6 = vld [vmem:[%s11638_s1 + $0x1d8] sm:$0xf0] }
 0x1c1   :  { %4110 = vmatpush.bf16.msra.mxu3 %v6450_v41  ;;  %v7009_v41 = vld [vmem:[%s11638_s1 + $0x788] sm:$0xf]  ;;  %v6754_v47 = vor.u32 %v7562_v28, %v6753_v35  ;;  %v7614_v33 = vld [vmem:[%s11638_s1 + $0x734] sm:$0xf0]  ;;  %v6578_v35 = vor.u32 %v7518_v23, %v6577_v22  ;;  %v7436_v22 = vld [vmem:[%s11638_s1 + $0x1ac] sm:$0xf] }
 0x1c2   :  { %4072 = vmatpush.bf16.msra.mxu0 %v6050_v52  ;;  %v3866_v40 = vpop.f32.mrf.mxu0  ;;  %v7526_v52 = vld [vmem:[%s11638_s1 + $0x474] sm:$0xf0]  ;;  %v6961_v24 = vld [vmem:[%s11638_s1 + $0x728] sm:$0xf] }
 0x1c3   :  { %4098 = vmatpush.bf16.msra.mxu2 %v6306_v14  ;;  %v3867_v44 = vadd.f32 %v3866_v40, %v9687_v49  ;;  %v7010_v49 = vor.u32 %v7626_v42, %v7009_v41  ;;  %v7590_v14 = vld [vmem:[%s11638_s1 + $0x674] sm:$0xf0]  ;;  %v6689_v40 = vld [vmem:[%s11638_s1 + $0x508] sm:$0xf] }
 0x1c4   :  { %4085 = vmatpush.bf16.msra.mxu1 %v6178_v10  ;;  %v3879_v46 = vpop.f32.mrf.mxu1  ;;  %v6865_v10 = vld [vmem:[%s11638_s1 + $0x668] sm:$0xf]  ;;  %v7514_v28 = vld [vmem:[%s11638_s1 + $0x414] sm:$0xf0] }
 0x1c5   :  { %4111 = vmatpush.bf16.msra.mxu3 %v6434_v56  ;;  %4073 = vmatmul.bf16.vlgmr.msra.gmra.mxu0 %v10159_v34  ;;  %v3880_v59 = vadd.f32 %v3879_v46, %v3867_v44  ;;  %v6610_v56 = vor.u32 %v7526_v52, %v6609_v50  ;;  %v7546_v41 = vld [vmem:[%s11638_s1 + $0x514] sm:$0xf0]  ;;  %v6817_v42 = vld [vmem:[%s11638_s1 + $0x608] sm:$0xf]  ;;  %v6962_v44 = vor.u32 %v7614_v33, %v6961_v24  ;;  %v7412_v50 = vld [vmem:[%s11638_s1 + $0xec] sm:$0xf] }
 0x1c6   :  { %4117 = vmatpush.bf16.msrb.mxu0 %v6674_v57  ;;  %4099 = vmatmul.bf16.vlgmr.msra.gmra.mxu2 %v10170_v43  ;;  %v6738_v57 = vor.u32 %v7558_v8, %v6737_v54  ;;  %v6945_v46 = vld [vmem:[%s11638_s1 + $0x708] sm:$0xf]  ;;  %v6163_v52 = vld [vmem:[%s11638_s1 + $0xf8] sm:$0xf0]  ;;  %v7444_v54 = vld [vmem:[%s11638_s1 + $0x1ec] sm:$0xf]  ;;  %v6690_v53 = vor.u32 %v7546_v41, %v6689_v40 }
 0x1c7   :  { %4143 = vmatpush.bf16.msrb.mxu2 %v6930_v60  ;;  %4086 = vmatmul.bf16.vlgmr.msra.gmra.mxu1 %v10172_v37  ;;  %v6593_v60 = vld [vmem:[%s11638_s1 + $0x448] sm:$0xf]  ;;  %v6291_v8 = vld [vmem:[%s11638_s1 + $0x1f8] sm:$0xf0]  ;;  %v7464_v41 = vld [vmem:[%s11638_s1 + $0x28c] sm:$0xf] }
 0x1c8   :  { %4130 = vmatpush.bf16.msrb.mxu1 %v6802_v58  ;;  %4112 = vmatmul.bf16.vlgmr.msra.gmra.mxu3 %v10180_v39  ;;  %v6866_v58 = vor.u32 %v7590_v14, %v6865_v10  ;;  %v6594_v19 = vor.u32 %v7522_v61, %v6593_v60  ;;  %v7476_v10 = vld [vmem:[%s11638_s1 + $0x2ec] sm:$0xf]  ;;  %v6419_v14 = vld [vmem:[%s11638_s1 + $0x2f8] sm:$0xf0]  ;;  %v6166_v60 = vor.u32 %v7412_v50, %v6163_v52 }
 0x1c9   :  { %4156 = vmatpush.bf16.msrb.mxu3 %v7058_v0  ;;  %v3892_v0 = vpop.f32.mrf.mxu2  ;;  %v6294_v61 = vor.u32 %v7444_v54, %v6291_v8  ;;  %v6243_v40 = vld [vmem:[%s11638_s1 + $0x198] sm:$0xf0]  ;;  %v7428_v8 = vld [vmem:[%s11638_s1 + $0x16c] sm:$0xf] }
 0x1ca   :  { %4118 = vmatpush.bf16.msrb.mxu0 %v6658_v15  ;;  %v3893_v7 = vadd.f32 %v3892_v0, %v3880_v59  ;;  %v6977_v15 = vld [vmem:[%s11638_s1 + $0x748] sm:$0xf]  ;;  %v6147_v0 = vld [vmem:[%s11638_s1 + $0xd8] sm:$0xf0] }
 0x1cb   :  { %4144 = vmatpush.bf16.msrb.mxu2 %v6914_v18  ;;  %v3905_v13 = vpop.f32.mrf.mxu3  ;;  %v3868_v18 = vpop.f32.mrf.mxu0 }
 0x1cc   :  { %4131 = vmatpush.bf16.msrb.mxu1 %v6786_v17  ;;  %v7618_v17 = vld [vmem:[%s11638_s1 + $0x754] sm:$0xf0]  ;;  %v3881_v11 = vpop.f32.mrf.mxu1  ;;  %v11095_v12 = vadd.f32 %v3905_v13, %v3893_v7  ;;  %v7472_v7 = vld [vmem:[%s11638_s1 + $0x2cc] sm:$0xf]  ;;  %v6403_v13 = vld [vmem:[%s11638_s1 + $0x2d8] sm:$0xf0] }
 0x1cd   :  { %4157 = vmatpush.bf16.msrb.mxu3 %v7042_v20  ;;  %v6722_v20 = vor.u32 %v7554_v3, %v6721_v63  ;;  %v6978_v26 = vor.u32 %v7618_v17, %v6977_v15  ;;  %v6422_v63 = vor.u32 %v7476_v10, %v6419_v14  ;;  %v7440_v3 = vld [vmem:[%s11638_s1 + $0x1cc] sm:$0xf]  ;;  %v6531_v17 = vld [vmem:[%s11638_s1 + $0x3d8] sm:$0xf0]  ;;  %v6406_v11 = vor.u32 %v7472_v7, %v6403_v13 }
 0x1ce   :  { %4119 = vmatpush.bf16.msrb.mxu0 %v6642_v27  ;;  %v7550_v27 = vld [vmem:[%s11638_s1 + $0x534] sm:$0xf0]  ;;  %v7504_v15 = vld [vmem:[%s11638_s1 + $0x3cc] sm:$0xf]  ;;  %v6227_v14 = vld [vmem:[%s11638_s1 + $0x178] sm:$0xf0] }
 0x1cf   :  { %4145 = vmatpush.bf16.msrb.mxu2 %v6898_v32  ;;  %v7582_v32 = vld [vmem:[%s11638_s1 + $0x634] sm:$0xf0]  ;;  %v6706_v38 = vor.u32 %v7550_v27, %v6705_v25  ;;  %v6534_v23 = vor.u32 %v7504_v15, %v6531_v17  ;;  %v6259_v25 = vld [vmem:[%s11638_s1 + $0x1b8] sm:$0xf0]  ;;  %v7456_v7 = vld [vmem:[%s11638_s1 + $0x24c] sm:$0xf] }
 0x1d0   :  { %4132 = vmatpush.bf16.msrb.mxu1 %v6770_v30  ;;  %v6833_v30 = vld [vmem:[%s11638_s1 + $0x628] sm:$0xf]  ;;  %v6387_v27 = vld [vmem:[%s11638_s1 + $0x2b8] sm:$0xf0]  ;;  %v6262_v33 = vor.u32 %v7436_v22, %v6259_v25 }
 0x1d1   :  { %4158 = vmatpush.bf16.msrb.mxu3 %v7026_v36  ;;  %v6561_v36 = vld [vmem:[%s11638_s1 + $0x408] sm:$0xf]  ;;  %v6834_v48 = vor.u32 %v7582_v32, %v6833_v30  ;;  %v7500_v30 = vld [vmem:[%s11638_s1 + $0x3ac] sm:$0xf]  ;;  %v6515_v32 = vld [vmem:[%s11638_s1 + $0x3b8] sm:$0xf0] }
 0x1d2   :  { %4120 = vmatpush.bf16.msrb.mxu0 %v6626_v45  ;;  %v7578_v45 = vld [vmem:[%s11638_s1 + $0x614] sm:$0xf0]  ;;  %v6562_v59 = vor.u32 %v7514_v28, %v6561_v36  ;;  %v7400_v36 = vld [vmem:[%s11638_s1 + $0x8c] sm:$0xf]  ;;  %v6115_v28 = vld [vmem:[%s11638_s1 + $0x98] sm:$0xf0] }
 0x1d3   :  { %4146 = vmatpush.bf16.msrb.mxu2 %v6882_v51  ;;  %v3894_v51 = vpop.f32.mrf.mxu2  ;;  %v6818_v55 = vor.u32 %v7578_v45, %v6817_v42  ;;  %v6371_v42 = vld [vmem:[%s11638_s1 + $0x298] sm:$0xf0]  ;;  %v7496_v45 = vld [vmem:[%s11638_s1 + $0x38c] sm:$0xf] }
 0x1d4   :  { %4133 = vmatpush.bf16.msrb.mxu1 %v6754_v47  ;;  %v7610_v47 = vld [vmem:[%s11638_s1 + $0x714] sm:$0xf0]  ;;  %v6118_v51 = vor.u32 %v7400_v36, %v6115_v28  ;;  %v6374_v54 = vor.u32 %v7464_v41, %v6371_v42  ;;  %v6339_v13 = vld [vmem:[%s11638_s1 + $0x258] sm:$0xf0]  ;;  %v7484_v36 = vld [vmem:[%s11638_s1 + $0x32c] sm:$0xf] }
 0x1d5   :  { %4159 = vmatpush.bf16.msrb.mxu3 %v7010_v49  ;;  %v3907_v49 = vpop.f32.mrf.mxu3  ;;  %v6342_v25 = vor.u32 %v7456_v7, %v6339_v13  ;;  %v6451_v28 = vld [vmem:[%s11638_s1 + $0x338] sm:$0xf0] }
 0x1d6   :  { %4121 = vmatpush.bf16.msrb.mxu0 %v6610_v56  ;;  %v7508_v56 = vld [vmem:[%s11638_s1 + $0x3ec] sm:$0xf]  ;;  %v6787_v13 = vld [vmem:[%s11638_s1 + $0x5d8] sm:$0xf0] }
 0x1d7   :  { %4147 = vmatpush.bf16.msrb.mxu2 %v6866_v58  ;;  %v6946_v58 = vor.u32 %v7610_v47, %v6945_v46  ;;  %v6499_v46 = vld [vmem:[%s11638_s1 + $0x398] sm:$0xf0]  ;;  %v7396_v49 = vld [vmem:[%s11638_s1 + $0x6c] sm:$0xf] }
 0x1d8   :  { %4134 = vmatpush.bf16.msrb.mxu1 %v6738_v57  ;;  %v6547_v57 = vld [vmem:[%s11638_s1 + $0x3f8] sm:$0xf0] }
 0x1d9   :  { %4160 = vmatpush.bf16.msrb.mxu3 %v6994_v29  ;;  %v7408_v29 = vld [vmem:[%s11638_s1 + $0xcc] sm:$0xf]  ;;  %v6550_v4 = vor.u32 %v7508_v56, %v6547_v57  ;;  %v6483_v57 = vld [vmem:[%s11638_s1 + $0x378] sm:$0xf0] }
 0x1da   :  { %4122 = vmatpush.bf16.msrb.mxu0 %v6594_v19  ;;  %v6150_v18 = vor.u32 %v7408_v29, %v6147_v0  ;;  %v6278_v19 = vor.u32 %v7440_v3, %v6275_v6  ;;  %v7492_v56 = vld [vmem:[%s11638_s1 + $0x36c] sm:$0xf]  ;;  %v6083_v29 = vld [vmem:[%s11638_s1 + $0x58] sm:$0xf0] }
 0x1db   :  { %4148 = vmatpush.bf16.msrb.mxu2 %v6850_v21  ;;  %v6131_v21 = vld [vmem:[%s11638_s1 + $0xb8] sm:$0xf0]  ;;  %v7424_v0 = vld [vmem:[%s11638_s1 + $0x14c] sm:$0xf]  ;;  %v6486_v3 = vor.u32 %v7492_v56, %v6483_v57 }
 0x1dc   :  { %4135 = vmatpush.bf16.msrb.mxu1 %v6722_v20  ;;  %v7404_v20 = vld [vmem:[%s11638_s1 + $0xac] sm:$0xf]  ;;  %v6211_v6 = vld [vmem:[%s11638_s1 + $0x158] sm:$0xf0] }
 0x1dd   :  { %4161 = vmatpush.bf16.msrb.mxu3 %v6978_v26  ;;  %v7468_v26 = vld [vmem:[%s11638_s1 + $0x2ac] sm:$0xf]  ;;  %v6134_v24 = vor.u32 %v7404_v20, %v6131_v21 }
 0x1de   :  { %4123 = vmatpush.bf16.msrb.mxu0 %v6578_v35  ;;  %v6390_v35 = vor.u32 %v7468_v26, %v6387_v27  ;;  %v7388_v26 = vld [vmem:[%s11638_s1 + $0x2c] sm:$0xf]  ;;  %v6067_v27 = vld [vmem:[%s11638_s1 + $0x38] sm:$0xf0] }
 0x1df   :  { %4149 = vmatpush.bf16.msrb.mxu2 %v6834_v48  ;;  %v6518_v48 = vor.u32 %v7500_v30, %v6515_v32  ;;  %v7420_v30 = vld [vmem:[%s11638_s1 + $0x12c] sm:$0xf] }
 0x1e0   :  { %4136 = vmatpush.bf16.msrb.mxu1 %v6706_v38  ;;  %v7432_v38 = vld [vmem:[%s11638_s1 + $0x18c] sm:$0xf] }
 0x1e1   :  { %4162 = vmatpush.bf16.msrb.mxu3 %v6962_v44  ;;  %v6246_v52 = vor.u32 %v7432_v38, %v6243_v40  ;;  %v6070_v38 = vor.u32 %v7388_v26, %v6067_v27  ;;  %v6051_v40 = vld [vmem:[%s11638_s1 + $0x18] sm:$0xf0]  ;;  %v7564_v26 = vld [vmem:[%s11638_s1 + $0x5ac] sm:$0xf] }
 0x1e2   :  { %4124 = vmatpush.bf16.msrb.mxu0 %v6562_v59  ;;  %v3918_v44 = vpop.f32.mrf.mxu0  ;;  %v6099_v59 = vld [vmem:[%s11638_s1 + $0x78] sm:$0xf0] }
 0x1e3   :  { %4150 = vmatpush.bf16.msrb.mxu2 %v6818_v55  ;;  %v3919_v47 = vadd.f32 %v3918_v44, %v11095_v12  ;;  %v6502_v12 = vor.u32 %v7496_v45, %v6499_v46  ;;  %v6355_v55 = vld [vmem:[%s11638_s1 + $0x278] sm:$0xf0]  ;;  %v7416_v44 = vld [vmem:[%s11638_s1 + $0x10c] sm:$0xf] }
 0x1e4   :  { %4137 = vmatpush.bf16.msrb.mxu1 %v6690_v53  ;;  %v3931_v50 = vpop.f32.mrf.mxu1  ;;  %v7460_v53 = vld [vmem:[%s11638_s1 + $0x26c] sm:$0xf]  ;;  %v6179_v45 = vld [vmem:[%s11638_s1 + $0x118] sm:$0xf0] }
 0x1e5   :  { %4163 = vmatpush.bf16.msrb.mxu3 %v6946_v58  ;;  %4125 = vmatmul.bf16.vlgmr.msrb.gmra.mxu0 %v10375_v62  ;;  %v3932_v10 = vadd.f32 %v3931_v50, %v3919_v47  ;;  %v6102_v58 = vor.u32 %v7396_v49, %v6099_v59  ;;  %v7448_v46 = vld [vmem:[%s11638_s1 + $0x20c] sm:$0xf]  ;;  %v6454_v47 = vor.u32 %v7484_v36, %v6451_v28  ;;  %v6675_v59 = vld [vmem:[%s11638_s1 + $0x4f8] sm:$0xf0] }
 0x1e6   :  { %4169 = vmatpush.bf16.msra.mxu0 %v6166_v60  ;;  %4151 = vmatmul.bf16.vlgmr.msrb.gmra.mxu2 %v10386_v1  ;;  %v6230_v60 = vor.u32 %v7428_v8, %v6227_v14  ;;  %v7480_v50 = vld [vmem:[%s11638_s1 + $0x30c] sm:$0xf]  ;;  %v6803_v14 = vld [vmem:[%s11638_s1 + $0x5f8] sm:$0xf0]  ;;  %v6182_v56 = vor.u32 %v7416_v44, %v6179_v45 }
 0x1e7   :  { %4195 = vmatpush.bf16.msra.mxu2 %v6422_v63  ;;  %4138 = vmatmul.bf16.vlgmr.msrb.gmra.mxu1 %v10388_v2  ;;  %v7392_v63 = vld [vmem:[%s11638_s1 + $0x4c] sm:$0xf]  ;;  %v7011_v45 = vld [vmem:[%s11638_s1 + $0x798] sm:$0xf0] }
 0x1e8   :  { %4182 = vmatpush.bf16.msra.mxu1 %v6294_v61  ;;  %4164 = vmatmul.bf16.vlgmr.msrb.gmra.mxu3 %v10396_v5  ;;  %v6358_v61 = vor.u32 %v7460_v53, %v6355_v55  ;;  %v6086_v20 = vor.u32 %v7392_v63, %v6083_v29  ;;  %v7540_v49 = vld [vmem:[%s11638_s1 + $0x4ec] sm:$0xf]  ;;  %v6931_v55 = vld [vmem:[%s11638_s1 + $0x6f8] sm:$0xf0] }
 0x1e9   :  { %4208 = vmatpush.bf16.msra.mxu3 %v6550_v4  ;;  %v3944_v4 = vpop.f32.mrf.mxu2  ;;  %v7572_v8 = vld [vmem:[%s11638_s1 + $0x5ec] sm:$0xf]  ;;  %v6678_v63 = vor.u32 %v7540_v49, %v6675_v59 }
 0x1ea   :  { %4170 = vmatpush.bf16.msra.mxu0 %v6150_v18  ;;  %v3945_v15 = vadd.f32 %v3944_v4, %v3932_v10  ;;  %v7488_v18 = vld [vmem:[%s11638_s1 + $0x34c] sm:$0xf]  ;;  %v6806_v29 = vor.u32 %v7572_v8, %v6803_v14  ;;  %v6659_v4 = vld [vmem:[%s11638_s1 + $0x4d8] sm:$0xf0] }
 0x1eb   :  { %4196 = vmatpush.bf16.msra.mxu2 %v6406_v11  ;;  %v3957_v17 = vpop.f32.mrf.mxu3  ;;  %v3920_v11 = vpop.f32.mrf.mxu0  ;;  %v7604_v53 = vld [vmem:[%s11638_s1 + $0x6ec] sm:$0xf]  ;;  %v6739_v8 = vld [vmem:[%s11638_s1 + $0x578] sm:$0xf0] }
 0x1ec   :  { %4183 = vmatpush.bf16.msra.mxu1 %v6278_v19  ;;  %v6467_v19 = vld [vmem:[%s11638_s1 + $0x358] sm:$0xf0]  ;;  %v3933_v21 = vpop.f32.mrf.mxu1  ;;  %v11294_v22 = vadd.f32 %v3957_v17, %v3945_v15  ;;  %v7600_v15 = vld [vmem:[%s11638_s1 + $0x6cc] sm:$0xf] }
 0x1ed   :  { %4209 = vmatpush.bf16.msra.mxu3 %v6534_v23  ;;  %v6214_v23 = vor.u32 %v7424_v0, %v6211_v6  ;;  %v6470_v32 = vor.u32 %v7488_v18, %v6467_v19  ;;  %v6934_v0 = vor.u32 %v7604_v53, %v6931_v55  ;;  %v7568_v6 = vld [vmem:[%s11638_s1 + $0x5cc] sm:$0xf]  ;;  %v6915_v17 = vld [vmem:[%s11638_s1 + $0x6d8] sm:$0xf0] }
 0x1ee   :  { %4171 = vmatpush.bf16.msra.mxu0 %v6134_v24  ;;  %v6195_v24 = vld [vmem:[%s11638_s1 + $0x138] sm:$0xf0]  ;;  %v7632_v18 = vld [vmem:[%s11638_s1 + $0x7cc] sm:$0xf]  ;;  %v6918_v21 = vor.u32 %v7600_v15, %v6915_v17 }
 0x1ef   :  { %4197 = vmatpush.bf16.msra.mxu2 %v6390_v35  ;;  %v6323_v35 = vld [vmem:[%s11638_s1 + $0x238] sm:$0xf0]  ;;  %v6198_v41 = vor.u32 %v7420_v30, %v6195_v24  ;;  %v7624_v44 = vld [vmem:[%s11638_s1 + $0x78c] sm:$0xf] }
 0x1f0   :  { %4184 = vmatpush.bf16.msra.mxu1 %v6262_v33  ;;  %v7452_v33 = vld [vmem:[%s11638_s1 + $0x22c] sm:$0xf]  ;;  %v7043_v19 = vld [vmem:[%s11638_s1 + $0x7d8] sm:$0xf0]  ;;  %v7014_v59 = vor.u32 %v7624_v44, %v7011_v45  ;;  %v7121_v45 = vld [vmem:[#allocation7 + $0x70] sm:$0xf] }
 0x1f1   :  { %4210 = vmatpush.bf16.msra.mxu3 %v6518_v48  ;;  %v7384_v48 = vld [vmem:[%s11638_s1 + $0xc] sm:$0xf]  ;;  %v6326_v42 = vor.u32 %v7452_v33, %v6323_v35  ;;  %v7046_v27 = vor.u32 %v7632_v18, %v7043_v19  ;;  %v6771_v30 = vld [vmem:[%s11638_s1 + $0x5b8] sm:$0xf0] }
 0x1f2   :  { %4172 = vmatpush.bf16.msra.mxu0 %v6118_v51  ;;  %v6307_v51 = vld [vmem:[%s11638_s1 + $0x218] sm:$0xf0]  ;;  %v6054_v10 = vor.u32 %v7384_v48, %v6051_v40  ;;  %v6774_v36 = vor.u32 %v7564_v26, %v6771_v30  ;;  %v7592_v40 = vld [vmem:[%s11638_s1 + $0x68c] sm:$0xf] }
 0x1f3   :  { %4198 = vmatpush.bf16.msra.mxu2 %v6374_v54  ;;  %v3946_v54 = vpop.f32.mrf.mxu2  ;;  %v6310_v57 = vor.u32 %v7448_v46, %v6307_v51  ;;  %v6899_v24 = vld [vmem:[%s11638_s1 + $0x6b8] sm:$0xf0]  ;;  %v7556_v49 = vld [vmem:[%s11638_s1 + $0x56c] sm:$0xf] }
 0x1f4   :  { %4185 = vmatpush.bf16.msra.mxu1 %v6246_v52  ;;  %v6435_v52 = vld [vmem:[%s11638_s1 + $0x318] sm:$0xf0]  ;;  %v7620_v14 = vld [vmem:[%s11638_s1 + $0x76c] sm:$0xf] }
 0x1f5   :  { %4211 = vmatpush.bf16.msra.mxu3 %v6502_v12  ;;  %v3959_v12 = vpop.f32.mrf.mxu3  ;;  %v7027_v33 = vld [vmem:[%s11638_s1 + $0x7b8] sm:$0xf0] }
 0x1f6   :  { %4173 = vmatpush.bf16.msra.mxu0 %v6102_v58  ;;  %v7636_v58 = vld [vmem:[%s11638_s1 + $0x7ec] sm:$0xf]  ;;  %v6755_v48 = vld [vmem:[%s11638_s1 + $0x598] sm:$0xf0] }
 0x1f7   :  { %4199 = vmatpush.bf16.msra.mxu2 %v6358_v61  ;;  %v6438_v61 = vor.u32 %v7480_v50, %v6435_v52  ;;  %v7524_v52 = vld [vmem:[%s11638_s1 + $0x46c] sm:$0xf]  ;;  %v6611_v54 = vld [vmem:[%s11638_s1 + $0x478] sm:$0xf0] }
 0x1f8   :  { %4186 = vmatpush.bf16.msra.mxu1 %v6230_v60  ;;  %v7059_v60 = vld [vmem:[%s11638_s1 + $0x7f8] sm:$0xf0]  ;;  %v7588_v12 = vld [vmem:[%s11638_s1 + $0x66c] sm:$0xf]  ;;  %v6614_v55 = vor.u32 %v7524_v52, %v6611_v54  ;;  %v7185_v52 = vld [vmem:[#allocation7 + $0xf0] sm:$0xf] }
 0x1f9   :  { %4212 = vmatpush.bf16.msra.mxu3 %v6486_v3  ;;  %v7536_v3 = vld [vmem:[%s11638_s1 + $0x4cc] sm:$0xf]  ;;  %v7062_v7 = vor.u32 %v7636_v58, %v7059_v60  ;;  %v6995_v53 = vld [vmem:[%s11638_s1 + $0x778] sm:$0xf0]  ;;  %v7926_v54 = vld [vmem:[#allocation7 + $0xf4] sm:$0xf0] }
 0x1fa   :  { %4174 = vmatpush.bf16.msra.mxu0 %v6086_v20  ;;  %v6662_v11 = vor.u32 %v7536_v3, %v6659_v4  ;;  %v6790_v20 = vor.u32 %v7568_v6, %v6787_v13  ;;  %v7520_v58 = vld [vmem:[%s11638_s1 + $0x44c] sm:$0xf]  ;;  %v6595_v60 = vld [vmem:[%s11638_s1 + $0x458] sm:$0xf0] }
 0x1fb   :  { %4200 = vmatpush.bf16.msra.mxu2 %v6342_v25  ;;  %v6643_v25 = vld [vmem:[%s11638_s1 + $0x4b8] sm:$0xf0]  ;;  %v7584_v3 = vld [vmem:[%s11638_s1 + $0x64c] sm:$0xf]  ;;  %v6598_v17 = vor.u32 %v7520_v58, %v6595_v60 }
 0x1fc   :  { %4187 = vmatpush.bf16.msra.mxu1 %v6214_v23  ;;  %v7532_v23 = vld [vmem:[%s11638_s1 + $0x4ac] sm:$0xf]  ;;  %v6851_v4 = vld [vmem:[%s11638_s1 + $0x658] sm:$0xf0] }
 0x1fd   :  { %4213 = vmatpush.bf16.msra.mxu3 %v6470_v32  ;;  %v7596_v32 = vld [vmem:[%s11638_s1 + $0x6ac] sm:$0xf]  ;;  %v6646_v35 = vor.u32 %v7532_v23, %v6643_v25  ;;  %v6979_v13 = vld [vmem:[%s11638_s1 + $0x758] sm:$0xf0] }
 0x1fe   :  { %4175 = vmatpush.bf16.msra.mxu0 %v6070_v38  ;;  %v6902_v28 = vor.u32 %v7596_v32, %v6899_v24  ;;  %v7560_v38 = vld [vmem:[%s11638_s1 + $0x58c] sm:$0xf]  ;;  %v6707_v26 = vld [vmem:[%s11638_s1 + $0x538] sm:$0xf0] }
 0x1ff   :  { %4201 = vmatpush.bf16.msra.mxu2 %v6326_v42  ;;  %v6758_v51 = vor.u32 %v7560_v38, %v6755_v48  ;;  %v7548_v23 = vld [vmem:[%s11638_s1 + $0x52c] sm:$0xf]  ;;  %v6835_v30 = vld [vmem:[%s11638_s1 + $0x638] sm:$0xf0] }
 0x200   :  { %4188 = vmatpush.bf16.msra.mxu1 %v6198_v41  ;;  %v6883_v41 = vld [vmem:[%s11638_s1 + $0x698] sm:$0xf0]  ;;  %v7612_v32 = vld [vmem:[%s11638_s1 + $0x72c] sm:$0xf] }
 0x201   :  { %4214 = vmatpush.bf16.msra.mxu3 %v6454_v47  ;;  %v6886_v50 = vor.u32 %v7592_v40, %v6883_v41  ;;  %v6963_v24 = vld [vmem:[%s11638_s1 + $0x738] sm:$0xf0]  ;;  %v7608_v40 = vld [vmem:[%s11638_s1 + $0x70c] sm:$0xf] }
 0x202   :  { %4176 = vmatpush.bf16.msra.mxu0 %v6054_v10  ;;  %v11438_v42 = vpop.f32.mrf.mxu0  ;;  %v6867_v10 = vld [vmem:[%s11638_s1 + $0x678] sm:$0xf0]  ;;  %v6966_v38 = vor.u32 %v7612_v32, %v6963_v24 }
 0x203   :  { %4202 = vmatpush.bf16.msra.mxu2 %v6310_v57  ;;  %v6870_v57 = vor.u32 %v7588_v12, %v6867_v10  ;;  %v6819_v48 = vld [vmem:[%s11638_s1 + $0x618] sm:$0xf0]  ;;  %v3971_v10 = vadd.f32 %v11438_v42, %v10072_v31  ;;  %v7169_v31 = vld [vmem:[#allocation7 + $0xd0] sm:$0xf]  ;;  %v7922_v42 = vld [vmem:[#allocation7 + $0xd4] sm:$0xf0] }
 0x204   :  { %4189 = vmatpush.bf16.msra.mxu1 %v6182_v56  ;;  %v11446_v47 = vpop.f32.mrf.mxu1  ;;  %v6742_v56 = vor.u32 %v7556_v49, %v6739_v8  ;;  %v6947_v44 = vld [vmem:[%s11638_s1 + $0x718] sm:$0xf0] }
 0x205   :  { %4215 = vmatpush.bf16.msra.mxu3 %v6438_v61  ;;  %4177 = vmatmul.bf16.vlgmr.msra.gmra.mxu0 %v10159_v34  ;;  %v7628_v34 = vld [vmem:[%s11638_s1 + $0x7ac] sm:$0xf]  ;;  %v6950_v8 = vor.u32 %v7608_v40, %v6947_v44  ;;  %v3984_v60 = vadd.f32 %v11446_v47, %v3971_v10  ;;  %v7241_v44 = vld [vmem:[#allocation7 + $0x160] sm:$0xf]  ;;  %v7914_v10 = vld [vmem:[#allocation7 + $0x94] sm:$0xf0] }
 0x206   :  { %4221 = vmatpush.bf16.msrb.mxu0 %v6678_v63  ;;  %4203 = vmatmul.bf16.vlgmr.msra.gmra.mxu2 %v10170_v43  ;;  %v7528_v43 = vld [vmem:[%s11638_s1 + $0x48c] sm:$0xf]  ;;  %v6998_v63 = vor.u32 %v7620_v14, %v6995_v53  ;;  %v7186_v14 = vor.u32 %v7926_v54, %v7185_v52  ;;  %v7113_v53 = vld [vmem:[#allocation7 + $0x60] sm:$0xf] }
 0x207   :  { %4247 = vmatpush.bf16.msrb.mxu2 %v6934_v0  ;;  %4190 = vmatmul.bf16.vlgmr.msra.gmra.mxu1 %v10172_v37  ;;  %v6627_v37 = vld [vmem:[%s11638_s1 + $0x498] sm:$0xf0]  ;;  %v7552_v61 = vld [vmem:[%s11638_s1 + $0x54c] sm:$0xf] }
 0x208   :  { %4234 = vmatpush.bf16.msrb.mxu1 %v6806_v29  ;;  %4216 = vmatmul.bf16.vlgmr.msra.gmra.mxu3 %v10180_v39  ;;  %v7030_v39 = vor.u32 %v7628_v34, %v7027_v33  ;;  %v6630_v46 = vor.u32 %v7528_v43, %v6627_v37  ;;  %v6723_v0 = vld [vmem:[%s11638_s1 + $0x558] sm:$0xf0]  ;;  %v7512_v33 = vld [vmem:[%s11638_s1 + $0x40c] sm:$0xf] }
 0x209   :  { %4260 = vmatpush.bf16.msrb.mxu3 %v7062_v7  ;;  %v11481_v29 = vpop.f32.mrf.mxu2  ;;  %v7616_v7 = vld [vmem:[%s11638_s1 + $0x74c] sm:$0xf]  ;;  %v6726_v19 = vor.u32 %v7552_v61, %v6723_v0  ;;  %v6691_v37 = vld [vmem:[%s11638_s1 + $0x518] sm:$0xf0]  ;;  %v7906_v0 = vld [vmem:[#allocation7 + $0x54] sm:$0xf0] }
 0x20a   :  { %4222 = vmatpush.bf16.msrb.mxu0 %v6662_v11  ;;  %v3972_v15 = vpop.f32.mrf.mxu0  ;;  %v6854_v11 = vor.u32 %v7584_v3, %v6851_v4  ;;  %v6982_v25 = vor.u32 %v7616_v7, %v6979_v13  ;;  %v7544_v43 = vld [vmem:[%s11638_s1 + $0x50c] sm:$0xf]  ;;  %v3997_v3 = vadd.f32 %v11481_v29, %v3984_v60  ;;  %v11556_v4 = vld [vmem:[#allocation2] sm:$0xf]  ;;  %v7170_v7 = vor.u32 %v7922_v42, %v7169_v31  ;;  %v7904_v13 = vld [vmem:[#allocation7 + $0x44] sm:$0xf0] }
 0x20b   :  { %4248 = vmatpush.bf16.msrb.mxu2 %v6918_v21  ;;  %v11492_v6 = vpop.f32.mrf.mxu3  ;;  %v6579_v21 = vld [vmem:[%s11638_s1 + $0x438] sm:$0xf0]  ;;  %v6694_v49 = vor.u32 %v7544_v43, %v6691_v37  ;;  %v7161_v15 = vld [vmem:[#allocation7 + $0xc0] sm:$0xf]  ;;  %v7912_v42 = vld [vmem:[#allocation7 + $0x84] sm:$0xf0] }
 0x20c   :  { %4235 = vmatpush.bf16.msrb.mxu1 %v6790_v20  ;;  %v3985_v18 = vpop.f32.mrf.mxu1  ;;  %v7516_v20 = vld [vmem:[%s11638_s1 + $0x42c] sm:$0xf]  ;;  %v7145_v37 = vld [vmem:[#allocation7 + $0xa0] sm:$0xf] }
 0x20d   :  { %4261 = vmatpush.bf16.msrb.mxu3 %v7046_v27  ;;  %v7580_v27 = vld [vmem:[%s11638_s1 + $0x62c] sm:$0xf]  ;;  %v6582_v34 = vor.u32 %v7516_v20, %v6579_v21  ;;  %v7089_v21 = vld [vmem:[#allocation7 + $0x30] sm:$0xf]  ;;  %v7065_v60 = vld [vmem:[#allocation7] sm:$0xf] }
 0x20e   :  { %4223 = vmatpush.bf16.msrb.mxu0 %v6646_v35  ;;  %v6710_v35 = vor.u32 %v7548_v23, %v6707_v26  ;;  %v7902_v23 = vld [vmem:[#allocation7 + $0x34] sm:$0xf0] }
 0x20f   :  { %4249 = vmatpush.bf16.msrb.mxu2 %v6902_v28  ;;  %v6563_v28 = vld [vmem:[%s11638_s1 + $0x418] sm:$0xf0]  ;;  %v7918_v26 = vld [vmem:[#allocation7 + $0xb4] sm:$0xf0] }
 0x210   :  { %4236 = vmatpush.bf16.msrb.mxu1 %v6774_v36  ;;  %v6838_v36 = vor.u32 %v7580_v27, %v6835_v30  ;;  %v7249_v27 = vld [vmem:[#allocation7 + $0x170] sm:$0xf]  ;;  %v7942_v30 = vld [vmem:[#allocation7 + $0x174] sm:$0xf0] }
 0x211   :  { %4262 = vmatpush.bf16.msrb.mxu3 %v7030_v39  ;;  %v7576_v39 = vld [vmem:[%s11638_s1 + $0x60c] sm:$0xf]  ;;  %v3998_v41 = vpop.f32.mrf.mxu2 }
 0x212   :  { %4224 = vmatpush.bf16.msrb.mxu0 %v6630_v46  ;;  %v7910_v46 = vld [vmem:[#allocation7 + $0x74] sm:$0xf0]  ;;  %v4276_v41 = vperm.slane %v11556_v4, 1 }
 0x213   :  { %4250 = vmatpush.bf16.msrb.mxu2 %v6886_v50  ;;  %v6566_v50 = vor.u32 %v7512_v33, %v6563_v28  ;;  %v7122_v12 = vor.u32 %v7910_v46, %v7121_v45  ;;  %v7900_v28 = vld [vmem:[#allocation7 + $0x24] sm:$0xf0] }
 0x214   :  { %4237 = vmatpush.bf16.msrb.mxu1 %v6758_v51  ;;  %v4011_v51 = vpop.f32.mrf.mxu3  ;;  %v7940_v45 = vld [vmem:[#allocation7 + $0x164] sm:$0xf0] }
 0x215   :  { %4263 = vmatpush.bf16.msrb.mxu3 %v7014_v59  ;;  %v6822_v59 = vor.u32 %v7576_v39, %v6819_v48  ;;  %v7242_v52 = vor.u32 %v7940_v45, %v7241_v44  ;;  %v7903_v44 = vld [vmem:[#allocation7 + $0x44] sm:$0xf]  ;;  %v7099_v45 = vld [vmem:[#allocation7 + $0x48] sm:$0xf0] }
 0x216   :  { %4225 = vmatpush.bf16.msrb.mxu0 %v6614_v55  ;;  %v7908_v55 = vld [vmem:[#allocation7 + $0x64] sm:$0xf0] }
 0x217   :  { %4251 = vmatpush.bf16.msrb.mxu2 %v6870_v57  ;;  %v7924_v57 = vld [vmem:[#allocation7 + $0xe4] sm:$0xf0]  ;;  %v7114_v58 = vor.u32 %v7908_v55, %v7113_v53  ;;  %v7938_v53 = vld [vmem:[#allocation7 + $0x154] sm:$0xf0] }
 0x218   :  { %4238 = vmatpush.bf16.msrb.mxu1 %v6742_v56  ;;  %v7177_v56 = vld [vmem:[#allocation7 + $0xe0] sm:$0xf] }
 0x219   :  { %4264 = vmatpush.bf16.msrb.mxu3 %v6998_v63  ;;  %v7178_v61 = vor.u32 %v7924_v57, %v7177_v56  ;;  %v7105_v63 = vld [vmem:[#allocation7 + $0x50] sm:$0xf] }
 0x21a   :  { %4226 = vmatpush.bf16.msrb.mxu0 %v6598_v17  ;;  %v7106_v47 = vor.u32 %v7906_v0, %v7105_v63  ;;  %v7920_v17 = vld [vmem:[#allocation7 + $0xc4] sm:$0xf0]  ;;  %v7129_v63 = vld [vmem:[#allocation7 + $0x80] sm:$0xf] }
 0x21b   :  { %4252 = vmatpush.bf16.msrb.mxu2 %v6854_v11  ;;  %v7162_v20 = vor.u32 %v7920_v17, %v7161_v15  ;;  %v7936_v15 = vld [vmem:[#allocation7 + $0x144] sm:$0xf0] }
 0x21c   :  { %4239 = vmatpush.bf16.msrb.mxu1 %v6726_v19  ;;  %v11560_v19 = vld [vmem:[#allocation5] sm:$0xf] }
 0x21d   :  { %4265 = vmatpush.bf16.msrb.mxu3 %v6982_v25  ;;  %v7153_v25 = vld [vmem:[#allocation7 + $0xb0] sm:$0xf]  ;;  %v4289_v24 = vperm.slane %v11560_v19, 0  ;;  %v4290_v46 = vperm.slane %v11560_v19, 1 }
 0x21e   :  { %4227 = vmatpush.bf16.msrb.mxu0 %v6582_v34  ;;  %v7090_v34 = vor.u32 %v7902_v23, %v7089_v21 }
 0x21f   :  { %4253 = vmatpush.bf16.msrb.mxu2 %v6838_v36  ;;  %v7081_v36 = vld [vmem:[#allocation7 + $0x20] sm:$0xf] }
 0x220   :  { %4240 = vmatpush.bf16.msrb.mxu1 %v6710_v35  ;;  %v7154_v35 = vor.u32 %v7918_v26, %v7153_v25  ;;  %v7082_v51 = vor.u32 %v7900_v28, %v7081_v36  ;;  %v7907_v25 = vld [vmem:[#allocation7 + $0x64] sm:$0xf]  ;;  %v7115_v26 = vld [vmem:[#allocation7 + $0x68] sm:$0xf0]  ;;  %v7209_v36 = vld [vmem:[#allocation7 + $0x120] sm:$0xf] }
 0x221   :  { %4266 = vmatpush.bf16.msrb.mxu3 %v6966_v38  ;;  %v7916_v38 = vld [vmem:[#allocation7 + $0xa4] sm:$0xf0] }
 0x222   :  { %4228 = vmatpush.bf16.msrb.mxu0 %v6566_v50  ;;  %v4022_v18 = vpop.f32.mrf.mxu0  ;;  %v7932_v28 = vld [vmem:[#allocation7 + $0x124] sm:$0xf0] }
 0x223   :  { %4254 = vmatpush.bf16.msrb.mxu2 %v6822_v59  ;;  %v7073_v59 = vld [vmem:[#allocation7 + $0x10] sm:$0xf] }
 0x224   :  { %4241 = vmatpush.bf16.msrb.mxu1 %v6694_v49  ;;  %v7146_v49 = vor.u32 %v7916_v38, %v7145_v37  ;;  %v7905_v37 = vld [vmem:[#allocation7 + $0x54] sm:$0xf]  ;;  %v7107_v38 = vld [vmem:[#allocation7 + $0x58] sm:$0xf0] }
 0x225   :  { %4267 = vmatpush.bf16.msrb.mxu3 %v6950_v8  ;;  %4229 = vmatmul.bf16.vlgmr.msrb.gmra.mxu0 %v10375_v62  ;;  %v7097_v62 = vld [vmem:[#allocation7 + $0x40] sm:$0xf]  ;;  %v7898_v8 = vld [vmem:[#allocation7 + $0x14] sm:$0xf0] }
 0x226   :  { %4707 = vmatpush.bf16.msra.mxu0 %v7122_v12  ;;  %4255 = vmatmul.bf16.vlgmr.msrb.gmra.mxu2 %v10386_v1  ;;  %v4010_v1 = vadd.f32 %v11492_v6, %v3997_v3  ;;  %v7098_v29 = vor.u32 %v7904_v13, %v7097_v62  ;;  %v7250_v6 = vor.u32 %v7942_v30, %v7249_v27  ;;  %v7137_v12 = vld [vmem:[#allocation7 + $0x90] sm:$0xf]  ;;  %v7909_v3 = vld [vmem:[#allocation7 + $0x74] sm:$0xf]  ;;  %v7225_v13 = vld [vmem:[#allocation7 + $0x140] sm:$0xf] }
 0x227   :  { %4242 = vmatmul.bf16.vlgmr.msrb.gmra.mxu1 %v10388_v2  ;;  %v4275_v2 = vperm.slane %v11556_v4, 0  ;;  %v7138_v31 = vor.u32 %v7914_v10, %v7137_v12  ;;  %v7923_v27 = vld [vmem:[#allocation7 + $0xe4] sm:$0xf]  ;;  %v7179_v30 = vld [vmem:[#allocation7 + $0xe8] sm:$0xf0] }
 0x228   :  { %4720 = vmatpush.bf16.msra.mxu1 %v7186_v14  ;;  %4268 = vmatmul.bf16.vlgmr.msrb.gmra.mxu3 %v10396_v5  ;;  %v4035_v5 = vpop.f32.mrf.mxu1  ;;  %v4023_v11 = vadd.f32 %v4022_v18, %v4010_v1  ;;  %v7233_v14 = vld [vmem:[#allocation7 + $0x150] sm:$0xf]  ;;  %v7226_v18 = vor.u32 %v7936_v15, %v7225_v13  ;;  %v7091_v12 = vld [vmem:[#allocation7 + $0x38] sm:$0xf0]  ;;  %v7939_v13 = vld [vmem:[#allocation7 + $0x164] sm:$0xf] }
 0x229   :  { %v4283_v32 = vmul.f32 %v4275_v2, %v11294_v22  ;;  %4733 = vmatpush.bf16.msra.mxu2 %v7250_v6  ;;  %v4048_v43 = vpop.f32.mrf.mxu2  ;;  %v7234_v57 = vor.u32 %v7938_v53, %v7233_v14  ;;  %v7187_v2 = vld [vmem:[#allocation7 + $0xf8] sm:$0xf0]  ;;  %v7193_v53 = vld [vmem:[#allocation7 + $0x100] sm:$0xf]  ;;  %v7243_v15 = vld [vmem:[#allocation7 + $0x168] sm:$0xf0] }
 0x22a   :  { %4708 = vmatpush.bf16.msra.mxu0 %v7114_v58  ;;  %v4036_v33 = vadd.f32 %v4035_v5, %v4023_v11  ;;  %v4024_v22 = vpop.f32.mrf.mxu0  ;;  %v7074_v58 = vor.u32 %v7898_v8, %v7073_v59  ;;  %v7130_v11 = vor.u32 %v7912_v42, %v7129_v63  ;;  %v7102_v59 = vor.u32 %v7903_v44, %v7099_v45  ;;  %v7901_v8 = vld [vmem:[#allocation7 + $0x34] sm:$0xf]  ;;  %v7899_v42 = vld [vmem:[#allocation7 + $0x24] sm:$0xf] }
 0x22b   :  { %v4297_v39 = vadd.f32 %v4289_v24, %v4283_v32  ;;  %v4061_v40 = vpop.f32.mrf.mxu3  ;;  %v7217_v32 = vld [vmem:[#allocation7 + $0x130] sm:$0xf]  ;;  %v7934_v24 = vld [vmem:[#allocation7 + $0x134] sm:$0xf0]  ;;  %v7931_v44 = vld [vmem:[#allocation7 + $0x124] sm:$0xf] }
 0x22c   :  { %4721 = vmatpush.bf16.msra.mxu1 %v7178_v61  ;;  %v4049_v48 = vadd.f32 %v4048_v43, %v4036_v33  ;;  %v7896_v61 = vld [vmem:[#allocation7 + $0x4] sm:$0xf0]  ;;  %v7182_v43 = vor.u32 %v7923_v27, %v7179_v30 }
 0x22d   :  { %4734 = vmatpush.bf16.msra.mxu2 %v7242_v52  ;;  %v4305_v55 = vmul.f32 0.2, %v4297_v39  ;;  %vm4301_vm1 = vcmp.gt.f32.partialorder %v4297_v39, 0.0  ;;  %v7930_v52 = vld [vmem:[#allocation7 + $0x114] sm:$0xf0] }
 0x22e   :  { %4709 = vmatpush.bf16.msra.mxu0 %v7106_v47  ;;  %v4062_v54 = vadd.f32 %v4061_v40, %v4049_v48  ;;  %v7123_v47 = vld [vmem:[#allocation7 + $0x78] sm:$0xf0]  ;;  %v7921_v48 = vld [vmem:[#allocation7 + $0xd4] sm:$0xf] }
 0x22f   :  { %v4309_v21 = vsel %vm4301_vm1, %v4297_v39, %v4305_v55  ;;  %v7210_v39 = vor.u32 %v7932_v28, %v7209_v36  ;;  %v7171_v40 = vld [vmem:[#allocation7 + $0xd8] sm:$0xf0]  ;;  %v7928_v55 = vld [vmem:[#allocation7 + $0x104] sm:$0xf0]  ;;  %v7131_v36 = vld [vmem:[#allocation7 + $0x88] sm:$0xf0] }
 0x230   :  { %4722 = vmatpush.bf16.msra.mxu1 %v7170_v7  ;;  %v4037_v50 = vpop.f32.mrf.mxu1  ;;  %v4284_v56 = vmul.f32 %v4276_v41, %v4062_v54  ;;  %v7925_v7 = vld [vmem:[#allocation7 + $0xf4] sm:$0xf]  ;;  %v11568_v33 = vpack.c.bf16 %v4309_v21, %v4309_v21  ;;  %v7110_v41 = vor.u32 %v7905_v37, %v7107_v38  ;;  %v7174_v22 = vor.u32 %v7921_v48, %v7171_v40  ;;  %v7227_v37 = vld [vmem:[#allocation7 + $0x148] sm:$0xf0] }
 0x231   :  { %v4050_v62 = vpop.f32.mrf.mxu2  ;;  %4735 = vmatpush.bf16.msra.mxu2 %v7234_v57  ;;  %v7190_v23 = vor.u32 %v7925_v7, %v7187_v2  ;;  %v7201_v50 = vld [vmem:[#allocation7 + $0x110] sm:$0xf]  ;;  %v7917_v57 = vld [vmem:[#allocation7 + $0xb4] sm:$0xf]  ;;  %v7147_v7 = vld [vmem:[#allocation7 + $0xa8] sm:$0xf0] }
 0x232   :  { %4710 = vmatpush.bf16.msra.mxu0 %v7098_v29  ;;  %v4298_v0 = vadd.f32 %v4290_v46, %v4284_v56  ;;  %v7066_v29 = vor.u32 %v7896_v61, %v7065_v60  ;;  %v7919_v46 = vld [vmem:[#allocation7 + $0xc4] sm:$0xf]  ;;  %v7202_v54 = vor.u32 %v7930_v52, %v7201_v50  ;;  %v7941_v56 = vld [vmem:[#allocation7 + $0x174] sm:$0xf]  ;;  %v7194_v60 = vor.u32 %v7928_v55, %v7193_v53  ;;  %v7251_v61 = vld [vmem:[#allocation7 + $0x178] sm:$0xf0] }
 0x233   :  { %v4063_v1 = vpop.f32.mrf.mxu3  ;;  %v7254_v63 = vor.u32 %v7941_v56, %v7251_v61  ;;  %v7913_v21 = vld [vmem:[#allocation7 + $0x94] sm:$0xf]  ;;  %v7195_v55 = vld [vmem:[#allocation7 + $0x108] sm:$0xf0]  ;;  %v7313_v56 = vld [vmem:[#allocation7 + $0x1f0] sm:$0xf] }
 0x234   :  { %4723 = vmatpush.bf16.msra.mxu1 %v7162_v20  ;;  %vm4302_vm2 = vcmp.gt.f32.partialorder %v4298_v0, 0.0  ;;  %v4306_v17 = vmul.f32 0.2, %v4298_v0  ;;  %v7126_v20 = vor.u32 %v7909_v3, %v7123_v47  ;;  %v7083_v3 = vld [vmem:[#allocation7 + $0x28] sm:$0xf0] }
 0x235   :  { %4736 = vmatpush.bf16.msra.mxu2 %v7226_v18  ;;  %v7915_v47 = vld [vmem:[#allocation7 + $0xa4] sm:$0xf]  ;;  %v7086_v2 = vor.u32 %v7899_v42, %v7083_v3  ;;  %v7246_v18 = vor.u32 %v7939_v13, %v7243_v15  ;;  %v7956_v61 = vld [vmem:[#allocation7 + $0x1e4] sm:$0xf0]  ;;  %v4277_v3 = vperm.slane %v11556_v4, 2 }
 0x236   :  { %4711 = vmatpush.bf16.msra.mxu0 %v7090_v34  ;;  %v4310_v5 = vsel %vm4302_vm2, %v4298_v0, %v4306_v17  ;;  %v7218_v34 = vor.u32 %v7934_v24, %v7217_v32  ;;  %v7094_v0 = vor.u32 %v7901_v8, %v7091_v12  ;;  %v7895_v24 = vld [vmem:[#allocation7 + $0x4] sm:$0xf]  ;;  %v7203_v8 = vld [vmem:[#allocation7 + $0x118] sm:$0xf0] }
 0x237   :  { %v11566_v6 = vpack.c.bf16 %v4310_v5, %v4310_v5  ;;  %v7897_v5 = vld [vmem:[#allocation7 + $0x14] sm:$0xf] }
 0x238   :  { %4724 = vmatpush.bf16.msra.mxu1 %v7154_v35  ;;  %v7118_v35 = vor.u32 %v7907_v25, %v7115_v26  ;;  %v7937_v25 = vld [vmem:[#allocation7 + $0x154] sm:$0xf]  ;;  %v7235_v26 = vld [vmem:[#allocation7 + $0x158] sm:$0xf0] }
 0x239   :  { %4737 = vmatpush.bf16.msra.mxu2 %v7218_v34  ;;  %v7238_v30 = vor.u32 %v7937_v25, %v7235_v26  ;;  %v7067_v34 = vld [vmem:[#allocation7 + $0x8] sm:$0xf0] }
 0x23a   :  { %4712 = vmatpush.bf16.msra.mxu0 %v7082_v51  ;;  %v7163_v51 = vld [vmem:[#allocation7 + $0xc8] sm:$0xf0]  ;;  %v7070_v38 = vor.u32 %v7895_v24, %v7067_v34  ;;  %v7948_v24 = vld [vmem:[#allocation7 + $0x1a4] sm:$0xf0] }
 0x23b   :  { %v7166_v10 = vor.u32 %v7919_v46, %v7163_v51  ;;  %v7211_v51 = vld [vmem:[#allocation7 + $0x128] sm:$0xf0] }
 0x23c   :  { %4725 = vmatpush.bf16.msra.mxu1 %v7146_v49  ;;  %v7214_v50 = vor.u32 %v7931_v44, %v7211_v51 }
 0x23d   :  { %4738 = vmatpush.bf16.msra.mxu2 %v7210_v39 }
 0x23e   :  { %4713 = vmatpush.bf16.msra.mxu0 %v7074_v58  ;;  %v7155_v58 = vld [vmem:[#allocation7 + $0xb8] sm:$0xf0] }
 0x240   :  { %4726 = vmatpush.bf16.msra.mxu1 %v7138_v31  ;;  %v7158_v31 = vor.u32 %v7917_v57, %v7155_v58 }
 0x241   :  { %4739 = vmatpush.bf16.msra.mxu2 %v7202_v54 }
 0x242   :  { %4714 = vmatpush.bf16.msra.mxu0 %v7066_v29  ;;  %v11572_v49 = vpop.f32.mrf.mxu0  ;;  %v7150_v29 = vor.u32 %v7915_v47, %v7147_v7  ;;  %v7297_v7 = vld [vmem:[#allocation7 + $0x1d0] sm:$0xf] }
 0x243   :  { %v4075_v45 = vadd.f32 %v11572_v49, %v10499_v9  ;;  %v7927_v49 = vld [vmem:[#allocation7 + $0x104] sm:$0xf] }
 0x244   :  { %4727 = vmatpush.bf16.msra.mxu1 %v7130_v11  ;;  %v11574_v14 = vpop.f32.mrf.mxu1  ;;  %v7075_v11 = vld [vmem:[#allocation7 + $0x18] sm:$0xf0]  ;;  %v7198_v58 = vor.u32 %v7927_v49, %v7195_v55 }
 0x245   :  { %4715 = vmatmul.bf16.vlgmr.msra.gmra.mxu0 %v11568_v33  ;;  %4740 = vmatpush.bf16.msra.mxu2 %v7194_v60  ;;  %v7078_v27 = vor.u32 %v7897_v5, %v7075_v11  ;;  %v4088_v52 = vadd.f32 %v11574_v14, %v4075_v45  ;;  %v7958_v60 = vld [vmem:[#allocation7 + $0x1f4] sm:$0xf0]  ;;  %v7955_v45 = vld [vmem:[#allocation7 + $0x1e4] sm:$0xf] }
 0x246   :  { %4759 = vmatpush.bf16.msrb.mxu0 %v7126_v20 }
 0x247   :  { %4728 = vmatmul.bf16.vlgmr.msra.gmra.mxu1 %v11566_v6 }
 0x248   :  { %4772 = vmatpush.bf16.msrb.mxu1 %v7190_v23  ;;  %v7139_v23 = vld [vmem:[#allocation7 + $0x98] sm:$0xf0] }
 0x249   :  { %4785 = vmatpush.bf16.msrb.mxu2 %v7254_v63  ;;  %v4100_v62 = vpop.f32.mrf.mxu2  ;;  %v7142_v32 = vor.u32 %v7913_v21, %v7139_v23  ;;  %v7950_v21 = vld [vmem:[#allocation7 + $0x1b4] sm:$0xf0] }
 0x24a   :  { %4760 = vmatpush.bf16.msrb.mxu0 %v7118_v35  ;;  %v4076_v1 = vpop.f32.mrf.mxu0  ;;  %v7911_v35 = vld [vmem:[#allocation7 + $0x84] sm:$0xf]  ;;  %v4101_v54 = vadd.f32 %v4100_v62, %v4088_v52  ;;  %v7954_v62 = vld [vmem:[#allocation7 + $0x1d4] sm:$0xf0] }
 0x24b   :  { %v4113_v17 = vpop.f32.mrf.mxu3  ;;  %v7134_v40 = vor.u32 %v7911_v35, %v7131_v36  ;;  %v7298_v15 = vor.u32 %v7954_v62, %v7297_v7  ;;  %v7289_v1 = vld [vmem:[#allocation7 + $0x1c0] sm:$0xf]  ;;  %v7265_v36 = vld [vmem:[#allocation7 + $0x190] sm:$0xf]  ;;  %v7943_v62 = vld [vmem:[#allocation7 + $0x184] sm:$0xf] }
 0x24c   :  { %4773 = vmatpush.bf16.msrb.mxu1 %v7182_v43  ;;  %v4089_v20 = vpop.f32.mrf.mxu1  ;;  %v7935_v43 = vld [vmem:[#allocation7 + $0x144] sm:$0xf] }
 0x24d   :  { %4786 = vmatpush.bf16.msrb.mxu2 %v7246_v18  ;;  %v7230_v48 = vor.u32 %v7935_v43, %v7227_v37  ;;  %v7952_v18 = vld [vmem:[#allocation7 + $0x1c4] sm:$0xf0]  ;;  %v7281_v20 = vld [vmem:[#allocation7 + $0x1b0] sm:$0xf] }
 0x24e   :  { %4761 = vmatpush.bf16.msrb.mxu0 %v7110_v41  ;;  %v7933_v41 = vld [vmem:[#allocation7 + $0x134] sm:$0xf]  ;;  %v7290_v5 = vor.u32 %v7952_v18, %v7289_v1 }
 0x250   :  { %4774 = vmatpush.bf16.msrb.mxu1 %v7174_v22  ;;  %v7219_v22 = vld [vmem:[#allocation7 + $0x138] sm:$0xf0] }
 0x251   :  { %4787 = vmatpush.bf16.msrb.mxu2 %v7238_v30  ;;  %v4102_v28 = vpop.f32.mrf.mxu2  ;;  %v7222_v46 = vor.u32 %v7933_v41, %v7219_v22  ;;  %v7315_v22 = vld [vmem:[#allocation7 + $0x1f8] sm:$0xf0] }
 0x252   :  { %4762 = vmatpush.bf16.msrb.mxu0 %v7102_v59  ;;  %v7929_v59 = vld [vmem:[#allocation7 + $0x114] sm:$0xf]  ;;  %v7946_v28 = vld [vmem:[#allocation7 + $0x194] sm:$0xf0] }
 0x253   :  { %v4115_v39 = vpop.f32.mrf.mxu3  ;;  %v7206_v12 = vor.u32 %v7929_v59, %v7203_v8  ;;  %v7266_v43 = vor.u32 %v7946_v28, %v7265_v36  ;;  %v7953_v8 = vld [vmem:[#allocation7 + $0x1d4] sm:$0xf] }
 0x254   :  { %4775 = vmatpush.bf16.msrb.mxu1 %v7166_v10  ;;  %v4114_v10 = vadd.f32 %v4113_v17, %v4101_v54  ;;  %v7944_v39 = vld [vmem:[#allocation7 + $0x184] sm:$0xf0] }
 0x255   :  { %4788 = vmatpush.bf16.msrb.mxu2 %v7230_v48  ;;  %v7957_v48 = vld [vmem:[#allocation7 + $0x1f4] sm:$0xf] }
 0x256   :  { %4763 = vmatpush.bf16.msrb.mxu0 %v7094_v0  ;;  %v7318_v44 = vor.u32 %v7957_v48, %v7315_v22 }
 0x258   :  { %4776 = vmatpush.bf16.msrb.mxu1 %v7158_v31 }
 0x259   :  { %4789 = vmatpush.bf16.msrb.mxu2 %v7222_v46  ;;  %v7307_v46 = vld [vmem:[#allocation7 + $0x1e8] sm:$0xf0] }
 0x25a   :  { %4764 = vmatpush.bf16.msrb.mxu0 %v7086_v2  ;;  %v4291_v2 = vperm.slane %v11560_v19, 2  ;;  %v7310_v51 = vor.u32 %v7955_v45, %v7307_v46  ;;  %v7966_v46 = vld [vmem:[%s11646_s9 + $0x38] sm:$0xff] }
 0x25c   :  { %4777 = vmatpush.bf16.msrb.mxu1 %v7150_v29 }
 0x25d   :  { %4790 = vmatpush.bf16.msrb.mxu2 %v7214_v50 }
 0x25e   :  { %4765 = vmatpush.bf16.msrb.mxu0 %v7078_v27  ;;  %v7282_v27 = vor.u32 %v7950_v21, %v7281_v20 }
 0x260   :  { %4778 = vmatpush.bf16.msrb.mxu1 %v7142_v32  ;;  %v7273_v32 = vld [vmem:[#allocation7 + $0x1a0] sm:$0xf] }
 0x261   :  { %4791 = vmatpush.bf16.msrb.mxu2 %v7206_v12  ;;  %v7274_v35 = vor.u32 %v7948_v24, %v7273_v32  ;;  %v7299_v12 = vld [vmem:[#allocation7 + $0x1d8] sm:$0xf0] }
 0x262   :  { %4766 = vmatpush.bf16.msrb.mxu0 %v7070_v38  ;;  %v4126_v53 = vpop.f32.mrf.mxu0  ;;  %v7257_v38 = vld [vmem:[#allocation7 + $0x180] sm:$0xf] }
 0x263   :  { %v4127_v57 = vadd.f32 %v4126_v53, %v4114_v10  ;;  %v7258_v41 = vor.u32 %v7944_v39, %v7257_v38  ;;  %v7302_v10 = vor.u32 %v7953_v8, %v7299_v12  ;;  %v7951_v53 = vld [vmem:[#allocation7 + $0x1c4] sm:$0xf]  ;;  %v7962_v8 = vld [vmem:[%s11646_s9 + $0x18] sm:$0xff] }
 0x264   :  { %4779 = vmatpush.bf16.msrb.mxu1 %v7134_v40  ;;  %v4139_v9 = vpop.f32.mrf.mxu1 }
 0x265   :  { %4767 = vmatmul.bf16.vlgmr.msrb.gmra.mxu0 %v11568_v33  ;;  %v7314_v33 = vor.u32 %v7958_v60, %v7313_v56  ;;  %4792 = vmatpush.bf16.msrb.mxu2 %v7198_v58  ;;  %v4140_v14 = vadd.f32 %v4139_v9, %v4127_v57  ;;  %v7291_v9 = vld [vmem:[#allocation7 + $0x1c8] sm:$0xf0]  ;;  %v7949_v57 = vld [vmem:[#allocation7 + $0x1b4] sm:$0xf]  ;;  %v7283_v58 = vld [vmem:[#allocation7 + $0x1b8] sm:$0xf0] }
 0x266   :  { %v7294_v49 = vor.u32 %v7951_v53, %v7291_v9  ;;  %v7286_v60 = vor.u32 %v7949_v57, %v7283_v58  ;;  %4967 = vmatpush.bf16.msra.mxu0 %v7966_v46  ;;  %v7961_v9 = vld [vmem:[%s11646_s9 + $0x10] sm:$0xff]  ;;  %v7959_v57 = vld [vmem:[%s11646_s9] sm:$0xff] }
 0x267   :  { %4780 = vmatmul.bf16.vlgmr.msrb.gmra.mxu1 %v11566_v6  ;;  %4746 = vmatpush.bf16.msra.mxu3 %v7314_v33  ;;  %v7305_v6 = vld [vmem:[#allocation7 + $0x1e0] sm:$0xf]  ;;  %v7947_v33 = vld [vmem:[#allocation7 + $0x1a4] sm:$0xf]  ;;  %v7971_v58 = vld [vmem:[%s11646_s9 + $0x60] sm:$0xff] }
 0x268   :  { %v7306_v0 = vor.u32 %v7956_v61, %v7305_v6 }
 0x269   :  { %v4152_v63 = vpop.f32.mrf.mxu2 }
 0x26a   :  { %v4153_v31 = vadd.f32 %v4152_v63, %v4140_v14  ;;  %v4128_v47 = vpop.f32.mrf.mxu0  ;;  %v7275_v14 = vld [vmem:[#allocation7 + $0x1a8] sm:$0xf0] }
 0x26b   :  { %v4165_v42 = vpop.f32.mrf.mxu3  ;;  %4747 = vmatpush.bf16.msra.mxu3 %v7306_v0  ;;  %v7278_v61 = vor.u32 %v7947_v33, %v7275_v14  ;;  %v7969_v33 = vld [vmem:[%s11646_s9 + $0x50] sm:$0xff]  ;;  %v7968_v14 = vld [vmem:[%s11646_s9 + $0x48] sm:$0xff] }
 0x26c   :  { %v4141_v13 = vpop.f32.mrf.mxu1  ;;  %v4166_v17 = vadd.f32 %v4165_v42, %v4153_v31  ;;  %v7945_v31 = vld [vmem:[#allocation7 + $0x194] sm:$0xf]  ;;  %v7267_v42 = vld [vmem:[#allocation7 + $0x198] sm:$0xf0] }
 0x26d   :  { %v7259_v13 = vld [vmem:[#allocation7 + $0x188] sm:$0xf0] }
 0x26e   :  { %v4285_v29 = vmul.f32 %v4277_v3, %v4166_v17  ;;  %v7270_v3 = vor.u32 %v7945_v31, %v7267_v42  ;;  %v7262_v17 = vor.u32 %v7943_v62, %v7259_v13 }
 0x26f   :  { %4748 = vmatpush.bf16.msra.mxu3 %v7298_v15 }
 0x270   :  { %v4299_v11 = vadd.f32 %v4291_v2, %v4285_v29 }
 0x271   :  { %v4154_v23 = vpop.f32.mrf.mxu2 }
 0x272   :  { %vm4303_vm3 = vcmp.gt.f32.partialorder %v4299_v11, 0.0  ;;  %v4307_v25 = vmul.f32 0.2, %v4299_v11  ;;  %v4292_v23 = vperm.slane %v11560_v19, 3 }
 0x273   :  { %v4167_v26 = vpop.f32.mrf.mxu3  ;;  %4749 = vmatpush.bf16.msra.mxu3 %v7290_v5  ;;  %v4278_v5 = vperm.slane %v11556_v4, 3 }
 0x274   :  { %v4311_v30 = vsel %vm4303_vm3, %v4299_v11, %v4307_v25 }
 0x275   :  { %v4315_v34 = vpack.c.bf16 %v4311_v30, %v4311_v30 }
 0x277   :  { %4741 = vmatmul.bf16.vlgmr.msra.gmra.mxu2 %v4315_v34  ;;  %4750 = vmatpush.bf16.msra.mxu3 %v7282_v27 }
 0x27b   :  { %4751 = vmatpush.bf16.msra.mxu3 %v7274_v35  ;;  %v4381_v35 = vld [vmem:[#allocation8] sm:$0x3] }
 0x27c   :  { %v4383_v36 = vperm.slane %v4381_v35, 0  ;;  %v4384_v48 = vperm.slane %v4381_v35, 1 }
 0x27f   :  { %4752 = vmatpush.bf16.msra.mxu3 %v7266_v43 }
 0x282   :  { %v4178_v37 = vpop.f32.mrf.mxu0 }
 0x283   :  { %4753 = vmatpush.bf16.msra.mxu3 %v7258_v41  ;;  %v4179_v6 = vadd.f32 %v4178_v37, %v10896_v16 }
 0x284   :  { %v4191_v40 = vpop.f32.mrf.mxu1 }
 0x285   :  { %v4192_v63 = vadd.f32 %v4191_v40, %v4179_v6  ;;  %v7967_v6 = vld [vmem:[%s11646_s9 + $0x40] sm:$0xff] }
 0x287   :  { %4798 = vmatpush.bf16.msrb.mxu3 %v7318_v44  ;;  %4793 = vmatmul.bf16.vlgmr.msrb.gmra.mxu2 %v4315_v34 }
 0x289   :  { %v4204_v50 = vpop.f32.mrf.mxu2 }
 0x28a   :  { %v4180_v54 = vpop.f32.mrf.mxu0  ;;  %v4205_v0 = vadd.f32 %v4204_v50, %v4192_v63  ;;  %v7965_v50 = vld [vmem:[%s11646_s9 + $0x30] sm:$0xff]  ;;  %v4819_v63 = vld [vmem:[#allocation11] sm:$0x3] }
 0x28b   :  { %v4217_v52 = vpop.f32.mrf.mxu3  ;;  %4799 = vmatpush.bf16.msrb.mxu3 %v7310_v51  ;;  %v7974_v51 = vld [vmem:[%s11646_s9 + $0x78] sm:$0xff]  ;;  %4968 = vmatpush.bf16.msra.mxu0 %v7965_v50 }
 0x28c   :  { %v4193_v59 = vpop.f32.mrf.mxu1  ;;  %v4218_v47 = vadd.f32 %v4217_v52, %v4205_v0  ;;  %4980 = vmatpush.bf16.msra.mxu1 %v7974_v51  ;;  %v7964_v52 = vld [vmem:[%s11646_s9 + $0x28] sm:$0xff] }
 0x28d   :  { %v7963_v59 = vld [vmem:[%s11646_s9 + $0x20] sm:$0xff] }
 0x28f   :  { %4800 = vmatpush.bf16.msrb.mxu3 %v7302_v10  ;;  %4969 = vmatpush.bf16.msra.mxu0 %v7964_v52 }
 0x291   :  { %v4206_v55 = vpop.f32.mrf.mxu2 }
 0x292   :  { %v7960_v55 = vld [vmem:[%s11646_s9 + $0x8] sm:$0xff] }
 0x293   :  { %v4219_v56 = vpop.f32.mrf.mxu3  ;;  %4801 = vmatpush.bf16.msrb.mxu3 %v7294_v49  ;;  %4970 = vmatpush.bf16.msra.mxu0 %v7963_v59  ;;  %v7973_v49 = vld [vmem:[%s11646_s9 + $0x70] sm:$0xff] }
 0x294   :  { %4981 = vmatpush.bf16.msra.mxu1 %v7973_v49  ;;  %v7972_v56 = vld [vmem:[%s11646_s9 + $0x68] sm:$0xff] }
 0x297   :  { %4802 = vmatpush.bf16.msrb.mxu3 %v7286_v60  ;;  %4971 = vmatpush.bf16.msra.mxu0 %v7962_v8  ;;  %v7970_v60 = vld [vmem:[%s11646_s9 + $0x58] sm:$0xff]  ;;  %s8201_s9 = smov [#allocation14]  }
 0x298   :  { %4982 = vmatpush.bf16.msra.mxu1 %v7972_v56  ;;  %s5000_s28 = sshll.u32 %s8201_s9, 4  ;;  %s5001_s28 = int_to_ptr.vmem [resolvable:$true] %s5000_s28 }
 0x29b   :  { %4803 = vmatpush.bf16.msrb.mxu3 %v7278_v61  ;;  %4972 = vmatpush.bf16.msra.mxu0 %v7961_v9  ;;  %v4811_v61 = vld [vmem:[#allocation10] sm:$0x3] }
 0x29c   :  { %4983 = vmatpush.bf16.msra.mxu1 %v7971_v58  ;;  %v4813_v31 = vperm.slane %v4811_v61, 0 }
 0x29f   :  { %4804 = vmatpush.bf16.msrb.mxu3 %v7270_v3  ;;  %4973 = vmatpush.bf16.msra.mxu0 %v7960_v55 }
 0x2a0   :  { %4984 = vmatpush.bf16.msra.mxu1 %v7970_v60 }
 0x2a2   :  { %v4230_v7 = vpop.f32.mrf.mxu0 }
 0x2a3   :  { %v4231_v2 = vadd.f32 %v4230_v7, %v4218_v47  ;;  %4805 = vmatpush.bf16.msrb.mxu3 %v7262_v17  ;;  %4974 = vmatpush.bf16.msra.mxu0 %v7959_v57  ;;  %v4821_v47 = vperm.slane %v4819_v63, 0 }
 0x2a4   :  { %v4243_v15 = vpop.f32.mrf.mxu1  ;;  %4985 = vmatpush.bf16.msra.mxu1 %v7969_v33 }
 0x2a5   :  { %v4244_v1 = vadd.f32 %v4243_v15, %v4231_v2 }
 0x2a8   :  { %4986 = vmatpush.bf16.msra.mxu1 %v7968_v14 }
 0x2a9   :  { %v4256_v18 = vpop.f32.mrf.mxu2 }
 0x2aa   :  { %v4257_v16 = vadd.f32 %v4256_v18, %v4244_v1  ;;  %v4232_v11 = vpop.f32.mrf.mxu0  ;;  %v4814_v18 = vperm.slane %v4811_v61, 1 }
 0x2ab   :  { %v4269_v29 = vpop.f32.mrf.mxu3 }
 0x2ac   :  { %v4245_v20 = vpop.f32.mrf.mxu1  ;;  %v4270_v21 = vadd.f32 %v4269_v29, %v4257_v16  ;;  %4987 = vmatpush.bf16.msra.mxu1 %v7967_v6 }
 0x2ae   :  { %v4286_v25 = vmul.f32 %v4278_v5, %v4270_v21  ;;  %v4822_v5 = vperm.slane %v4819_v63, 1 }
 0x2b0   :  { %v4300_v26 = vadd.f32 %v4292_v23, %v4286_v25 }
 0x2b1   :  { %v4258_v27 = vpop.f32.mrf.mxu2 }
 0x2b2   :  { %vm4304_vm4 = vcmp.gt.f32.partialorder %v4300_v26, 0.0  ;;  %v4308_v30 = vmul.f32 0.2, %v4300_v26 }
 0x2b3   :  { %v4271_v32 = vpop.f32.mrf.mxu3 }
 0x2b4   :  { %v4312_v24 = vsel %vm4304_vm4, %v4300_v26, %v4308_v30  ;;  %v7985_v32 = vld [vmem:[#allocation13] ss:$0 sm:$0xff] }
 0x2b5   :  { %v4316_v34 = vpack.c.bf16 %v4312_v24, %v4312_v24 }
 0x2b7   :  { %4754 = vmatmul.bf16.vlgmr.msra.gmra.mxu3 %v4316_v34 }
 0x2c2   :  { %v4716_v28 = vpop.f32.mrf.mxu0 }
 0x2c3   :  { %v4717_v43 = vadd.f32 %v4716_v28, %v4383_v36 }
 0x2c4   :  { %v4729_v37 = vpop.f32.mrf.mxu1 }
 0x2c5   :  { %v4730_v4 = vadd.f32 %v4729_v37, %v4717_v43 }
 0x2c7   :  { %4806 = vmatmul.bf16.vlgmr.msrb.gmra.mxu3 %v4316_v34 }
 0x2ca   :  { %v4718_v38 = vpop.f32.mrf.mxu0 }
 0x2cc   :  { %v4731_v39 = vpop.f32.mrf.mxu1 }
 0x2e2   :  { %v4768_v19 = vpop.f32.mrf.mxu0 }
 0x2e3   :  { %v4769_v40 = vadd.f32 %v4768_v19, %v4384_v48 }
 0x2e4   :  { %v4781_v41 = vpop.f32.mrf.mxu1 }
 0x2e5   :  { %v4782_v22 = vadd.f32 %v4781_v41, %v4769_v40 }
 0x2ea   :  { %v4770_v44 = vpop.f32.mrf.mxu0 }
 0x2ec   :  { %v4783_v45 = vpop.f32.mrf.mxu1 }
 0x2fa   :  { %v4742_v54 = vpop.f32.mrf.mxu2 }
 0x2fb   :  { %v4743_v0 = vadd.f32 %v4742_v54, %v4730_v4 }
 0x302   :  { %v4744_v12 = vpop.f32.mrf.mxu2 }
 0x30a   :  { %v4794_v10 = vpop.f32.mrf.mxu2 }
 0x30b   :  { %v4795_v1 = vadd.f32 %v4794_v10, %v4782_v22 }
 0x312   :  { %v4796_v53 = vpop.f32.mrf.mxu2 }
 0x33a   :  { %v4755_v42 = vpop.f32.mrf.mxu3 }
 0x33b   :  { %v4756_v3 = vadd.f32 %v4755_v42, %v4743_v0 }
 0x33d   :  { %v4817_v7 = vmul.f32 %v4813_v31, %v4756_v3 }
 0x33f   :  { %v4825_v62 = vadd.f32 %v4821_v47, %v4817_v7 }
 0x341   :  { %vm4827_vm5 = vcmp.gt.f32.partialorder %v4825_v62, 0.0  ;;  %v4829_v13 = vmul.f32 0.2, %v4825_v62 }
 0x342   :  { %v4757_v15 = vpop.f32.mrf.mxu3 }
 0x343   :  { %v4831_v17 = vsel %vm4827_vm5, %v4825_v62, %v4829_v13 }
 0x344   :  { %v4833_v2 = vpack.c.bf16 %v4831_v17, %v4831_v17 }
 0x346   :  { %4975 = vmatmul.bf16.vlgmr.msra.gmra.mxu0 %v4833_v2 }
 0x34a   :  { %v4807_v16 = vpop.f32.mrf.mxu3 }
 0x34b   :  { %v4808_v29 = vadd.f32 %v4807_v16, %v4795_v1 }
 0x34d   :  { %v4818_v11 = vmul.f32 %v4814_v18, %v4808_v29 }
 0x34f   :  { %v4826_v20 = vadd.f32 %v4822_v5, %v4818_v11 }
 0x351   :  { %vm4828_vm6 = vcmp.gt.f32.partialorder %v4826_v20, 0.0  ;;  %v4830_v21 = vmul.f32 0.2, %v4826_v20 }
 0x352   :  { %v4809_v23 = vpop.f32.mrf.mxu3 }
 0x353   :  { %v4832_v25 = vsel %vm4828_vm6, %v4826_v20, %v4830_v21 }
 0x354   :  { %v4834_v26 = vpack.c.bf16 %v4832_v25, %v4832_v25 }
 0x356   :  { %4988 = vmatmul.bf16.vlgmr.msra.gmra.mxu1 %v4834_v26 }
 0x3c3   :  { %v4976_v27 = vpop.f32.mrf.mxu0 }
 0x3c4   :  { %v4977_v24 = vadd.f32 %v7985_v32, %v4976_v27 }
 0x3cb   :  { %v4978_v30 = vpop.f32.mrf.mxu0 }
 0x3d3   :  { %v4989_v34 = vpop.f32.mrf.mxu1 }
 0x3d4   :  { %v4990_v35 = vadd.f32 %v4989_v34, %v4977_v24 }
 0x3d6   :  { %4994 = vst.msk [vmem:[#allocation14] sm:$0x3] %vm4993_vm7, %v4990_v35 }
 0x3d7   :  { %5005 = dma.vmem_to_hbm [thread:$0]  %s5001_s28, 32, %s5003_s7, [#allocation4]  }
 0x3db   :  { %v4991_v36 = vpop.f32.mrf.mxu1 }
 0x3dc   :  { %8190 = dma.done.wait [#allocation4], 32  }
 0x3dd   :  { %8191 = vsyncadd [#allocation4], 4294967264 }
 0x3de   :  { %5010 = vsyncpa [#allocation3], 1 }
 0x3df   :  { %5011 = vsyncpa [#allocation6], 1 }
 0x3e0   :  { %5012 = vsyncpa [#allocation9], 1 }
 0x3e1   :  { %5013 = vsyncpa [#allocation12], 1 }
 0x3e2   :  { %5014 = vsyncpa [#allocation4], 1 }

</bundles_post_ra>
